<compile_context>
chip_gen: v7x
topology: tpu7x:2x2x1
jax: 0.10.0
libtpu: 0.0.40
codegen_flags: <defaults>
</compile_context>

<pallas_src>
import functools

import jax
import jax.numpy as jnp
from jax.experimental import pallas as pl
from jax.experimental.pallas import tpu as pltpu

EPS = 1e-5
LANE = 128


def _round_up(v, m):
    return (v + m - 1) // m * m


def _vmem_limit_bytes():
    """Chip-adaptive scoped-VMEM cap (v7x phys 64 MiB, v5e/v6e 128 MiB)."""
    try:
        info = pltpu.get_tpu_info()
        cap = None
        for name in ("vmem_capacity_bytes", "vmem_size_bytes", "vmem_bytes"):
            cap = getattr(info, name, None)
            if cap:
                break
        if not cap:
            return 32 * 1024 * 1024
        return int(min(cap * 3 // 4, 100 * 1024 * 1024))
    except Exception:
        return 32 * 1024 * 1024


# -----------------------------------------------------------------------------
# Kernels
# -----------------------------------------------------------------------------
def _conv1_kernel(x_ref, w_ref, *rest, proj):
    """3x3 conv (stride 1, halo pre-padded) + per-image BN sum/sumsq.

    Row-packed: one matmul per kernel row di with K = 3*cin_p (the 3 dj-shifted
    windows are concatenated on the channel/lane axis).  Optionally fuses the
    1x1 projection-shortcut conv reusing the centre-tap slice of the row-1 LHS.
      x_ref : (1, H+2, W+2, cin_p) bf16
      w_ref : (3, 3*cin_p, c_p)    bf16   (row di major, K index = dj*cin_p + c)
    """
    if proj:
        wsc_ref, y_ref, s_ref, q_ref, ysc_ref, ssc_ref, qsc_ref = rest
    else:
        y_ref, s_ref, q_ref = rest
    oh = x_ref.shape[1] - 2
    ow = x_ref.shape[2] - 2
    cin = x_ref.shape[3]
    p = oh * ow

    acc = None
    lhs_mid = None
    for di in range(3):
        lhs = jnp.concatenate(
            [x_ref[0, di:di + oh, 0:ow, :],
             x_ref[0, di:di + oh, 1:1 + ow, :],
             x_ref[0, di:di + oh, 2:2 + ow, :]],
            axis=-1).reshape(p, 3 * cin)
        if proj and di == 1:
            lhs_mid = lhs
        d = jnp.dot(lhs, w_ref[di], preferred_element_type=jnp.float32)
        acc = d if acc is None else acc + d

    y_ref[0] = acc.astype(jnp.bfloat16)
    # Single-pass batch-norm statistics (f32) for this image; summed across the
    # (parallel) grid in the wrapper.
    s_ref[0] = jnp.sum(acc, axis=0, keepdims=True)
    q_ref[0] = jnp.sum(acc * acc, axis=0, keepdims=True)

    if proj:
        # 1x1 shortcut conv: reuse the centre tap (di=1, dj=1) of the already
        # built row-1 LHS (lanes [cin:2*cin]) -- no extra window copy.
        sc = jnp.dot(lhs_mid[:, cin:2 * cin], wsc_ref[...],
                     preferred_element_type=jnp.float32)
        ysc_ref[0] = sc.astype(jnp.bfloat16)
        ssc_ref[0] = jnp.sum(sc, axis=0, keepdims=True)
        qsc_ref[0] = jnp.sum(sc * sc, axis=0, keepdims=True)


def _conv2_kernel(y1_ref, scale_ref, shift_ref, w_ref,
                  y2_ref, s_ref, q_ref, pad_ref):
    """Fused bn1+ReLU prologue (bf16 padded scratch) + row-packed 3x3 conv +
    per-image BN sum/sumsq for bn2.
      y1_ref : (1, oh*ow, c_p) bf16
      w_ref  : (3, 3*c_p, c_p) bf16
      pad_ref: (oh+2, ow+2, c_p) bf16 scratch
    """
    oh = pad_ref.shape[0] - 2
    ow = pad_ref.shape[1] - 2
    c = pad_ref.shape[2]
    p = oh * ow

    # bn1 (precomputed scale/shift) + ReLU + single f32->bf16 cast, written once
    # into the interior of the padded scratch (padding applies to the
    # *activated* tensor, as in PyTorch).
    act = jnp.maximum(y1_ref[0].astype(jnp.float32) * scale_ref[...]
                      + shift_ref[...], 0.0).astype(jnp.bfloat16)
    pad_ref[1:1 + oh, 1:1 + ow, :] = act.reshape(oh, ow, c)

    # Zero only the 1-pixel halo ring (the interior is fully overwritten each
    # grid step, and a program_id==0 guard would be unsafe under megacore
    # grid splitting).
    zrow = jnp.zeros((1, ow + 2, c), jnp.bfloat16)
    zcol = jnp.zeros((oh, 1, c), jnp.bfloat16)
    pad_ref[0:1, :, :] = zrow
    pad_ref[oh + 1:oh + 2, :, :] = zrow
    pad_ref[1:1 + oh, 0:1, :] = zcol
    pad_ref[1:1 + oh, ow + 1:ow + 2, :] = zcol

    acc = None
    for di in range(3):
        lhs = jnp.concatenate(
            [pad_ref[di:di + oh, 0:ow, :],
             pad_ref[di:di + oh, 1:1 + ow, :],
             pad_ref[di:di + oh, 2:2 + ow, :]],
            axis=-1).reshape(p, 3 * c)
        d = jnp.dot(lhs, w_ref[di], preferred_element_type=jnp.float32)
        acc = d if acc is None else acc + d

    y2_ref[0] = acc.astype(jnp.bfloat16)
    s_ref[0] = jnp.sum(acc, axis=0, keepdims=True)
    q_ref[0] = jnp.sum(acc * acc, axis=0, keepdims=True)


def _residual_kernel(y2_ref, s2_ref, b2_ref, *rest, proj):
    """out = relu(bn2(y2) + shortcut); shortcut = bn_sc(ysc) or identity x."""
    if proj:
        ysc_ref, ssc_ref, bsc_ref, o_ref = rest
        shortcut = ysc_ref[0].astype(jnp.float32) * ssc_ref[...] + bsc_ref[...]
    else:
        x_ref, o_ref = rest                       # (1, H+2, W+2, c_p) bf16
        oh = x_ref.shape[1] - 2
        ow = x_ref.shape[2] - 2
        c = x_ref.shape[3]
        shortcut = x_ref[0, 1:1 + oh, 1:1 + ow, :].reshape(oh * ow, c)
        shortcut = shortcut.astype(jnp.float32)
    out = y2_ref[0].astype(jnp.float32) * s2_ref[...] + b2_ref[...] + shortcut
    o_ref[0] = jnp.maximum(out, 0.0)


# -----------------------------------------------------------------------------
# Wrapper (layout glue + tiny per-channel BN math in plain JAX)
# -----------------------------------------------------------------------------
def _row_weights(w_oihw, cin_pad, cout_pad):
    """(Cout, Cin, 3, 3) -> (3, 3*cin_pad, cout_pad) bf16, zero-padded.

    Output K index = dj*cin_pad + c_in, matching the in-kernel channel concat.
    """
    wt = jnp.transpose(w_oihw, (2, 3, 1, 0))          # (3, 3, cin, cout)
    cin, cout = wt.shape[2], wt.shape[3]
    wt = jnp.pad(wt, ((0, 0), (0, 0),
                      (0, cin_pad - cin), (0, cout_pad - cout)))
    return wt.reshape(3, 3 * cin_pad, cout_pad).astype(jnp.bfloat16)


def _bn_affine(ssum, ssq, gamma, beta, count, c_pad):
    """Training-mode BN per-channel scale/shift from summed sum / sumsq."""
    s = jnp.sum(ssum, axis=(0, 1))
    q = jnp.sum(ssq, axis=(0, 1))
    mean = s / count
    var = jnp.maximum(q / count - mean * mean, 0.0)    # biased variance
    g = jnp.pad(gamma, (0, c_pad - gamma.shape[0]))
    b = jnp.pad(beta, (0, c_pad - beta.shape[0]))
    scale = g * jax.lax.rsqrt(var + EPS)
    shift = b - mean * scale
    return scale.reshape(1, c_pad), shift.reshape(1, c_pad)


@jax.jit
def basic_block_forward(x_nchw, params):
    w1 = params["conv1"]
    planes, in_planes = w1.shape[0], w1.shape[1]
    proj = "conv_sc" in params
    n, _, h, w = x_nchw.shape
    oh, ow = h, w                                      # stride = 1
    p = oh * ow
    cin_p = _round_up(in_planes, LANE)
    c_p = _round_up(planes, LANE)
    count = float(n * p)

    # NCHW -> NHWC bf16, channel pad to a lane multiple + 1px spatial halo,
    # done in one fused pass.  TODO(synk): in a full network keep activations
    # in this padded-NHWC bf16 layout between blocks to avoid re-layout.
    x_halo = jnp.pad(
        jnp.transpose(x_nchw, (0, 2, 3, 1)).astype(jnp.bfloat16),
        ((0, 0), (1, 1), (1, 1), (0, cin_p - in_planes)))

    w1t = _row_weights(params["conv1"], cin_p, c_p)    # (3, 3*cin_p, c_p)
    w2t = _row_weights(params["conv2"], c_p, c_p)      # (3, 3*c_p,  c_p)

    cparams = pltpu.CompilerParams(
        dimension_semantics=("parallel",),             # megacore sharding
        vmem_limit_bytes=_vmem_limit_bytes())

    img_in = pl.BlockSpec((1, h + 2, w + 2, cin_p), lambda i: (i, 0, 0, 0))
    act3 = pl.BlockSpec((1, p, c_p), lambda i: (i, 0, 0))
    st3 = pl.BlockSpec((1, 1, c_p), lambda i: (i, 0, 0))
    full = lambda a: pl.BlockSpec(a.shape, lambda i: (0,) * a.ndim)

    y_shape = jax.ShapeDtypeStruct((n, p, c_p), jnp.bfloat16)
    sq_shape = jax.ShapeDtypeStruct((n, 1, c_p), jnp.float32)

    # ---- kernel 1: conv1 (+ fused 1x1 shortcut conv) + BN sums -------------
    inputs = [x_halo, w1t]
    in_specs = [img_in, full(w1t)]
    out_shape = [y_shape, sq_shape, sq_shape]
    out_specs = [act3, st3, st3]
    if proj:
        wsc = jnp.pad(jnp.transpose(params["conv_sc"][:, :, 0, 0], (1, 0)),
                      ((0, cin_p - in_planes), (0, c_p - planes)))
        wsc = wsc.astype(jnp.bfloat16)                  # (cin_p, c_p)
        inputs.append(wsc)
        in_specs.append(full(wsc))
        out_shape += [y_shape, sq_shape, sq_shape]
        out_specs += [act3, st3, st3]
    outs = pl.pallas_call(
        functools.partial(_conv1_kernel, proj=proj),
        grid=(n,),
        in_specs=in_specs,
        out_specs=tuple(out_specs),
        out_shape=tuple(out_shape),
        compiler_params=cparams,
    )(*inputs)
    if proj:
        y1, s1, q1, ysc, ssc, qsc = outs
    else:
        y1, s1, q1 = outs

    scale1, shift1 = _bn_affine(s1, q1, params["bn1_gamma"],
                                params["bn1_beta"], count, c_p)

    # ---- kernel 2: fused bn1+ReLU prologue + conv2 + BN sums ---------------
    y2, s2, q2 = pl.pallas_call(
        _conv2_kernel,
        grid=(n,),
        in_specs=[act3, full(scale1), full(shift1), full(w2t)],
        out_specs=(act3, st3, st3),
        out_shape=(y_shape, sq_shape, sq_shape),
        scratch_shapes=[pltpu.VMEM((oh + 2, ow + 2, c_p), jnp.bfloat16)],
        compiler_params=cparams,
    )(y1, scale1, shift1, w2t)

    scale2, shift2 = _bn_affine(s2, q2, params["bn2_gamma"],
                                params["bn2_beta"], count, c_p)

    # ---- kernel 3: bn2 + shortcut(-BN) + residual add + ReLU ---------------
    if proj:
        scale_sc, shift_sc = _bn_affine(ssc, qsc, params["bnsc_gamma"],
                                        params["bnsc_beta"], count, c_p)
        k3_inputs = [y2, scale2, shift2, ysc, scale_sc, shift_sc]
        k3_specs = [act3, full(scale2), full(shift2),
                    act3, full(scale_sc), full(shift_sc)]
    else:
        # Identity shortcut: read the interior of the already-materialized
        # bf16 halo-padded x (no second f32 copy of x in HBM).
        k3_inputs = [y2, scale2, shift2, x_halo]
        k3_specs = [act3, full(scale2), full(shift2), img_in]
    out = pl.pallas_call(
        functools.partial(_residual_kernel, proj=proj),
        grid=(n,),
        in_specs=k3_specs,
        out_specs=act3,
        out_shape=jax.ShapeDtypeStruct((n, p, c_p), jnp.float32),
        compiler_params=cparams,
    )(*k3_inputs)

    # drop channel padding, restore spatial dims, back to NCHW
    out = out.reshape(n, oh, ow, c_p)[:, :, :, :planes]
    return jnp.transpose(out, (0, 3, 1, 2))


# -----------------------------------------------------------------------------
# Parameters (PyTorch-like defaults: gamma=1, beta=0, no conv bias)
# -----------------------------------------------------------------------------
def init_basic_block_params(key, in_planes, planes, stride=1):
    if stride != 1:
        # TODO(synk): stride > 1 not implemented (needs phase-decomposed input).
        raise NotImplementedError("stride > 1 not supported in this kernel")
    ks = jax.random.split(key, 3)

    def conv_w(k, cout, cin, kh, kw):
        fan_in = cin * kh * kw
        return jax.random.normal(k, (cout, cin, kh, kw),
                                 jnp.float32) / jnp.sqrt(fan_in)

    p = {
        "conv1": conv_w(ks[0], planes, in_planes, 3, 3),
        "bn1_gamma": jnp.ones((planes,), jnp.float32),
        "bn1_beta": jnp.zeros((planes,), jnp.float32),
        "conv2": conv_w(ks[1], planes, planes, 3, 3),
        "bn2_gamma": jnp.ones((planes,), jnp.float32),
        "bn2_beta": jnp.zeros((planes,), jnp.float32),
    }
    if stride != 1 or in_planes != planes:
        p["conv_sc"] = conv_w(ks[2], planes, in_planes, 1, 1)
        p["bnsc_gamma"] = jnp.ones((planes,), jnp.float32)
        p["bnsc_beta"] = jnp.zeros((planes,), jnp.float32)
    return p


# -----------------------------------------------------------------------------
# Pure-JAX reference (bf16 conv operands, f32 accumulation & f32 BatchNorm)
# -----------------------------------------------------------------------------
def reference_forward(x_nchw, params):
    def conv(x, w, pad):
        return jax.lax.conv_general_dilated(
            x.astype(jnp.bfloat16), w.astype(jnp.bfloat16),
            window_strides=(1, 1), padding=[(pad, pad), (pad, pad)],
            dimension_numbers=("NCHW", "OIHW", "NCHW"),
            preferred_element_type=jnp.float32)

    def bn(y, g, b):
        mean = jnp.mean(y, axis=(0, 2, 3), keepdims=True)
        var = jnp.mean(jnp.square(y - mean), axis=(0, 2, 3), keepdims=True)
        yh = (y - mean) * jax.lax.rsqrt(var + EPS)
        return yh * g.reshape(1, -1, 1, 1) + b.reshape(1, -1, 1, 1)

    out = jax.nn.relu(bn(conv(x_nchw, params["conv1"], 1),
                         params["bn1_gamma"], params["bn1_beta"]))
    out = bn(conv(out, params["conv2"], 1),
             params["bn2_gamma"], params["bn2_beta"])
    if "conv_sc" in params:
        sc = bn(conv(x_nchw, params["conv_sc"], 0),
                params["bnsc_gamma"], params["bnsc_beta"])
    else:
        sc = x_nchw
    return jax.nn.relu(out + sc)


if __name__ == "__main__":
    key = jax.random.PRNGKey(0)
    pk1, pk2, xkey = jax.random.split(key, 3)

    # Kernel keeps bf16 intermediates between the three pallas_calls, so allow
    # bf16-level rounding vs the f32-intermediate reference.
    MAX_TOL, MEAN_TOL = 1e-1, 1e-2

    # Case 1: projection shortcut (in_planes != planes), stride = 1.
    in_planes, planes = 32, 64
    params = init_basic_block_params(pk1, in_planes, planes, stride=1)
    x = jax.random.normal(xkey, (2, in_planes, 16, 16), jnp.float32)
    out = basic_block_forward(x, params)
    jax.block_until_ready(out)
    assert out.shape == (2, planes, 16, 16)
    assert bool(jnp.all(jnp.isfinite(out)))
    ref = reference_forward(x, params)
    err = float(jnp.max(jnp.abs(out - ref)))
    merr = float(jnp.mean(jnp.abs(out - ref)))
    assert err < MAX_TOL and merr < MEAN_TOL, \
        f"projection-shortcut mismatch, max {err}, mean {merr}"

    # Case 2: identity shortcut (in_planes == planes), stride = 1.
    params_id = init_basic_block_params(pk2, planes, planes, stride=1)
    x2 = jax.random.normal(jax.random.PRNGKey(1), (2, planes, 16, 16),
                           jnp.float32)
    out2 = basic_block_forward(x2, params_id)
    jax.block_until_ready(out2)
    assert out2.shape == (2, planes, 16, 16)
    assert bool(jnp.all(jnp.isfinite(out2)))
    ref2 = reference_forward(x2, params_id)
    err2 = float(jnp.max(jnp.abs(out2 - ref2)))
    merr2 = float(jnp.mean(jnp.abs(out2 - ref2)))
    assert err2 < MAX_TOL and merr2 < MEAN_TOL, \
        f"identity-shortcut mismatch, max {err2}, mean {merr2}"

    print("KERNEL_OK")
</pallas_src>

<mosaic_0001>
module attributes {stable_mosaic.version = 11 : i64} {
  func.func @_conv1_kernel(%arg0: i32, %arg1: memref<1x18x18x128xbf16, #tpu.memory_space<vmem>>, %arg2: memref<3x384x128xbf16, #tpu.memory_space<vmem>>, %arg3: memref<128x128xbf16, #tpu.memory_space<vmem>>, %arg4: memref<1x256x128xbf16, #tpu.memory_space<vmem>>, %arg5: memref<1x1x128xf32, #tpu.memory_space<vmem>>, %arg6: memref<1x1x128xf32, #tpu.memory_space<vmem>>, %arg7: memref<1x256x128xbf16, #tpu.memory_space<vmem>>, %arg8: memref<1x1x128xf32, #tpu.memory_space<vmem>>, %arg9: memref<1x1x128xf32, #tpu.memory_space<vmem>>) attributes {dimension_semantics = [#tpu.dimension_semantics<parallel>], iteration_bounds = array<i64: 2>, scalar_prefetch = 0 : i64, scratch_operands = 0 : i64, tpu.core_type = #tpu.core_type<tc>, window_params = [{transform_indices = @transform_0, window_bounds = array<i64: 1, 18, 18, 128>}, {pipeline_mode = #tpu.pipeline_mode<synchronous>, transform_indices = @transform_1, window_bounds = array<i64: 3, 384, 128>}, {pipeline_mode = #tpu.pipeline_mode<synchronous>, transform_indices = @transform_2, window_bounds = array<i64: 128, 128>}, {transform_indices = @transform_3, window_bounds = array<i64: 1, 256, 128>}, {transform_indices = @transform_4, window_bounds = array<i64: 1, 1, 128>}, {transform_indices = @transform_5, window_bounds = array<i64: 1, 1, 128>}, {transform_indices = @transform_6, window_bounds = array<i64: 1, 256, 128>}, {transform_indices = @transform_7, window_bounds = array<i64: 1, 1, 128>}, {transform_indices = @transform_8, window_bounds = array<i64: 1, 1, 128>}]} {
    %c0 = arith.constant 0 : index
    %c0_0 = arith.constant 0 : index
    %c0_1 = arith.constant 0 : index
    %c0_2 = arith.constant 0 : index
    %0 = vector.load %arg1[%c0, %c0_0, %c0_1, %c0_2] : memref<1x18x18x128xbf16, #tpu.memory_space<vmem>>, vector<1x16x16x128xbf16>
    %1 = vector.shape_cast %0 : vector<1x16x16x128xbf16> to vector<16x16x128xbf16>
    %c0_3 = arith.constant 0 : index
    %c0_4 = arith.constant 0 : index
    %c1 = arith.constant 1 : index
    %c0_5 = arith.constant 0 : index
    %2 = vector.load %arg1[%c0_3, %c0_4, %c1, %c0_5] : memref<1x18x18x128xbf16, #tpu.memory_space<vmem>>, vector<1x16x16x128xbf16>
    %3 = vector.shape_cast %2 : vector<1x16x16x128xbf16> to vector<16x16x128xbf16>
    %c0_6 = arith.constant 0 : index
    %c0_7 = arith.constant 0 : index
    %c2 = arith.constant 2 : index
    %c0_8 = arith.constant 0 : index
    %4 = vector.load %arg1[%c0_6, %c0_7, %c2, %c0_8] : memref<1x18x18x128xbf16, #tpu.memory_space<vmem>>, vector<1x16x16x128xbf16>
    %5 = vector.shape_cast %4 : vector<1x16x16x128xbf16> to vector<16x16x128xbf16>
    %6 = tpu.concatenate %1, %3, %5 in 2 : vector<16x16x128xbf16>, vector<16x16x128xbf16>, vector<16x16x128xbf16> -> vector<16x16x384xbf16>
    %7 = vector.shape_cast %6 : vector<16x16x384xbf16> to vector<256x384xbf16>
    %c0_9 = arith.constant 0 : index
    %c0_10 = arith.constant 0 : index
    %c0_11 = arith.constant 0 : index
    %8 = vector.load %arg2[%c0_9, %c0_10, %c0_11] : memref<3x384x128xbf16, #tpu.memory_space<vmem>>, vector<1x384x128xbf16>
    %9 = vector.shape_cast %8 : vector<1x384x128xbf16> to vector<384x128xbf16>
    %cst = arith.constant dense<0.000000e+00> : vector<256x128xf32>
    %10 = tpu.matmul %7, %9, %cst {dimension_numbers = #tpu.dot_dimension_numbers<[1], [0], [0], [1], [0, 0, 1, 1], [], []>} : vector<256x384xbf16>, vector<384x128xbf16>, vector<256x128xf32> -> vector<256x128xf32>
    %c0_12 = arith.constant 0 : index
    %c1_13 = arith.constant 1 : index
    %c0_14 = arith.constant 0 : index
    %c0_15 = arith.constant 0 : index
    %11 = vector.load %arg1[%c0_12, %c1_13, %c0_14, %c0_15] : memref<1x18x18x128xbf16, #tpu.memory_space<vmem>>, vector<1x16x16x128xbf16>
    %12 = vector.shape_cast %11 : vector<1x16x16x128xbf16> to vector<16x16x128xbf16>
    %c0_16 = arith.constant 0 : index
    %c1_17 = arith.constant 1 : index
    %c1_18 = arith.constant 1 : index
    %c0_19 = arith.constant 0 : index
    %13 = vector.load %arg1[%c0_16, %c1_17, %c1_18, %c0_19] : memref<1x18x18x128xbf16, #tpu.memory_space<vmem>>, vector<1x16x16x128xbf16>
    %14 = vector.shape_cast %13 : vector<1x16x16x128xbf16> to vector<16x16x128xbf16>
    %c0_20 = arith.constant 0 : index
    %c1_21 = arith.constant 1 : index
    %c2_22 = arith.constant 2 : index
    %c0_23 = arith.constant 0 : index
    %15 = vector.load %arg1[%c0_20, %c1_21, %c2_22, %c0_23] : memref<1x18x18x128xbf16, #tpu.memory_space<vmem>>, vector<1x16x16x128xbf16>
    %16 = vector.shape_cast %15 : vector<1x16x16x128xbf16> to vector<16x16x128xbf16>
    %17 = tpu.concatenate %12, %14, %16 in 2 : vector<16x16x128xbf16>, vector<16x16x128xbf16>, vector<16x16x128xbf16> -> vector<16x16x384xbf16>
    %18 = vector.shape_cast %17 : vector<16x16x384xbf16> to vector<256x384xbf16>
    %c1_24 = arith.constant 1 : index
    %c0_25 = arith.constant 0 : index
    %c0_26 = arith.constant 0 : index
    %19 = vector.load %arg2[%c1_24, %c0_25, %c0_26] : memref<3x384x128xbf16, #tpu.memory_space<vmem>>, vector<1x384x128xbf16>
    %20 = vector.shape_cast %19 : vector<1x384x128xbf16> to vector<384x128xbf16>
    %cst_27 = arith.constant dense<0.000000e+00> : vector<256x128xf32>
    %21 = tpu.matmul %18, %20, %cst_27 {dimension_numbers = #tpu.dot_dimension_numbers<[1], [0], [0], [1], [0, 0, 1, 1], [], []>} : vector<256x384xbf16>, vector<384x128xbf16>, vector<256x128xf32> -> vector<256x128xf32>
    %22 = arith.addf %10, %21 : vector<256x128xf32>
    %c0_28 = arith.constant 0 : index
    %c2_29 = arith.constant 2 : index
    %c0_30 = arith.constant 0 : index
    %c0_31 = arith.constant 0 : index
    %23 = vector.load %arg1[%c0_28, %c2_29, %c0_30, %c0_31] : memref<1x18x18x128xbf16, #tpu.memory_space<vmem>>, vector<1x16x16x128xbf16>
    %24 = vector.shape_cast %23 : vector<1x16x16x128xbf16> to vector<16x16x128xbf16>
    %c0_32 = arith.constant 0 : index
    %c2_33 = arith.constant 2 : index
    %c1_34 = arith.constant 1 : index
    %c0_35 = arith.constant 0 : index
    %25 = vector.load %arg1[%c0_32, %c2_33, %c1_34, %c0_35] : memref<1x18x18x128xbf16, #tpu.memory_space<vmem>>, vector<1x16x16x128xbf16>
    %26 = vector.shape_cast %25 : vector<1x16x16x128xbf16> to vector<16x16x128xbf16>
    %c0_36 = arith.constant 0 : index
    %c2_37 = arith.constant 2 : index
    %c2_38 = arith.constant 2 : index
    %c0_39 = arith.constant 0 : index
    %27 = vector.load %arg1[%c0_36, %c2_37, %c2_38, %c0_39] : memref<1x18x18x128xbf16, #tpu.memory_space<vmem>>, vector<1x16x16x128xbf16>
    %28 = vector.shape_cast %27 : vector<1x16x16x128xbf16> to vector<16x16x128xbf16>
    %29 = tpu.concatenate %24, %26, %28 in 2 : vector<16x16x128xbf16>, vector<16x16x128xbf16>, vector<16x16x128xbf16> -> vector<16x16x384xbf16>
    %30 = vector.shape_cast %29 : vector<16x16x384xbf16> to vector<256x384xbf16>
    %c2_40 = arith.constant 2 : index
    %c0_41 = arith.constant 0 : index
    %c0_42 = arith.constant 0 : index
    %31 = vector.load %arg2[%c2_40, %c0_41, %c0_42] : memref<3x384x128xbf16, #tpu.memory_space<vmem>>, vector<1x384x128xbf16>
    %32 = vector.shape_cast %31 : vector<1x384x128xbf16> to vector<384x128xbf16>
    %cst_43 = arith.constant dense<0.000000e+00> : vector<256x128xf32>
    %33 = tpu.matmul %30, %32, %cst_43 {dimension_numbers = #tpu.dot_dimension_numbers<[1], [0], [0], [1], [0, 0, 1, 1], [], []>} : vector<256x384xbf16>, vector<384x128xbf16>, vector<256x128xf32> -> vector<256x128xf32>
    %34 = arith.addf %22, %33 : vector<256x128xf32>
    %35 = arith.truncf %34 : vector<256x128xf32> to vector<256x128xbf16>
    %c0_44 = arith.constant 0 : index
    %c0_45 = arith.constant 0 : index
    %c0_46 = arith.constant 0 : index
    %36 = vector.load %arg4[%c0_44, %c0_45, %c0_46] : memref<1x256x128xbf16, #tpu.memory_space<vmem>>, vector<1x256x128xbf16>
    %37 = vector.shape_cast %36 : vector<1x256x128xbf16> to vector<256x128xbf16>
    %38 = vector.shape_cast %35 : vector<256x128xbf16> to vector<1x256x128xbf16>
    tpu.vector_store %arg4[%c0_44, %c0_45, %c0_46], %38 {strides = array<i32>} : memref<1x256x128xbf16, #tpu.memory_space<vmem>>, vector<1x256x128xbf16>,
    %cst_47 = arith.constant dense<0.000000e+00> : vector<128xf32>
    %39 = vector.multi_reduction <add>, %34, %cst_47 [0] : vector<256x128xf32> to vector<128xf32>
    %40 = vector.shape_cast %39 : vector<128xf32> to vector<1x128xf32>
    %c0_48 = arith.constant 0 : index
    %c0_49 = arith.constant 0 : index
    %c0_50 = arith.constant 0 : index
    %41 = vector.load %arg5[%c0_48, %c0_49, %c0_50] : memref<1x1x128xf32, #tpu.memory_space<vmem>>, vector<1x1x128xf32>
    %42 = vector.shape_cast %41 : vector<1x1x128xf32> to vector<1x128xf32>
    %43 = vector.shape_cast %40 : vector<1x128xf32> to vector<1x1x128xf32>
    tpu.vector_store %arg5[%c0_48, %c0_49, %c0_50], %43 {strides = array<i32>} : memref<1x1x128xf32, #tpu.memory_space<vmem>>, vector<1x1x128xf32>,
    %44 = arith.mulf %34, %34 : vector<256x128xf32>
    %cst_51 = arith.constant dense<0.000000e+00> : vector<128xf32>
    %45 = vector.multi_reduction <add>, %44, %cst_51 [0] : vector<256x128xf32> to vector<128xf32>
    %46 = vector.shape_cast %45 : vector<128xf32> to vector<1x128xf32>
    %c0_52 = arith.constant 0 : index
    %c0_53 = arith.constant 0 : index
    %c0_54 = arith.constant 0 : index
    %47 = vector.load %arg6[%c0_52, %c0_53, %c0_54] : memref<1x1x128xf32, #tpu.memory_space<vmem>>, vector<1x1x128xf32>
    %48 = vector.shape_cast %47 : vector<1x1x128xf32> to vector<1x128xf32>
    %49 = vector.shape_cast %46 : vector<1x128xf32> to vector<1x1x128xf32>
    tpu.vector_store %arg6[%c0_52, %c0_53, %c0_54], %49 {strides = array<i32>} : memref<1x1x128xf32, #tpu.memory_space<vmem>>, vector<1x1x128xf32>,
    %50 = vector.extract_strided_slice %18 {offsets = [0, 128], sizes = [256, 128], strides = [1, 1]} : vector<256x384xbf16> to vector<256x128xbf16>
    %c0_55 = arith.constant 0 : index
    %c0_56 = arith.constant 0 : index
    %51 = vector.load %arg3[%c0_55, %c0_56] : memref<128x128xbf16, #tpu.memory_space<vmem>>, vector<128x128xbf16>
    %cst_57 = arith.constant dense<0.000000e+00> : vector<256x128xf32>
    %52 = tpu.matmul %50, %51, %cst_57 {dimension_numbers = #tpu.dot_dimension_numbers<[1], [0], [0], [1], [0, 0, 1, 1], [], []>} : vector<256x128xbf16>, vector<128x128xbf16>, vector<256x128xf32> -> vector<256x128xf32>
    %53 = arith.truncf %52 : vector<256x128xf32> to vector<256x128xbf16>
    %c0_58 = arith.constant 0 : index
    %c0_59 = arith.constant 0 : index
    %c0_60 = arith.constant 0 : index
    %54 = vector.load %arg7[%c0_58, %c0_59, %c0_60] : memref<1x256x128xbf16, #tpu.memory_space<vmem>>, vector<1x256x128xbf16>
    %55 = vector.shape_cast %54 : vector<1x256x128xbf16> to vector<256x128xbf16>
    %56 = vector.shape_cast %53 : vector<256x128xbf16> to vector<1x256x128xbf16>
    tpu.vector_store %arg7[%c0_58, %c0_59, %c0_60], %56 {strides = array<i32>} : memref<1x256x128xbf16, #tpu.memory_space<vmem>>, vector<1x256x128xbf16>,
    %cst_61 = arith.constant dense<0.000000e+00> : vector<128xf32>
    %57 = vector.multi_reduction <add>, %52, %cst_61 [0] : vector<256x128xf32> to vector<128xf32>
    %58 = vector.shape_cast %57 : vector<128xf32> to vector<1x128xf32>
    %c0_62 = arith.constant 0 : index
    %c0_63 = arith.constant 0 : index
    %c0_64 = arith.constant 0 : index
    %59 = vector.load %arg8[%c0_62, %c0_63, %c0_64] : memref<1x1x128xf32, #tpu.memory_space<vmem>>, vector<1x1x128xf32>
    %60 = vector.shape_cast %59 : vector<1x1x128xf32> to vector<1x128xf32>
    %61 = vector.shape_cast %58 : vector<1x128xf32> to vector<1x1x128xf32>
    tpu.vector_store %arg8[%c0_62, %c0_63, %c0_64], %61 {strides = array<i32>} : memref<1x1x128xf32, #tpu.memory_space<vmem>>, vector<1x1x128xf32>,
    %62 = arith.mulf %52, %52 : vector<256x128xf32>
    %cst_65 = arith.constant dense<0.000000e+00> : vector<128xf32>
    %63 = vector.multi_reduction <add>, %62, %cst_65 [0] : vector<256x128xf32> to vector<128xf32>
    %64 = vector.shape_cast %63 : vector<128xf32> to vector<1x128xf32>
    %c0_66 = arith.constant 0 : index
    %c0_67 = arith.constant 0 : index
    %c0_68 = arith.constant 0 : index
    %65 = vector.load %arg9[%c0_66, %c0_67, %c0_68] : memref<1x1x128xf32, #tpu.memory_space<vmem>>, vector<1x1x128xf32>
    %66 = vector.shape_cast %65 : vector<1x1x128xf32> to vector<1x128xf32>
    %67 = vector.shape_cast %64 : vector<1x128xf32> to vector<1x1x128xf32>
    tpu.vector_store %arg9[%c0_66, %c0_67, %c0_68], %67 {strides = array<i32>} : memref<1x1x128xf32, #tpu.memory_space<vmem>>, vector<1x1x128xf32>,
    return
  }
  func.func @transform_0(%arg0: i32) -> (i32, i32, i32, i32) {
    %c0_i32 = arith.constant 0 : i32
    %c0_i32_0 = arith.constant 0 : i32
    %c0_i32_1 = arith.constant 0 : i32
    %c0_i32_2 = arith.constant 0 : i32
    return %arg0, %c0_i32, %c0_i32_0, %c0_i32_1 : i32, i32, i32, i32
  }
  func.func @transform_1(%arg0: i32) -> (i32, i32, i32) {
    %c0_i32 = arith.constant 0 : i32
    %c0_i32_0 = arith.constant 0 : i32
    %c0_i32_1 = arith.constant 0 : i32
    %c0_i32_2 = arith.constant 0 : i32
    return %c0_i32, %c0_i32_0, %c0_i32_1 : i32, i32, i32
  }
  func.func @transform_2(%arg0: i32) -> (i32, i32) {
    %c0_i32 = arith.constant 0 : i32
    %c0_i32_0 = arith.constant 0 : i32
    %c0_i32_1 = arith.constant 0 : i32
    return %c0_i32, %c0_i32_0 : i32, i32
  }
  func.func @transform_3(%arg0: i32) -> (i32, i32, i32) {
    %c0_i32 = arith.constant 0 : i32
    %c0_i32_0 = arith.constant 0 : i32
    %c0_i32_1 = arith.constant 0 : i32
    return %arg0, %c0_i32, %c0_i32_0 : i32, i32, i32
  }
  func.func @transform_4(%arg0: i32) -> (i32, i32, i32) {
    %c0_i32 = arith.constant 0 : i32
    %c0_i32_0 = arith.constant 0 : i32
    %c0_i32_1 = arith.constant 0 : i32
    return %arg0, %c0_i32, %c0_i32_0 : i32, i32, i32
  }
  func.func @transform_5(%arg0: i32) -> (i32, i32, i32) {
    %c0_i32 = arith.constant 0 : i32
    %c0_i32_0 = arith.constant 0 : i32
    %c0_i32_1 = arith.constant 0 : i32
    return %arg0, %c0_i32, %c0_i32_0 : i32, i32, i32
  }
  func.func @transform_6(%arg0: i32) -> (i32, i32, i32) {
    %c0_i32 = arith.constant 0 : i32
    %c0_i32_0 = arith.constant 0 : i32
    %c0_i32_1 = arith.constant 0 : i32
    return %arg0, %c0_i32, %c0_i32_0 : i32, i32, i32
  }
  func.func @transform_7(%arg0: i32) -> (i32, i32, i32) {
    %c0_i32 = arith.constant 0 : i32
    %c0_i32_0 = arith.constant 0 : i32
    %c0_i32_1 = arith.constant 0 : i32
    return %arg0, %c0_i32, %c0_i32_0 : i32, i32, i32
  }
  func.func @transform_8(%arg0: i32) -> (i32, i32, i32) {
    %c0_i32 = arith.constant 0 : i32
    %c0_i32_0 = arith.constant 0 : i32
    %c0_i32_1 = arith.constant 0 : i32
    return %arg0, %c0_i32, %c0_i32_0 : i32, i32, i32
  }
}

module attributes {stable_mosaic.version = 11 : i64} {
  func.func @_conv2_kernel(%arg0: i32, %arg1: memref<1x256x128xbf16, #tpu.memory_space<vmem>>, %arg2: memref<1x128xf32, #tpu.memory_space<vmem>>, %arg3: memref<1x128xf32, #tpu.memory_space<vmem>>, %arg4: memref<3x384x128xbf16, #tpu.memory_space<vmem>>, %arg5: memref<1x256x128xbf16, #tpu.memory_space<vmem>>, %arg6: memref<1x1x128xf32, #tpu.memory_space<vmem>>, %arg7: memref<1x1x128xf32, #tpu.memory_space<vmem>>, %arg8: memref<18x18x128xbf16, #tpu.memory_space<vmem>>) attributes {dimension_semantics = [#tpu.dimension_semantics<parallel>], iteration_bounds = array<i64: 2>, scalar_prefetch = 0 : i64, scratch_operands = 1 : i64, tpu.core_type = #tpu.core_type<tc>, window_params = [{transform_indices = @transform_0, window_bounds = array<i64: 1, 256, 128>}, {pipeline_mode = #tpu.pipeline_mode<synchronous>, transform_indices = @transform_1, window_bounds = array<i64: 1, 128>}, {pipeline_mode = #tpu.pipeline_mode<synchronous>, transform_indices = @transform_2, window_bounds = array<i64: 1, 128>}, {pipeline_mode = #tpu.pipeline_mode<synchronous>, transform_indices = @transform_3, window_bounds = array<i64: 3, 384, 128>}, {transform_indices = @transform_4, window_bounds = array<i64: 1, 256, 128>}, {transform_indices = @transform_5, window_bounds = array<i64: 1, 1, 128>}, {transform_indices = @transform_6, window_bounds = array<i64: 1, 1, 128>}]} {
    %c0 = arith.constant 0 : index
    %c0_0 = arith.constant 0 : index
    %c0_1 = arith.constant 0 : index
    %0 = vector.load %arg1[%c0, %c0_0, %c0_1] : memref<1x256x128xbf16, #tpu.memory_space<vmem>>, vector<1x256x128xbf16>
    %1 = vector.shape_cast %0 : vector<1x256x128xbf16> to vector<256x128xbf16>
    %2 = arith.extf %1 : vector<256x128xbf16> to vector<256x128xf32>
    %c0_2 = arith.constant 0 : index
    %c0_3 = arith.constant 0 : index
    %3 = vector.load %arg2[%c0_2, %c0_3] : memref<1x128xf32, #tpu.memory_space<vmem>>, vector<1x128xf32>
    %4 = vector.broadcast %3 : vector<1x128xf32> to vector<256x128xf32>
    %5 = arith.mulf %2, %4 : vector<256x128xf32>
    %c0_4 = arith.constant 0 : index
    %c0_5 = arith.constant 0 : index
    %6 = vector.load %arg3[%c0_4, %c0_5] : memref<1x128xf32, #tpu.memory_space<vmem>>, vector<1x128xf32>
    %7 = vector.broadcast %6 : vector<1x128xf32> to vector<256x128xf32>
    %8 = arith.addf %5, %7 : vector<256x128xf32>
    %cst = arith.constant 0.000000e+00 : f32
    %9 = vector.broadcast %cst : f32 to vector<256x128xf32>
    %10 = arith.maximumf %8, %9 : vector<256x128xf32>
    %11 = arith.truncf %10 : vector<256x128xf32> to vector<256x128xbf16>
    %12 = vector.shape_cast %11 : vector<256x128xbf16> to vector<16x16x128xbf16>
    %c1 = arith.constant 1 : index
    %c1_6 = arith.constant 1 : index
    %c0_7 = arith.constant 0 : index
    %13 = vector.load %arg8[%c1, %c1_6, %c0_7] : memref<18x18x128xbf16, #tpu.memory_space<vmem>>, vector<16x16x128xbf16>
    tpu.vector_store %arg8[%c1, %c1_6, %c0_7], %12 {strides = array<i32>} : memref<18x18x128xbf16, #tpu.memory_space<vmem>>, vector<16x16x128xbf16>,
    %cst_8 = arith.constant 0.000000e+00 : bf16
    %14 = vector.broadcast %cst_8 : bf16 to vector<1x18x128xbf16>
    %cst_9 = arith.constant 0.000000e+00 : bf16
    %15 = vector.broadcast %cst_9 : bf16 to vector<16x1x128xbf16>
    %c0_10 = arith.constant 0 : index
    %c0_11 = arith.constant 0 : index
    %c0_12 = arith.constant 0 : index
    %16 = vector.load %arg8[%c0_10, %c0_11, %c0_12] : memref<18x18x128xbf16, #tpu.memory_space<vmem>>, vector<1x18x128xbf16>
    tpu.vector_store %arg8[%c0_10, %c0_11, %c0_12], %14 {strides = array<i32>} : memref<18x18x128xbf16, #tpu.memory_space<vmem>>, vector<1x18x128xbf16>,
    %c17 = arith.constant 17 : index
    %c0_13 = arith.constant 0 : index
    %c0_14 = arith.constant 0 : index
    %17 = vector.load %arg8[%c17, %c0_13, %c0_14] : memref<18x18x128xbf16, #tpu.memory_space<vmem>>, vector<1x18x128xbf16>
    tpu.vector_store %arg8[%c17, %c0_13, %c0_14], %14 {strides = array<i32>} : memref<18x18x128xbf16, #tpu.memory_space<vmem>>, vector<1x18x128xbf16>,
    %c1_15 = arith.constant 1 : index
    %c0_16 = arith.constant 0 : index
    %c0_17 = arith.constant 0 : index
    %18 = vector.load %arg8[%c1_15, %c0_16, %c0_17] : memref<18x18x128xbf16, #tpu.memory_space<vmem>>, vector<16x1x128xbf16>
    tpu.vector_store %arg8[%c1_15, %c0_16, %c0_17], %15 {strides = array<i32>} : memref<18x18x128xbf16, #tpu.memory_space<vmem>>, vector<16x1x128xbf16>,
    %c1_18 = arith.constant 1 : index
    %c17_19 = arith.constant 17 : index
    %c0_20 = arith.constant 0 : index
    %19 = vector.load %arg8[%c1_18, %c17_19, %c0_20] : memref<18x18x128xbf16, #tpu.memory_space<vmem>>, vector<16x1x128xbf16>
    tpu.vector_store %arg8[%c1_18, %c17_19, %c0_20], %15 {strides = array<i32>} : memref<18x18x128xbf16, #tpu.memory_space<vmem>>, vector<16x1x128xbf16>,
    %c0_21 = arith.constant 0 : index
    %c0_22 = arith.constant 0 : index
    %c0_23 = arith.constant 0 : index
    %20 = vector.load %arg8[%c0_21, %c0_22, %c0_23] : memref<18x18x128xbf16, #tpu.memory_space<vmem>>, vector<16x16x128xbf16>
    %c0_24 = arith.constant 0 : index
    %c1_25 = arith.constant 1 : index
    %c0_26 = arith.constant 0 : index
    %21 = vector.load %arg8[%c0_24, %c1_25, %c0_26] : memref<18x18x128xbf16, #tpu.memory_space<vmem>>, vector<16x16x128xbf16>
    %c0_27 = arith.constant 0 : index
    %c2 = arith.constant 2 : index
    %c0_28 = arith.constant 0 : index
    %22 = vector.load %arg8[%c0_27, %c2, %c0_28] : memref<18x18x128xbf16, #tpu.memory_space<vmem>>, vector<16x16x128xbf16>
    %23 = tpu.concatenate %20, %21, %22 in 2 : vector<16x16x128xbf16>, vector<16x16x128xbf16>, vector<16x16x128xbf16> -> vector<16x16x384xbf16>
    %24 = vector.shape_cast %23 : vector<16x16x384xbf16> to vector<256x384xbf16>
    %c0_29 = arith.constant 0 : index
    %c0_30 = arith.constant 0 : index
    %c0_31 = arith.constant 0 : index
    %25 = vector.load %arg4[%c0_29, %c0_30, %c0_31] : memref<3x384x128xbf16, #tpu.memory_space<vmem>>, vector<1x384x128xbf16>
    %26 = vector.shape_cast %25 : vector<1x384x128xbf16> to vector<384x128xbf16>
    %cst_32 = arith.constant dense<0.000000e+00> : vector<256x128xf32>
    %27 = tpu.matmul %24, %26, %cst_32 {dimension_numbers = #tpu.dot_dimension_numbers<[1], [0], [0], [1], [0, 0, 1, 1], [], []>} : vector<256x384xbf16>, vector<384x128xbf16>, vector<256x128xf32> -> vector<256x128xf32>
    %c1_33 = arith.constant 1 : index
    %c0_34 = arith.constant 0 : index
    %c0_35 = arith.constant 0 : index
    %28 = vector.load %arg8[%c1_33, %c0_34, %c0_35] : memref<18x18x128xbf16, #tpu.memory_space<vmem>>, vector<16x16x128xbf16>
    %c1_36 = arith.constant 1 : index
    %c1_37 = arith.constant 1 : index
    %c0_38 = arith.constant 0 : index
    %29 = vector.load %arg8[%c1_36, %c1_37, %c0_38] : memref<18x18x128xbf16, #tpu.memory_space<vmem>>, vector<16x16x128xbf16>
    %c1_39 = arith.constant 1 : index
    %c2_40 = arith.constant 2 : index
    %c0_41 = arith.constant 0 : index
    %30 = vector.load %arg8[%c1_39, %c2_40, %c0_41] : memref<18x18x128xbf16, #tpu.memory_space<vmem>>, vector<16x16x128xbf16>
    %31 = tpu.concatenate %28, %29, %30 in 2 : vector<16x16x128xbf16>, vector<16x16x128xbf16>, vector<16x16x128xbf16> -> vector<16x16x384xbf16>
    %32 = vector.shape_cast %31 : vector<16x16x384xbf16> to vector<256x384xbf16>
    %c1_42 = arith.constant 1 : index
    %c0_43 = arith.constant 0 : index
    %c0_44 = arith.constant 0 : index
    %33 = vector.load %arg4[%c1_42, %c0_43, %c0_44] : memref<3x384x128xbf16, #tpu.memory_space<vmem>>, vector<1x384x128xbf16>
    %34 = vector.shape_cast %33 : vector<1x384x128xbf16> to vector<384x128xbf16>
    %cst_45 = arith.constant dense<0.000000e+00> : vector<256x128xf32>
    %35 = tpu.matmul %32, %34, %cst_45 {dimension_numbers = #tpu.dot_dimension_numbers<[1], [0], [0], [1], [0, 0, 1, 1], [], []>} : vector<256x384xbf16>, vector<384x128xbf16>, vector<256x128xf32> -> vector<256x128xf32>
    %36 = arith.addf %27, %35 : vector<256x128xf32>
    %c2_46 = arith.constant 2 : index
    %c0_47 = arith.constant 0 : index
    %c0_48 = arith.constant 0 : index
    %37 = vector.load %arg8[%c2_46, %c0_47, %c0_48] : memref<18x18x128xbf16, #tpu.memory_space<vmem>>, vector<16x16x128xbf16>
    %c2_49 = arith.constant 2 : index
    %c1_50 = arith.constant 1 : index
    %c0_51 = arith.constant 0 : index
    %38 = vector.load %arg8[%c2_49, %c1_50, %c0_51] : memref<18x18x128xbf16, #tpu.memory_space<vmem>>, vector<16x16x128xbf16>
    %c2_52 = arith.constant 2 : index
    %c2_53 = arith.constant 2 : index
    %c0_54 = arith.constant 0 : index
    %39 = vector.load %arg8[%c2_52, %c2_53, %c0_54] : memref<18x18x128xbf16, #tpu.memory_space<vmem>>, vector<16x16x128xbf16>
    %40 = tpu.concatenate %37, %38, %39 in 2 : vector<16x16x128xbf16>, vector<16x16x128xbf16>, vector<16x16x128xbf16> -> vector<16x16x384xbf16>
    %41 = vector.shape_cast %40 : vector<16x16x384xbf16> to vector<256x384xbf16>
    %c2_55 = arith.constant 2 : index
    %c0_56 = arith.constant 0 : index
    %c0_57 = arith.constant 0 : index
    %42 = vector.load %arg4[%c2_55, %c0_56, %c0_57] : memref<3x384x128xbf16, #tpu.memory_space<vmem>>, vector<1x384x128xbf16>
    %43 = vector.shape_cast %42 : vector<1x384x128xbf16> to vector<384x128xbf16>
    %cst_58 = arith.constant dense<0.000000e+00> : vector<256x128xf32>
    %44 = tpu.matmul %41, %43, %cst_58 {dimension_numbers = #tpu.dot_dimension_numbers<[1], [0], [0], [1], [0, 0, 1, 1], [], []>} : vector<256x384xbf16>, vector<384x128xbf16>, vector<256x128xf32> -> vector<256x128xf32>
    %45 = arith.addf %36, %44 : vector<256x128xf32>
    %46 = arith.truncf %45 : vector<256x128xf32> to vector<256x128xbf16>
    %c0_59 = arith.constant 0 : index
    %c0_60 = arith.constant 0 : index
    %c0_61 = arith.constant 0 : index
    %47 = vector.load %arg5[%c0_59, %c0_60, %c0_61] : memref<1x256x128xbf16, #tpu.memory_space<vmem>>, vector<1x256x128xbf16>
    %48 = vector.shape_cast %47 : vector<1x256x128xbf16> to vector<256x128xbf16>
    %49 = vector.shape_cast %46 : vector<256x128xbf16> to vector<1x256x128xbf16>
    tpu.vector_store %arg5[%c0_59, %c0_60, %c0_61], %49 {strides = array<i32>} : memref<1x256x128xbf16, #tpu.memory_space<vmem>>, vector<1x256x128xbf16>,
    %cst_62 = arith.constant dense<0.000000e+00> : vector<128xf32>
    %50 = vector.multi_reduction <add>, %45, %cst_62 [0] : vector<256x128xf32> to vector<128xf32>
    %51 = vector.shape_cast %50 : vector<128xf32> to vector<1x128xf32>
    %c0_63 = arith.constant 0 : index
    %c0_64 = arith.constant 0 : index
    %c0_65 = arith.constant 0 : index
    %52 = vector.load %arg6[%c0_63, %c0_64, %c0_65] : memref<1x1x128xf32, #tpu.memory_space<vmem>>, vector<1x1x128xf32>
    %53 = vector.shape_cast %52 : vector<1x1x128xf32> to vector<1x128xf32>
    %54 = vector.shape_cast %51 : vector<1x128xf32> to vector<1x1x128xf32>
    tpu.vector_store %arg6[%c0_63, %c0_64, %c0_65], %54 {strides = array<i32>} : memref<1x1x128xf32, #tpu.memory_space<vmem>>, vector<1x1x128xf32>,
    %55 = arith.mulf %45, %45 : vector<256x128xf32>
    %cst_66 = arith.constant dense<0.000000e+00> : vector<128xf32>
    %56 = vector.multi_reduction <add>, %55, %cst_66 [0] : vector<256x128xf32> to vector<128xf32>
    %57 = vector.shape_cast %56 : vector<128xf32> to vector<1x128xf32>
    %c0_67 = arith.constant 0 : index
    %c0_68 = arith.constant 0 : index
    %c0_69 = arith.constant 0 : index
    %58 = vector.load %arg7[%c0_67, %c0_68, %c0_69] : memref<1x1x128xf32, #tpu.memory_space<vmem>>, vector<1x1x128xf32>
    %59 = vector.shape_cast %58 : vector<1x1x128xf32> to vector<1x128xf32>
    %60 = vector.shape_cast %57 : vector<1x128xf32> to vector<1x1x128xf32>
    tpu.vector_store %arg7[%c0_67, %c0_68, %c0_69], %60 {strides = array<i32>} : memref<1x1x128xf32, #tpu.memory_space<vmem>>, vector<1x1x128xf32>,
    return
  }
  func.func @transform_0(%arg0: i32) -> (i32, i32, i32) {
    %c0_i32 = arith.constant 0 : i32
    %c0_i32_0 = arith.constant 0 : i32
    %c0_i32_1 = arith.constant 0 : i32
    return %arg0, %c0_i32, %c0_i32_0 : i32, i32, i32
  }
  func.func @transform_1(%arg0: i32) -> (i32, i32) {
    %c0_i32 = arith.constant 0 : i32
    %c0_i32_0 = arith.constant 0 : i32
    %c0_i32_1 = arith.constant 0 : i32
    return %c0_i32, %c0_i32_0 : i32, i32
  }
  func.func @transform_2(%arg0: i32) -> (i32, i32) {
    %c0_i32 = arith.constant 0 : i32
    %c0_i32_0 = arith.constant 0 : i32
    %c0_i32_1 = arith.constant 0 : i32
    return %c0_i32, %c0_i32_0 : i32, i32
  }
  func.func @transform_3(%arg0: i32) -> (i32, i32, i32) {
    %c0_i32 = arith.constant 0 : i32
    %c0_i32_0 = arith.constant 0 : i32
    %c0_i32_1 = arith.constant 0 : i32
    %c0_i32_2 = arith.constant 0 : i32
    return %c0_i32, %c0_i32_0, %c0_i32_1 : i32, i32, i32
  }
  func.func @transform_4(%arg0: i32) -> (i32, i32, i32) {
    %c0_i32 = arith.constant 0 : i32
    %c0_i32_0 = arith.constant 0 : i32
    %c0_i32_1 = arith.constant 0 : i32
    return %arg0, %c0_i32, %c0_i32_0 : i32, i32, i32
  }
  func.func @transform_5(%arg0: i32) -> (i32, i32, i32) {
    %c0_i32 = arith.constant 0 : i32
    %c0_i32_0 = arith.constant 0 : i32
    %c0_i32_1 = arith.constant 0 : i32
    return %arg0, %c0_i32, %c0_i32_0 : i32, i32, i32
  }
  func.func @transform_6(%arg0: i32) -> (i32, i32, i32) {
    %c0_i32 = arith.constant 0 : i32
    %c0_i32_0 = arith.constant 0 : i32
    %c0_i32_1 = arith.constant 0 : i32
    return %arg0, %c0_i32, %c0_i32_0 : i32, i32, i32
  }
}

module attributes {stable_mosaic.version = 11 : i64} {
  func.func @_residual_kernel(%arg0: i32, %arg1: memref<1x256x128xbf16, #tpu.memory_space<vmem>>, %arg2: memref<1x128xf32, #tpu.memory_space<vmem>>, %arg3: memref<1x128xf32, #tpu.memory_space<vmem>>, %arg4: memref<1x256x128xbf16, #tpu.memory_space<vmem>>, %arg5: memref<1x128xf32, #tpu.memory_space<vmem>>, %arg6: memref<1x128xf32, #tpu.memory_space<vmem>>, %arg7: memref<1x256x128xf32, #tpu.memory_space<vmem>>) attributes {dimension_semantics = [#tpu.dimension_semantics<parallel>], iteration_bounds = array<i64: 2>, scalar_prefetch = 0 : i64, scratch_operands = 0 : i64, tpu.core_type = #tpu.core_type<tc>, window_params = [{transform_indices = @transform_0, window_bounds = array<i64: 1, 256, 128>}, {pipeline_mode = #tpu.pipeline_mode<synchronous>, transform_indices = @transform_1, window_bounds = array<i64: 1, 128>}, {pipeline_mode = #tpu.pipeline_mode<synchronous>, transform_indices = @transform_2, window_bounds = array<i64: 1, 128>}, {transform_indices = @transform_3, window_bounds = array<i64: 1, 256, 128>}, {pipeline_mode = #tpu.pipeline_mode<synchronous>, transform_indices = @transform_4, window_bounds = array<i64: 1, 128>}, {pipeline_mode = #tpu.pipeline_mode<synchronous>, transform_indices = @transform_5, window_bounds = array<i64: 1, 128>}, {transform_indices = @transform_6, window_bounds = array<i64: 1, 256, 128>}]} {
    %c0 = arith.constant 0 : index
    %c0_0 = arith.constant 0 : index
    %c0_1 = arith.constant 0 : index
    %0 = vector.load %arg4[%c0, %c0_0, %c0_1] : memref<1x256x128xbf16, #tpu.memory_space<vmem>>, vector<1x256x128xbf16>
    %1 = vector.shape_cast %0 : vector<1x256x128xbf16> to vector<256x128xbf16>
    %2 = arith.extf %1 : vector<256x128xbf16> to vector<256x128xf32>
    %c0_2 = arith.constant 0 : index
    %c0_3 = arith.constant 0 : index
    %3 = vector.load %arg5[%c0_2, %c0_3] : memref<1x128xf32, #tpu.memory_space<vmem>>, vector<1x128xf32>
    %4 = vector.broadcast %3 : vector<1x128xf32> to vector<256x128xf32>
    %5 = arith.mulf %2, %4 : vector<256x128xf32>
    %c0_4 = arith.constant 0 : index
    %c0_5 = arith.constant 0 : index
    %6 = vector.load %arg6[%c0_4, %c0_5] : memref<1x128xf32, #tpu.memory_space<vmem>>, vector<1x128xf32>
    %7 = vector.broadcast %6 : vector<1x128xf32> to vector<256x128xf32>
    %8 = arith.addf %5, %7 : vector<256x128xf32>
    %c0_6 = arith.constant 0 : index
    %c0_7 = arith.constant 0 : index
    %c0_8 = arith.constant 0 : index
    %9 = vector.load %arg1[%c0_6, %c0_7, %c0_8] : memref<1x256x128xbf16, #tpu.memory_space<vmem>>, vector<1x256x128xbf16>
    %10 = vector.shape_cast %9 : vector<1x256x128xbf16> to vector<256x128xbf16>
    %11 = arith.extf %10 : vector<256x128xbf16> to vector<256x128xf32>
    %c0_9 = arith.constant 0 : index
    %c0_10 = arith.constant 0 : index
    %12 = vector.load %arg2[%c0_9, %c0_10] : memref<1x128xf32, #tpu.memory_space<vmem>>, vector<1x128xf32>
    %13 = vector.broadcast %12 : vector<1x128xf32> to vector<256x128xf32>
    %14 = arith.mulf %11, %13 : vector<256x128xf32>
    %c0_11 = arith.constant 0 : index
    %c0_12 = arith.constant 0 : index
    %15 = vector.load %arg3[%c0_11, %c0_12] : memref<1x128xf32, #tpu.memory_space<vmem>>, vector<1x128xf32>
    %16 = vector.broadcast %15 : vector<1x128xf32> to vector<256x128xf32>
    %17 = arith.addf %14, %16 : vector<256x128xf32>
    %18 = arith.addf %17, %8 : vector<256x128xf32>
    %cst = arith.constant 0.000000e+00 : f32
    %19 = vector.broadcast %cst : f32 to vector<256x128xf32>
    %20 = arith.maximumf %18, %19 : vector<256x128xf32>
    %c0_13 = arith.constant 0 : index
    %c0_14 = arith.constant 0 : index
    %c0_15 = arith.constant 0 : index
    %21 = vector.load %arg7[%c0_13, %c0_14, %c0_15] : memref<1x256x128xf32, #tpu.memory_space<vmem>>, vector<1x256x128xf32>
    %22 = vector.shape_cast %21 : vector<1x256x128xf32> to vector<256x128xf32>
    %23 = vector.shape_cast %20 : vector<256x128xf32> to vector<1x256x128xf32>
    tpu.vector_store %arg7[%c0_13, %c0_14, %c0_15], %23 {strides = array<i32>} : memref<1x256x128xf32, #tpu.memory_space<vmem>>, vector<1x256x128xf32>,
    return
  }
  func.func @transform_0(%arg0: i32) -> (i32, i32, i32) {
    %c0_i32 = arith.constant 0 : i32
    %c0_i32_0 = arith.constant 0 : i32
    %c0_i32_1 = arith.constant 0 : i32
    return %arg0, %c0_i32, %c0_i32_0 : i32, i32, i32
  }
  func.func @transform_1(%arg0: i32) -> (i32, i32) {
    %c0_i32 = arith.constant 0 : i32
    %c0_i32_0 = arith.constant 0 : i32
    %c0_i32_1 = arith.constant 0 : i32
    return %c0_i32, %c0_i32_0 : i32, i32
  }
  func.func @transform_2(%arg0: i32) -> (i32, i32) {
    %c0_i32 = arith.constant 0 : i32
    %c0_i32_0 = arith.constant 0 : i32
    %c0_i32_1 = arith.constant 0 : i32
    return %c0_i32, %c0_i32_0 : i32, i32
  }
  func.func @transform_3(%arg0: i32) -> (i32, i32, i32) {
    %c0_i32 = arith.constant 0 : i32
    %c0_i32_0 = arith.constant 0 : i32
    %c0_i32_1 = arith.constant 0 : i32
    return %arg0, %c0_i32, %c0_i32_0 : i32, i32, i32
  }
  func.func @transform_4(%arg0: i32) -> (i32, i32) {
    %c0_i32 = arith.constant 0 : i32
    %c0_i32_0 = arith.constant 0 : i32
    %c0_i32_1 = arith.constant 0 : i32
    return %c0_i32, %c0_i32_0 : i32, i32
  }
  func.func @transform_5(%arg0: i32) -> (i32, i32) {
    %c0_i32 = arith.constant 0 : i32
    %c0_i32_0 = arith.constant 0 : i32
    %c0_i32_1 = arith.constant 0 : i32
    return %c0_i32, %c0_i32_0 : i32, i32
  }
  func.func @transform_6(%arg0: i32) -> (i32, i32, i32) {
    %c0_i32 = arith.constant 0 : i32
    %c0_i32_0 = arith.constant 0 : i32
    %c0_i32_1 = arith.constant 0 : i32
    return %arg0, %c0_i32, %c0_i32_0 : i32, i32, i32
  }
}

</mosaic_0001>

<bundles_post_ra>
// kernel: basic_block_forward.5
= control target key start
LH: loop header
LB: loop body
LE: loop exit
PB: predicated region body
PF: predicated region fallthrough
CT: control target
= control target key end

     0   :  { %s948_s21 = smov 0   ;;  %s1190_s0 = inlined_call_operand.vmem [shape: bf16[2,256,128], index: 0, kind: input, shape index: {}]   ;;  %s1191_s1 = inlined_call_operand.vmem [shape: f32[1,128], index: 1, kind: input, shape index: {}]   ;;  %s1192_s2 = inlined_call_operand.vmem [shape: f32[1,128], index: 2, kind: input, shape index: {}]   ;;  %s1193_s3 = inlined_call_operand.vmem [shape: bf16[2,256,128], index: 3, kind: input, shape index: {}]   ;;  %s1194_s4 = inlined_call_operand.vmem [shape: f32[1,128], index: 4, kind: input, shape index: {}]   ;;  %s1195_s5 = inlined_call_operand.vmem [shape: f32[1,128], index: 5, kind: input, shape index: {}]   ;;  %s1196_s6 = inlined_call_operand.vmem [shape: f32[2,256,128], index: 6, kind: output, shape index: {}]  }
   0x1 LB: > { %s719_s22 = sadd.s32 4294967295, %s911_s21   ;;  %p723_p0 = scmp.ge.s32.totalorder %s911_s21, 1  ;;  %s911_s21 = sphi %s948_s21, %s16_s21  }
   0x2   : > { %p222_p1 = scmp.lt.s32.totalorder %s911_s21, 3 }
   0x4   : > { %p223_p2 = pnand %p723_p0, %p222_p1 }
   0x5   : > { %p257_p3 = scmp.lt.s32.totalorder (!%p223_p2), %s719_s22, 1  ;;  %v972_v0 = vld [vmem:[%s1194_s4] ss:$0 sm:$0xff] (!%p223_p2) }
   0x6   : > { %226 = sbr.rel (%p223_p2) target bundleno = 88 (0x58), region = 44  ;;  %v977_v1 = vld [vmem:[%s1191_s1] ss:$0 sm:$0xff] (!%p223_p2) }
   0x7   : > { %v986_v10 = vld [vmem:[%s1195_s5] ss:$0 sm:$0xff] (!%p223_p2) }
   0x8   : > { %v991_v11 = vld [vmem:[%s1192_s2] ss:$0 sm:$0xff] (!%p223_p2) }
   0xd   : > { %s1198_s22 = smov (!%p257_p3, %s719_s22), 1 }
   0xe   : > { %s736_s23 = sshll.u32 %s1198_s22, 7  ;;  %s738_s14 = sshll.u32 %s1198_s22, 8 }
   0xf   : > { %s962_s26 = scalar_lea.vmem %s1190_s0, %s736_s23  ;;  %s967_s29 = scalar_lea.vmem %s1193_s3, %s736_s23 }
  0x10   : > { %v740_v2 = vld [vmem:[%s967_s29] sm:$0xff]   ;;  %v867_v4 = vld [vmem:[%s967_s29 + $0x8] sm:$0xff]   ;;  %v868_v24 = vld [vmem:[%s967_s29 + $0x10] sm:$0xff]   ;;  %s1015_s17 = scalar_lea.vmem %s1196_s6, %s738_s14 }
  0x11   : > { %v804_v3 = vld [vmem:[%s962_s26] sm:$0xff]   ;;  %v741_v5 = vunpack.c.l.bf16 %v740_v2  ;;  %v742_v7 = vunpack.c.h.bf16 %v740_v2  ;;  %v882_v9 = vld [vmem:[%s962_s26 + $0x8] sm:$0xff]   ;;  %v745_v12 = vunpack.c.l.bf16 %v867_v4  ;;  %v746_v14 = vunpack.c.h.bf16 %v867_v4  ;;  %v883_v25 = vld [vmem:[%s962_s26 + $0x10] sm:$0xff]  }
  0x12   : > { %v805_v6 = vunpack.c.l.bf16 %v804_v3  ;;  %v806_v8 = vunpack.c.h.bf16 %v804_v3  ;;  %v809_v13 = vunpack.c.l.bf16 %v882_v9  ;;  %v810_v15 = vunpack.c.h.bf16 %v882_v9  ;;  %v869_v42 = vld [vmem:[%s967_s29 + $0x18] sm:$0xff]   ;;  %v870_v52 = vld [vmem:[%s967_s29 + $0x20] sm:$0xff]  }
  0x13   : > { %v343_v16 = vmul.f32 %v741_v5, %v972_v0  ;;  %v344_v18 = vmul.f32 %v742_v7, %v972_v0  ;;  %v345_v20 = vmul.f32 %v745_v12, %v972_v0  ;;  %v346_v22 = vmul.f32 %v746_v14, %v972_v0  ;;  %v884_v43 = vld [vmem:[%s962_s26 + $0x18] sm:$0xff]   ;;  %v885_v57 = vld [vmem:[%s962_s26 + $0x20] sm:$0xff]   ;;  %v871_v14 = vld [vmem:[%s967_s29 + $0x28] sm:$0xff]  }
  0x14   : > { %v485_v17 = vmul.f32 %v805_v6, %v977_v1  ;;  %v486_v19 = vmul.f32 %v806_v8, %v977_v1  ;;  %v487_v21 = vmul.f32 %v809_v13, %v977_v1  ;;  %v488_v23 = vmul.f32 %v810_v15, %v977_v1  ;;  %v886_v15 = vld [vmem:[%s962_s26 + $0x28] sm:$0xff]  }
  0x15   : > { %v382_v26 = vadd.f32 %v986_v10, %v343_v16  ;;  %v383_v28 = vadd.f32 %v986_v10, %v344_v18  ;;  %v384_v30 = vadd.f32 %v986_v10, %v345_v20  ;;  %v385_v32 = vadd.f32 %v986_v10, %v346_v22 }
  0x16   : > { %v524_v27 = vadd.f32 %v991_v11, %v485_v17  ;;  %v525_v29 = vadd.f32 %v991_v11, %v486_v19  ;;  %v526_v31 = vadd.f32 %v991_v11, %v487_v21  ;;  %v527_v33 = vadd.f32 %v991_v11, %v488_v23 }
  0x17   : > { %v749_v36 = vunpack.c.l.bf16 %v868_v24  ;;  %v813_v37 = vunpack.c.l.bf16 %v883_v25  ;;  %v750_v40 = vunpack.c.h.bf16 %v868_v24  ;;  %v814_v41 = vunpack.c.h.bf16 %v883_v25 }
  0x18   : > { %v556_v34 = vadd.f32 %v524_v27, %v382_v26  ;;  %v557_v35 = vadd.f32 %v525_v29, %v383_v28  ;;  %v558_v38 = vadd.f32 %v526_v31, %v384_v30  ;;  %v559_v39 = vadd.f32 %v527_v33, %v385_v32  ;;  %v872_v32 = vld [vmem:[%s967_s29 + $0x30] sm:$0xff]  }
  0x19   : > { %v347_v46 = vmul.f32 %v749_v36, %v972_v0  ;;  %v489_v47 = vmul.f32 %v813_v37, %v977_v1  ;;  %v348_v50 = vmul.f32 %v750_v40, %v972_v0  ;;  %v490_v51 = vmul.f32 %v814_v41, %v977_v1  ;;  %v887_v37 = vld [vmem:[%s962_s26 + $0x30] sm:$0xff]  }
  0x1a   : > { %v588_v44 = vmax.f32 %v556_v34, 0.0  ;;  %v589_v45 = vmax.f32 %v557_v35, 0.0  ;;  %v590_v48 = vmax.f32 %v558_v38, 0.0  ;;  %v591_v49 = vmax.f32 %v559_v39, 0.0 }
  0x1b   : > { %v386_v53 = vadd.f32 %v986_v10, %v347_v46  ;;  %v528_v54 = vadd.f32 %v991_v11, %v489_v47  ;;  %v753_v55 = vunpack.c.l.bf16 %v869_v42  ;;  %v817_v56 = vunpack.c.l.bf16 %v884_v43  ;;  %v873_v46 = vld [vmem:[%s967_s29 + $0x38] sm:$0xff]  }
  0x1c   : > { %620 = vst [vmem:[%s1015_s17] sm:$0xff] %v588_v44  ;;  %621 = vst [vmem:[%s1015_s17 + $0x8] sm:$0xff] %v589_v45  ;;  %v387_v58 = vadd.f32 %v986_v10, %v348_v50  ;;  %v529_v59 = vadd.f32 %v991_v11, %v490_v51  ;;  %v754_v60 = vunpack.c.h.bf16 %v869_v42  ;;  %v818_v61 = vunpack.c.h.bf16 %v884_v43 }
  0x1d   : > { %622 = vst [vmem:[%s1015_s17 + $0x10] sm:$0xff] %v590_v48  ;;  %623 = vst [vmem:[%s1015_s17 + $0x18] sm:$0xff] %v591_v49  ;;  %v560_v62 = vadd.f32 %v528_v54, %v386_v53  ;;  %v349_v63 = vmul.f32 %v753_v55, %v972_v0  ;;  %v491_v2 = vmul.f32 %v817_v56, %v977_v1  ;;  %v757_v3 = vunpack.c.l.bf16 %v870_v52  ;;  %v888_v55 = vld [vmem:[%s962_s26 + $0x38] sm:$0xff]  }
  0x1e   : > { %v561_v4 = vadd.f32 %v529_v59, %v387_v58  ;;  %v350_v5 = vmul.f32 %v754_v60, %v972_v0  ;;  %v492_v6 = vmul.f32 %v818_v61, %v977_v1  ;;  %v821_v7 = vunpack.c.l.bf16 %v885_v57 }
  0x1f   : > { %v592_v8 = vmax.f32 %v560_v62, 0.0  ;;  %v388_v9 = vadd.f32 %v986_v10, %v349_v63  ;;  %v530_v12 = vadd.f32 %v991_v11, %v491_v2  ;;  %v351_v13 = vmul.f32 %v757_v3, %v972_v0 }
  0x20   : > { %v593_v16 = vmax.f32 %v561_v4, 0.0  ;;  %v389_v17 = vadd.f32 %v986_v10, %v350_v5  ;;  %v531_v18 = vadd.f32 %v991_v11, %v492_v6  ;;  %v493_v19 = vmul.f32 %v821_v7, %v977_v1  ;;  %v874_v6 = vld [vmem:[%s967_s29 + $0x40] sm:$0xff]  }
  0x21   : > { %624 = vst [vmem:[%s1015_s17 + $0x20] sm:$0xff] %v592_v8  ;;  %v562_v20 = vadd.f32 %v530_v12, %v388_v9  ;;  %v390_v21 = vadd.f32 %v986_v10, %v351_v13  ;;  %v758_v22 = vunpack.c.h.bf16 %v870_v52  ;;  %v822_v23 = vunpack.c.h.bf16 %v885_v57  ;;  %v889_v13 = vld [vmem:[%s962_s26 + $0x40] sm:$0xff]  }
  0x22   : > { %625 = vst [vmem:[%s1015_s17 + $0x28] sm:$0xff] %v593_v16  ;;  %v563_v24 = vadd.f32 %v531_v18, %v389_v17  ;;  %v532_v25 = vadd.f32 %v991_v11, %v493_v19  ;;  %v761_v26 = vunpack.c.l.bf16 %v871_v14  ;;  %v825_v27 = vunpack.c.l.bf16 %v886_v15 }
  0x23   : > { %v594_v28 = vmax.f32 %v562_v20, 0.0  ;;  %v352_v29 = vmul.f32 %v758_v22, %v972_v0  ;;  %v494_v30 = vmul.f32 %v822_v23, %v977_v1  ;;  %v762_v31 = vunpack.c.h.bf16 %v871_v14 }
  0x24   : > { %v595_v33 = vmax.f32 %v563_v24, 0.0  ;;  %v564_v34 = vadd.f32 %v532_v25, %v390_v21  ;;  %v353_v35 = vmul.f32 %v761_v26, %v972_v0  ;;  %v495_v36 = vmul.f32 %v825_v27, %v977_v1  ;;  %v875_v26 = vld [vmem:[%s967_s29 + $0x48] sm:$0xff]  }
  0x25   : > { %626 = vst [vmem:[%s1015_s17 + $0x30] sm:$0xff] %v594_v28  ;;  %v391_v38 = vadd.f32 %v986_v10, %v352_v29  ;;  %v533_v39 = vadd.f32 %v991_v11, %v494_v30  ;;  %v354_v40 = vmul.f32 %v762_v31, %v972_v0  ;;  %v826_v41 = vunpack.c.h.bf16 %v886_v15  ;;  %v890_v27 = vld [vmem:[%s962_s26 + $0x48] sm:$0xff]  }
  0x26   : > { %627 = vst [vmem:[%s1015_s17 + $0x38] sm:$0xff] %v595_v33  ;;  %v596_v42 = vmax.f32 %v564_v34, 0.0  ;;  %v392_v43 = vadd.f32 %v986_v10, %v353_v35  ;;  %v534_v44 = vadd.f32 %v991_v11, %v495_v36  ;;  %v765_v45 = vunpack.c.l.bf16 %v872_v32 }
  0x27   : > { %v565_v47 = vadd.f32 %v533_v39, %v391_v38  ;;  %v393_v48 = vadd.f32 %v986_v10, %v354_v40  ;;  %v496_v49 = vmul.f32 %v826_v41, %v977_v1  ;;  %v829_v50 = vunpack.c.l.bf16 %v887_v37  ;;  %v876_v40 = vld [vmem:[%s967_s29 + $0x50] sm:$0xff]  }
  0x28   : > { %628 = vst [vmem:[%s1015_s17 + $0x40] sm:$0xff] %v596_v42  ;;  %v566_v51 = vadd.f32 %v534_v44, %v392_v43  ;;  %v355_v52 = vmul.f32 %v765_v45, %v972_v0  ;;  %v766_v53 = vunpack.c.h.bf16 %v872_v32  ;;  %v830_v54 = vunpack.c.h.bf16 %v887_v37  ;;  %v891_v45 = vld [vmem:[%s962_s26 + $0x50] sm:$0xff]  }
  0x29   : > { %v597_v56 = vmax.f32 %v565_v47, 0.0  ;;  %v535_v57 = vadd.f32 %v991_v11, %v496_v49  ;;  %v497_v58 = vmul.f32 %v829_v50, %v977_v1  ;;  %v769_v59 = vunpack.c.l.bf16 %v873_v46 }
  0x2a   : > { %v598_v60 = vmax.f32 %v566_v51, 0.0  ;;  %v394_v61 = vadd.f32 %v986_v10, %v355_v52  ;;  %v356_v62 = vmul.f32 %v766_v53, %v972_v0  ;;  %v498_v63 = vmul.f32 %v830_v54, %v977_v1 }
  0x2b   : > { %629 = vst [vmem:[%s1015_s17 + $0x48] sm:$0xff] %v597_v56  ;;  %v567_v2 = vadd.f32 %v535_v57, %v393_v48  ;;  %v536_v3 = vadd.f32 %v991_v11, %v497_v58  ;;  %v357_v4 = vmul.f32 %v769_v59, %v972_v0  ;;  %v833_v5 = vunpack.c.l.bf16 %v888_v55 }
  0x2c   : > { %630 = vst [vmem:[%s1015_s17 + $0x50] sm:$0xff] %v598_v60  ;;  %v395_v7 = vadd.f32 %v986_v10, %v356_v62  ;;  %v537_v8 = vadd.f32 %v991_v11, %v498_v63  ;;  %v770_v9 = vunpack.c.h.bf16 %v873_v46  ;;  %v834_v12 = vunpack.c.h.bf16 %v888_v55  ;;  %v877_v62 = vld [vmem:[%s967_s29 + $0x58] sm:$0xff]  }
  0x2d   : > { %v599_v14 = vmax.f32 %v567_v2, 0.0  ;;  %v568_v15 = vadd.f32 %v536_v3, %v394_v61  ;;  %v396_v16 = vadd.f32 %v986_v10, %v357_v4  ;;  %v499_v17 = vmul.f32 %v833_v5, %v977_v1  ;;  %v892_v5 = vld [vmem:[%s962_s26 + $0x58] sm:$0xff]  }
  0x2e   : > { %v569_v18 = vadd.f32 %v537_v8, %v395_v7  ;;  %v358_v19 = vmul.f32 %v770_v9, %v972_v0  ;;  %v500_v20 = vmul.f32 %v834_v12, %v977_v1  ;;  %v773_v21 = vunpack.c.l.bf16 %v874_v6 }
  0x2f   : > { %631 = vst [vmem:[%s1015_s17 + $0x58] sm:$0xff] %v599_v14  ;;  %v600_v22 = vmax.f32 %v568_v15, 0.0  ;;  %v538_v23 = vadd.f32 %v991_v11, %v499_v17  ;;  %v837_v24 = vunpack.c.l.bf16 %v889_v13  ;;  %v774_v25 = vunpack.c.h.bf16 %v874_v6 }
  0x30   : > { %v601_v28 = vmax.f32 %v569_v18, 0.0  ;;  %v397_v29 = vadd.f32 %v986_v10, %v358_v19  ;;  %v539_v30 = vadd.f32 %v991_v11, %v500_v20  ;;  %v359_v31 = vmul.f32 %v773_v21, %v972_v0  ;;  %v878_v20 = vld [vmem:[%s967_s29 + $0x60] sm:$0xff]  }
  0x31   : > { %632 = vst [vmem:[%s1015_s17 + $0x60] sm:$0xff] %v600_v22  ;;  %v570_v32 = vadd.f32 %v538_v23, %v396_v16  ;;  %v501_v33 = vmul.f32 %v837_v24, %v977_v1  ;;  %v360_v34 = vmul.f32 %v774_v25, %v972_v0  ;;  %v838_v35 = vunpack.c.h.bf16 %v889_v13  ;;  %v893_v25 = vld [vmem:[%s962_s26 + $0x60] sm:$0xff]  }
  0x32   : > { %633 = vst [vmem:[%s1015_s17 + $0x68] sm:$0xff] %v601_v28  ;;  %v571_v36 = vadd.f32 %v539_v30, %v397_v29  ;;  %v398_v37 = vadd.f32 %v986_v10, %v359_v31  ;;  %v777_v38 = vunpack.c.l.bf16 %v875_v26  ;;  %v841_v39 = vunpack.c.l.bf16 %v890_v27 }
  0x33   : > { %v602_v41 = vmax.f32 %v570_v32, 0.0  ;;  %v540_v42 = vadd.f32 %v991_v11, %v501_v33  ;;  %v399_v43 = vadd.f32 %v986_v10, %v360_v34  ;;  %v502_v44 = vmul.f32 %v838_v35, %v977_v1  ;;  %v879_v34 = vld [vmem:[%s967_s29 + $0x68] sm:$0xff]  }
  0x34   : > { %v603_v46 = vmax.f32 %v571_v36, 0.0  ;;  %v361_v47 = vmul.f32 %v777_v38, %v972_v0  ;;  %v503_v48 = vmul.f32 %v841_v39, %v977_v1  ;;  %v778_v49 = vunpack.c.h.bf16 %v875_v26 }
  0x35   : > { %634 = vst [vmem:[%s1015_s17 + $0x70] sm:$0xff] %v602_v41  ;;  %v572_v50 = vadd.f32 %v540_v42, %v398_v37  ;;  %v541_v51 = vadd.f32 %v991_v11, %v502_v44  ;;  %v842_v52 = vunpack.c.h.bf16 %v890_v27  ;;  %v781_v53 = vunpack.c.l.bf16 %v876_v40 }
  0x36   : > { %635 = vst [vmem:[%s1015_s17 + $0x78] sm:$0xff] %v603_v46  ;;  %v400_v54 = vadd.f32 %v986_v10, %v361_v47  ;;  %v542_v55 = vadd.f32 %v991_v11, %v503_v48  ;;  %v362_v56 = vmul.f32 %v778_v49, %v972_v0  ;;  %v845_v57 = vunpack.c.l.bf16 %v891_v45 }
  0x37   : > { %v604_v58 = vmax.f32 %v572_v50, 0.0  ;;  %v573_v59 = vadd.f32 %v541_v51, %v399_v43  ;;  %v504_v60 = vmul.f32 %v842_v52, %v977_v1  ;;  %v363_v61 = vmul.f32 %v781_v53, %v972_v0  ;;  %v894_v43 = vld [vmem:[%s962_s26 + $0x68] sm:$0xff]  }
  0x38   : > { %v574_v63 = vadd.f32 %v542_v55, %v400_v54  ;;  %v401_v2 = vadd.f32 %v986_v10, %v362_v56  ;;  %v505_v3 = vmul.f32 %v845_v57, %v977_v1  ;;  %v782_v4 = vunpack.c.h.bf16 %v876_v40  ;;  %v880_v56 = vld [vmem:[%s967_s29 + $0x70] sm:$0xff]  }
  0x39   : > { %636 = vst [vmem:[%s1015_s17 + $0x80] sm:$0xff] %v604_v58  ;;  %v605_v6 = vmax.f32 %v573_v59, 0.0  ;;  %v543_v7 = vadd.f32 %v991_v11, %v504_v60  ;;  %v402_v8 = vadd.f32 %v986_v10, %v363_v61  ;;  %v846_v9 = vunpack.c.h.bf16 %v891_v45  ;;  %v895_v57 = vld [vmem:[%s962_s26 + $0x70] sm:$0xff]  }
  0x3a   : > { %v606_v12 = vmax.f32 %v574_v63, 0.0  ;;  %v544_v13 = vadd.f32 %v991_v11, %v505_v3  ;;  %v364_v14 = vmul.f32 %v782_v4, %v972_v0  ;;  %v785_v15 = vunpack.c.l.bf16 %v877_v62 }
  0x3b   : > { %637 = vst [vmem:[%s1015_s17 + $0x88] sm:$0xff] %v605_v6  ;;  %v575_v16 = vadd.f32 %v543_v7, %v401_v2  ;;  %v506_v17 = vmul.f32 %v846_v9, %v977_v1  ;;  %v849_v18 = vunpack.c.l.bf16 %v892_v5  ;;  %v786_v19 = vunpack.c.h.bf16 %v877_v62 }
  0x3c   : > { %638 = vst [vmem:[%s1015_s17 + $0x90] sm:$0xff] %v606_v12  ;;  %v576_v21 = vadd.f32 %v544_v13, %v402_v8  ;;  %v403_v22 = vadd.f32 %v986_v10, %v364_v14  ;;  %v365_v23 = vmul.f32 %v785_v15, %v972_v0  ;;  %v850_v24 = vunpack.c.h.bf16 %v892_v5  ;;  %v881_v14 = vld [vmem:[%s967_s29 + $0x78] sm:$0xff]  }
  0x3d   : > { %v607_v26 = vmax.f32 %v575_v16, 0.0  ;;  %v545_v27 = vadd.f32 %v991_v11, %v506_v17  ;;  %v507_v28 = vmul.f32 %v849_v18, %v977_v1  ;;  %v366_v29 = vmul.f32 %v786_v19, %v972_v0  ;;  %v896_v15 = vld [vmem:[%s962_s26 + $0x78] sm:$0xff]  }
  0x3e   : > { %v608_v30 = vmax.f32 %v576_v21, 0.0  ;;  %v404_v31 = vadd.f32 %v986_v10, %v365_v23  ;;  %v508_v32 = vmul.f32 %v850_v24, %v977_v1  ;;  %v789_v33 = vunpack.c.l.bf16 %v878_v20 }
  0x3f   : > { %639 = vst [vmem:[%s1015_s17 + $0x98] sm:$0xff] %v607_v26  ;;  %v577_v35 = vadd.f32 %v545_v27, %v403_v22  ;;  %v546_v36 = vadd.f32 %v991_v11, %v507_v28  ;;  %v405_v37 = vadd.f32 %v986_v10, %v366_v29  ;;  %v853_v38 = vunpack.c.l.bf16 %v893_v25 }
  0x40   : > { %640 = vst [vmem:[%s1015_s17 + $0xa0] sm:$0xff] %v608_v30  ;;  %v547_v39 = vadd.f32 %v991_v11, %v508_v32  ;;  %v367_v40 = vmul.f32 %v789_v33, %v972_v0  ;;  %v790_v41 = vunpack.c.h.bf16 %v878_v20  ;;  %v854_v42 = vunpack.c.h.bf16 %v893_v25 }
  0x41   : > { %v609_v44 = vmax.f32 %v577_v35, 0.0  ;;  %v578_v45 = vadd.f32 %v546_v36, %v404_v31  ;;  %v509_v46 = vmul.f32 %v853_v38, %v977_v1  ;;  %v793_v47 = vunpack.c.l.bf16 %v879_v34 }
  0x42   : > { %v579_v48 = vadd.f32 %v547_v39, %v405_v37  ;;  %v406_v49 = vadd.f32 %v986_v10, %v367_v40  ;;  %v368_v50 = vmul.f32 %v790_v41, %v972_v0  ;;  %v510_v51 = vmul.f32 %v854_v42, %v977_v1 }
  0x43   : > { %641 = vst [vmem:[%s1015_s17 + $0xa8] sm:$0xff] %v609_v44  ;;  %v610_v52 = vmax.f32 %v578_v45, 0.0  ;;  %v548_v53 = vadd.f32 %v991_v11, %v509_v46  ;;  %v369_v54 = vmul.f32 %v793_v47, %v972_v0  ;;  %v857_v55 = vunpack.c.l.bf16 %v894_v43 }
  0x44   : > { %v611_v58 = vmax.f32 %v579_v48, 0.0  ;;  %v407_v59 = vadd.f32 %v986_v10, %v368_v50  ;;  %v549_v60 = vadd.f32 %v991_v11, %v510_v51  ;;  %v794_v61 = vunpack.c.h.bf16 %v879_v34 }
  0x45   : > { %642 = vst [vmem:[%s1015_s17 + $0xb0] sm:$0xff] %v610_v52  ;;  %v580_v62 = vadd.f32 %v548_v53, %v406_v49  ;;  %v408_v63 = vadd.f32 %v986_v10, %v369_v54  ;;  %v511_v2 = vmul.f32 %v857_v55, %v977_v1  ;;  %v858_v3 = vunpack.c.h.bf16 %v894_v43 }
  0x46   : > { %643 = vst [vmem:[%s1015_s17 + $0xb8] sm:$0xff] %v611_v58  ;;  %v581_v4 = vadd.f32 %v549_v60, %v407_v59  ;;  %v370_v5 = vmul.f32 %v794_v61, %v972_v0  ;;  %v797_v6 = vunpack.c.l.bf16 %v880_v56  ;;  %v861_v7 = vunpack.c.l.bf16 %v895_v57 }
  0x47   : > { %v612_v8 = vmax.f32 %v580_v62, 0.0  ;;  %v550_v9 = vadd.f32 %v991_v11, %v511_v2  ;;  %v512_v12 = vmul.f32 %v858_v3, %v977_v1  ;;  %v798_v13 = vunpack.c.h.bf16 %v880_v56 }
  0x48   : > { %v613_v16 = vmax.f32 %v581_v4, 0.0  ;;  %v409_v17 = vadd.f32 %v986_v10, %v370_v5  ;;  %v371_v18 = vmul.f32 %v797_v6, %v972_v0  ;;  %v513_v19 = vmul.f32 %v861_v7, %v977_v1 }
  0x49   : > { %644 = vst [vmem:[%s1015_s17 + $0xc0] sm:$0xff] %v612_v8  ;;  %v582_v20 = vadd.f32 %v550_v9, %v408_v63  ;;  %v551_v21 = vadd.f32 %v991_v11, %v512_v12  ;;  %v372_v22 = vmul.f32 %v798_v13, %v972_v0  ;;  %v862_v23 = vunpack.c.h.bf16 %v895_v57 }
  0x4a   : > { %645 = vst [vmem:[%s1015_s17 + $0xc8] sm:$0xff] %v613_v16  ;;  %v410_v24 = vadd.f32 %v986_v10, %v371_v18  ;;  %v552_v25 = vadd.f32 %v991_v11, %v513_v19  ;;  %v801_v26 = vunpack.c.l.bf16 %v881_v14  ;;  %v865_v27 = vunpack.c.l.bf16 %v896_v15 }
  0x4b   : > { %v614_v28 = vmax.f32 %v582_v20, 0.0  ;;  %v583_v29 = vadd.f32 %v551_v21, %v409_v17  ;;  %v411_v30 = vadd.f32 %v986_v10, %v372_v22  ;;  %v514_v31 = vmul.f32 %v862_v23, %v977_v1 }
  0x4c   : > { %v584_v32 = vadd.f32 %v552_v25, %v410_v24  ;;  %v373_v33 = vmul.f32 %v801_v26, %v972_v0  ;;  %v515_v34 = vmul.f32 %v865_v27, %v977_v1  ;;  %v802_v35 = vunpack.c.h.bf16 %v881_v14 }
  0x4d   : > { %646 = vst [vmem:[%s1015_s17 + $0xd0] sm:$0xff] %v614_v28  ;;  %v615_v36 = vmax.f32 %v583_v29, 0.0  ;;  %v553_v37 = vadd.f32 %v991_v11, %v514_v31  ;;  %v866_v38 = vunpack.c.h.bf16 %v896_v15 }
  0x4e   : > { %v616_v39 = vmax.f32 %v584_v32, 0.0  ;;  %v412_v40 = vadd.f32 %v986_v10, %v373_v33  ;;  %v554_v41 = vadd.f32 %v991_v11, %v515_v34  ;;  %v374_v42 = vmul.f32 %v802_v35, %v972_v0 }
  0x4f   : > { %647 = vst [vmem:[%s1015_s17 + $0xd8] sm:$0xff] %v615_v36  ;;  %v585_v43 = vadd.f32 %v553_v37, %v411_v30  ;;  %v516_v44 = vmul.f32 %v866_v38, %v977_v1 }
  0x50   : > { %648 = vst [vmem:[%s1015_s17 + $0xe0] sm:$0xff] %v616_v39  ;;  %v586_v45 = vadd.f32 %v554_v41, %v412_v40  ;;  %v413_v46 = vadd.f32 %v986_v10, %v374_v42 }
  0x51   : > { %v617_v47 = vmax.f32 %v585_v43, 0.0  ;;  %v555_v48 = vadd.f32 %v991_v11, %v516_v44 }
  0x52   : > { %v618_v49 = vmax.f32 %v586_v45, 0.0 }
  0x53   : > { %649 = vst [vmem:[%s1015_s17 + $0xe8] sm:$0xff] %v617_v47  ;;  %v587_v50 = vadd.f32 %v555_v48, %v413_v46 }
  0x54   : > { %650 = vst [vmem:[%s1015_s17 + $0xf0] sm:$0xff] %v618_v49 }
  0x55   : > { %v619_v51 = vmax.f32 %v587_v50, 0.0 }
  0x57   : > { %651 = vst [vmem:[%s1015_s17 + $0xf8] sm:$0xff] %v619_v51 }
  0x58 PF: > { %s16_s21 = sadd.s32 1, %s911_s21  }
  0x59   : > { %p13_p4 = scmp.ge.s32.totalorder %s16_s21, 4  }
  0x5b   :  { %15 = sbr.rel (!%p13_p4) target bundleno = 1 (0x1), region = 77 }

// kernel: basic_block_forward.3
= control target key start
LH: loop header
LB: loop body
LE: loop exit
PB: predicated region body
PF: predicated region fallthrough
CT: control target
= control target key end

     0   :  { %s6340_s27 = smov 0   ;;  %s7884_s0 = inlined_call_operand.vmem [shape: bf16[2,18,18,128], index: 0, kind: input, shape index: {}]   ;;  %s7885_s1 = inlined_call_operand.vmem [shape: bf16[3,384,128], index: 1, kind: input, shape index: {}]   ;;  %s7886_s2 = inlined_call_operand.vmem [shape: bf16[128,128], index: 2, kind: input, shape index: {}]   ;;  %s7887_s3 = inlined_call_operand.vmem [shape: bf16[2,256,128], index: 3, kind: output, shape index: {0}]   ;;  %s7888_s4 = inlined_call_operand.vmem [shape: f32[2,1,128], index: 4, kind: output, shape index: {1}]   ;;  %s7889_s5 = inlined_call_operand.vmem [shape: f32[2,1,128], index: 5, kind: output, shape index: {2}]   ;;  %s7890_s6 = inlined_call_operand.vmem [shape: bf16[2,256,128], index: 6, kind: output, shape index: {3}]   ;;  %s7891_s7 = inlined_call_operand.vmem [shape: f32[2,1,128], index: 7, kind: output, shape index: {4}]   ;;  %s7892_s8 = inlined_call_operand.vmem [shape: f32[2,1,128], index: 8, kind: output, shape index: {5}]  }
   0x1 LB: > { %s4465_s28 = sadd.s32 4294967295, %s6293_s27   ;;  %p4469_p0 = scmp.ge.s32.totalorder %s6293_s27, 1  ;;  %s6293_s27 = sphi %s6340_s27, %s19_s27  }
   0x2   : > { %p273_p1 = scmp.lt.s32.totalorder %s6293_s27, 3 }
   0x4   : > { %p274_p2 = pnand %p4469_p0, %p273_p1 }
   0x6   : > { %277 = sbr.rel (%p274_p2) target bundleno = 598 (0x256), region = 32 }
   0xd   : > { %v6038_v0 = vld [vmem:[%s7885_s1 + $0x100] sm:$0xff]   ;;  %v6041_v3 = vld [vmem:[%s7885_s1 + $0x108] sm:$0xff]   ;;  %v6044_v6 = vld [vmem:[%s7885_s1 + $0x110] sm:$0xff]   ;;  %p324_p3 = scmp.lt.s32.totalorder %s4465_s28, 1  ;;  %vm817_vm0 = vcmask 1046528  }
   0xe   : > { %v6039_v1 = vld [vmem:[%s7885_s1 + $0x140] sm:$0xff]   ;;  %5245 = vmatprep.subr.bf16.mxu0 %v6038_v0  ;;  %v6042_v4 = vld [vmem:[%s7885_s1 + $0x148] sm:$0xff]   ;;  %v6045_v7 = vld [vmem:[%s7885_s1 + $0x150] sm:$0xff]   ;;  %vm560_vm1 = vsmask.f32 7424 }
   0xf   : > { %v6040_v2 = vld [vmem:[%s7885_s1 + $0xc0] sm:$0xff]   ;;  %5677 = vmatprep.subr.bf16.mxu1 %v6039_v1  ;;  %v6043_v5 = vld [vmem:[%s7885_s1 + $0xc8] sm:$0xff]   ;;  %v6046_v8 = vld [vmem:[%s7885_s1 + $0xd0] sm:$0xff]   ;;  %s7928_s28 = smov (!%p324_p3, %s4465_s28), 1 }
  0x10   : > { %5246 = vmatpush3.bf16.msra.mxu0 %v6040_v2  ;;  %5678 = vmatpush3.bf16.msra.mxu1 %v6039_v1  ;;  %v6047_v9 = vld [vmem:[%s7885_s1 + $0x118] sm:$0xff]   ;;  %v6050_v12 = vld [vmem:[%s7885_s1 + $0x120] sm:$0xff]   ;;  %v6053_v15 = vld [vmem:[%s7885_s1 + $0x128] sm:$0xff]   ;;  %s6029_s21 = smul.u32 216, %s7928_s28  ;;  %s347_s25 = scalar_lea.vmem %s7891_s7, %s7928_s28 }
  0x11   : > { %5247 = vmatprep.subr.bf16.mxu0 %v6041_v3  ;;  %5679 = vmatprep.subr.bf16.mxu1 %v6042_v4  ;;  %v6048_v10 = vld [vmem:[%s7885_s1 + $0x158] sm:$0xff]   ;;  %v6051_v13 = vld [vmem:[%s7885_s1 + $0x160] sm:$0xff]   ;;  %v6054_v16 = vld [vmem:[%s7885_s1 + $0x168] sm:$0xff]   ;;  %s336_s30 = scalar_lea.vmem %s7888_s4, %s7928_s28  ;;  %s350_s12 = scalar_lea.vmem %s7892_s8, %s7928_s28 }
  0x12   : > { %v6049_v11 = vld [vmem:[%s7885_s1 + $0xd8] sm:$0xff]   ;;  %v6052_v14 = vld [vmem:[%s7885_s1 + $0xe0] sm:$0xff]   ;;  %v6055_v17 = vld [vmem:[%s7885_s1 + $0xe8] sm:$0xff]   ;;  %s6418_s10 = scalar_lea.vmem %s7884_s0, %s6029_s21  ;;  %s339_s15 = scalar_lea.vmem %s7889_s5, %s7928_s28 }
  0x13   : > { %v6056_v18 = vld [vmem:[%s7885_s1 + $0x130] sm:$0xff]   ;;  %v6059_v21 = vld [vmem:[%s7885_s1 + $0x138] sm:$0xff]   ;;  %v4523_v22 = vld [vmem:[%s6418_s10 + $0xc] sm:$0xf] }
  0x14   : > { %5248 = vmatpush3.bf16.msra.mxu0 %v6043_v5  ;;  %5680 = vmatpush3.bf16.msra.mxu1 %v6042_v4  ;;  %v6057_v19 = vld [vmem:[%s7885_s1 + $0x170] sm:$0xff]   ;;  %v6060_v24 = vld [vmem:[%s7885_s1 + $0x178] sm:$0xff]   ;;  %v4571_v28 = vld [vmem:[%s6418_s10 + $0xc] sm:$0xe] }
  0x15   : > { %5249 = vmatprep.subr.bf16.mxu0 %v6044_v6  ;;  %5681 = vmatprep.subr.bf16.mxu1 %v6045_v7  ;;  %v6058_v20 = vld [vmem:[%s7885_s1 + $0xf0] sm:$0xff]   ;;  %v6061_v27 = vld [vmem:[%s7885_s1 + $0xf8] sm:$0xff]   ;;  %v6068_v35 = vld [vmem:[%s7885_s1 + $0x40] sm:$0xff]  }
  0x16   : > { %v4524_v23 = vld [vmem:[%s6418_s10 + $0x10] sm:$0xf]  ;;  %v6063_v26 = vld [vmem:[%s6418_s10 + $0x14] ss:$0 sps:$4 sm:$0x11]   ;;  %v6070_v44 = vld [vmem:[%s7885_s1 + $0x1c0] sm:$0xff]  }
  0x17   : > { %v4587_v25 = vcombine.low %v4523_v22, %v4524_v23  ;;  %v4525_v29 = vld [vmem:[%s6418_s10 + $0x18] sm:$0xf]  ;;  %v4526_v30 = vld [vmem:[%s6418_s10 + $0x1c] sm:$0xf]  ;;  %v1147_v33 = vshll.u32 %v6063_v26, 16  ;;  %v4619_v34 = vcombine.low %v4571_v28, %v4524_v23  ;;  %v1396_v36 = vrot.slane %v6063_v26, 1 }
  0x18   : > { %5250 = vmatpush3.bf16.msra.mxu0 %v6046_v8  ;;  %5682 = vmatpush3.bf16.msra.mxu1 %v6045_v7  ;;  %v4572_v37 = vld [vmem:[%s6418_s10 + $0x18] sm:$0xe]  ;;  %v6442_v38 = vcombine.low %v4525_v29, %v4526_v30  ;;  %v6066_v39 = vld [vmem:[%s6418_s10 + $0x20] ss:$0 sps:$4 sm:$0x11]   ;;  %v6078_v63 = vld [vmem:[%s7885_s1 + $0x48] sm:$0xff]  }
  0x19   : > { %5251 = vmatprep.subr.bf16.mxu0 %v6047_v9  ;;  %5683 = vmatprep.subr.bf16.mxu1 %v6048_v10  ;;  %v1140_v31 = vshrl.u32 %v4587_v25, 16  ;;  %v1142_v32 = vshll.u32 %v4587_v25, 16  ;;  %v1149_v41 = vrot.slane %v1147_v33, 1  ;;  %v1395_v42 = vrot.slane %v4619_v34, 1  ;;  %v6069_v46 = vld [vmem:[%s7885_s1] sm:$0xff]   ;;  %v6079_v7 = vld [vmem:[%s7885_s1 + $0x8] sm:$0xff]  }
  0x1a   : > { %v4620_v43 = vcombine.low %v4572_v37, %v4526_v30  ;;  %v1399_v45 = vrot.slane %v6066_v39, 1  ;;  %v6071_v47 = vld [vmem:[%s7885_s1 + $0x180] sm:$0xff]   ;;  %v1152_v51 = vshrl.u32 %v6442_v38, 16  ;;  %v1154_v54 = vshll.u32 %v6442_v38, 16  ;;  %v4528_v57 = vld [vmem:[%s6418_s10 + $0x28] sm:$0xf] }
  0x1b   : > { %v1144_v40 = vrot.slane %v1142_v32, 1  ;;  %v1397_v49 = vsel %vm817_vm0, %v1395_v42, %v1396_v36  ;;  %v1159_v55 = vshll.u32 %v6066_v39, 16  ;;  %v4527_v56 = vld [vmem:[%s6418_s10 + $0x24] sm:$0xf]  ;;  %v4530_v1 = vld [vmem:[%s6418_s10 + $0x34] sm:$0xf] }
  0x1c   : > { %5252 = vmatpush3.bf16.msra.mxu0 %v6049_v11  ;;  %5684 = vmatpush3.bf16.msra.mxu1 %v6048_v10  ;;  %v1398_v50 = vrot.slane %v4620_v43, 1  ;;  %v4573_v58 = vld [vmem:[%s6418_s10 + $0x24] sm:$0xe]  ;;  %v1156_v59 = vrot.slane %v1154_v54, 1  ;;  %v6469_v0 = vcombine.low %v4527_v56, %v4528_v57  ;;  %v4574_v2 = vld [vmem:[%s6418_s10 + $0x30] sm:$0xe] }
  0x1d   : > { %5253 = vmatprep.subr.bf16.mxu0 %v6050_v12  ;;  %5685 = vmatprep.subr.bf16.mxu1 %v6051_v13  ;;  %v1145_v48 = vor.u32 %v1144_v40, %v1140_v31  ;;  %v1161_v60 = vrot.slane %v1159_v55, 1  ;;  %v6073_v61 = vld [vmem:[%s6418_s10 + $0x2c] ss:$0 sps:$4 sm:$0x11]   ;;  %v4621_v62 = vcombine.low %v4573_v58, %v4528_v57  ;;  %v4622_v8 = vcombine.low %v4574_v2, %v4530_v1  ;;  %v4531_v34 = vld [vmem:[%s6418_s10 + $0x3c] sm:$0xf] }
  0x1e   : > { %5693 = vmatprep.mubr.bf16.mxu1 %v1397_v49  ;;  %v1400_v53 = vsel %vm817_vm0, %v1398_v50, %v1399_v45  ;;  %v1157_v3 = vor.u32 %v1156_v59, %v1152_v51  ;;  %v1402_v5 = vrot.slane %v6073_v61, 1  ;;  %v6076_v6 = vld [vmem:[%s6418_s10 + $0x38] ss:$0 sps:$4 sm:$0x11]   ;;  %v1164_v12 = vshrl.u32 %v6469_v0, 16  ;;  %v6088_v33 = vld [vmem:[%s7885_s1 + $0x1c8] sm:$0xff]  }
  0x1f   : > { %v6457_v52 = vsel %vm560_vm1, %v1145_v48, %v1149_v41  ;;  %v1401_v4 = vrot.slane %v4621_v62, 1  ;;  %v1405_v11 = vrot.slane %v6076_v6, 1  ;;  %v6492_v23 = vld [vmem:[%s6418_s10 + $0x44] ss:$0 sps:$4 sm:$0x11]   ;;  %v6089_v39 = vld [vmem:[%s7885_s1 + $0x188] sm:$0xff]  }
  0x20   : > { %5254 = vmatpush3.bf16.msra.mxu0 %v6052_v14  ;;  %5686 = vmatpush3.bf16.msra.mxu1 %v6051_v13  ;;  %v6478_v9 = vsel %vm560_vm1, %v1157_v3, %v1161_v60  ;;  %v1404_v13 = vrot.slane %v4622_v8, 1  ;;  %v1166_v14 = vshll.u32 %v6469_v0, 16  ;;  %v6499_v26 = vld [vmem:[%s6418_s10 + $0x4c] sm:$0xf]  ;;  %v1408_v31 = vrot.slane %v6492_v23, 1 }
  0x21   : > { %5255 = vmatprep.subr.bf16.mxu0 %v6053_v15  ;;  %5687 = vmatprep.subr.bf16.mxu1 %v6054_v16  ;;  %v1403_v10 = vsel %vm817_vm0, %v1401_v4, %v1402_v5  ;;  %v1171_v15 = vshll.u32 %v6073_v61, 16  ;;  %v6506_v32 = vld [vmem:[%s6418_s10 + $0x50] ss:$0 sps:$4 sm:$0x11]   ;;  %v1183_v43 = vshll.u32 %v6076_v6, 16  ;;  %v6097_v61 = vld [vmem:[%s7885_s1 + $0x18] sm:$0xff]  }
  0x22   : > { %1684 = vmatprep.mubr.bf16.mxu0 %v6457_v52  ;;  %v6526_v45 = vld [vmem:[%s6418_s10 + $0x58] sm:$0xf]  ;;  %v6532_v50 = vld [vmem:[%s6418_s10 + $0x5c] ss:$0 sps:$4 sm:$0x11]   ;;  %v1195_v5 = vshll.u32 %v6492_v23, 16 }
  0x23   : > { %v1173_v22 = vrot.slane %v1171_v15, 1  ;;  %v1185_v49 = vrot.slane %v1183_v43, 1  ;;  %v6540_v54 = vld [vmem:[%s6418_s10 + $0x64] sm:$0xf]  ;;  %v1414_v57 = vrot.slane %v6532_v50, 1 }
  0x24   : > { %5256 = vmatpush3.bf16.msra.mxu0 %v6055_v17  ;;  %5688 = vmatpush3.bf16.msra.mxu1 %v6054_v16  ;;  %v4532_v16 = vld [vmem:[%s6418_s10 + $0x40] sm:$0xf]  ;;  %v6086_v17 = vld [vmem:[%s7885_s1 + $0x50] sm:$0xff]   ;;  %v6545_v59 = vld [vmem:[%s6418_s10 + $0x68] ss:$0 sps:$4 sm:$0x11]  }
  0x25   : > { %5257 = vmatprep.subr.bf16.mxu0 %v6056_v18  ;;  %5689 = vmatprep.subr.bf16.mxu1 %v6057_v19  ;;  %v4529_v18 = vld [vmem:[%s6418_s10 + $0x30] sm:$0xf]  ;;  %v4578_v58 = vld [vmem:[%s6418_s10 + $0x60] sm:$0xe]  ;;  %v4533_v2 = vld [vmem:[%s6418_s10 + $0x48] sm:$0xf] }
  0x26   : > { %v6502_v28 = vcombine.low %v4529_v18, %v4530_v1  ;;  %v4626_v60 = vcombine.low %v4578_v58, %v6540_v54  ;;  %v1417_v4 = vrot.slane %v6545_v59, 1  ;;  %v6104_v6 = vld [vmem:[%s7885_s1 + $0x60] sm:$0xff]   ;;  %v6565_v8 = vld [vmem:[%s6418_s10 + $0x70] sm:$0xf]  ;;  %v6580_v18 = vcombine.low %v4533_v2, %v6499_v26  ;;  %v6615_v43 = vld [vmem:[%s6418_s10 + $0x94] sm:$0xf] }
  0x27   : > { %v6647_v2 = vld [vmem:[%s6418_s10 + $0xa0] sm:$0xf] }
  0x28   : > { %5258 = vmatpush3.bf16.msra.mxu0 %v6058_v20  ;;  %5690 = vmatpush3.bf16.msra.mxu1 %v6057_v19  ;;  %v4575_v19 = vld [vmem:[%s6418_s10 + $0x3c] sm:$0xe]  ;;  %v1406_v20 = vsel %vm817_vm0, %v1404_v13, %v1405_v11  ;;  %v1176_v41 = vshrl.u32 %v6502_v28, 16  ;;  %v1178_v42 = vshll.u32 %v6502_v28, 16  ;;  %v1416_v3 = vrot.slane %v4626_v60, 1 }
  0x29   : > { %5259 = vmatprep.subr.bf16.mxu0 %v6059_v21  ;;  %5691 = vmatprep.subr.bf16.mxu1 %v6060_v24  ;;  %v1168_v21 = vrot.slane %v1166_v14, 1  ;;  %v4579_v13 = vld [vmem:[%s6418_s10 + $0x6c] sm:$0xe]  ;;  %v6573_v14 = vld [vmem:[%s6418_s10 + $0x74] ss:$0 sps:$4 sm:$0x11]  }
  0x2a   : > { %v1180_v48 = vrot.slane %v1178_v42, 1  ;;  %v1418_v11 = vsel %vm817_vm0, %v1416_v3, %v1417_v4  ;;  %v4583_v4 = vld [vmem:[%s6418_s10 + $0x9c] sm:$0xe] }
  0x2b   : > { %v1169_v29 = vor.u32 %v1168_v21, %v1164_v12  ;;  %v1197_v12 = vrot.slane %v1195_v5, 1  ;;  %v6586_v21 = vld [vmem:[%s6418_s10 + $0x80] ss:$0 sps:$4 sm:$0x11]  }
  0x2c   : > { %5260 = vmatpush3.bf16.msra.mxu0 %v6061_v27  ;;  %5692 = vmatpush3.bf16.msra.mxu1 %v6060_v24  ;;  %v4623_v24 = vcombine.low %v4575_v19, %v4532_v16  ;;  %v4576_v27 = vld [vmem:[%s6418_s10 + $0x48] sm:$0xe]  ;;  %v1181_v55 = vor.u32 %v1180_v48, %v1176_v41  ;;  %v1420_v19 = vrot.slane %v6573_v14, 1  ;;  %v6611_v41 = vld [vmem:[%s6418_s10 + $0x8c] ss:$0 sps:$4 sm:$0x11]  }
  0x2d   : > { %5381 = vmatprep.subr.bf16.mxu1 %v6068_v35  ;;  %5517 = vmatprep.subr.bf16.mxu0 %v6070_v44  ;;  %v4624_v35 = vcombine.low %v4576_v27, %v6499_v26  ;;  %v6514_v36 = vsel %vm560_vm1, %v1169_v29, %v1173_v22  ;;  %v1423_v26 = vrot.slane %v6586_v21, 1  ;;  %v6107_v27 = vld [vmem:[%s7885_s1 + $0x190] sm:$0xff]   ;;  %v6652_v5 = vld [vmem:[%s6418_s10 + $0xa4] ss:$0 sps:$4 sm:$0x11]  }
  0x2e   : > { %v1407_v30 = vrot.slane %v4623_v24, 1  ;;  %v6552_v62 = vsel %vm560_vm1, %v1181_v55, %v1185_v49  ;;  %v4582_v48 = vld [vmem:[%s6418_s10 + $0x90] sm:$0xe] }
  0x2f   : > { %1685 = vmatmul.mubr.bf16.vlgmr.msra.gmra.mrb[0].mxu0 %v4587_v25  ;;  %5694 = vmatmul.mubr.bf16.vlgmr.msra.gmra.mrb[0].mxu1 %v1400_v53  ;;  %v6087_v25 = vld [vmem:[%s7885_s1 + $0x10] sm:$0xff]   ;;  %v1410_v40 = vrot.slane %v4624_v35, 1  ;;  %v6096_v53 = vld [vmem:[%s7885_s1 + $0x58] sm:$0xff]   ;;  %v4630_v55 = vcombine.low %v4582_v48, %v6615_v43  ;;  %v6704_v48 = vld [vmem:[%s6418_s10 + $0xc4] sm:$0xf] }
  0x30   : > { %5382 = vmatpush3.bf16.msra.mxu1 %v6069_v46  ;;  %5518 = vmatpush3.bf16.msra.mxu0 %v6071_v47  ;;  %v1409_v37 = vsel %vm817_vm0, %v1407_v30, %v1408_v31  ;;  %v4577_v46 = vld [vmem:[%s6418_s10 + $0x54] sm:$0xe]  ;;  %v6529_v47 = vcombine.low %v4531_v34, %v4532_v16  ;;  %v4627_v16 = vcombine.low %v4579_v13, %v6565_v8  ;;  %v1200_v30 = vshrl.u32 %v6580_v18, 16  ;;  %v4584_v13 = vld [vmem:[%s6418_s10 + $0xa8] sm:$0xe] }
  0x31   : > { %5383 = vmatprep.subr.bf16.mxu1 %v6078_v63  ;;  %1692 = vmatprep.mubr.bf16.mxu0 %v6478_v9  ;;  %v4625_v51 = vcombine.low %v4577_v46, %v6526_v45  ;;  %v1202_v31 = vshll.u32 %v6580_v18, 16  ;;  %v4535_v34 = vld [vmem:[%s6418_s10 + $0x54] sm:$0xf]  ;;  %v1428_v58 = vrot.slane %v4630_v55, 1 }
  0x32   : > { %5697 = vmatprep.mubr.bf16.mxu1 %v1403_v10  ;;  %5519 = vmatprep.subr.bf16.mxu0 %v6088_v33  ;;  %v1190_v1 = vshll.u32 %v6529_v47, 16  ;;  %v6105_v10 = vld [vmem:[%s7885_s1 + $0x20] sm:$0xff]   ;;  %v1419_v23 = vrot.slane %v4627_v16, 1  ;;  %v1207_v33 = vshll.u32 %v6506_v32, 16 }
  0x33   : > { %v1413_v56 = vrot.slane %v4625_v51, 1  ;;  %v1426_v51 = vrot.slane %v6611_v41, 1 }
  0x34   : > { %5384 = vmatpush3.bf16.msra.mxu1 %v6079_v7  ;;  %5520 = vmatpush3.bf16.msra.mxu0 %v6089_v39  ;;  %v1192_v7 = vrot.slane %v1190_v1, 1  ;;  %v1209_v39 = vrot.slane %v1207_v33, 1  ;;  %v1219_v1 = vshll.u32 %v6532_v50, 16  ;;  %v1432_v50 = vrot.slane %v6652_v5, 1  ;;  %v6688_v33 = vld [vmem:[%s6418_s10 + $0xb8] sm:$0xf] }
  0x35   : > { %5385 = vmatprep.subr.bf16.mxu1 %v6086_v17  ;;  %v1415_v63 = vsel %vm817_vm0, %v1413_v56, %v1414_v57  ;;  %v6577_v17 = vld [vmem:[%s6418_s10 + $0x7c] sm:$0xf]  ;;  %v4537_v56 = vld [vmem:[%s6418_s10 + $0x60] sm:$0xf] }
  0x36   : > { %v6667_v16 = vcombine.low %v4537_v56, %v6540_v54  ;;  %v6710_v56 = vld [vmem:[%s6418_s10 + $0xc8] ss:$0 sps:$4 sm:$0x11]  }
  0x37   : > { %1693 = vmatmul.mubr.bf16.gmra.mrb[4].mxu0 %v6442_v38  ;;  %5698 = vmatmul.mubr.bf16.gmra.mrb[4].mxu1 %v1406_v20  ;;  %v1411_v38 = vrot.slane %v6506_v32, 1  ;;  %v4580_v20 = vld [vmem:[%s6418_s10 + $0x78] sm:$0xe]  ;;  %v6114_v32 = vld [vmem:[%s7885_s1 + $0x68] sm:$0xff]  }
  0x38   : > { %5386 = vmatpush3.bf16.msra.mxu1 %v6087_v25  ;;  %1700 = vmatprep.mubr.bf16.mxu0 %v6514_v36  ;;  %v4628_v24 = vcombine.low %v4580_v20, %v6577_v17  ;;  %v6106_v25 = vld [vmem:[%s7885_s1 + $0x1d0] sm:$0xff]  }
  0x39   : > { %5701 = vmatprep.mubr.bf16.mxu1 %v1409_v37  ;;  %v1412_v44 = vsel %vm817_vm0, %v1410_v40, %v1411_v38  ;;  %5387 = vmatprep.subr.bf16.mxu1 %v6096_v53  ;;  %v6607_v37 = vld [vmem:[%s6418_s10 + $0x88] sm:$0xf]  ;;  %v1204_v38 = vrot.slane %v1202_v31, 1  ;;  %v4581_v40 = vld [vmem:[%s6418_s10 + $0x84] sm:$0xe]  ;;  %v1231_v31 = vshll.u32 %v6545_v59, 16 }
  0x3a   : > { %v1422_v29 = vrot.slane %v4628_v24, 1  ;;  %5521 = vmatprep.subr.bf16.mxu0 %v6106_v25  ;;  %v4629_v42 = vcombine.low %v4581_v40, %v6607_v37  ;;  %v6627_v53 = vld [vmem:[%s6418_s10 + $0x98] ss:$0 sps:$4 sm:$0x11]   ;;  %v4539_v25 = vld [vmem:[%s6418_s10 + $0x6c] sm:$0xf] }
  0x3b   : > { %5522 = vmatpush3.bf16.msra.mxu0 %v6107_v27  ;;  %v1205_v46 = vor.u32 %v1204_v38, %v1200_v30  ;;  %v1429_v60 = vrot.slane %v6627_v53, 1  ;;  %v1226_v30 = vshll.u32 %v6667_v16, 16  ;;  %v6693_v40 = vld [vmem:[%s6418_s10 + $0xbc] ss:$0 sps:$4 sm:$0x11]   ;;  %v6700_v59 = vcombine.low %v4539_v25, %v6565_v8 }
  0x3c   : > { %5388 = vmatpush3.bf16.msra.mxu1 %v6097_v61  ;;  %v1424_v35 = vsel %vm817_vm0, %v1422_v29, %v1423_v26  ;;  %v1425_v49 = vrot.slane %v4629_v42, 1  ;;  %v1224_v29 = vshrl.u32 %v6667_v16, 16  ;;  %v6133_v8 = vld [vmem:[%s7885_s1 + $0x38] sm:$0xff]  }
  0x3d   : > { %5389 = vmatprep.subr.bf16.mxu1 %v6104_v6  ;;  %v1430_v3 = vsel %vm817_vm0, %v1428_v58, %v1429_v60  ;;  %v6123_v6 = vld [vmem:[%s7885_s1 + $0x30] sm:$0xff]   ;;  %v1228_v38 = vrot.slane %v1226_v30, 1 }
  0x3e   : > { %v1427_v57 = vsel %vm817_vm0, %v1425_v49, %v1426_v51  ;;  %v4586_v49 = vld [vmem:[%s6418_s10 + $0xc0] sm:$0xe] }
  0x3f   : > { %1701 = vmatmul.mubr.bf16.gmra.mrb[8].mxu0 %v6469_v0  ;;  %5702 = vmatmul.mubr.bf16.gmra.mrb[8].mxu1 %v1412_v44  ;;  %v1188_v0 = vshrl.u32 %v6529_v47, 16  ;;  %v6621_v44 = vcombine.low %v4535_v34, %v6526_v45  ;;  %v6115_v45 = vld [vmem:[%s7885_s1 + $0x28] sm:$0xff]   ;;  %v1229_v51 = vor.u32 %v1228_v38, %v1224_v29  ;;  %v4634_v58 = vcombine.low %v4586_v49, %v6704_v48  ;;  %v355_v38 = vld [vmem:[%s6418_s10 + $0x10] sm:$0xf] }
  0x40   : > { %1708 = vmatprep.mubr.bf16.mxu0 %v6552_v62  ;;  %5705 = vmatprep.mubr.bf16.mxu1 %v1415_v63  ;;  %v6122_v63 = vld [vmem:[%s7885_s1 + $0x70] sm:$0xff]  }
  0x41   : > { %v1193_v15 = vor.u32 %v1192_v7, %v1188_v0  ;;  %5390 = vmatpush3.bf16.msra.mxu1 %v6105_v10  ;;  %v1212_v61 = vshrl.u32 %v6621_v44, 16  ;;  %v1214_v0 = vshll.u32 %v6621_v44, 16  ;;  %v1221_v10 = vrot.slane %v1219_v1, 1 }
  0x42   : > { %5391 = vmatprep.subr.bf16.mxu1 %v6114_v32  ;;  %v6132_v32 = vld [vmem:[%s7885_s1 + $0x78] sm:$0xff]   ;;  %v1440_v1 = vrot.slane %v4634_v58, 1 }
  0x43   : > { %v6589_v22 = vsel %vm560_vm1, %v1193_v15, %v1197_v12  ;;  %v1216_v7 = vrot.slane %v1214_v0, 1  ;;  %v6659_v12 = vld [vmem:[%s6418_s10 + $0xac] sm:$0xf]  ;;  %v6124_v15 = vld [vmem:[%s7885_s1 + $0x1d8] sm:$0xff]   ;;  %v352_v0 = vld [vmem:[%s6418_s10] sm:$0xf] }
  0x44   : > { %v4632_v24 = vcombine.low %v4584_v13, %v6659_v12  ;;  %5523 = vmatprep.subr.bf16.mxu0 %v6124_v15  ;;  %v6137_v13 = vld [vmem:[%s7885_s1 + $0x1e0] sm:$0xff]  }
  0x45   : > { %5392 = vmatpush3.bf16.msra.mxu1 %v6115_v45  ;;  %v1438_v45 = vrot.slane %v6693_v40, 1 }
  0x46   : > { %5393 = vmatprep.subr.bf16.mxu1 %v6122_v63  ;;  %v1434_v27 = vrot.slane %v4632_v24, 1  ;;  %v1236_v63 = vshrl.u32 %v6700_v59, 16 }
  0x47   : > { %1709 = vmatmul.mubr.bf16.gmra.mrb[12].mxu0 %v6502_v28  ;;  %5706 = vmatmul.mubr.bf16.gmra.mrb[12].mxu1 %v1418_v11  ;;  %v1421_v28 = vsel %vm817_vm0, %v1419_v23, %v1420_v19  ;;  %v4631_v11 = vcombine.low %v4583_v4, %v6647_v2  ;;  %v1217_v19 = vor.u32 %v1216_v7, %v1212_v61  ;;  %v6671_v23 = vld [vmem:[%s6418_s10 + $0xb0] ss:$0 sps:$4 sm:$0x11]   ;;  %v1441_v61 = vrot.slane %v6710_v56, 1  ;;  %v6136_v7 = vld [vmem:[%s7885_s1 + $0x80] sm:$0xff]  }
  0x48   : > { %1716 = vmatprep.mubr.bf16.mxu0 %v6589_v22  ;;  %5709 = vmatprep.mubr.bf16.mxu1 %v1421_v28  ;;  %v6125_v28 = vld [vmem:[%s7885_s1 + $0x198] sm:$0xff]   ;;  %v1243_v4 = vshll.u32 %v6573_v14, 16 }
  0x49   : > { %5394 = vmatpush3.bf16.msra.mxu1 %v6123_v6  ;;  %v1431_v20 = vrot.slane %v4631_v11, 1  ;;  %v6676_v26 = vsel %vm560_vm1, %v1217_v19, %v1221_v10  ;;  %5524 = vmatpush3.bf16.msra.mxu0 %v6125_v28  ;;  %v353_v6 = vld [vmem:[%s6418_s10 + $0x4] sm:$0xf]  ;;  %v1442_v15 = vsel %vm817_vm0, %v1440_v1, %v1441_v61 }
  0x4a   : > { %7905 = vst [vmem:[#allocation3_spill] sm:$0xff] %v6676_v26  ;;  %5395 = vmatprep.subr.bf16.mxu1 %v6132_v32  ;;  %v4475_v11 = vcombine.low %v352_v0, %v353_v6  ;;  %v1245_v14 = vrot.slane %v1243_v4, 1  ;;  %5525 = vmatprep.subr.bf16.mxu0 %v6137_v13  ;;  %v6144_v13 = vld [vmem:[%s7885_s1 + $0x1e8] sm:$0xff]  }
  0x4b   : > { %v1433_v54 = vsel %vm817_vm0, %v1431_v20, %v1432_v50  ;;  %v6735_v50 = vld [vmem:[%s6418_s10 + $0x8] ss:$0 sps:$4 sm:$0x11]  }
  0x4c   : > { %v562_v24 = vshrl.u32 %v4475_v11, 16  ;;  %v564_v25 = vshll.u32 %v4475_v11, 16 }
  0x4d   : > { %5396 = vmatpush3.bf16.msra.mxu1 %v6133_v8  ;;  %v357_v8 = vld [vmem:[%s6418_s10 + $0x1c] sm:$0xf] }
  0x4e   : > { %5725 = vmatprep.subr.bf16.mxu1 %v6136_v7  ;;  %v566_v28 = vrot.slane %v564_v25, 1 }
  0x4f   : > { %1717 = vmatmul.mubr.bf16.gmra.mrb[16].mxu0 %v6529_v47  ;;  %5710 = vmatmul.mubr.bf16.gmra.mrb[16].mxu1 %v1424_v35  ;;  %v6634_v47 = vsel %vm560_vm1, %v1205_v46, %v1209_v39  ;;  %v4585_v35 = vld [vmem:[%s6418_s10 + $0xb4] sm:$0xe]  ;;  %v1233_v39 = vrot.slane %v1231_v31, 1  ;;  %v4541_v46 = vld [vmem:[%s6418_s10 + $0x78] sm:$0xf] }
  0x50   : > { %7904 = vst [vmem:[#allocation2_spill] sm:$0xff] %v6634_v47  ;;  %1724 = vmatprep.mubr.bf16.mxu0 %v6634_v47  ;;  %5713 = vmatprep.mubr.bf16.mxu1 %v1427_v57  ;;  %v4633_v42 = vcombine.low %v4585_v35, %v6688_v33  ;;  %v4543_v57 = vld [vmem:[%s6418_s10 + $0x84] sm:$0xf]  ;;  %v6732_v10 = vcombine.low %v4541_v46, %v6577_v17  ;;  %v569_v17 = vshll.u32 %v6735_v50, 16  ;;  %v354_v31 = vld [vmem:[%s6418_s10 + $0xc] sm:$0xf] }
  0x51   : > { %v6718_v60 = vsel %vm560_vm1, %v1229_v51, %v1233_v39  ;;  %v6742_v20 = vcombine.low %v4543_v57, %v6607_v37  ;;  %v1255_v35 = vshll.u32 %v6586_v21, 16  ;;  %v567_v39 = vor.u32 %v566_v28, %v562_v24  ;;  %v6140_v46 = vld [vmem:[%s6418_s10 + $0x14] ss:$0 sps:$4 sm:$0x11]   ;;  %v4547_v24 = vld [vmem:[%s6418_s10 + $0x9c] sm:$0xf] }
  0x52   : > { %v1437_v55 = vrot.slane %v4633_v42, 1  ;;  %7906 = vst [vmem:[#allocation4_spill] sm:$0xff] %v6718_v60  ;;  %v571_v29 = vrot.slane %v569_v17, 1  ;;  %v1248_v37 = vshrl.u32 %v6732_v10, 16  ;;  %v1250_v30 = vshll.u32 %v6732_v10, 16 }
  0x53   : > { %v6760_v32 = vcombine.low %v354_v31, %v355_v38  ;;  %v1262_v49 = vshll.u32 %v6742_v20, 16  ;;  %v1257_v51 = vrot.slane %v1255_v35, 1  ;;  %v6147_v38 = vld [vmem:[%s6418_s10 + $0x2c] ss:$0 sps:$4 sm:$0x11]  }
  0x54   : > { %v1252_v42 = vrot.slane %v1250_v30, 1  ;;  %v572_v21 = vsel %vm560_vm1, %v567_v39, %v571_v29  ;;  %v1279_v29 = vshll.u32 %v6627_v53, 16  ;;  %v6151_v53 = vld [vmem:[%s7885_s1 + $0x1f0] sm:$0xff]  }
  0x55   : > { %v574_v58 = vshrl.u32 %v6760_v32, 16  ;;  %v1264_v0 = vrot.slane %v1262_v49, 1  ;;  %v6811_v49 = vcombine.low %v4547_v24, %v6647_v2 }
  0x56   : > { %v1253_v57 = vor.u32 %v1252_v42, %v1248_v37  ;;  %v358_v37 = vld [vmem:[%s6418_s10 + $0x24] sm:$0xf]  ;;  %v360_v42 = vld [vmem:[%s6418_s10 + $0x30] sm:$0xf] }
  0x57   : > { %1725 = vmatmul.mubr.bf16.gmra.mrb[20].mxu0 %v6580_v18  ;;  %5714 = vmatmul.mubr.bf16.gmra.mrb[20].mxu1 %v1430_v3  ;;  %v1435_v18 = vrot.slane %v6671_v23, 1  ;;  %v1238_v3 = vshll.u32 %v6700_v59, 16 }
  0x58   : > { %1732 = vmatprep.mubr.bf16.mxu0 %v6676_v26  ;;  %5717 = vmatprep.mubr.bf16.mxu1 %v1433_v54  ;;  %v6138_v54 = vld [vmem:[%s7885_s1 + $0x1a0] sm:$0xff]   ;;  %v6780_v4 = vsel %vm560_vm1, %v1253_v57, %v1257_v51  ;;  %v605_v57 = vshll.u32 %v6147_v38, 16  ;;  %v6263_v26 = vld [vmem:[%s6418_s10 + $0x10] sm:$0xf] }
  0x59   : > { %v1436_v34 = vsel %vm817_vm0, %v1434_v27, %v1435_v18  ;;  %v1240_v19 = vrot.slane %v1238_v3, 1  ;;  %v4545_v18 = vld [vmem:[%s6418_s10 + $0x90] sm:$0xf]  ;;  %5526 = vmatpush3.bf16.msra.mxu0 %v6138_v54  ;;  %v6142_v3 = vld [vmem:[%s6418_s10 + $0x20] ss:$0 sps:$4 sm:$0x11]  }
  0x5a   : > { %v6771_v61 = vcombine.low %v4545_v18, %v6615_v43  ;;  %7908 = vst [vmem:[#allocation6_spill] sm:$0xff] %v6780_v4  ;;  %v593_v54 = vshll.u32 %v6142_v3, 16  ;;  %5527 = vmatprep.subr.bf16.mxu0 %v6144_v13  ;;  %v6157_v3 = vld [vmem:[%s7885_s1 + $0x98] sm:$0xff]   ;;  %v6154_v38 = vld [vmem:[%s6418_s10 + $0x44] ss:$0 sps:$4 sm:$0x11]  }
  0x5b   : > { %v1241_v27 = vor.u32 %v1240_v19, %v1236_v63  ;;  %v581_v63 = vshll.u32 %v6140_v46, 16  ;;  %v361_v46 = vld [vmem:[%s6418_s10 + $0x34] sm:$0xf] }
  0x5c   : > { %v1274_v28 = vshll.u32 %v6771_v61, 16  ;;  %v595_v30 = vrot.slane %v593_v54, 1 }
  0x5d   : > { %v583_v43 = vrot.slane %v581_v63, 1  ;;  %v6152_v63 = vld [vmem:[%s7885_s1 + $0x1b0] sm:$0xff]  }
  0x5e   : > { %v1276_v39 = vrot.slane %v1274_v28, 1 }
  0x5f   : > { %1733 = vmatmul.mubr.bf16.gmra.mrb[24].mxu0 %v6621_v44  ;;  %5718 = vmatmul.mubr.bf16.gmra.mrb[24].mxu1 %v1436_v34  ;;  %v1439_v44 = vsel %vm817_vm0, %v1437_v55, %v1438_v45  ;;  %v6754_v34 = vsel %vm560_vm1, %v1241_v27, %v1245_v14  ;;  %v1267_v55 = vshll.u32 %v6611_v41, 16  ;;  %v356_v45 = vld [vmem:[%s6418_s10 + $0x18] sm:$0xf]  ;;  %v6143_v41 = vld [vmem:[%s7885_s1 + $0x88] sm:$0xff]  }
  0x60   : > { %1740 = vmatprep.mubr.bf16.mxu0 %v6718_v60  ;;  %5721 = vmatprep.mubr.bf16.mxu1 %v1439_v44  ;;  %7907 = vst [vmem:[#allocation5_spill] sm:$0xff] %v6754_v34  ;;  %v576_v44 = vshll.u32 %v6760_v32, 16  ;;  %v6773_v1 = vcombine.low %v356_v45, %v357_v8  ;;  %v6145_v14 = vld [vmem:[%s7885_s1 + $0x1a8] sm:$0xff]  }
  0x61   : > { %v1269_v17 = vrot.slane %v1267_v55, 1  ;;  %5528 = vmatpush3.bf16.msra.mxu0 %v6145_v14  ;;  %v1281_v55 = vrot.slane %v1279_v29, 1  ;;  %v363_v14 = vld [vmem:[%s6418_s10 + $0x40] sm:$0xf] }
  0x62   : > { %v578_v6 = vrot.slane %v576_v44, 1  ;;  %v588_v19 = vshll.u32 %v6773_v1, 16  ;;  %5529 = vmatprep.subr.bf16.mxu0 %v6151_v53  ;;  %v4549_v44 = vld [vmem:[%s6418_s10 + $0xa8] sm:$0xf]  ;;  %v6166_v53 = vld [vmem:[%s7885_s1 + $0xa0] sm:$0xff]  }
  0x63   : > { %v6841_v24 = vcombine.low %v4549_v44, %v6659_v12  ;;  %v629_v44 = vshll.u32 %v6154_v38, 16 }
  0x64   : > { %v579_v25 = vor.u32 %v578_v6, %v574_v58  ;;  %v590_v18 = vrot.slane %v588_v19, 1  ;;  %v6819_v58 = vcombine.low %v360_v42, %v361_v46  ;;  %v362_v19 = vld [vmem:[%s6418_s10 + $0x3c] sm:$0xf] }
  0x65   : > { %5530 = vmatpush3.bf16.msra.mxu0 %v6152_v63  ;;  %v6852_v12 = vcombine.low %v362_v19, %v363_v14  ;;  %v1296_v42 = vshrl.u32 %v6841_v24, 16  ;;  %v6884_v63 = vld [vmem:[%s7886_s2] sm:$0xff]  }
  0x66   : > { %v612_v6 = vshll.u32 %v6819_v58, 16 }
  0x67   : > { %1741 = vmatmul.mubr.bf16.gmra.mrb[28].mxu0 %v6667_v16  ;;  %5722 = vmatmul.mubr.bf16.gmra.mrb[28].mxu1 %v1442_v15  ;;  %v1260_v16 = vshrl.u32 %v6742_v20, 16  ;;  %v586_v15 = vshrl.u32 %v6773_v1, 16 }
  0x68   : > { %1748 = vmatprep.mubr.bf16.mxu0 %v6754_v34  ;;  %2150 = vmatprep.mubr.bf16.mxu1 %v572_v21 }
  0x69   : > { %v1265_v27 = vor.u32 %v1264_v0, %v1260_v16  ;;  %v591_v31 = vor.u32 %v590_v18, %v586_v15  ;;  %v1272_v16 = vshrl.u32 %v6771_v61, 16  ;;  %v6149_v0 = vld [vmem:[%s6418_s10 + $0x38] ss:$0 sps:$4 sm:$0x11]   ;;  %v607_v15 = vrot.slane %v605_v57, 1 }
  0x6a   : > { %v614_v18 = vrot.slane %v612_v6, 1 }
  0x6b   : > { %v6814_v51 = vsel %vm560_vm1, %v1265_v27, %v1269_v17  ;;  %v596_v8 = vsel %vm560_vm1, %v591_v31, %v595_v30  ;;  %v1277_v13 = vor.u32 %v1276_v39, %v1272_v16  ;;  %v6159_v17 = vld [vmem:[%s7885_s1 + $0x1b8] sm:$0xff]   ;;  %v610_v27 = vshrl.u32 %v6819_v58, 16  ;;  %v364_v39 = vld [vmem:[%s6418_s10 + $0x48] sm:$0xf] }
  0x6c   : > { %7909 = vst [vmem:[#allocation7_spill] sm:$0xff] %v6814_v51  ;;  %v624_v16 = vshll.u32 %v6852_v12, 16 }
  0x6d   : > { %v6849_v28 = vsel %vm560_vm1, %v1277_v13, %v1281_v55  ;;  %v615_v31 = vor.u32 %v614_v18, %v610_v27 }
  0x6e   : > { %7910 = vst [vmem:[#allocation8_spill] sm:$0xff] %v6849_v28  ;;  %v626_v57 = vrot.slane %v624_v16, 1  ;;  %v4732_v16 = vld [vmem:[%s6418_s10 + $0x1c] sm:$0xf] }
  0x6f   : > { %1749 = vmatmul.mubr.bf16.gmra.mrb[32].mxu0 %v6700_v59  ;;  %2151 = vmatmul.mubr.bf16.vlgmr.msra.gmra.mrb[32].mxu1 %v4475_v11  ;;  %v584_v59 = vsel %vm560_vm1, %v579_v25, %v583_v43  ;;  %v359_v11 = vld [vmem:[%s6418_s10 + $0x28] sm:$0xf]  ;;  %v617_v25 = vshll.u32 %v6149_v0, 16  ;;  %v4553_v0 = vld [vmem:[%s6418_s10 + $0xc0] sm:$0xf] }
  0x70   : > { %5726 = vmatpush3.bf16.msra.mxu1 %v6136_v7  ;;  %1756 = vmatprep.mubr.bf16.mxu0 %v6780_v4  ;;  %v6150_v7 = vld [vmem:[%s7885_s1 + $0x90] sm:$0xff]   ;;  %v6801_v35 = vcombine.low %v358_v37, %v359_v11  ;;  %v1298_v11 = vshll.u32 %v6841_v24, 16 }
  0x71   : > { %5727 = vmatprep.subr.bf16.mxu1 %v6143_v41  ;;  %2158 = vmatprep.mubr.bf16.mxu1 %v584_v59  ;;  %v4551_v37 = vld [vmem:[%s6418_s10 + $0xb4] sm:$0xf]  ;;  %v619_v30 = vrot.slane %v617_v25, 1 }
  0x72   : > { %v600_v45 = vshll.u32 %v6801_v35, 16  ;;  %v598_v21 = vshrl.u32 %v6801_v35, 16  ;;  %v7170_v4 = vld [vmem:[%s6418_s10 + $0x74] ss:$0 sps:$4 sm:$0x11]  }
  0x73   : > { %v620_v55 = vsel %vm560_vm1, %v615_v31, %v619_v30  ;;  %v368_v30 = vld [vmem:[%s6418_s10 + $0x60] sm:$0xf] }
  0x74   : > { %5728 = vmatpush3.bf16.msra.mxu1 %v6143_v41  ;;  %v602_v2 = vrot.slane %v600_v45, 1  ;;  %v1286_v41 = vshll.u32 %v6811_v49, 16  ;;  %v1300_v45 = vrot.slane %v1298_v11, 1  ;;  %v369_v11 = vld [vmem:[%s6418_s10 + $0x64] sm:$0xf] }
  0x75   : > { %5729 = vmatprep.subr.bf16.mxu1 %v6150_v7 }
  0x76   : > { %v603_v43 = vor.u32 %v602_v2, %v598_v21  ;;  %v1288_v54 = vrot.slane %v1286_v41, 1  ;;  %v622_v21 = vshrl.u32 %v6852_v12, 16 }
  0x77   : > { %1757 = vmatmul.mubr.bf16.gmra.mrb[36].mxu0 %v6732_v10  ;;  %2159 = vmatmul.mubr.bf16.gmra.mrb[36].mxu1 %v6760_v32  ;;  %v1291_v10 = vshll.u32 %v6652_v5, 16  ;;  %v6158_v32 = vld [vmem:[%s7885_s1 + $0x1f8] sm:$0xff]   ;;  %v1284_v5 = vshrl.u32 %v6811_v49, 16 }
  0x78   : > { %1764 = vmatprep.mubr.bf16.mxu0 %v6814_v51  ;;  %2166 = vmatprep.mubr.bf16.mxu1 %v596_v8  ;;  %v608_v29 = vsel %vm560_vm1, %v603_v43, %v607_v15  ;;  %v1303_v8 = vshll.u32 %v6671_v23, 16  ;;  %v1301_v23 = vor.u32 %v1300_v45, %v1296_v42  ;;  %v627_v6 = vor.u32 %v626_v57, %v622_v21  ;;  %v366_v43 = vld [vmem:[%s6418_s10 + $0x54] sm:$0xf]  ;;  %v367_v15 = vld [vmem:[%s6418_s10 + $0x58] sm:$0xf] }
  0x79   : > { %5730 = vmatpush3.bf16.msra.mxu1 %v6150_v7  ;;  %5531 = vmatprep.subr.bf16.mxu0 %v6158_v32  ;;  %v1293_v59 = vrot.slane %v1291_v10, 1  ;;  %v1289_v7 = vor.u32 %v1288_v54, %v1284_v5  ;;  %v6897_v10 = vcombine.low %v4553_v0, %v6704_v48  ;;  %v1315_v32 = vshll.u32 %v6693_v40, 16  ;;  %v6186_v40 = vld [vmem:[%s7885_s1 + $0xb0] sm:$0xff]   ;;  %v6163_v45 = vld [vmem:[%s6418_s10 + $0x68] ss:$0 sps:$4 sm:$0x11]  }
  0x7a   : > { %5731 = vmatprep.subr.bf16.mxu1 %v6157_v3  ;;  %5532 = vmatpush3.bf16.msra.mxu0 %v6159_v17  ;;  %v6906_v48 = vcombine.low %v366_v43, %v367_v15  ;;  %v6165_v0 = vld [vmem:[%s6418_s10 + $0x20] ss:$0 sps:$4 sm:$0x11]   ;;  %v6949_v43 = vld [vmem:[%s6418_s10 + $0x70] sm:$0xf] }
  0x7b   : > { %v6871_v46 = vsel %vm560_vm1, %v1289_v7, %v1293_v59  ;;  %5821 = vmatprep.subr.bf16.mxu0 %v6884_v63  ;;  %v1317_v18 = vrot.slane %v1315_v32, 1  ;;  %v6161_v59 = vld [vmem:[%s6418_s10 + $0x5c] ss:$0 sps:$4 sm:$0x11]   ;;  %v2657_v15 = vshll.u32 %v6165_v0, 16 }
  0x7c   : > { %7911 = vst [vmem:[#allocation9_spill] sm:$0xff] %v6871_v46  ;;  %v648_v38 = vshll.u32 %v6906_v48, 16  ;;  %v653_v42 = vshll.u32 %v6161_v59, 16  ;;  %v4734_v32 = vld [vmem:[%s6418_s10 + $0x28] sm:$0xf] }
  0x7d   : > { %5732 = vmatpush3.bf16.msra.mxu1 %v6157_v3  ;;  %v1305_v3 = vrot.slane %v1303_v8, 1  ;;  %v6968_v59 = vld [vmem:[%s6418_s10 + $0x74] ss:$0 sps:$4 sm:$0x11]  }
  0x7e   : > { %5733 = vmatprep.subr.bf16.mxu1 %v6166_v53 }
  0x7f   : > { %1765 = vmatmul.mubr.bf16.gmra.mrb[40].mxu0 %v6742_v20  ;;  %2167 = vmatmul.mubr.bf16.gmra.mrb[40].mxu1 %v6773_v1  ;;  %v365_v20 = vld [vmem:[%s6418_s10 + $0x4c] sm:$0xf]  ;;  %v6867_v1 = vcombine.low %v4551_v37, %v6688_v33  ;;  %v6156_v33 = vld [vmem:[%s6418_s10 + $0x50] ss:$0 sps:$4 sm:$0x11]   ;;  %v6901_v14 = vsel %vm560_vm1, %v1301_v23, %v1305_v3  ;;  %v1322_v37 = vshll.u32 %v6897_v10, 16 }
  0x80   : > { %1772 = vmatprep.mubr.bf16.mxu0 %v6849_v28  ;;  %2174 = vmatprep.mubr.bf16.mxu1 %v608_v29  ;;  %v6876_v2 = vcombine.low %v364_v39, %v365_v20  ;;  %v641_v19 = vshll.u32 %v6156_v33, 16  ;;  %7912 = vst [vmem:[#allocation10_spill] sm:$0xff] %v6901_v14  ;;  %v1327_v20 = vshll.u32 %v6710_v56, 16  ;;  %v650_v33 = vrot.slane %v648_v38, 1  ;;  %v6940_v56 = vld [vmem:[%s7885_s1 + $0x200] sm:$0xff]  }
  0x81   : > { %5734 = vmatpush3.bf16.msra.mxu1 %v6166_v53  ;;  %v1310_v41 = vshll.u32 %v6867_v1, 16  ;;  %v1308_v25 = vshrl.u32 %v6867_v1, 16  ;;  %v4731_v53 = vld [vmem:[%s6418_s10 + $0x18] sm:$0xf]  ;;  %v1324_v39 = vrot.slane %v1322_v37, 1  ;;  %v2659_v37 = vrot.slane %v2657_v15, 1 }
  0x82   : > { %v636_v13 = vshll.u32 %v6876_v2, 16  ;;  %v634_v54 = vshrl.u32 %v6876_v2, 16  ;;  %v643_v29 = vrot.slane %v641_v19, 1  ;;  %v6929_v8 = vcombine.low %v4731_v53, %v4732_v16  ;;  %v6975_v53 = vld [vmem:[%s6418_s10 + $0x7c] sm:$0xf] }
  0x83   : > { %v1312_v17 = vrot.slane %v1310_v41, 1  ;;  %v1329_v23 = vrot.slane %v1327_v20, 1  ;;  %v655_v41 = vrot.slane %v653_v42, 1 }
  0x84   : > { %v638_v27 = vrot.slane %v636_v13, 1  ;;  %v370_v13 = vld [vmem:[%s6418_s10 + $0x6c] sm:$0xf] }
  0x85   : > { %v1313_v7 = vor.u32 %v1312_v17, %v1308_v25  ;;  %v6959_v17 = vcombine.low %v370_v13, %v6949_v43  ;;  %v6175_v13 = vld [vmem:[%s6418_s10 + $0x38] ss:$0 sps:$4 sm:$0x11]  }
  0x86   : > { %v639_v31 = vor.u32 %v638_v27, %v634_v54  ;;  %v2650_v27 = vshrl.u32 %v6929_v8, 16 }
  0x87   : > { %1773 = vmatmul.mubr.bf16.gmra.mrb[44].mxu0 %v6771_v61  ;;  %2175 = vmatmul.mubr.bf16.gmra.mrb[44].mxu1 %v6801_v35  ;;  %v6176_v61 = vld [vmem:[%s7885_s1 + $0xa8] sm:$0xff]   ;;  %v631_v35 = vrot.slane %v629_v44, 1  ;;  %v6932_v21 = vsel %vm560_vm1, %v1313_v7, %v1317_v18  ;;  %v646_v44 = vshrl.u32 %v6906_v48, 16 }
  0x88   : > { %1780 = vmatprep.mubr.bf16.mxu0 %v6871_v46  ;;  %2182 = vmatprep.mubr.bf16.mxu1 %v620_v55  ;;  %v6926_v55 = vcombine.low %v368_v30, %v369_v11  ;;  %7913 = vst [vmem:[#allocation11_spill] sm:$0xff] %v6932_v21  ;;  %v644_v57 = vsel %vm560_vm1, %v639_v31, %v643_v29  ;;  %v372_v30 = vld [vmem:[%s6418_s10 + $0x78] sm:$0xf]  ;;  %v672_v11 = vshll.u32 %v6959_v17, 16 }
  0x89   : > { %5735 = vmatprep.subr.bf16.mxu1 %v6176_v61  ;;  %v632_v5 = vsel %vm560_vm1, %v627_v6, %v631_v35  ;;  %v2652_v6 = vshll.u32 %v6929_v8, 16  ;;  %v651_v35 = vor.u32 %v650_v33, %v646_v44  ;;  %v6171_v7 = vld [vmem:[%s6418_s10 + $0x2c] ss:$0 sps:$4 sm:$0x11]   ;;  %v6983_v20 = vcombine.low %v372_v30, %v6975_v53  ;;  %v6240_v46 = vld [vmem:[%s7886_s2 + $0x38] sm:$0xff]  }
  0x8a   : > { %5736 = vmatpush3.bf16.msra.mxu1 %v6176_v61  ;;  %v660_v61 = vshll.u32 %v6926_v55, 16  ;;  %v658_v25 = vshrl.u32 %v6926_v55, 16  ;;  %v2669_v0 = vshll.u32 %v6171_v7, 16  ;;  %v6177_v30 = vld [vmem:[%s7886_s2 + $0x8] sm:$0xff]  }
  0x8b   : > { %5737 = vmatprep.subr.bf16.mxu1 %v6186_v40 }
  0x8c   : > { %v662_v54 = vrot.slane %v660_v61, 1  ;;  %v684_v61 = vshll.u32 %v6983_v20, 16 }
  0x8e   : > { %5738 = vmatpush3.bf16.msra.mxu1 %v6186_v40  ;;  %v2654_v40 = vrot.slane %v2652_v6, 1  ;;  %v663_v31 = vor.u32 %v662_v54, %v658_v25  ;;  %v374_v6 = vld [vmem:[%s6418_s10 + $0x84] sm:$0xf]  ;;  %v682_v54 = vshrl.u32 %v6983_v20, 16 }
  0x8f   : > { %1781 = vmatmul.mubr.bf16.gmra.mrb[48].mxu0 %v6811_v49  ;;  %2183 = vmatmul.mubr.bf16.gmra.mrb[48].mxu1 %v6819_v58  ;;  %v6196_v49 = vld [vmem:[%s7885_s1 + $0xb8] sm:$0xff]   ;;  %v1320_v58 = vshrl.u32 %v6897_v10, 16 }
  0x90   : > { %1788 = vmatprep.mubr.bf16.mxu0 %v6901_v14  ;;  %2190 = vmatprep.mubr.bf16.mxu1 %v632_v5  ;;  %v656_v5 = vsel %vm560_vm1, %v651_v35, %v655_v41  ;;  %v2655_v38 = vor.u32 %v2654_v40, %v2650_v27  ;;  %v6998_v35 = vld [vmem:[%s6418_s10 + $0x88] sm:$0xf]  ;;  %v686_v27 = vrot.slane %v684_v61, 1 }
  0x91   : > { %5739 = vmatprep.subr.bf16.mxu1 %v6196_v49  ;;  %v1325_v3 = vor.u32 %v1324_v39, %v1320_v58  ;;  %v674_v58 = vrot.slane %v672_v11, 1  ;;  %v677_v39 = vshll.u32 %v6968_v59, 16  ;;  %v7006_v25 = vcombine.low %v374_v6, %v6998_v35  ;;  %v6197_v6 = vld [vmem:[%s7886_s2 + $0x18] sm:$0xff]  }
  0x92   : > { %5740 = vmatpush3.bf16.msra.mxu1 %v6196_v49  ;;  %v4736_v49 = vld [vmem:[%s6418_s10 + $0x34] sm:$0xf] }
  0x93   : > { %5773 = vmatprep.subr.bf16.mxu1 %v6940_v56  ;;  %v6955_v19 = vsel %vm560_vm1, %v1325_v3, %v1329_v23  ;;  %v6993_v23 = vld [vmem:[%s6418_s10 + $0x80] ss:$0 sps:$4 sm:$0x11]   ;;  %v679_v41 = vrot.slane %v677_v39, 1 }
  0x94   : > { %7914 = vst [vmem:[#allocation12_spill] sm:$0xff] %v6955_v19 }
  0x97   : > { %1789 = vmatmul.mubr.bf16.gmra.mrb[52].mxu0 %v6841_v24  ;;  %2191 = vmatmul.mubr.bf16.gmra.mrb[52].mxu1 %v6852_v12  ;;  %v665_v24 = vshll.u32 %v6163_v45, 16  ;;  %v4733_v12 = vld [vmem:[%s6418_s10 + $0x24] sm:$0xf]  ;;  %v2660_v45 = vsel %vm560_vm1, %v2655_v38, %v2659_v37  ;;  %v2681_v37 = vshll.u32 %v6175_v13, 16 }
  0x98   : > { %1796 = vmatprep.mubr.bf16.mxu0 %v6932_v21  ;;  %2198 = vmatprep.mubr.bf16.mxu1 %v644_v57  ;;  %v6963_v29 = vcombine.low %v4733_v12, %v4734_v32  ;;  %v2671_v12 = vrot.slane %v2669_v0, 1  ;;  %v4738_v32 = vld [vmem:[%s6418_s10 + $0x40] sm:$0xf]  ;;  %v694_v0 = vshrl.u32 %v7006_v25, 16 }
  0x99   : > { %v667_v18 = vrot.slane %v665_v24, 1 }
  0x9a   : > { %v2664_v16 = vshll.u32 %v6963_v29, 16  ;;  %v2662_v44 = vshrl.u32 %v6963_v29, 16 }
  0x9b   : > { %v668_v42 = vsel %vm560_vm1, %v663_v31, %v667_v18  ;;  %v7018_v31 = vld [vmem:[%s6418_s10 + $0x8c] ss:$0 sps:$4 sm:$0x11]  }
  0x9c   : > { %v2666_v33 = vrot.slane %v2664_v16, 1  ;;  %v696_v16 = vshll.u32 %v7006_v25, 16 }
  0x9e   : > { %v2667_v15 = vor.u32 %v2666_v33, %v2662_v44  ;;  %v7035_v44 = vld [vmem:[%s6418_s10 + $0x4c] sm:$0xf]  ;;  %v701_v33 = vshll.u32 %v7018_v31, 16 }
  0x9f   : > { %1797 = vmatmul.mubr.bf16.gmra.mrb[56].mxu0 %v6867_v1  ;;  %2199 = vmatmul.mubr.bf16.gmra.mrb[56].mxu1 %v6876_v2  ;;  %v4735_v1 = vld [vmem:[%s6418_s10 + $0x30] sm:$0xf]  ;;  %v670_v2 = vshrl.u32 %v6959_v17, 16 }
  0xa0   : > { %1804 = vmatprep.mubr.bf16.mxu0 %v6955_v19  ;;  %2206 = vmatprep.mubr.bf16.mxu1 %v656_v5  ;;  %v6987_v57 = vcombine.low %v4735_v1, %v4736_v49  ;;  %v2672_v7 = vsel %vm560_vm1, %v2667_v15, %v2671_v12  ;;  %v6181_v1 = vld [vmem:[%s6418_s10 + $0x44] ss:$0 sps:$4 sm:$0x11]   ;;  %v6187_v49 = vld [vmem:[%s7886_s2 + $0x10] sm:$0xff]  }
  0xa1   : > { %v675_v3 = vor.u32 %v674_v58, %v670_v2  ;;  %v376_v2 = vld [vmem:[%s6418_s10 + $0x90] sm:$0xf]  ;;  %v7030_v58 = vld [vmem:[%s6418_s10 + $0x94] sm:$0xf] }
  0xa2   : > { %v2676_v24 = vshll.u32 %v6987_v57, 16  ;;  %v2674_v40 = vshrl.u32 %v6987_v57, 16 }
  0xa3   : > { %v680_v5 = vsel %vm560_vm1, %v675_v3, %v679_v41  ;;  %v2693_v3 = vshll.u32 %v6181_v1, 16  ;;  %v7040_v41 = vcombine.low %v376_v2, %v7030_v58  ;;  %v6207_v1 = vld [vmem:[%s7886_s2 + $0x20] sm:$0xff]   ;;  %v380_v2 = vld [vmem:[%s6418_s10 + $0xa8] sm:$0xf] }
  0xa4   : > { %v2678_v18 = vrot.slane %v2676_v24, 1 }
  0xa6   : > { %v2679_v39 = vor.u32 %v2678_v18, %v2674_v40  ;;  %v7062_v40 = vld [vmem:[%s6418_s10 + $0x50] ss:$0 sps:$4 sm:$0x11]  }
  0xa7   : > { %1805 = vmatmul.mubr.bf16.gmra.mrb[60].mxu0 %v6897_v10  ;;  %2207 = vmatmul.mubr.bf16.gmra.mrb[60].mxu1 %v6906_v48  ;;  %v4737_v10 = vld [vmem:[%s6418_s10 + $0x3c] sm:$0xf]  ;;  %v689_v48 = vshll.u32 %v6993_v23, 16 }
  0xa8   : > { %2214 = vmatprep.mubr.bf16.mxu1 %v668_v42  ;;  %3194 = vmatprep.mubr.bf16.mxu0 %v2660_v45  ;;  %v7014_v11 = vcombine.low %v4737_v10, %v4738_v32  ;;  %v2683_v42 = vrot.slane %v2681_v37, 1  ;;  %v4739_v45 = vld [vmem:[%s6418_s10 + $0x48] sm:$0xf]  ;;  %v703_v10 = vrot.slane %v701_v33, 1 }
  0xa9   : > { %v691_v38 = vrot.slane %v689_v48, 1  ;;  %v7043_v61 = vcombine.low %v4739_v45, %v7035_v44  ;;  %v7052_v32 = vld [vmem:[%s6418_s10 + $0x98] ss:$0 sps:$4 sm:$0x11]   ;;  %v378_v48 = vld [vmem:[%s6418_s10 + $0x9c] sm:$0xf] }
  0xaa   : > { %v2684_v24 = vsel %vm560_vm1, %v2679_v39, %v2683_v42  ;;  %v2686_v15 = vshrl.u32 %v7014_v11, 16  ;;  %v2705_v42 = vshll.u32 %v7062_v40, 16 }
  0xab   : > { %v2700_v18 = vshll.u32 %v7043_v61, 16  ;;  %v2698_v39 = vshrl.u32 %v7043_v61, 16 }
  0xaf   : > { %2215 = vmatmul.mubr.bf16.gmra.mrb[64].mxu1 %v6926_v55  ;;  %3195 = vmatmul.mubr.bf16.vlgmr.msra.gmra.mrb[64].mxu0 %v6929_v8  ;;  %v687_v55 = vor.u32 %v686_v27, %v682_v54  ;;  %v2688_v8 = vshll.u32 %v7014_v11, 16  ;;  %v2695_v54 = vrot.slane %v2693_v3, 1  ;;  %v708_v27 = vshll.u32 %v7040_v41, 16  ;;  %v7092_v3 = vld [vmem:[%s6418_s10 + $0x5c] ss:$0 sps:$4 sm:$0x11]  }
  0xb0   : > { %5822 = vmatpush3.bf16.msra.mxu0 %v6884_v63  ;;  %2222 = vmatprep.mubr.bf16.mxu1 %v680_v5  ;;  %v698_v63 = vrot.slane %v696_v16, 1  ;;  %v7058_v5 = vld [vmem:[%s6418_s10 + $0xa0] sm:$0xf] }
  0xb1   : > { %3202 = vmatprep.mubr.bf16.mxu0 %v2672_v7  ;;  %5823 = vmatprep.subr.bf16.mxu0 %v6177_v30  ;;  %v692_v13 = vsel %vm560_vm1, %v687_v55, %v691_v38  ;;  %v2690_v12 = vrot.slane %v2688_v8, 1  ;;  %v706_v7 = vshrl.u32 %v7040_v41, 16  ;;  %v713_v38 = vshll.u32 %v7052_v32, 16  ;;  %v7079_v55 = vld [vmem:[%s6418_s10 + $0xac] sm:$0xf] }
  0xb2   : > { %v699_v37 = vor.u32 %v698_v63, %v694_v0  ;;  %v7072_v16 = vcombine.low %v378_v48, %v7058_v5  ;;  %v7084_v8 = vld [vmem:[%s6418_s10 + $0xa4] ss:$0 sps:$4 sm:$0x11]   ;;  %v2702_v63 = vrot.slane %v2700_v18, 1 }
  0xb4   : > { %5824 = vmatpush3.bf16.msra.mxu0 %v6177_v30  ;;  %v2691_v30 = vor.u32 %v2690_v12, %v2686_v15  ;;  %v704_v33 = vsel %vm560_vm1, %v699_v37, %v703_v10  ;;  %v7099_v15 = vld [vmem:[%s6418_s10 + $0xb0] ss:$0 sps:$4 sm:$0x11]   ;;  %v6218_v12 = vld [vmem:[%s7886_s2 + $0x28] sm:$0xff]   ;;  %v2707_v10 = vrot.slane %v2705_v42, 1  ;;  %v718_v48 = vshrl.u32 %v7072_v16, 16 }
  0xb5   : > { %5825 = vmatprep.subr.bf16.mxu0 %v6187_v49  ;;  %v2703_v18 = vor.u32 %v2702_v63, %v2698_v39  ;;  %v4743_v37 = vld [vmem:[%s6418_s10 + $0x60] sm:$0xf]  ;;  %v737_v42 = vshll.u32 %v7099_v15, 16  ;;  %v7127_v39 = vld [vmem:[%s6418_s10 + $0xb8] sm:$0xf] }
  0xb6   : > { %v2696_v0 = vsel %vm560_vm1, %v2691_v30, %v2695_v54  ;;  %v7110_v30 = vld [vmem:[%s6418_s10 + $0x64] sm:$0xf] }
  0xb7   : > { %2223 = vmatmul.mubr.bf16.gmra.mrb[68].mxu1 %v6959_v17  ;;  %3203 = vmatmul.mubr.bf16.gmra.mrb[68].mxu0 %v6963_v29  ;;  %v4741_v17 = vld [vmem:[%s6418_s10 + $0x54] sm:$0xf]  ;;  %v7067_v29 = vld [vmem:[%s6418_s10 + $0x58] sm:$0xf] }
  0xb8   : > { %2230 = vmatprep.mubr.bf16.mxu1 %v692_v13  ;;  %3210 = vmatprep.mubr.bf16.mxu0 %v2684_v24  ;;  %v7087_v45 = vcombine.low %v4741_v17, %v7067_v29  ;;  %v720_v13 = vshll.u32 %v7072_v16, 16  ;;  %v7096_v24 = vcombine.low %v380_v2, %v7079_v55  ;;  %v2717_v17 = vshll.u32 %v7092_v3, 16  ;;  %v6229_v2 = vld [vmem:[%s7886_s2 + $0x30] sm:$0xff]  }
  0xb9   : > { %5826 = vmatpush3.bf16.msra.mxu0 %v6187_v49  ;;  %v710_v49 = vrot.slane %v708_v27, 1 }
  0xba   : > { %5827 = vmatprep.subr.bf16.mxu0 %v6197_v6  ;;  %v2712_v54 = vshll.u32 %v7087_v45, 16  ;;  %v2710_v63 = vshrl.u32 %v7087_v45, 16  ;;  %v2719_v21 = vrot.slane %v2717_v17, 1  ;;  %v730_v14 = vshrl.u32 %v7096_v24, 16  ;;  %v409_v17 = vld [vmem:[%s6418_s10 + $0x6c] sm:$0xe] }
  0xbb   : > { %v711_v27 = vor.u32 %v710_v49, %v706_v7  ;;  %v7120_v7 = vld [vmem:[%s6418_s10 + $0x68] ss:$0 sps:$4 sm:$0x11]   ;;  %v7123_v49 = vcombine.low %v4743_v37, %v7110_v30  ;;  %v846_v37 = vrot.slane %v6968_v59, 1  ;;  %v849_v59 = vrot.slane %v6993_v23, 1 }
  0xbd   : > { %5828 = vmatpush3.bf16.msra.mxu0 %v6197_v6  ;;  %v715_v6 = vrot.slane %v713_v38, 1  ;;  %v732_v38 = vshll.u32 %v7096_v24, 16 }
  0xbe   : > { %5829 = vmatprep.subr.bf16.mxu0 %v6207_v1 }
  0xbf   : > { %2231 = vmatmul.mubr.bf16.gmra.mrb[72].mxu1 %v6983_v20  ;;  %3211 = vmatmul.mubr.bf16.gmra.mrb[72].mxu0 %v6987_v57  ;;  %v722_v20 = vrot.slane %v720_v13, 1  ;;  %v725_v57 = vshll.u32 %v7084_v8, 16  ;;  %v2714_v13 = vrot.slane %v2712_v54, 1  ;;  %v7144_v54 = vld [vmem:[%s6418_s10 + $0x70] sm:$0xf] }
  0xc0   : > { %2238 = vmatprep.mubr.bf16.mxu1 %v704_v33  ;;  %3218 = vmatprep.mubr.bf16.mxu0 %v2696_v0  ;;  %v716_v33 = vsel %vm560_vm1, %v711_v27, %v715_v6  ;;  %v2708_v0 = vsel %vm560_vm1, %v2703_v18, %v2707_v10  ;;  %v4745_v10 = vld [vmem:[%s6418_s10 + $0x6c] sm:$0xf]  ;;  %v734_v27 = vrot.slane %v732_v38, 1  ;;  %v739_v18 = vrot.slane %v737_v42, 1  ;;  %v4747_v42 = vld [vmem:[%s6418_s10 + $0x78] sm:$0xf] }
  0xc1   : > { %5830 = vmatpush3.bf16.msra.mxu0 %v6207_v1  ;;  %v382_v1 = vld [vmem:[%s6418_s10 + $0xb4] sm:$0xf]  ;;  %v727_v19 = vrot.slane %v725_v57, 1  ;;  %v723_v6 = vor.u32 %v722_v20, %v718_v48  ;;  %v2724_v57 = vshll.u32 %v7123_v49, 16  ;;  %v2722_v48 = vshrl.u32 %v7123_v49, 16 }
  0xc2   : > { %5831 = vmatprep.subr.bf16.mxu0 %v6218_v12  ;;  %v7151_v20 = vld [vmem:[%s6418_s10 + $0xbc] ss:$0 sps:$4 sm:$0x11]   ;;  %v7156_v38 = vcombine.low %v4745_v10, %v7144_v54 }
  0xc3   : > { %v2726_v28 = vrot.slane %v2724_v57, 1 }
  0xc4   : > { %v2736_v57 = vshll.u32 %v7156_v38, 16 }
  0xc5   : > { %5832 = vmatpush3.bf16.msra.mxu0 %v6218_v12  ;;  %v7140_v12 = vcombine.low %v382_v1, %v7127_v39  ;;  %v4516_v1 = vcombine.low %v409_v17, %v6949_v43 }
  0xc6   : > { %5833 = vmatprep.subr.bf16.mxu0 %v6229_v2 }
  0xc7   : > { %2239 = vmatmul.mubr.bf16.gmra.mrb[76].mxu1 %v7006_v25  ;;  %3219 = vmatmul.mubr.bf16.gmra.mrb[76].mxu0 %v7014_v11  ;;  %v2729_v25 = vshll.u32 %v7120_v7, 16  ;;  %v2715_v11 = vor.u32 %v2714_v13, %v2710_v63  ;;  %v845_v63 = vrot.slane %v4516_v1, 1  ;;  %v410_v13 = vld [vmem:[%s6418_s10 + $0x78] sm:$0xe]  ;;  %v742_v17 = vshrl.u32 %v7140_v12, 16 }
  0xc8   : > { %2246 = vmatprep.mubr.bf16.mxu1 %v716_v33  ;;  %3226 = vmatprep.mubr.bf16.mxu0 %v2708_v0  ;;  %v7160_v33 = vld [vmem:[%s6418_s10 + $0x7c] sm:$0xf]  ;;  %v744_v0 = vshll.u32 %v7140_v12, 16  ;;  %v4517_v43 = vcombine.low %v410_v13, %v6975_v53  ;;  %v2727_v1 = vor.u32 %v2726_v28, %v2722_v48  ;;  %v2738_v28 = vrot.slane %v2736_v57, 1  ;;  %v402_v48 = vld [vmem:[%s6418_s10 + $0x18] sm:$0xe] }
  0xc9   : > { %5834 = vmatpush3.bf16.msra.mxu0 %v6229_v2  ;;  %v2731_v51 = vrot.slane %v2729_v25, 1  ;;  %v728_v2 = vsel %vm560_vm1, %v723_v6, %v727_v19  ;;  %v2720_v10 = vsel %vm560_vm1, %v2715_v11, %v2719_v21  ;;  %v7173_v34 = vsel %vm817_vm0, %v845_v63, %v846_v37  ;;  %v411_v25 = vld [vmem:[%s6418_s10 + $0x84] sm:$0xe]  ;;  %v400_v37 = vld [vmem:[%s6418_s10] sm:$0xe] }
  0xca   : > { %5835 = vmatprep.subr.bf16.mxu0 %v6240_v46  ;;  %v7177_v53 = vcombine.low %v4747_v42, %v7160_v33  ;;  %v848_v23 = vrot.slane %v4517_v43, 1  ;;  %v746_v21 = vrot.slane %v744_v0, 1  ;;  %v749_v19 = vshll.u32 %v7151_v20, 16  ;;  %v7188_v63 = vld [vmem:[%s6418_s10 + $0x80] ss:$0 sps:$4 sm:$0x11]  }
  0xcb   : > { %v852_v6 = vrot.slane %v7018_v31, 1  ;;  %v735_v11 = vor.u32 %v734_v27, %v730_v14  ;;  %v2734_v42 = vshrl.u32 %v7156_v38, 16  ;;  %v412_v0 = vld [vmem:[%s6418_s10 + $0x90] sm:$0xe]  ;;  %v855_v14 = vrot.slane %v7052_v32, 1 }
  0xcc   : > { %v4519_v13 = vcombine.low %v412_v0, %v7030_v58  ;;  %v2748_v27 = vshll.u32 %v7177_v53, 16  ;;  %v413_v43 = vld [vmem:[%s6418_s10 + $0x9c] sm:$0xe]  ;;  %v2732_v58 = vsel %vm560_vm1, %v2727_v1, %v2731_v51  ;;  %v6262_v32 = vld [vmem:[%s6418_s10 + $0x4] sm:$0xf]  ;;  %v751_v60 = vrot.slane %v749_v19, 1 }
  0xcd   : > { %5836 = vmatpush3.bf16.msra.mxu0 %v6240_v46  ;;  %v4518_v46 = vcombine.low %v411_v25, %v6998_v35  ;;  %v2741_v35 = vshll.u32 %v7170_v4, 16  ;;  %v740_v25 = vsel %vm560_vm1, %v735_v11, %v739_v18  ;;  %v4749_v57 = vld [vmem:[%s6418_s10 + $0x84] sm:$0xf]  ;;  %v7211_v0 = vld [vmem:[%s6418_s10 + $0x88] sm:$0xf]  ;;  %v2753_v18 = vshll.u32 %v7188_v63, 16 }
  0xce   : > { %v6264_v19 = vld [vmem:[%s6418_s10 + $0x1c] sm:$0xf]  ;;  %v7226_v1 = vcombine.low %v4749_v57, %v7211_v0  ;;  %v4785_v57 = vld [vmem:[%s6418_s10 + $0x60] sm:$0xe] }
  0xcf   : > { %2247 = vmatmul.mubr.bf16.gmra.mrb[80].mxu1 %v7040_v41  ;;  %3227 = vmatmul.mubr.bf16.gmra.mrb[80].mxu0 %v7043_v61  ;;  %v401_v41 = vld [vmem:[%s6418_s10 + $0xc] sm:$0xe]  ;;  %v7192_v61 = vsel %vm817_vm0, %v848_v23, %v849_v59  ;;  %v851_v31 = vrot.slane %v4518_v46, 1  ;;  %v858_v23 = vrot.slane %v7084_v8, 1  ;;  %v4507_v46 = vcombine.low %v400_v37, %v6262_v32 }
  0xd0   : > { %2254 = vmatprep.mubr.bf16.mxu1 %v728_v2  ;;  %3234 = vmatprep.mubr.bf16.mxu0 %v2720_v10  ;;  %v854_v2 = vrot.slane %v4519_v13, 1  ;;  %v4520_v10 = vcombine.low %v413_v43, %v7058_v5  ;;  %v4508_v47 = vcombine.low %v401_v41, %v6263_v26  ;;  %v414_v5 = vld [vmem:[%s6418_s10 + $0xa8] sm:$0xe]  ;;  %v2746_v8 = vshrl.u32 %v7177_v53, 16 }
  0xd1   : > { %v7202_v59 = vsel %vm817_vm0, %v851_v31, %v852_v6  ;;  %v4521_v51 = vcombine.low %v414_v5, %v7079_v55  ;;  %v861_v37 = vrot.slane %v7099_v15, 1  ;;  %v2750_v26 = vrot.slane %v2748_v27, 1  ;;  %v7233_v43 = vld [vmem:[%s6418_s10 + $0x14] ss:$0 sps:$4 sm:$0x11]  }
  0xd2   : > { %v7215_v6 = vsel %vm817_vm0, %v854_v2, %v855_v14  ;;  %v857_v31 = vrot.slane %v4520_v10, 1  ;;  %v4509_v11 = vcombine.low %v402_v48, %v6264_v19  ;;  %v747_v55 = vor.u32 %v746_v21, %v742_v17  ;;  %v7237_v27 = vld [vmem:[%s6418_s10 + $0x20] ss:$0 sps:$4 sm:$0x11]   ;;  %v4751_v5 = vld [vmem:[%s6418_s10 + $0x90] sm:$0xf] }
  0xd3   : > { %v2739_v13 = vor.u32 %v2738_v28, %v2734_v42  ;;  %v2743_v15 = vrot.slane %v2741_v35, 1  ;;  %v860_v14 = vrot.slane %v4521_v51, 1  ;;  %v825_v48 = vrot.slane %v7237_v27, 1  ;;  %v7245_v35 = vld [vmem:[%s6418_s10 + $0x8c] ss:$0 sps:$4 sm:$0x11]  }
  0xd4   : > { %v7229_v41 = vsel %vm817_vm0, %v857_v31, %v858_v23  ;;  %v864_v10 = vrot.slane %v7151_v20, 1  ;;  %v818_v17 = vrot.slane %v4507_v46, 1  ;;  %v2755_v21 = vrot.slane %v2753_v18, 1  ;;  %v4783_v46 = vld [vmem:[%s6418_s10 + $0x48] sm:$0xe] }
  0xd5   : > { %v7242_v42 = vrot.slane %v4508_v47, 1  ;;  %v7248_v28 = vsel %vm817_vm0, %v860_v14, %v861_v37  ;;  %v2751_v23 = vor.u32 %v2750_v26, %v2746_v8  ;;  %v2744_v20 = vsel %vm560_vm1, %v2739_v13, %v2743_v15  ;;  %v4784_v47 = vld [vmem:[%s6418_s10 + $0x54] sm:$0xe]  ;;  %v4786_v13 = vld [vmem:[%s6418_s10 + $0x6c] sm:$0xe] }
  0xd6   : > { %v2758_v31 = vshrl.u32 %v7226_v1, 16  ;;  %v4752_v18 = vld [vmem:[%s6418_s10 + $0x94] sm:$0xf]  ;;  %v4831_v51 = vcombine.low %v4783_v46, %v7035_v44  ;;  %v2918_v37 = vrot.slane %v7062_v40, 1  ;;  %v2765_v19 = vshll.u32 %v7245_v35, 16 }
  0xd7   : > { %2255 = vmatmul.mubr.bf16.gmra.mrb[84].mxu1 %v7072_v16  ;;  %3235 = vmatmul.mubr.bf16.gmra.mrb[84].mxu0 %v7087_v45  ;;  %v415_v16 = vld [vmem:[%s6418_s10 + $0xb4] sm:$0xe]  ;;  %v822_v45 = vrot.slane %v7233_v43, 1  ;;  %v4787_v15 = vld [vmem:[%s6418_s10 + $0x78] sm:$0xe]  ;;  %v4833_v40 = vcombine.low %v4785_v57, %v7110_v30  ;;  %v2924_v14 = vrot.slane %v7120_v7, 1 }
  0xd8   : > { %2262 = vmatprep.mubr.bf16.mxu1 %v740_v25  ;;  %3242 = vmatprep.mubr.bf16.mxu0 %v2732_v58  ;;  %v4522_v2 = vcombine.low %v415_v16, %v7127_v39  ;;  %v7250_v25 = vrot.slane %v4509_v11, 1  ;;  %v2760_v58 = vshll.u32 %v7226_v1, 16  ;;  %v752_v39 = vsel %vm560_vm1, %v747_v55, %v751_v60  ;;  %v4789_v30 = vld [vmem:[%s6418_s10 + $0x90] sm:$0xe]  ;;  %v7292_v7 = vld [vmem:[%s6418_s10 + $0xa0] sm:$0xf] }
  0xd9   : > { %v7915_v60 = vrot.slane %v6735_v50, 1  ;;  %v4832_v11 = vcombine.low %v4784_v47, %v7067_v29  ;;  %v2921_v55 = vrot.slane %v7092_v3, 1  ;;  %v2756_v50 = vsel %vm560_vm1, %v2751_v23, %v2755_v21  ;;  %v4788_v29 = vld [vmem:[%s6418_s10 + $0x84] sm:$0xe]  ;;  %v6212_v43 = vld [vmem:[%s7885_s1 + $0x208] sm:$0xff]  }
  0xda   : > { %v863_v32 = vrot.slane %v4522_v2, 1  ;;  %v2917_v44 = vrot.slane %v4831_v51, 1  ;;  %v7282_v3 = vrot.slane %v2760_v58, 1  ;;  %v7284_v16 = vcombine.low %v4751_v5, %v4752_v18  ;;  %v7317_v5 = vld [vmem:[%s6418_s10 + $0xb8] sm:$0xf] }
  0xdb   : > { %v7269_v26 = vsel %vm817_vm0, %v818_v17, %v7915_v60  ;;  %v2927_v2 = vrot.slane %v7170_v4, 1  ;;  %v2923_v21 = vrot.slane %v4833_v40, 1  ;;  %v4834_v23 = vcombine.low %v4786_v13, %v7144_v54  ;;  %v7307_v4 = vld [vmem:[%s6418_s10 + $0xb0] ss:$0 sps:$4 sm:$0x11]  }
  0xdc   : > { %v7262_v8 = vsel %vm817_vm0, %v863_v32, %v864_v10  ;;  %v7295_v10 = vld [vmem:[%s6418_s10 + $0xa4] ss:$0 sps:$4 sm:$0x11]   ;;  %v7298_v17 = vsel %vm817_vm0, %v2917_v44, %v2918_v37  ;;  %v4835_v58 = vcombine.low %v4787_v15, %v7160_v33  ;;  %v4790_v32 = vld [vmem:[%s6418_s10 + $0x9c] sm:$0xe]  ;;  %v2930_v46 = vrot.slane %v7188_v63, 1 }
  0xdd   : > { %v4836_v47 = vcombine.low %v4788_v29, %v7211_v0  ;;  %v2933_v57 = vrot.slane %v7245_v35, 1  ;;  %v4791_v54 = vld [vmem:[%s6418_s10 + $0xa8] sm:$0xe]  ;;  %v7320_v33 = vld [vmem:[%s6418_s10 + $0xbc] ss:$0 sps:$4 sm:$0x11]   ;;  %v7323_v51 = vsel %vm817_vm0, %v2923_v21, %v2924_v14  ;;  %v4838_v13 = vcombine.low %v4790_v32, %v7292_v7 }
  0xde   : > { %v2926_v37 = vrot.slane %v4834_v23, 1  ;;  %v2929_v60 = vrot.slane %v4835_v58, 1  ;;  %v4792_v63 = vld [vmem:[%s6418_s10 + $0xb4] sm:$0xe]  ;;  %v2939_v15 = vrot.slane %v7295_v10, 1 }
  0xdf   : > { %2263 = vmatmul.mubr.bf16.gmra.mrb[88].mxu1 %v7096_v24  ;;  %3243 = vmatmul.mubr.bf16.gmra.mrb[88].mxu0 %v7123_v49  ;;  %v7287_v24 = vld [vmem:[%s6418_s10 + $0x98] ss:$0 sps:$4 sm:$0x11]   ;;  %v2920_v49 = vrot.slane %v4832_v11, 1  ;;  %v4837_v11 = vcombine.low %v4789_v30, %v4752_v18  ;;  %v4793_v44 = vld [vmem:[%s6418_s10 + $0xc0] sm:$0xe] }
  0xe0   : > { %2270 = vmatprep.mubr.bf16.mxu1 %v752_v39  ;;  %3250 = vmatprep.mubr.bf16.mxu0 %v2744_v20  ;;  %v7304_v39 = vld [vmem:[%s6418_s10 + $0xac] sm:$0xf]  ;;  %v2936_v0 = vrot.slane %v7287_v24, 1  ;;  %v7331_v40 = vld [vmem:[%s6418_s10 + $0xc8] ss:$0 sps:$4 sm:$0x11]   ;;  %v7334_v14 = vsel %vm817_vm0, %v2926_v37, %v2927_v2  ;;  %v7337_v29 = vsel %vm817_vm0, %v2929_v60, %v2930_v46  ;;  %v4840_v2 = vcombine.low %v4792_v63, %v7317_v5 }
  0xe1   : > { %v7310_v20 = vsel %vm817_vm0, %v2920_v49, %v2921_v55  ;;  %v2932_v55 = vrot.slane %v4836_v47, 1  ;;  %v2935_v49 = vrot.slane %v4837_v11, 1  ;;  %v4839_v18 = vcombine.low %v4791_v54, %v7304_v39  ;;  %v4794_v30 = vld [vmem:[%s6418_s10 + $0xcc] sm:$0xe]  ;;  %v7342_v21 = vld [vmem:[%s6418_s10 + $0xc4] sm:$0xf] }
  0xe2   : > { %v7345_v23 = vld [vmem:[%s6418_s10 + $0xd0] sm:$0xf]  ;;  %v2938_v32 = vrot.slane %v4838_v13, 1  ;;  %v2942_v47 = vrot.slane %v7307_v4, 1  ;;  %v2945_v60 = vrot.slane %v7320_v33, 1  ;;  %v2772_v13 = vshll.u32 %v7284_v16, 16 }
  0xe3   : > { %v7348_v58 = vsel %vm817_vm0, %v2932_v55, %v2933_v57  ;;  %v7355_v46 = vld [vmem:[%s6418_s10 + $0xd4] ss:$0 sps:$4 sm:$0x11]   ;;  %v7358_v54 = vsel %vm817_vm0, %v2935_v49, %v2936_v0  ;;  %v2941_v37 = vrot.slane %v4839_v18, 1  ;;  %v4841_v57 = vcombine.low %v4793_v44, %v7342_v21  ;;  %v403_v11 = vld [vmem:[%s6418_s10 + $0x24] sm:$0xe] }
  0xe4   : > { %v7365_v63 = vsel %vm817_vm0, %v2938_v32, %v2939_v15  ;;  %v4842_v55 = vcombine.low %v4794_v30, %v7345_v23  ;;  %v404_v0 = vld [vmem:[%s6418_s10 + $0x30] sm:$0xe]  ;;  %v2767_v15 = vrot.slane %v2765_v19, 1  ;;  %v4753_v18 = vld [vmem:[%s6418_s10 + $0x9c] sm:$0xf]  ;;  %v2774_v27 = vrot.slane %v2772_v13, 1 }
  0xe5   : > { %v7372_v49 = vsel %vm817_vm0, %v2941_v37, %v2942_v47  ;;  %v2947_v44 = vrot.slane %v4841_v57, 1  ;;  %v823_v47 = vsel %vm817_vm0, %v7242_v42, %v822_v45  ;;  %v6267_v35 = vld [vmem:[%s6418_s10 + $0x28] sm:$0xf]  ;;  %v2770_v45 = vshrl.u32 %v7284_v16, 16 }
  0xe6   : > { %v2950_v32 = vrot.slane %v4842_v55, 1  ;;  %v4510_v19 = vcombine.low %v403_v11, %v6267_v35  ;;  %v2777_v42 = vshll.u32 %v7287_v24, 16  ;;  %v6269_v11 = vld [vmem:[%s6418_s10 + $0x2c] ss:$0 sps:$4 sm:$0x11]  }
  0xe7   : > { %2271 = vmatmul.mubr.bf16.gmra.mrb[92].mxu1 %v7140_v12  ;;  %3251 = vmatmul.mubr.bf16.gmra.mrb[92].mxu0 %v7156_v38  ;;  %v2944_v12 = vrot.slane %v4840_v2, 1  ;;  %v2948_v38 = vrot.slane %v7331_v40, 1  ;;  %v6270_v55 = vld [vmem:[%s6418_s10 + $0x38] ss:$0 sps:$4 sm:$0x11]  }
  0xe8   : > { %5741 = vmatprep.mubr.bf16.mxu1 %v7269_v26  ;;  %3258 = vmatprep.mubr.bf16.mxu0 %v2756_v50  ;;  %v2951_v26 = vrot.slane %v7355_v46, 1  ;;  %v2763_v50 = vor.u32 %v7282_v3, %v2758_v31  ;;  %v826_v31 = vsel %vm817_vm0, %v7250_v25, %v825_v48  ;;  %v6268_v3 = vld [vmem:[%s6418_s10 + $0x34] sm:$0xf]  ;;  %v7406_v48 = vcombine.low %v4753_v18, %v7292_v7  ;;  %v405_v7 = vld [vmem:[%s6418_s10 + $0x3c] sm:$0xe] }
  0xe9   : > { %v7382_v30 = vsel %vm817_vm0, %v2944_v12, %v2945_v60  ;;  %v7389_v2 = vsel %vm817_vm0, %v2947_v44, %v2948_v38  ;;  %v4511_v37 = vcombine.low %v404_v0, %v6268_v3  ;;  %v827_v57 = vrot.slane %v4510_v19, 1 }
  0xea   : > { %v7398_v60 = vsel %vm817_vm0, %v2950_v32, %v2951_v26  ;;  %v2768_v25 = vsel %vm560_vm1, %v2763_v50, %v2767_v15  ;;  %v828_v12 = vrot.slane %v6269_v11, 1  ;;  %v831_v24 = vrot.slane %v6270_v55, 1  ;;  %v4755_v26 = vld [vmem:[%s6418_s10 + $0xa8] sm:$0xf]  ;;  %v6271_v50 = vld [vmem:[%s6418_s10 + $0x40] sm:$0xf] }
  0xeb   : > { %v830_v38 = vrot.slane %v4511_v37, 1  ;;  %v2775_v0 = vor.u32 %v2774_v27, %v2770_v45  ;;  %v2779_v13 = vrot.slane %v2777_v42, 1  ;;  %v2784_v44 = vshll.u32 %v7406_v48, 16  ;;  %v6273_v42 = vld [vmem:[%s6418_s10 + $0x44] ss:$0 sps:$4 sm:$0x11]  }
  0xec   : > { %v4512_v15 = vcombine.low %v405_v7, %v6271_v50  ;;  %v829_v18 = vsel %vm817_vm0, %v827_v57, %v828_v12  ;;  %v2782_v35 = vshrl.u32 %v7406_v48, 16  ;;  %v2789_v37 = vshll.u32 %v7295_v10, 16  ;;  %v6274_v57 = vld [vmem:[%s6418_s10 + $0x50] ss:$0 sps:$4 sm:$0x11]  }
  0xed   : > { %v832_v32 = vsel %vm817_vm0, %v830_v38, %v831_v24  ;;  %v2780_v19 = vsel %vm560_vm1, %v2775_v0, %v2779_v13  ;;  %v2786_v3 = vrot.slane %v2784_v44, 1  ;;  %v7428_v45 = vcombine.low %v4755_v26, %v7304_v39  ;;  %v407_v38 = vld [vmem:[%s6418_s10 + $0x54] sm:$0xe]  ;;  %v408_v55 = vld [vmem:[%s6418_s10 + $0x60] sm:$0xe] }
  0xee   : > { %v833_v27 = vrot.slane %v4512_v15, 1  ;;  %v837_v39 = vrot.slane %v6274_v57, 1  ;;  %v2791_v12 = vrot.slane %v2789_v37, 1  ;;  %v4757_v7 = vld [vmem:[%s6418_s10 + $0xb4] sm:$0xf] }
  0xef   : > { %5742 = vmatmul.mubr.bf16.vlgmr.msra.gmra.mrb[0].mxu1 %v823_v47  ;;  %3259 = vmatmul.mubr.bf16.gmra.mrb[96].mxu0 %v7177_v53  ;;  %v6217_v53 = vld [vmem:[%s7885_s1 + $0x210] sm:$0xff]   ;;  %v6272_v47 = vld [vmem:[%s6418_s10 + $0x4c] sm:$0xf]  ;;  %v2787_v11 = vor.u32 %v2786_v3, %v2782_v35  ;;  %v2796_v24 = vshll.u32 %v7428_v45, 16  ;;  %v2794_v50 = vshrl.u32 %v7428_v45, 16 }
  0xf0   : > { %5774 = vmatpush3.bf16.msra.mxu1 %v6940_v56  ;;  %5745 = vmatprep.mubr.bf16.mxu1 %v826_v31  ;;  %v406_v56 = vld [vmem:[%s6418_s10 + $0x48] sm:$0xe] }
  0xf1   : > { %3266 = vmatprep.mubr.bf16.mxu0 %v2768_v25  ;;  %5775 = vmatprep.subr.bf16.mxu1 %v6212_v43  ;;  %v4513_v31 = vcombine.low %v406_v56, %v6272_v47  ;;  %v834_v25 = vrot.slane %v6273_v42, 1  ;;  %v6275_v56 = vld [vmem:[%s6418_s10 + $0x58] sm:$0xf]  ;;  %v2792_v15 = vsel %vm560_vm1, %v2787_v11, %v2791_v12  ;;  %v7451_v47 = vcombine.low %v4757_v7, %v7317_v5 }
  0xf2   : > { %v4514_v44 = vcombine.low %v407_v38, %v6275_v56 }
  0xf3   : > { %v836_v10 = vrot.slane %v4513_v31, 1  ;;  %v835_v0 = vsel %vm817_vm0, %v833_v27, %v834_v25  ;;  %v6234_v31 = vld [vmem:[%s7885_s1 + $0x228] sm:$0xff]   ;;  %v2808_v42 = vshll.u32 %v7451_v47, 16 }
  0xf4   : > { %5776 = vmatpush3.bf16.msra.mxu1 %v6212_v43  ;;  %v6223_v43 = vld [vmem:[%s7885_s1 + $0x218] sm:$0xff]   ;;  %v839_v35 = vrot.slane %v4514_v44, 1 }
  0xf5   : > { %5777 = vmatprep.subr.bf16.mxu1 %v6217_v53  ;;  %v838_v13 = vsel %vm817_vm0, %v836_v10, %v837_v39  ;;  %v4759_v10 = vld [vmem:[%s6418_s10 + $0xc0] sm:$0xf]  ;;  %v2810_v7 = vrot.slane %v2808_v42, 1  ;;  %v6245_v44 = vld [vmem:[%s7885_s1 + $0x238] sm:$0xff]  }
  0xf7   : > { %5746 = vmatmul.mubr.bf16.gmra.mrb[4].mxu1 %v829_v18  ;;  %3267 = vmatmul.mubr.bf16.gmra.mrb[100].mxu0 %v7226_v1  ;;  %v6228_v1 = vld [vmem:[%s7885_s1 + $0x220] sm:$0xff]   ;;  %v2798_v18 = vrot.slane %v2796_v24, 1 }
  0xf8   : > { %5749 = vmatprep.mubr.bf16.mxu1 %v832_v32  ;;  %3274 = vmatprep.mubr.bf16.mxu0 %v2780_v19  ;;  %v2801_v32 = vshll.u32 %v7307_v4, 16  ;;  %v6277_v19 = vld [vmem:[%s6418_s10 + $0x5c] ss:$0 sps:$4 sm:$0x11]  }
  0xf9   : > { %5778 = vmatpush3.bf16.msra.mxu1 %v6217_v53  ;;  %v6276_v53 = vld [vmem:[%s6418_s10 + $0x64] sm:$0xf]  ;;  %v840_v3 = vrot.slane %v6277_v19, 1  ;;  %v2799_v27 = vor.u32 %v2798_v18, %v2794_v50 }
  0xfa   : > { %5779 = vmatprep.subr.bf16.mxu1 %v6223_v43  ;;  %v4515_v26 = vcombine.low %v408_v55, %v6276_v53  ;;  %v2803_v5 = vrot.slane %v2801_v32, 1  ;;  %v2806_v55 = vshrl.u32 %v7451_v47, 16 }
  0xfb   : > { %v841_v12 = vsel %vm817_vm0, %v839_v35, %v840_v3 }
  0xfc   : > { %v842_v37 = vrot.slane %v4515_v26, 1  ;;  %v2811_v53 = vor.u32 %v2810_v7, %v2806_v55  ;;  %v4779_v55 = vld [vmem:[%s6418_s10 + $0x18] sm:$0xe] }
  0xfd   : > { %5780 = vmatpush3.bf16.msra.mxu1 %v6223_v43  ;;  %v6278_v43 = vld [vmem:[%s6418_s10 + $0x68] ss:$0 sps:$4 sm:$0x11]  }
  0xfe   : > { %5781 = vmatprep.subr.bf16.mxu1 %v6228_v1  ;;  %v843_v4 = vrot.slane %v6278_v43, 1 }
  0xff   : > { %5750 = vmatmul.mubr.bf16.gmra.mrb[8].mxu1 %v835_v0  ;;  %3275 = vmatmul.mubr.bf16.gmra.mrb[104].mxu0 %v7284_v16  ;;  %v6239_v16 = vld [vmem:[%s7885_s1 + $0x230] sm:$0xff]   ;;  %v2813_v0 = vshll.u32 %v7320_v33, 16 }
 0x100   : > { %5753 = vmatprep.mubr.bf16.mxu1 %v838_v13  ;;  %3282 = vmatprep.mubr.bf16.mxu0 %v2792_v15  ;;  %v844_v38 = vsel %vm817_vm0, %v842_v37, %v843_v4  ;;  %v4809_v13 = vcombine.low %v4759_v10, %v7342_v21  ;;  %v4761_v15 = vld [vmem:[%s6418_s10 + $0xcc] sm:$0xf] }
 0x101   : > { %5782 = vmatpush3.bf16.msra.mxu1 %v6228_v1  ;;  %v2804_v1 = vsel %vm560_vm1, %v2799_v27, %v2803_v5  ;;  %v2815_v26 = vrot.slane %v2813_v0, 1  ;;  %v4810_v37 = vcombine.low %v4761_v15, %v7345_v23  ;;  %v4781_v15 = vld [vmem:[%s6418_s10 + $0x30] sm:$0xe] }
 0x102   : > { %v5261_v25 = vpop.f32.mrb[0].mxu0  ;;  %5783 = vmatprep.subr.bf16.mxu1 %v6234_v31  ;;  %v2820_v50 = vshll.u32 %v4809_v13, 16 }
 0x103   : > { %v5262_v57 = vpop.f32.mrb[1].mxu0  ;;  %v2816_v19 = vsel %vm560_vm1, %v2811_v53, %v2815_v26  ;;  %v2832_v5 = vshll.u32 %v4810_v37, 16  ;;  %v6280_v53 = vld [vmem:[%s6418_s10 + $0x20] ss:$0 sps:$4 sm:$0x11]  }
 0x104   : > { %v7464_v39 = vadd.f32 %v5262_v57, %v5261_v25  ;;  %v5264_v11 = vpop.f32.mrb[2].mxu0  ;;  %v2822_v3 = vrot.slane %v2820_v50, 1  ;;  %v2830_v57 = vshrl.u32 %v4810_v37, 16  ;;  %v2906_v26 = vrot.slane %v6280_v53, 1  ;;  %v4780_v50 = vld [vmem:[%s6418_s10 + $0x24] sm:$0xe] }
 0x105   : > { %v5265_v24 = vpop.f32.mrb[3].mxu0  ;;  %5784 = vmatpush3.bf16.msra.mxu1 %v6234_v31  ;;  %v2818_v31 = vshrl.u32 %v4809_v13, 16 }
 0x106   : > { %v7472_v56 = vadd.f32 %v5265_v24, %v5264_v11  ;;  %5785 = vmatprep.subr.bf16.mxu1 %v6239_v16  ;;  %v2834_v11 = vrot.slane %v2832_v5, 1 }
 0x107   : > { %5754 = vmatmul.mubr.bf16.gmra.mrb[12].mxu1 %v841_v12  ;;  %3283 = vmatmul.mubr.bf16.gmra.mrb[108].mxu0 %v7406_v48  ;;  %v2825_v48 = vshll.u32 %v7331_v40, 16  ;;  %v2823_v4 = vor.u32 %v2822_v3, %v2818_v31 }
 0x108   : > { %5757 = vmatprep.mubr.bf16.mxu1 %v844_v38  ;;  %3290 = vmatprep.mubr.bf16.mxu0 %v2804_v1 }
 0x109   : > { %5786 = vmatpush3.bf16.msra.mxu1 %v6239_v16  ;;  %v2827_v27 = vrot.slane %v2825_v48, 1 }
 0x10a   : > { %v5267_v33 = vpop.f32.mrb[4].mxu0  ;;  %5787 = vmatprep.subr.bf16.mxu1 %v6245_v44 }
 0x10b   : > { %v5268_v21 = vpop.f32.mrb[5].mxu0  ;;  %v2828_v16 = vsel %vm560_vm1, %v2823_v4, %v2827_v27  ;;  %v6283_v27 = vld [vmem:[%s6418_s10 + $0x2c] ss:$0 sps:$4 sm:$0x11]  }
 0x10c   : > { %v7479_v18 = vadd.f32 %v5268_v21, %v5267_v33  ;;  %v5270_v32 = vpop.f32.mrb[6].mxu0  ;;  %v2909_v5 = vrot.slane %v6283_v27, 1 }
 0x10d   : > { %v5271_v35 = vpop.f32.mrb[7].mxu0  ;;  %5788 = vmatpush3.bf16.msra.mxu1 %v6245_v44 }
 0x10e   : > { %v7484_v43 = vadd.f32 %v5271_v35, %v5270_v32  ;;  %v6281_v35 = vld [vmem:[%s6418_s10 + $0x28] sm:$0xf] }
 0x10f   : > { %5758 = vmatmul.mubr.bf16.gmra.mrb[16].mxu1 %v7173_v34  ;;  %3291 = vmatmul.mubr.bf16.gmra.mrb[112].mxu0 %v7428_v45  ;;  %v2837_v34 = vshll.u32 %v7355_v46, 16 }
 0x110   : > { %5761 = vmatprep.mubr.bf16.mxu1 %v7192_v61  ;;  %3298 = vmatprep.mubr.bf16.mxu0 %v2816_v19  ;;  %v2835_v61 = vor.u32 %v2834_v11, %v2830_v57  ;;  %v4828_v19 = vcombine.low %v4780_v50, %v6281_v35  ;;  %v7917_v35 = vld [vmem:[#allocation3_spill] sm:$0xff] }
 0x111   : > { %v2839_v12 = vrot.slane %v2837_v34, 1 }
 0x112   : > { %v5273_v42 = vpop.f32.mrb[8].mxu0  ;;  %v2908_v4 = vrot.slane %v4828_v19, 1 }
 0x113   : > { %v5274_v25 = vpop.f32.mrb[9].mxu0  ;;  %v2840_v0 = vsel %vm560_vm1, %v2835_v61, %v2839_v12  ;;  %v6285_v61 = vld [vmem:[%s6418_s10 + $0x40] sm:$0xf] }
 0x114   : > { %v7489_v10 = vadd.f32 %v5274_v25, %v5273_v42  ;;  %v5276_v40 = vpop.f32.mrb[10].mxu0  ;;  %v6284_v25 = vld [vmem:[%s6418_s10 + $0x38] ss:$0 sps:$4 sm:$0x11]  }
 0x115   : > { %v5277_v23 = vpop.f32.mrb[11].mxu0 }
 0x116   : > { %v7493_v45 = vadd.f32 %v5277_v23, %v5276_v40  ;;  %v2912_v40 = vrot.slane %v6284_v25, 1  ;;  %v4782_v23 = vld [vmem:[%s6418_s10 + $0x3c] sm:$0xe] }
 0x117   : > { %5762 = vmatmul.mubr.bf16.gmra.mrb[20].mxu1 %v7202_v59  ;;  %3299 = vmatmul.mubr.bf16.gmra.mrb[116].mxu0 %v7451_v47  ;;  %v6279_v59 = vld [vmem:[%s6418_s10 + $0x1c] sm:$0xf] }
 0x118   : > { %5765 = vmatprep.mubr.bf16.mxu1 %v7215_v6  ;;  %3306 = vmatprep.mubr.bf16.mxu0 %v2828_v16  ;;  %v4827_v47 = vcombine.low %v4779_v55, %v6279_v59 }
 0x11a   : > { %v5279_v38 = vpop.f32.mrb[12].mxu0  ;;  %v2905_v6 = vrot.slane %v4827_v47, 1 }
 0x11b   : > { %v5280_v24 = vpop.f32.mrb[13].mxu0 }
 0x11c   : > { %v7499_v1 = vadd.f32 %v5280_v24, %v5279_v38  ;;  %v5282_v46 = vpop.f32.mrb[14].mxu0  ;;  %v6286_v24 = vld [vmem:[%s6418_s10 + $0x44] ss:$0 sps:$4 sm:$0x11]  }
 0x11d   : > { %v5283_v7 = vpop.f32.mrb[15].mxu0 }
 0x11e   : > { %v7503_v44 = vadd.f32 %v5283_v7, %v5282_v46  ;;  %v2915_v46 = vrot.slane %v6286_v24, 1 }
 0x11f   : > { %5766 = vmatmul.mubr.bf16.gmra.mrb[24].mxu1 %v7229_v41  ;;  %3307 = vmatmul.mubr.bf16.gmra.mrb[120].mxu0 %v4809_v13  ;;  %v2907_v13 = vsel %vm817_vm0, %v2905_v6, %v2906_v26 }
 0x120   : > { %5769 = vmatprep.mubr.bf16.mxu1 %v7248_v28  ;;  %3314 = vmatprep.mubr.bf16.mxu0 %v2840_v0  ;;  %v6282_v28 = vld [vmem:[%s6418_s10 + $0x34] sm:$0xf]  ;;  %s4989_s10 = sshll.u32 %s7928_s28, 7 }
 0x121   : > { %v4829_v3 = vcombine.low %v4781_v15, %v6282_v28  ;;  %s7796_s19 = scalar_lea.vmem %s7890_s6, %s4989_s10  ;;  %s7802_s22 = scalar_lea.vmem %s7887_s3, %s4989_s10 }
 0x122   : > { %v5285_v33 = vpop.f32.mrb[16].mxu0 }
 0x123   : > { %v5286_v21 = vpop.f32.mrb[17].mxu0  ;;  %v2911_v42 = vrot.slane %v4829_v3, 1 }
 0x124   : > { %v7510_v32 = vadd.f32 %v5286_v21, %v5285_v33  ;;  %v5288_v31 = vpop.f32.mrb[18].mxu0 }
 0x125   : > { %v5289_v41 = vpop.f32.mrb[19].mxu0 }
 0x126   : > { %v7515_v48 = vadd.f32 %v5289_v41, %v5288_v31  ;;  %v7916_v31 = vld [vmem:[#allocation2_spill] sm:$0xff] }
 0x127   : > { %5770 = vmatmul.mubr.bf16.gmra.mrb[28].mxu1 %v7262_v8  ;;  %3315 = vmatmul.mubr.bf16.gmra.mrb[124].mxu0 %v4810_v37  ;;  %v2910_v8 = vsel %vm817_vm0, %v2908_v4, %v2909_v5  ;;  %v4830_v37 = vcombine.low %v4782_v23, %v6285_v61 }
 0x128   : > { %5789 = vmatprep.mubr.bf16.mxu1 %v2907_v13  ;;  %5837 = vmatprep.mubr.bf16.mxu0 %v6457_v52  ;;  %v2913_v52 = vsel %vm817_vm0, %v2911_v42, %v2912_v40  ;;  %v7919_v40 = vld [vmem:[#allocation5_spill] sm:$0xff] }
 0x129   : > { %v2914_v55 = vrot.slane %v4830_v37, 1 }
 0x12a   : > { %v5291_v16 = vpop.f32.mrb[20].mxu0 }
 0x12b   : > { %v5292_v57 = vpop.f32.mrb[21].mxu0  ;;  %v2916_v6 = vsel %vm817_vm0, %v2914_v55, %v2915_v46  ;;  %v7921_v46 = vld [vmem:[#allocation7_spill] sm:$0xff] }
 0x12c   : > { %v7522_v11 = vadd.f32 %v5292_v57, %v5291_v16  ;;  %v5294_v34 = vpop.f32.mrb[22].mxu0 }
 0x12d   : > { %v5295_v12 = vpop.f32.mrb[23].mxu0 }
 0x12e   : > { %v7527_v38 = vadd.f32 %v5295_v12, %v5294_v34 }
 0x12f   : > { %5790 = vmatmul.mubr.bf16.vlgmr.msra.gmra.mrb[0].mxu1 %v2910_v8  ;;  %5838 = vmatmul.mubr.bf16.vlgmr.msra.gmra.mrb[128].mxu0 %v6478_v9 }
 0x130   : > { %5793 = vmatprep.mubr.bf16.mxu1 %v2913_v52  ;;  %5841 = vmatprep.mubr.bf16.mxu0 %v6514_v36 }
 0x132   : > { %v5297_v7 = vpop.f32.mrb[24].mxu0 }
 0x133   : > { %v5298_v0 = vpop.f32.mrb[25].mxu0 }
 0x134   : > { %v7532_v59 = vadd.f32 %v5298_v0, %v5297_v7  ;;  %v5300_v47 = vpop.f32.mrb[26].mxu0 }
 0x135   : > { %v5301_v53 = vpop.f32.mrb[27].mxu0 }
 0x136   : > { %v7535_v26 = vadd.f32 %v5301_v53, %v5300_v47 }
 0x137   : > { %5794 = vmatmul.mubr.bf16.gmra.mrb[4].mxu1 %v2916_v6  ;;  %5842 = vmatmul.mubr.bf16.gmra.mrb[132].mxu0 %v6552_v62 }
 0x138   : > { %5797 = vmatprep.mubr.bf16.mxu1 %v7298_v17  ;;  %5845 = vmatprep.mubr.bf16.mxu0 %v6589_v22 }
 0x13a   : > { %v5303_v9 = vpop.f32.mrb[28].mxu0 }
 0x13b   : > { %v5304_v36 = vpop.f32.mrb[29].mxu0 }
 0x13c   : > { %v7540_v50 = vadd.f32 %v5304_v36, %v5303_v9  ;;  %v5306_v33 = vpop.f32.mrb[30].mxu0 }
 0x13d   : > { %v5307_v15 = vpop.f32.mrb[31].mxu0 }
 0x13e   : > { %v7542_v21 = vadd.f32 %v5307_v15, %v5306_v33 }
 0x13f   : > { %5798 = vmatmul.mubr.bf16.gmra.mrb[8].mxu1 %v7310_v20  ;;  %5846 = vmatmul.mubr.bf16.gmra.mrb[136].mxu0 %v7916_v31 }
 0x140   : > { %5801 = vmatprep.mubr.bf16.mxu1 %v7323_v51  ;;  %5849 = vmatprep.mubr.bf16.mxu0 %v7917_v35  ;;  %v7918_v51 = vld [vmem:[#allocation4_spill] sm:$0xff] }
 0x142   : > { %v5309_v62 = vpop.f32.mrb[32].mxu0  ;;  %v5397_v17 = vpop.f32.mrb[32].mxu1 }
 0x143   : > { %v5310_v19 = vpop.f32.mrb[33].mxu0  ;;  %v5398_v22 = vpop.f32.mrb[33].mxu1 }
 0x144   : > { %v7548_v41 = vadd.f32 %v5310_v19, %v5309_v62  ;;  %v5399_v13 = vadd.f32 %v5398_v22, %v5397_v17  ;;  %v5312_v28 = vpop.f32.mrb[34].mxu0  ;;  %v5400_v3 = vpop.f32.mrb[34].mxu1  ;;  %v7923_v62 = vld [vmem:[#allocation9_spill] sm:$0xff] }
 0x145   : > { %v5313_v4 = vpop.f32.mrb[35].mxu0  ;;  %v5401_v27 = vpop.f32.mrb[35].mxu1 }
 0x146   : > { %v7551_v5 = vadd.f32 %v5399_v13, %v7464_v39  ;;  %v7553_v20 = vadd.f32 %v5313_v4, %v5312_v28  ;;  %v5402_v42 = vadd.f32 %v5401_v27, %v5400_v3 }
 0x147   : > { %5802 = vmatmul.mubr.bf16.gmra.mrb[12].mxu1 %v7334_v14  ;;  %5850 = vmatmul.mubr.bf16.gmra.mrb[140].mxu0 %v7918_v51 }
 0x148   : > { %v7558_v25 = vadd.f32 %v5402_v42, %v7472_v56  ;;  %5805 = vmatprep.mubr.bf16.mxu1 %v7337_v29  ;;  %5853 = vmatprep.mubr.bf16.mxu0 %v7919_v40  ;;  %v7920_v29 = vld [vmem:[#allocation6_spill] sm:$0xff] }
 0x14a   : > { %v5315_v23 = vpop.f32.mrb[36].mxu0  ;;  %v5403_v16 = vpop.f32.mrb[36].mxu1 }
 0x14b   : > { %v5316_v57 = vpop.f32.mrb[37].mxu0  ;;  %v5404_v34 = vpop.f32.mrb[37].mxu1 }
 0x14c   : > { %v7562_v39 = vadd.f32 %v5316_v57, %v5315_v23  ;;  %v5405_v8 = vadd.f32 %v5404_v34, %v5403_v16  ;;  %v5318_v61 = vpop.f32.mrb[38].mxu0  ;;  %v5406_v37 = vpop.f32.mrb[38].mxu1  ;;  %v7925_v23 = vld [vmem:[#allocation11_spill] sm:$0xff] }
 0x14d   : > { %v5319_v12 = vpop.f32.mrb[39].mxu0  ;;  %v5407_v14 = vpop.f32.mrb[39].mxu1 }
 0x14e   : > { %v7565_v52 = vadd.f32 %v5405_v8, %v7479_v18  ;;  %v7567_v56 = vadd.f32 %v5319_v12, %v5318_v61  ;;  %v5408_v55 = vadd.f32 %v5407_v14, %v5406_v37 }
 0x14f   : > { %5806 = vmatmul.mubr.bf16.gmra.mrb[16].mxu1 %v7348_v58  ;;  %5854 = vmatmul.mubr.bf16.gmra.mrb[144].mxu0 %v7920_v29 }
 0x150   : > { %v7572_v24 = vadd.f32 %v5408_v55, %v7484_v43  ;;  %5809 = vmatprep.mubr.bf16.mxu1 %v7358_v54  ;;  %5857 = vmatprep.mubr.bf16.mxu0 %v7921_v46  ;;  %v7922_v54 = vld [vmem:[#allocation8_spill] sm:$0xff] }
 0x152   : > { %v5321_v7 = vpop.f32.mrb[40].mxu0  ;;  %v5409_v0 = vpop.f32.mrb[40].mxu1 }
 0x153   : > { %v5322_v47 = vpop.f32.mrb[41].mxu0  ;;  %v5410_v6 = vpop.f32.mrb[41].mxu1 }
 0x154   : > { %v7576_v18 = vadd.f32 %v5322_v47, %v5321_v7  ;;  %v5411_v53 = vadd.f32 %v5410_v6, %v5409_v0  ;;  %v5324_v9 = vpop.f32.mrb[42].mxu0  ;;  %v5412_v36 = vpop.f32.mrb[42].mxu1 }
 0x155   : > { %v5325_v33 = vpop.f32.mrb[43].mxu0  ;;  %v5413_v58 = vpop.f32.mrb[43].mxu1 }
 0x156   : > { %v7579_v15 = vadd.f32 %v5411_v53, %v7489_v10  ;;  %v7581_v43 = vadd.f32 %v5325_v33, %v5324_v9  ;;  %v5414_v31 = vadd.f32 %v5413_v58, %v5412_v36 }
 0x157   : > { %5810 = vmatmul.mubr.bf16.gmra.mrb[20].mxu1 %v7365_v63  ;;  %5858 = vmatmul.mubr.bf16.gmra.mrb[148].mxu0 %v7922_v54 }
 0x158   : > { %v7586_v35 = vadd.f32 %v5414_v31, %v7493_v45  ;;  %5813 = vmatprep.mubr.bf16.mxu1 %v7372_v49  ;;  %5861 = vmatprep.mubr.bf16.mxu0 %v7923_v62  ;;  %v7924_v49 = vld [vmem:[#allocation10_spill] sm:$0xff] }
 0x15a   : > { %v5327_v17 = vpop.f32.mrb[44].mxu0  ;;  %v5415_v19 = vpop.f32.mrb[44].mxu1 }
 0x15b   : > { %v5328_v22 = vpop.f32.mrb[45].mxu0  ;;  %v5416_v13 = vpop.f32.mrb[45].mxu1 }
 0x15c   : > { %v7590_v10 = vadd.f32 %v5328_v22, %v5327_v17  ;;  %v5417_v28 = vadd.f32 %v5416_v13, %v5415_v19  ;;  %v5330_v3 = vpop.f32.mrb[46].mxu0  ;;  %v5418_v4 = vpop.f32.mrb[46].mxu1 }
 0x15d   : > { %v5331_v27 = vpop.f32.mrb[47].mxu0  ;;  %v5419_v63 = vpop.f32.mrb[47].mxu1 }
 0x15e   : > { %v7593_v42 = vadd.f32 %v5417_v28, %v7499_v1  ;;  %v7595_v45 = vadd.f32 %v5331_v27, %v5330_v3  ;;  %v5420_v51 = vadd.f32 %v5419_v63, %v5418_v4 }
 0x15f   : > { %5814 = vmatmul.mubr.bf16.gmra.mrb[24].mxu1 %v7382_v30  ;;  %5862 = vmatmul.mubr.bf16.gmra.mrb[152].mxu0 %v7924_v49 }
 0x160   : > { %v7600_v40 = vadd.f32 %v5420_v51, %v7503_v44  ;;  %5817 = vmatprep.mubr.bf16.mxu1 %v7389_v2  ;;  %5865 = vmatprep.mubr.bf16.mxu0 %v7925_v23  ;;  %v7926_v2 = vld [vmem:[#allocation12_spill] sm:$0xff] }
 0x162   : > { %v5333_v16 = vpop.f32.mrb[48].mxu0  ;;  %v5421_v57 = vpop.f32.mrb[48].mxu1 }
 0x163   : > { %v5334_v34 = vpop.f32.mrb[49].mxu0  ;;  %v5422_v8 = vpop.f32.mrb[49].mxu1 }
 0x164   : > { %v7604_v1 = vadd.f32 %v5334_v34, %v5333_v16  ;;  %v5423_v61 = vadd.f32 %v5422_v8, %v5421_v57  ;;  %v5336_v37 = vpop.f32.mrb[50].mxu0  ;;  %v5424_v12 = vpop.f32.mrb[50].mxu1 }
 0x165   : > { %v5337_v14 = vpop.f32.mrb[51].mxu0  ;;  %v5425_v30 = vpop.f32.mrb[51].mxu1 }
 0x166   : > { %v7607_v55 = vadd.f32 %v5423_v61, %v7510_v32  ;;  %v7609_v44 = vadd.f32 %v5337_v14, %v5336_v37  ;;  %v5426_v29 = vadd.f32 %v5425_v30, %v5424_v12 }
 0x167   : > { %5818 = vmatmul.mubr.bf16.gmra.mrb[28].mxu1 %v7398_v60  ;;  %5866 = vmatmul.mubr.bf16.gmra.mrb[156].mxu0 %v7926_v2 }
 0x168   : > { %v7614_v46 = vadd.f32 %v5426_v29, %v7515_v48 }
 0x16a   : > { %v5339_v7 = vpop.f32.mrb[52].mxu0  ;;  %v5427_v0 = vpop.f32.mrb[52].mxu1 }
 0x16b   : > { %v5340_v47 = vpop.f32.mrb[53].mxu0  ;;  %v5428_v6 = vpop.f32.mrb[53].mxu1 }
 0x16c   : > { %v7616_v53 = vadd.f32 %v5340_v47, %v5339_v7  ;;  %v5429_v9 = vadd.f32 %v5428_v6, %v5427_v0  ;;  %v5342_v36 = vpop.f32.mrb[54].mxu0  ;;  %v5430_v32 = vpop.f32.mrb[54].mxu1 }
 0x16d   : > { %v5343_v33 = vpop.f32.mrb[55].mxu0  ;;  %v5431_v58 = vpop.f32.mrb[55].mxu1 }
 0x16e   : > { %v7619_v31 = vadd.f32 %v5429_v9, %v7522_v11  ;;  %v7621_v60 = vadd.f32 %v5343_v33, %v5342_v36  ;;  %v5432_v54 = vadd.f32 %v5431_v58, %v5430_v32 }
 0x170   : > { %v7624_v48 = vadd.f32 %v5432_v54, %v7527_v38 }
 0x172   : > { %v5345_v62 = vpop.f32.mrb[56].mxu0  ;;  %v5433_v17 = vpop.f32.mrb[56].mxu1 }
 0x173   : > { %v5346_v19 = vpop.f32.mrb[57].mxu0  ;;  %v5434_v22 = vpop.f32.mrb[57].mxu1 }
 0x174   : > { %v7626_v13 = vadd.f32 %v5346_v19, %v5345_v62  ;;  %v5435_v28 = vadd.f32 %v5434_v22, %v5433_v17  ;;  %v5348_v3 = vpop.f32.mrb[58].mxu0  ;;  %v5436_v4 = vpop.f32.mrb[58].mxu1 }
 0x175   : > { %v5349_v27 = vpop.f32.mrb[59].mxu0  ;;  %v5437_v63 = vpop.f32.mrb[59].mxu1 }
 0x176   : > { %v7629_v11 = vadd.f32 %v5435_v28, %v7532_v59  ;;  %v7631_v51 = vadd.f32 %v5349_v27, %v5348_v3  ;;  %v5438_v49 = vadd.f32 %v5437_v63, %v5436_v4 }
 0x178   : > { %v7634_v38 = vadd.f32 %v5438_v49, %v7535_v26 }
 0x17a   : > { %v5351_v23 = vpop.f32.mrb[60].mxu0  ;;  %v5439_v16 = vpop.f32.mrb[60].mxu1 }
 0x17b   : > { %v5352_v57 = vpop.f32.mrb[61].mxu0  ;;  %v5440_v34 = vpop.f32.mrb[61].mxu1 }
 0x17c   : > { %v7636_v8 = vadd.f32 %v5352_v57, %v5351_v23  ;;  %v5441_v61 = vadd.f32 %v5440_v34, %v5439_v16  ;;  %v5354_v37 = vpop.f32.mrb[62].mxu0  ;;  %v5442_v12 = vpop.f32.mrb[62].mxu1 }
 0x17d   : > { %v5355_v14 = vpop.f32.mrb[63].mxu0  ;;  %v5443_v30 = vpop.f32.mrb[63].mxu1 }
 0x17e   : > { %v7639_v59 = vadd.f32 %v5441_v61, %v7540_v50  ;;  %v7641_v29 = vadd.f32 %v5355_v14, %v5354_v37  ;;  %v5444_v2 = vadd.f32 %v5443_v30, %v5442_v12 }
 0x180   : > { %v7644_v26 = vadd.f32 %v5444_v2, %v7542_v21 }
 0x182   : > { %v5445_v7 = vpop.f32.mrb[64].mxu1  ;;  %v5533_v0 = vpop.f32.mrb[64].mxu0 }
 0x183   : > { %v5446_v47 = vpop.f32.mrb[65].mxu1  ;;  %v5534_v6 = vpop.f32.mrb[65].mxu0 }
 0x184   : > { %v5447_v9 = vadd.f32 %v5446_v47, %v5445_v7  ;;  %v5535_v36 = vadd.f32 %v5534_v6, %v5533_v0  ;;  %v5448_v32 = vpop.f32.mrb[66].mxu1  ;;  %v5536_v33 = vpop.f32.mrb[66].mxu0 }
 0x185   : > { %v5449_v58 = vpop.f32.mrb[67].mxu1  ;;  %v5537_v54 = vpop.f32.mrb[67].mxu0 }
 0x186   : > { %v7647_v62 = vadd.f32 %v5447_v9, %v7548_v41  ;;  %v5450_v50 = vadd.f32 %v5449_v58, %v5448_v32  ;;  %v5538_v17 = vadd.f32 %v5537_v54, %v5536_v33  ;;  %v7650_v19 = vadd.f32 %v7551_v5, %v5535_v36 }
 0x188   : > { %v7653_v21 = vadd.f32 %v5450_v50, %v7553_v20  ;;  %v7656_v22 = vadd.f32 %v7558_v25, %v5538_v17 }
 0x18a   : > { %v5451_v28 = vpop.f32.mrb[68].mxu1  ;;  %v5539_v3 = vpop.f32.mrb[68].mxu0 }
 0x18b   : > { %v5452_v4 = vpop.f32.mrb[69].mxu1  ;;  %v5540_v27 = vpop.f32.mrb[69].mxu0 }
 0x18c   : > { %v5453_v63 = vadd.f32 %v5452_v4, %v5451_v28  ;;  %v5541_v49 = vadd.f32 %v5540_v27, %v5539_v3  ;;  %v5454_v23 = vpop.f32.mrb[70].mxu1  ;;  %v5542_v41 = vpop.f32.mrb[70].mxu0 }
 0x18d   : > { %v5455_v16 = vpop.f32.mrb[71].mxu1  ;;  %v5543_v57 = vpop.f32.mrb[71].mxu0 }
 0x18e   : > { %v7659_v34 = vadd.f32 %v5453_v63, %v7562_v39  ;;  %v5456_v5 = vadd.f32 %v5455_v16, %v5454_v23  ;;  %v5544_v61 = vadd.f32 %v5543_v57, %v5542_v41  ;;  %v7662_v20 = vadd.f32 %v7565_v52, %v5541_v49 }
 0x190   : > { %v7665_v25 = vadd.f32 %v5456_v5, %v7567_v56  ;;  %v7668_v37 = vadd.f32 %v7572_v24, %v5544_v61 }
 0x192   : > { %v5457_v12 = vpop.f32.mrb[72].mxu1  ;;  %v5545_v14 = vpop.f32.mrb[72].mxu0 }
 0x193   : > { %v5458_v30 = vpop.f32.mrb[73].mxu1  ;;  %v5546_v2 = vpop.f32.mrb[73].mxu0 }
 0x194   : > { %v5459_v7 = vadd.f32 %v5458_v30, %v5457_v12  ;;  %v5547_v0 = vadd.f32 %v5546_v2, %v5545_v14  ;;  %v5460_v47 = vpop.f32.mrb[74].mxu1  ;;  %v5548_v39 = vpop.f32.mrb[74].mxu0 }
 0x195   : > { %v5461_v6 = vpop.f32.mrb[75].mxu1  ;;  %v5549_v9 = vpop.f32.mrb[75].mxu0 }
 0x196   : > { %v7671_v36 = vadd.f32 %v5459_v7, %v7576_v18  ;;  %v5462_v52 = vadd.f32 %v5461_v6, %v5460_v47  ;;  %v5550_v32 = vadd.f32 %v5549_v9, %v5548_v39  ;;  %v7674_v56 = vadd.f32 %v7579_v15, %v5547_v0 }
 0x198   : > { %v7677_v24 = vadd.f32 %v5462_v52, %v7581_v43  ;;  %v7680_v33 = vadd.f32 %v7586_v35, %v5550_v32 }
 0x19a   : > { %v5463_v58 = vpop.f32.mrb[76].mxu1  ;;  %v5551_v54 = vpop.f32.mrb[76].mxu0 }
 0x19b   : > { %v5464_v50 = vpop.f32.mrb[77].mxu1  ;;  %v5552_v17 = vpop.f32.mrb[77].mxu0 }
 0x19c   : > { %v5465_v28 = vadd.f32 %v5464_v50, %v5463_v58  ;;  %v5553_v3 = vadd.f32 %v5552_v17, %v5551_v54  ;;  %v5466_v4 = vpop.f32.mrb[78].mxu1  ;;  %v5554_v18 = vpop.f32.mrb[78].mxu0 }
 0x19d   : > { %v5467_v27 = vpop.f32.mrb[79].mxu1  ;;  %v5555_v63 = vpop.f32.mrb[79].mxu0 }
 0x19e   : > { %v7683_v49 = vadd.f32 %v5465_v28, %v7590_v10  ;;  %v5468_v15 = vadd.f32 %v5467_v27, %v5466_v4  ;;  %v5556_v23 = vadd.f32 %v5555_v63, %v5554_v18  ;;  %v7686_v43 = vadd.f32 %v7593_v42, %v5553_v3 }
 0x1a0   : > { %v7689_v35 = vadd.f32 %v5468_v15, %v7595_v45  ;;  %v7692_v41 = vadd.f32 %v7600_v40, %v5556_v23 }
 0x1a2   : > { %v5469_v16 = vpop.f32.mrb[80].mxu1  ;;  %v5557_v57 = vpop.f32.mrb[80].mxu0 }
 0x1a3   : > { %v5470_v5 = vpop.f32.mrb[81].mxu1  ;;  %v5558_v61 = vpop.f32.mrb[81].mxu0 }
 0x1a4   : > { %v5471_v12 = vadd.f32 %v5470_v5, %v5469_v16  ;;  %v5559_v14 = vadd.f32 %v5558_v61, %v5557_v57  ;;  %v5472_v30 = vpop.f32.mrb[82].mxu1  ;;  %v5560_v10 = vpop.f32.mrb[82].mxu0 }
 0x1a5   : > { %v5473_v2 = vpop.f32.mrb[83].mxu1  ;;  %v5561_v7 = vpop.f32.mrb[83].mxu0 }
 0x1a6   : > { %v7695_v0 = vadd.f32 %v5471_v12, %v7604_v1  ;;  %v5474_v42 = vadd.f32 %v5473_v2, %v5472_v30  ;;  %v5562_v47 = vadd.f32 %v5561_v7, %v5560_v10  ;;  %v7698_v45 = vadd.f32 %v7607_v55, %v5559_v14 }
 0x1a8   : > { %v7701_v40 = vadd.f32 %v5474_v42, %v7609_v44  ;;  %v7704_v39 = vadd.f32 %v7614_v46, %v5562_v47 }
 0x1aa   : > { %v5475_v6 = vpop.f32.mrb[84].mxu1  ;;  %v5563_v9 = vpop.f32.mrb[84].mxu0 }
 0x1ab   : > { %v5476_v52 = vpop.f32.mrb[85].mxu1  ;;  %v5564_v32 = vpop.f32.mrb[85].mxu0 }
 0x1ac   : > { %v5477_v58 = vadd.f32 %v5476_v52, %v5475_v6  ;;  %v5565_v54 = vadd.f32 %v5564_v32, %v5563_v9  ;;  %v5478_v50 = vpop.f32.mrb[86].mxu1  ;;  %v5566_v1 = vpop.f32.mrb[86].mxu0 }
 0x1ad   : > { %v5479_v17 = vpop.f32.mrb[87].mxu1  ;;  %v5567_v28 = vpop.f32.mrb[87].mxu0 }
 0x1ae   : > { %v7707_v3 = vadd.f32 %v5477_v58, %v7616_v53  ;;  %v5480_v55 = vadd.f32 %v5479_v17, %v5478_v50  ;;  %v5568_v4 = vadd.f32 %v5567_v28, %v5566_v1  ;;  %v7710_v44 = vadd.f32 %v7619_v31, %v5565_v54 }
 0x1b0   : > { %v7713_v46 = vadd.f32 %v5480_v55, %v7621_v60  ;;  %v7716_v18 = vadd.f32 %v7624_v48, %v5568_v4 }
 0x1b2   : > { %v5481_v27 = vpop.f32.mrb[88].mxu1  ;;  %v5569_v63 = vpop.f32.mrb[88].mxu0 }
 0x1b3   : > { %v5482_v15 = vpop.f32.mrb[89].mxu1  ;;  %v5570_v23 = vpop.f32.mrb[89].mxu0 }
 0x1b4   : > { %v5483_v16 = vadd.f32 %v5482_v15, %v5481_v27  ;;  %v5571_v57 = vadd.f32 %v5570_v23, %v5569_v63  ;;  %v5484_v5 = vpop.f32.mrb[90].mxu1  ;;  %v5572_v53 = vpop.f32.mrb[90].mxu0 }
 0x1b5   : > { %v5485_v61 = vpop.f32.mrb[91].mxu1  ;;  %v5573_v12 = vpop.f32.mrb[91].mxu0 }
 0x1b6   : > { %v7719_v14 = vadd.f32 %v5483_v16, %v7626_v13  ;;  %v5486_v31 = vadd.f32 %v5485_v61, %v5484_v5  ;;  %v5574_v30 = vadd.f32 %v5573_v12, %v5572_v53  ;;  %v7722_v60 = vadd.f32 %v7629_v11, %v5571_v57 }
 0x1b8   : > { %v7725_v48 = vadd.f32 %v5486_v31, %v7631_v51  ;;  %v7728_v10 = vadd.f32 %v7634_v38, %v5574_v30 }
 0x1ba   : > { %v5487_v2 = vpop.f32.mrb[92].mxu1  ;;  %v5575_v7 = vpop.f32.mrb[92].mxu0 }
 0x1bb   : > { %v5488_v42 = vpop.f32.mrb[93].mxu1  ;;  %v5576_v47 = vpop.f32.mrb[93].mxu0 }
 0x1bc   : > { %v5489_v6 = vadd.f32 %v5488_v42, %v5487_v2  ;;  %v5577_v9 = vadd.f32 %v5576_v47, %v5575_v7  ;;  %v5490_v52 = vpop.f32.mrb[94].mxu1  ;;  %v5578_v13 = vpop.f32.mrb[94].mxu0 }
 0x1bd   : > { %v5491_v32 = vpop.f32.mrb[95].mxu1  ;;  %v5579_v58 = vpop.f32.mrb[95].mxu0 }
 0x1be   : > { %v7731_v54 = vadd.f32 %v5489_v6, %v7636_v8  ;;  %v5492_v11 = vadd.f32 %v5491_v32, %v5490_v52  ;;  %v5580_v50 = vadd.f32 %v5579_v58, %v5578_v13  ;;  %v7734_v51 = vadd.f32 %v7639_v59, %v5577_v9 }
 0x1c0   : > { %v7737_v38 = vadd.f32 %v5492_v11, %v7641_v29  ;;  %v7740_v1 = vadd.f32 %v7644_v26, %v5580_v50 }
 0x1c2   : > { %v5581_v17 = vpop.f32.mrb[96].mxu0 }
 0x1c3   : > { %v5582_v28 = vpop.f32.mrb[97].mxu0 }
 0x1c4   : > { %v5583_v55 = vadd.f32 %v5582_v28, %v5581_v17  ;;  %v5584_v4 = vpop.f32.mrb[98].mxu0 }
 0x1c5   : > { %v5585_v27 = vpop.f32.mrb[99].mxu0 }
 0x1c6   : > { %v5586_v63 = vadd.f32 %v5585_v27, %v5584_v4  ;;  %v7743_v8 = vadd.f32 %v7647_v62, %v5583_v55 }
 0x1c8   : > { %v7746_v15 = vadd.f32 %v7653_v21, %v5586_v63 }
 0x1ca   : > { %v5587_v59 = vpop.f32.mrb[100].mxu0 }
 0x1cb   : > { %v5588_v23 = vpop.f32.mrb[101].mxu0 }
 0x1cc   : > { %v5589_v16 = vadd.f32 %v5588_v23, %v5587_v59  ;;  %v5590_v29 = vpop.f32.mrb[102].mxu0 }
 0x1cd   : > { %v5591_v57 = vpop.f32.mrb[103].mxu0 }
 0x1ce   : > { %v5592_v5 = vadd.f32 %v5591_v57, %v5590_v29  ;;  %v7749_v26 = vadd.f32 %v7659_v34, %v5589_v16 }
 0x1d0   : > { %v7752_v53 = vadd.f32 %v7665_v25, %v5592_v5 }
 0x1d2   : > { %v5593_v61 = vpop.f32.mrb[104].mxu0 }
 0x1d3   : > { %v5594_v12 = vpop.f32.mrb[105].mxu0 }
 0x1d4   : > { %v5595_v31 = vadd.f32 %v5594_v12, %v5593_v61  ;;  %v5596_v62 = vpop.f32.mrb[106].mxu0 }
 0x1d5   : > { %v5597_v30 = vpop.f32.mrb[107].mxu0 }
 0x1d6   : > { %v5598_v2 = vadd.f32 %v5597_v30, %v5596_v62  ;;  %v7755_v21 = vadd.f32 %v7671_v36, %v5595_v31 }
 0x1d8   : > { %v7758_v7 = vadd.f32 %v7677_v24, %v5598_v2 }
 0x1da   : > { %v5599_v42 = vpop.f32.mrb[108].mxu0 }
 0x1db   : > { %v5600_v47 = vpop.f32.mrb[109].mxu0 }
 0x1dc   : > { %v5601_v6 = vadd.f32 %v5600_v47, %v5599_v42  ;;  %v5602_v34 = vpop.f32.mrb[110].mxu0 }
 0x1dd   : > { %v5603_v9 = vpop.f32.mrb[111].mxu0 }
 0x1de   : > { %v5604_v52 = vadd.f32 %v5603_v9, %v5602_v34  ;;  %v7761_v25 = vadd.f32 %v7683_v49, %v5601_v6 }
 0x1e0   : > { %v7764_v13 = vadd.f32 %v7689_v35, %v5604_v52 }
 0x1e2   : > { %v5605_v32 = vpop.f32.mrb[112].mxu0 }
 0x1e3   : > { %v5606_v58 = vpop.f32.mrb[113].mxu0 }
 0x1e4   : > { %v5607_v11 = vadd.f32 %v5606_v58, %v5605_v32  ;;  %v5608_v36 = vpop.f32.mrb[114].mxu0 }
 0x1e5   : > { %v5609_v50 = vpop.f32.mrb[115].mxu0 }
 0x1e6   : > { %v5610_v17 = vadd.f32 %v5609_v50, %v5608_v36  ;;  %v7767_v24 = vadd.f32 %v7695_v0, %v5607_v11 }
 0x1e8   : > { %v7770_v28 = vadd.f32 %v7701_v40, %v5610_v17 }
 0x1ea   : > { %v5611_v55 = vpop.f32.mrb[116].mxu0 }
 0x1eb   : > { %v5612_v4 = vpop.f32.mrb[117].mxu0 }
 0x1ec   : > { %v5613_v27 = vadd.f32 %v5612_v4, %v5611_v55  ;;  %v5614_v49 = vpop.f32.mrb[118].mxu0 }
 0x1ed   : > { %v5615_v63 = vpop.f32.mrb[119].mxu0 }
 0x1ee   : > { %v5616_v59 = vadd.f32 %v5615_v63, %v5614_v49  ;;  %v7773_v35 = vadd.f32 %v7707_v3, %v5613_v27 }
 0x1f0   : > { %v7776_v23 = vadd.f32 %v7713_v46, %v5616_v59 }
 0x1f2   : > { %v5617_v16 = vpop.f32.mrb[120].mxu0 }
 0x1f3   : > { %v5618_v29 = vpop.f32.mrb[121].mxu0 }
 0x1f4   : > { %v5619_v0 = vadd.f32 %v5618_v29, %v5617_v16  ;;  %v5620_v57 = vpop.f32.mrb[122].mxu0 }
 0x1f5   : > { %v5621_v5 = vpop.f32.mrb[123].mxu0 }
 0x1f6   : > { %v5622_v40 = vadd.f32 %v5621_v5, %v5620_v57  ;;  %v7779_v61 = vadd.f32 %v7719_v14, %v5619_v0 }
 0x1f8   : > { %v7782_v12 = vadd.f32 %v7725_v48, %v5622_v40 }
 0x1fa   : > { %v5623_v31 = vpop.f32.mrb[124].mxu0 }
 0x1fb   : > { %v5624_v62 = vpop.f32.mrb[125].mxu0 }
 0x1fc   : > { %v5625_v3 = vadd.f32 %v5624_v62, %v5623_v31  ;;  %v5626_v30 = vpop.f32.mrb[126].mxu0 }
 0x1fd   : > { %v5627_v2 = vpop.f32.mrb[127].mxu0 }
 0x1fe   : > { %v5628_v46 = vadd.f32 %v5627_v2, %v5626_v30  ;;  %v7785_v42 = vadd.f32 %v7731_v54, %v5625_v3 }
 0x200   : > { %v7788_v47 = vadd.f32 %v7737_v38, %v5628_v46 }
 0x202   : > { %v5791_v6 = vpop.f32.mrb[0].mxu1  ;;  %v5839_v34 = vpop.f32.mrb[128].mxu0 }
 0x203   : > { %v5871_v14 = vadd.f32 %v7662_v20, %v5791_v6  ;;  %v3357_v9 = vpop.f32.mrb[1].mxu1  ;;  %v3882_v48 = vpop.f32.mrb[129].mxu0  ;;  %v4209_v16 = vmul.f32 %v5839_v34, %v5839_v34 }
 0x204   : > { %v5874_v52 = vadd.f32 %v7650_v19, %v3357_v9  ;;  %v5792_v32 = vpop.f32.mrb[2].mxu1  ;;  %v5840_v54 = vpop.f32.mrb[130].mxu0  ;;  %v4207_v58 = vmul.f32 %v3882_v48, %v3882_v48 }
 0x205   : > { %v5877_v38 = vadd.f32 %v7668_v37, %v5792_v32  ;;  %v5143_v11 = vpack.c.bf16 %v5840_v54, %v5839_v34  ;;  %v3360_v36 = vpop.f32.mrb[3].mxu1  ;;  %v3885_v50 = vpop.f32.mrb[131].mxu0  ;;  %v3716_v0 = vmul.f32 %v5871_v14, %v5871_v14  ;;  %v4210_v3 = vmul.f32 %v5840_v54, %v5840_v54 }
 0x206   : > { %v5880_v19 = vadd.f32 %v7656_v22, %v3360_v36  ;;  %v5138_v20 = vpack.c.bf16 %v3885_v50, %v3882_v48  ;;  %v4169_v17 = vadd.f32 %v3885_v50, %v3882_v48  ;;  %v3714_v55 = vmul.f32 %v5874_v52, %v5874_v52 }
 0x207   : > { %v5063_v4 = vpack.c.bf16 %v5877_v38, %v5871_v14  ;;  %5230 = vst [vmem:[%s7796_s19 + $0x8] sm:$0xff] %v5143_v11   ;;  %v4208_v27 = vmul.f32 %v3885_v50, %v3885_v50  ;;  %v3717_v62 = vmul.f32 %v5877_v38, %v5877_v38 }
 0x208   : > { %v5058_v49 = vpack.c.bf16 %v5880_v19, %v5874_v52  ;;  %v3676_v37 = vadd.f32 %v5880_v19, %v5874_v52  ;;  %v3715_v63 = vmul.f32 %v5880_v19, %v5880_v19  ;;  %5139 = vst [vmem:[%s7796_s19] sm:$0xff] %v5138_v20   ;;  %v4170_v59 = vadd.f32 %v5839_v34, %v4169_v17 }
 0x209   : > { %5215 = vst [vmem:[%s7802_s22 + $0x8] sm:$0xff] %v5063_v4   ;;  %v4239_v29 = vadd.f32 %v4208_v27, %v4207_v58 }
 0x20a   : > { %5059 = vst [vmem:[%s7802_s22] sm:$0xff] %v5058_v49   ;;  %v3677_v57 = vadd.f32 %v5871_v14, %v3676_v37  ;;  %v3746_v5 = vadd.f32 %v3715_v63, %v3714_v55  ;;  %v5795_v22 = vpop.f32.mrb[4].mxu1  ;;  %v5843_v40 = vpop.f32.mrb[132].mxu0  ;;  %v4171_v31 = vadd.f32 %v5840_v54, %v4170_v59 }
 0x20b   : > { %v4240_v30 = vadd.f32 %v4239_v29, %v4209_v16  ;;  %v5883_v2 = vadd.f32 %v7686_v43, %v5795_v22  ;;  %v3373_v46 = vpop.f32.mrb[5].mxu1  ;;  %v3898_v6 = vpop.f32.mrb[133].mxu0  ;;  %v4213_v37 = vmul.f32 %v5843_v40, %v5843_v40 }
 0x20c   : > { %v3747_v9 = vadd.f32 %v3746_v5, %v3716_v0  ;;  %v5886_v48 = vadd.f32 %v7674_v56, %v3373_v46  ;;  %v3678_v34 = vadd.f32 %v5877_v38, %v3677_v57  ;;  %v4172_v52 = vadd.f32 %v4171_v31, %v3898_v6  ;;  %v5796_v32 = vpop.f32.mrb[6].mxu1  ;;  %v5844_v58 = vpop.f32.mrb[134].mxu0 }
 0x20d   : > { %v4211_v14 = vmul.f32 %v3898_v6, %v3898_v6  ;;  %v4241_v11 = vadd.f32 %v4240_v30, %v4210_v3  ;;  %v5889_v36 = vadd.f32 %v7692_v41, %v5796_v32  ;;  %v3376_v50 = vpop.f32.mrb[7].mxu1  ;;  %v3901_v54 = vpop.f32.mrb[135].mxu0  ;;  %v5153_v17 = vpack.c.bf16 %v5844_v58, %v5843_v40 }
 0x20e   : > { %v3679_v19 = vadd.f32 %v5886_v48, %v3678_v34  ;;  %v3718_v20 = vmul.f32 %v5886_v48, %v5886_v48  ;;  %v3748_v43 = vadd.f32 %v3747_v9, %v3717_v62  ;;  %v5892_v38 = vadd.f32 %v7680_v33, %v3376_v50 }
 0x20f   : > { %v4242_v55 = vadd.f32 %v4241_v11, %v4211_v14  ;;  %v5073_v4 = vpack.c.bf16 %v5889_v36, %v5883_v2  ;;  %5232 = vst [vmem:[%s7796_s19 + $0x18] sm:$0xff] %v5153_v17   ;;  %v5148_v27 = vpack.c.bf16 %v3901_v54, %v3898_v6  ;;  %v4173_v49 = vadd.f32 %v4172_v52, %v3901_v54 }
 0x210   : > { %v3749_v56 = vadd.f32 %v3748_v43, %v3718_v20  ;;  %v4212_v63 = vmul.f32 %v3901_v54, %v3901_v54  ;;  %v5068_v41 = vpack.c.bf16 %v5892_v38, %v5886_v48  ;;  %v3680_v59 = vadd.f32 %v5892_v38, %v3679_v19 }
 0x211   : > { %5217 = vst [vmem:[%s7802_s22 + $0x18] sm:$0xff] %v5073_v4   ;;  %v3719_v16 = vmul.f32 %v5892_v38, %v5892_v38  ;;  %5231 = vst [vmem:[%s7796_s19 + $0x10] sm:$0xff] %v5148_v27   ;;  %v4174_v29 = vadd.f32 %v5843_v40, %v4173_v49  ;;  %v3720_v5 = vmul.f32 %v5883_v2, %v5883_v2 }
 0x212   : > { %v5799_v0 = vpop.f32.mrb[8].mxu1  ;;  %v5847_v57 = vpop.f32.mrb[136].mxu0  ;;  %v3721_v22 = vmul.f32 %v5889_v36, %v5889_v36  ;;  %v4243_v31 = vadd.f32 %v4242_v55, %v4212_v63  ;;  %5216 = vst [vmem:[%s7802_s22 + $0x10] sm:$0xff] %v5068_v41   ;;  %v3681_v30 = vadd.f32 %v5883_v2, %v3680_v59  ;;  %v4214_v52 = vmul.f32 %v5844_v58, %v5844_v58 }
 0x213   : > { %v5895_v62 = vadd.f32 %v7710_v44, %v5799_v0  ;;  %v3389_v3 = vpop.f32.mrb[9].mxu1  ;;  %v3914_v33 = vpop.f32.mrb[137].mxu0  ;;  %v3750_v46 = vadd.f32 %v3749_v56, %v3719_v16  ;;  %v4175_v9 = vadd.f32 %v5844_v58, %v4174_v29  ;;  %v4217_v2 = vmul.f32 %v5847_v57, %v5847_v57 }
 0x214   : > { %v5898_v6 = vadd.f32 %v7698_v45, %v3389_v3  ;;  %v5800_v48 = vpop.f32.mrb[10].mxu1  ;;  %v5848_v34 = vpop.f32.mrb[138].mxu0  ;;  %v4244_v32 = vadd.f32 %v4243_v31, %v4213_v37  ;;  %v4215_v40 = vmul.f32 %v3914_v33, %v3914_v33  ;;  %v3682_v54 = vadd.f32 %v5889_v36, %v3681_v30 }
 0x215   : > { %v5901_v14 = vadd.f32 %v7716_v18, %v5800_v48  ;;  %v3392_v11 = vpop.f32.mrb[11].mxu1  ;;  %v3917_v50 = vpop.f32.mrb[139].mxu0  ;;  %v3751_v44 = vadd.f32 %v3750_v46, %v3720_v5  ;;  %v4176_v20 = vadd.f32 %v4175_v9, %v3914_v33  ;;  %v5163_v45 = vpack.c.bf16 %v5848_v34, %v5847_v57 }
 0x216   : > { %v3722_v19 = vmul.f32 %v5898_v6, %v5898_v6  ;;  %v4245_v43 = vadd.f32 %v4244_v32, %v4214_v52  ;;  %v3724_v55 = vmul.f32 %v5895_v62, %v5895_v62  ;;  %v3683_v4 = vadd.f32 %v5898_v6, %v3682_v54 }
 0x217   : > { %v5083_v17 = vpack.c.bf16 %v5901_v14, %v5895_v62  ;;  %v3752_v58 = vadd.f32 %v3751_v44, %v3721_v22  ;;  %v5904_v56 = vadd.f32 %v7704_v39, %v3392_v11  ;;  %5234 = vst [vmem:[%s7796_s19 + $0x28] sm:$0xff] %v5163_v45   ;;  %v5158_v18 = vpack.c.bf16 %v3917_v50, %v3914_v33 }
 0x218   : > { %v4246_v38 = vadd.f32 %v4245_v43, %v4215_v40  ;;  %v4177_v27 = vadd.f32 %v4176_v20, %v3917_v50  ;;  %v4216_v49 = vmul.f32 %v3917_v50, %v3917_v50  ;;  %v3725_v29 = vmul.f32 %v5901_v14, %v5901_v14 }
 0x219   : > { %5219 = vst [vmem:[%s7802_s22 + $0x28] sm:$0xff] %v5083_v17   ;;  %v3753_v36 = vadd.f32 %v3752_v58, %v3722_v19  ;;  %v5078_v37 = vpack.c.bf16 %v5904_v56, %v5898_v6  ;;  %v3684_v63 = vadd.f32 %v5904_v56, %v3683_v4  ;;  %v3723_v41 = vmul.f32 %v5904_v56, %v5904_v56 }
 0x21a   : > { %v5803_v59 = vpop.f32.mrb[12].mxu1  ;;  %v5851_v16 = vpop.f32.mrb[140].mxu0  ;;  %5233 = vst [vmem:[%s7796_s19 + $0x20] sm:$0xff] %v5158_v18   ;;  %v4178_v0 = vadd.f32 %v5847_v57, %v4177_v27  ;;  %v4247_v5 = vadd.f32 %v4246_v38, %v4216_v49  ;;  %v4218_v3 = vmul.f32 %v5848_v34, %v5848_v34 }
 0x21b   : > { %v5907_v22 = vadd.f32 %v7734_v51, %v5803_v59  ;;  %v3405_v39 = vpop.f32.mrb[13].mxu1  ;;  %v3930_v31 = vpop.f32.mrb[141].mxu0  ;;  %5218 = vst [vmem:[%s7802_s22 + $0x20] sm:$0xff] %v5078_v37   ;;  %v3685_v33 = vadd.f32 %v5895_v62, %v3684_v63  ;;  %v3754_v30 = vadd.f32 %v3753_v36, %v3723_v41  ;;  %v4221_v19 = vmul.f32 %v5851_v16, %v5851_v16 }
 0x21c   : > { %v5910_v46 = vadd.f32 %v7722_v60, %v3405_v39  ;;  %v5804_v9 = vpop.f32.mrb[14].mxu1  ;;  %v5852_v6 = vpop.f32.mrb[142].mxu0  ;;  %v4248_v48 = vadd.f32 %v4247_v5, %v4217_v2  ;;  %v4179_v52 = vadd.f32 %v5848_v34, %v4178_v0  ;;  %v4219_v32 = vmul.f32 %v3930_v31, %v3930_v31 }
 0x21d   : > { %v5913_v40 = vadd.f32 %v7740_v1, %v5804_v9  ;;  %v3408_v57 = vpop.f32.mrb[15].mxu1  ;;  %v3933_v11 = vpop.f32.mrb[143].mxu0  ;;  %v3755_v51 = vadd.f32 %v3754_v30, %v3724_v55  ;;  %v3686_v50 = vadd.f32 %v5901_v14, %v3685_v33  ;;  %v5173_v54 = vpack.c.bf16 %v5852_v6, %v5851_v16 }
 0x21e   : > { %v3726_v44 = vmul.f32 %v5910_v46, %v5910_v46  ;;  %v4180_v62 = vadd.f32 %v4179_v52, %v3930_v31  ;;  %v4249_v20 = vadd.f32 %v4248_v48, %v4218_v3  ;;  %v3728_v60 = vmul.f32 %v5907_v22, %v5907_v22 }
 0x21f   : > { %v5093_v43 = vpack.c.bf16 %v5913_v40, %v5907_v22  ;;  %v3687_v17 = vadd.f32 %v5910_v46, %v3686_v50  ;;  %v3756_v2 = vadd.f32 %v3755_v51, %v3725_v29  ;;  %5236 = vst [vmem:[%s7796_s19 + $0x38] sm:$0xff] %v5173_v54   ;;  %v5916_v34 = vadd.f32 %v7728_v10, %v3408_v57 }
 0x220   : > { %v4250_v45 = vadd.f32 %v4249_v20, %v4219_v32  ;;  %v5168_v1 = vpack.c.bf16 %v3933_v11, %v3930_v31  ;;  %v4181_v4 = vadd.f32 %v4180_v62, %v3933_v11  ;;  %v4220_v55 = vmul.f32 %v3933_v11, %v3933_v11 }
 0x221   : > { %5221 = vst [vmem:[%s7802_s22 + $0x38] sm:$0xff] %v5093_v43   ;;  %v3757_v14 = vadd.f32 %v3756_v2, %v3726_v44  ;;  %v5088_v58 = vpack.c.bf16 %v5916_v34, %v5910_v46  ;;  %v3688_v56 = vadd.f32 %v5916_v34, %v3687_v17  ;;  %v3727_v38 = vmul.f32 %v5916_v34, %v5916_v34 }
 0x222   : > { %v5807_v18 = vpop.f32.mrb[16].mxu1  ;;  %v5855_v27 = vpop.f32.mrb[144].mxu0  ;;  %v3729_v49 = vmul.f32 %v5913_v40, %v5913_v40  ;;  %5235 = vst [vmem:[%s7796_s19 + $0x30] sm:$0xff] %v5168_v1   ;;  %v4182_v36 = vadd.f32 %v5851_v16, %v4181_v4  ;;  %v4251_v37 = vadd.f32 %v4250_v45, %v4220_v55  ;;  %v4222_v59 = vmul.f32 %v5852_v6, %v5852_v6 }
 0x223   : > { %v5919_v63 = vadd.f32 %v7749_v26, %v5807_v18  ;;  %v3421_v41 = vpop.f32.mrb[17].mxu1  ;;  %v3946_v10 = vpop.f32.mrb[145].mxu0  ;;  %5220 = vst [vmem:[%s7802_s22 + $0x30] sm:$0xff] %v5088_v58   ;;  %v3689_v29 = vadd.f32 %v5907_v22, %v3688_v56  ;;  %v3758_v0 = vadd.f32 %v3757_v14, %v3727_v38  ;;  %v4225_v57 = vmul.f32 %v5855_v27, %v5855_v27 }
 0x224   : > { %v5922_v5 = vadd.f32 %v7743_v8, %v3421_v41  ;;  %v5808_v39 = vpop.f32.mrb[18].mxu1  ;;  %v5856_v31 = vpop.f32.mrb[146].mxu0  ;;  %v4252_v3 = vadd.f32 %v4251_v37, %v4221_v19  ;;  %v4183_v33 = vadd.f32 %v5852_v6, %v4182_v36  ;;  %v4223_v30 = vmul.f32 %v3946_v10, %v3946_v10 }
 0x225   : > { %v5925_v46 = vadd.f32 %v7752_v53, %v5808_v39  ;;  %v3424_v16 = vpop.f32.mrb[19].mxu1  ;;  %v3949_v9 = vpop.f32.mrb[147].mxu0  ;;  %v3759_v26 = vadd.f32 %v3758_v0, %v3728_v60  ;;  %v3690_v48 = vadd.f32 %v5913_v40, %v3689_v29  ;;  %v5183_v32 = vpack.c.bf16 %v5856_v31, %v5855_v27 }
 0x226   : > { %v3730_v52 = vmul.f32 %v5922_v5, %v5922_v5  ;;  %v4184_v22 = vadd.f32 %v4183_v33, %v3946_v10  ;;  %v4253_v11 = vadd.f32 %v4252_v3, %v4222_v59  ;;  %v3732_v8 = vmul.f32 %v5919_v63, %v5919_v63 }
 0x227   : > { %v5103_v51 = vpack.c.bf16 %v5925_v46, %v5919_v63  ;;  %v3691_v50 = vadd.f32 %v5922_v5, %v3690_v48  ;;  %v3760_v44 = vadd.f32 %v3759_v26, %v3729_v49  ;;  %5238 = vst [vmem:[%s7796_s19 + $0x48] sm:$0xff] %v5183_v32   ;;  %v5928_v6 = vadd.f32 %v7746_v15, %v3424_v16 }
 0x228   : > { %v4254_v54 = vadd.f32 %v4253_v11, %v4223_v30  ;;  %v5178_v53 = vpack.c.bf16 %v3949_v9, %v3946_v10  ;;  %v4185_v19 = vadd.f32 %v4184_v22, %v3949_v9  ;;  %v4224_v62 = vmul.f32 %v3949_v9, %v3949_v9 }
 0x229   : > { %5223 = vst [vmem:[%s7802_s22 + $0x48] sm:$0xff] %v5103_v51   ;;  %v3761_v40 = vadd.f32 %v3760_v44, %v3730_v52  ;;  %v5098_v20 = vpack.c.bf16 %v5928_v6, %v5922_v5  ;;  %v3692_v43 = vadd.f32 %v5928_v6, %v3691_v50  ;;  %v3731_v60 = vmul.f32 %v5928_v6, %v5928_v6 }
 0x22a   : > { %v5811_v17 = vpop.f32.mrb[20].mxu1  ;;  %v5859_v2 = vpop.f32.mrb[148].mxu0  ;;  %v3733_v34 = vmul.f32 %v5925_v46, %v5925_v46  ;;  %5237 = vst [vmem:[%s7796_s19 + $0x40] sm:$0xff] %v5178_v53   ;;  %v4186_v45 = vadd.f32 %v5855_v27, %v4185_v19  ;;  %v4255_v1 = vadd.f32 %v4254_v54, %v4224_v62  ;;  %v4226_v14 = vmul.f32 %v5856_v31, %v5856_v31 }
 0x22b   : > { %v5931_v4 = vadd.f32 %v7761_v25, %v5811_v17  ;;  %v3437_v55 = vpop.f32.mrb[21].mxu1  ;;  %v3962_v15 = vpop.f32.mrb[149].mxu0  ;;  %5222 = vst [vmem:[%s7802_s22 + $0x40] sm:$0xff] %v5098_v20   ;;  %v3693_v58 = vadd.f32 %v5919_v63, %v3692_v43  ;;  %v3762_v56 = vadd.f32 %v3761_v40, %v3731_v60  ;;  %v4229_v39 = vmul.f32 %v5859_v2, %v5859_v2 }
 0x22c   : > { %v5934_v38 = vadd.f32 %v7755_v21, %v3437_v55  ;;  %v5812_v18 = vpop.f32.mrb[22].mxu1  ;;  %v5860_v49 = vpop.f32.mrb[150].mxu0  ;;  %v4256_v36 = vadd.f32 %v4255_v1, %v4225_v57  ;;  %v4187_v37 = vadd.f32 %v5856_v31, %v4186_v45  ;;  %v4227_v41 = vmul.f32 %v3962_v15, %v3962_v15 }
 0x22d   : > { %v5937_v10 = vadd.f32 %v7764_v13, %v5812_v18  ;;  %v3440_v27 = vpop.f32.mrb[23].mxu1  ;;  %v3965_v59 = vpop.f32.mrb[151].mxu0  ;;  %v3763_v25 = vadd.f32 %v3762_v56, %v3732_v8  ;;  %v3694_v29 = vadd.f32 %v5925_v46, %v3693_v58  ;;  %v5193_v5 = vpack.c.bf16 %v5860_v49, %v5859_v2 }
 0x22e   : > { %v3734_v0 = vmul.f32 %v5934_v38, %v5934_v38  ;;  %v4188_v63 = vadd.f32 %v4187_v37, %v3962_v15  ;;  %v4257_v3 = vadd.f32 %v4256_v36, %v4226_v14  ;;  %v3736_v21 = vmul.f32 %v5931_v4, %v5931_v4 }
 0x22f   : > { %v5113_v33 = vpack.c.bf16 %v5937_v10, %v5931_v4  ;;  %v3695_v30 = vadd.f32 %v5934_v38, %v3694_v29  ;;  %v3764_v16 = vadd.f32 %v3763_v25, %v3733_v34  ;;  %5240 = vst [vmem:[%s7796_s19 + $0x58] sm:$0xff] %v5193_v5   ;;  %v5940_v31 = vadd.f32 %v7758_v7, %v3440_v27 }
 0x230   : > { %v4258_v9 = vadd.f32 %v4257_v3, %v4227_v41  ;;  %v5188_v13 = vpack.c.bf16 %v3965_v59, %v3962_v15  ;;  %v4189_v26 = vadd.f32 %v4188_v63, %v3965_v59  ;;  %v4228_v48 = vmul.f32 %v3965_v59, %v3965_v59 }
 0x231   : > { %5225 = vst [vmem:[%s7802_s22 + $0x58] sm:$0xff] %v5113_v33   ;;  %v3765_v46 = vadd.f32 %v3764_v16, %v3734_v0  ;;  %v5108_v52 = vpack.c.bf16 %v5940_v31, %v5934_v38  ;;  %v3696_v32 = vadd.f32 %v5940_v31, %v3695_v30  ;;  %v3735_v57 = vmul.f32 %v5940_v31, %v5940_v31 }
 0x232   : > { %v5815_v22 = vpop.f32.mrb[24].mxu1  ;;  %v5863_v11 = vpop.f32.mrb[152].mxu0  ;;  %v3737_v51 = vmul.f32 %v5937_v10, %v5937_v10  ;;  %5239 = vst [vmem:[%s7796_s19 + $0x50] sm:$0xff] %v5188_v13   ;;  %v4190_v8 = vadd.f32 %v5859_v2, %v4189_v26  ;;  %v4259_v50 = vadd.f32 %v4258_v9, %v4228_v48  ;;  %v4230_v54 = vmul.f32 %v5860_v49, %v5860_v49 }
 0x233   : > { %v5943_v44 = vadd.f32 %v7773_v35, %v5815_v22  ;;  %v3453_v6 = vpop.f32.mrb[25].mxu1  ;;  %v3978_v7 = vpop.f32.mrb[153].mxu0  ;;  %5224 = vst [vmem:[%s7802_s22 + $0x50] sm:$0xff] %v5108_v52   ;;  %v3697_v53 = vadd.f32 %v5931_v4, %v3696_v32  ;;  %v3766_v19 = vadd.f32 %v3765_v46, %v3735_v57  ;;  %v4233_v14 = vmul.f32 %v5863_v11, %v5863_v11 }
 0x234   : > { %v5946_v62 = vadd.f32 %v7767_v24, %v3453_v6  ;;  %v5816_v40 = vpop.f32.mrb[26].mxu1  ;;  %v5864_v20 = vpop.f32.mrb[154].mxu0  ;;  %v4260_v43 = vadd.f32 %v4259_v50, %v4229_v39  ;;  %v4191_v60 = vadd.f32 %v5860_v49, %v4190_v8  ;;  %v4231_v17 = vmul.f32 %v3978_v7, %v3978_v7 }
 0x235   : > { %v5949_v34 = vadd.f32 %v7776_v23, %v5816_v40  ;;  %v3456_v2 = vpop.f32.mrb[27].mxu1  ;;  %v3981_v45 = vpop.f32.mrb[155].mxu0  ;;  %v3767_v35 = vadd.f32 %v3766_v19, %v3736_v21  ;;  %v3698_v1 = vadd.f32 %v5937_v10, %v3697_v53  ;;  %v5203_v15 = vpack.c.bf16 %v5864_v20, %v5863_v11 }
 0x236   : > { %v3738_v55 = vmul.f32 %v5946_v62, %v5946_v62  ;;  %v4192_v4 = vadd.f32 %v4191_v60, %v3978_v7  ;;  %v4261_v58 = vadd.f32 %v4260_v43, %v4230_v54  ;;  %v3740_v24 = vmul.f32 %v5943_v44, %v5943_v44 }
 0x237   : > { %v5123_v56 = vpack.c.bf16 %v5949_v34, %v5943_v44  ;;  %v3699_v38 = vadd.f32 %v5946_v62, %v3698_v1  ;;  %v3768_v18 = vadd.f32 %v3767_v35, %v3737_v51  ;;  %5242 = vst [vmem:[%s7796_s19 + $0x68] sm:$0xff] %v5203_v15   ;;  %v5952_v49 = vadd.f32 %v7770_v28, %v3456_v2 }
 0x238   : > { %v4262_v36 = vadd.f32 %v4261_v58, %v4231_v17  ;;  %v5198_v23 = vpack.c.bf16 %v3981_v45, %v3978_v7  ;;  %v4193_v37 = vadd.f32 %v4192_v4, %v3981_v45  ;;  %v4232_v41 = vmul.f32 %v3981_v45, %v3981_v45 }
 0x239   : > { %5227 = vst [vmem:[%s7802_s22 + $0x68] sm:$0xff] %v5123_v56   ;;  %v3769_v10 = vadd.f32 %v3768_v18, %v3738_v55  ;;  %v5118_v27 = vpack.c.bf16 %v5952_v49, %v5946_v62  ;;  %v3700_v59 = vadd.f32 %v5952_v49, %v3699_v38  ;;  %v3739_v25 = vmul.f32 %v5952_v49, %v5952_v49 }
 0x23a   : > { %v5819_v29 = vpop.f32.mrb[28].mxu1  ;;  %v5867_v0 = vpop.f32.mrb[156].mxu0  ;;  %v3741_v5 = vmul.f32 %v5949_v34, %v5949_v34  ;;  %5241 = vst [vmem:[%s7796_s19 + $0x60] sm:$0xff] %v5198_v23   ;;  %v4194_v39 = vadd.f32 %v5863_v11, %v4193_v37  ;;  %v4263_v63 = vadd.f32 %v4262_v36, %v4232_v41  ;;  %v4234_v21 = vmul.f32 %v5864_v20, %v5864_v20 }
 0x23b   : > { %v5955_v3 = vadd.f32 %v7785_v42, %v5819_v29  ;;  %v3469_v33 = vpop.f32.mrb[29].mxu1  ;;  %v3994_v28 = vpop.f32.mrb[157].mxu0  ;;  %5226 = vst [vmem:[%s7802_s22 + $0x60] sm:$0xff] %v5118_v27   ;;  %v3701_v30 = vadd.f32 %v5943_v44, %v3700_v59  ;;  %v3770_v16 = vadd.f32 %v3769_v10, %v3739_v25  ;;  %v4237_v60 = vmul.f32 %v5867_v0, %v5867_v0 }
 0x23c   : > { %v5958_v31 = vadd.f32 %v7779_v61, %v3469_v33  ;;  %v5820_v9 = vpop.f32.mrb[30].mxu1  ;;  %v5868_v13 = vpop.f32.mrb[158].mxu0  ;;  %v4264_v26 = vadd.f32 %v4263_v63, %v4233_v14  ;;  %v4195_v48 = vadd.f32 %v5864_v20, %v4194_v39  ;;  %v4235_v46 = vmul.f32 %v3994_v28, %v3994_v28 }
 0x23d   : > { %v5961_v52 = vadd.f32 %v7788_v47, %v5820_v9  ;;  %v3472_v32 = vpop.f32.mrb[31].mxu1  ;;  %v3997_v57 = vpop.f32.mrb[159].mxu0  ;;  %v3771_v42 = vadd.f32 %v3770_v16, %v3740_v24  ;;  %v3702_v22 = vadd.f32 %v5949_v34, %v3701_v30  ;;  %v5213_v51 = vpack.c.bf16 %v5868_v13, %v5867_v0 }
 0x23e   : > { %v3742_v11 = vmul.f32 %v5958_v31, %v5958_v31  ;;  %v4196_v8 = vadd.f32 %v4195_v48, %v3994_v28  ;;  %v4265_v50 = vadd.f32 %v4264_v26, %v4234_v21  ;;  %v5964_v7 = vadd.f32 %v7782_v12, %v3472_v32 }
 0x23f   : > { %v5133_v44 = vpack.c.bf16 %v5961_v52, %v5955_v3  ;;  %v3703_v61 = vadd.f32 %v5958_v31, %v3702_v22  ;;  %v3772_v6 = vadd.f32 %v3771_v42, %v3741_v5  ;;  %5244 = vst [vmem:[%s7796_s19 + $0x78] sm:$0xff] %v5213_v51   ;;  %v5208_v53 = vpack.c.bf16 %v3997_v57, %v3994_v28 }
 0x240   : > { %v4266_v54 = vadd.f32 %v4265_v50, %v4235_v46  ;;  %v4197_v47 = vadd.f32 %v4196_v8, %v3997_v57  ;;  %v4236_v19 = vmul.f32 %v3997_v57, %v3997_v57  ;;  %v5128_v40 = vpack.c.bf16 %v5964_v7, %v5958_v31 }
 0x241   : > { %5229 = vst [vmem:[%s7802_s22 + $0x78] sm:$0xff] %v5133_v44   ;;  %v3773_v62 = vadd.f32 %v3772_v6, %v3742_v11  ;;  %v3704_v20 = vadd.f32 %v5964_v7, %v3703_v61  ;;  %v3743_v43 = vmul.f32 %v5964_v7, %v5964_v7  ;;  %5243 = vst [vmem:[%s7796_s19 + $0x70] sm:$0xff] %v5208_v53  }
 0x242   : > { %v4198_v17 = vadd.f32 %v5867_v0, %v4197_v47  ;;  %v4267_v34 = vadd.f32 %v4266_v54, %v4236_v19  ;;  %v3744_v2 = vmul.f32 %v5955_v3, %v5955_v3  ;;  %5228 = vst [vmem:[%s7802_s22 + $0x70] sm:$0xff] %v5128_v40   ;;  %v4238_v1 = vmul.f32 %v5868_v13, %v5868_v13 }
 0x243   : > { %v3705_v45 = vadd.f32 %v5955_v3, %v3704_v20  ;;  %v3774_v35 = vadd.f32 %v3773_v62, %v3743_v43  ;;  %v3745_v15 = vmul.f32 %v5961_v52, %v5961_v52 }
 0x244   : > { %v4199_v55 = vadd.f32 %v5868_v13, %v4198_v17  ;;  %v4268_v12 = vadd.f32 %v4267_v34, %v4237_v60 }
 0x245   : > { %v3706_v14 = vadd.f32 %v5961_v52, %v3705_v45  ;;  %v3775_v4 = vadd.f32 %v3774_v35, %v3744_v2 }
 0x246   : > { %v4200_v58 = vrot.slane %v4199_v55, 4  ;;  %v4269_v56 = vadd.f32 %v4268_v12, %v4238_v1 }
 0x247   : > { %v3707_v24 = vrot.slane %v3706_v14, 4  ;;  %v3776_v38 = vadd.f32 %v3775_v4, %v3745_v15 }
 0x248   : > { %v4201_v18 = vadd.f32 %v4200_v58, %v4199_v55  ;;  %v4270_v49 = vrot.slane %v4269_v56, 4 }
 0x249   : > { %v3708_v36 = vadd.f32 %v3707_v24, %v3706_v14  ;;  %v3777_v23 = vrot.slane %v3776_v38, 4 }
 0x24a   : > { %v4202_v37 = vrot.slane %v4201_v18, 2  ;;  %v4271_v41 = vadd.f32 %v4270_v49, %v4269_v56 }
 0x24b   : > { %v3709_v10 = vrot.slane %v3708_v36, 2  ;;  %v3778_v27 = vadd.f32 %v3777_v23, %v3776_v38 }
 0x24c   : > { %v4203_v59 = vadd.f32 %v4202_v37, %v4201_v18  ;;  %v4272_v25 = vrot.slane %v4271_v41, 2 }
 0x24d   : > { %v3710_v29 = vadd.f32 %v3709_v10, %v3708_v36  ;;  %v3779_v0 = vrot.slane %v3778_v27, 2 }
 0x24e   : > { %v4204_v5 = vrot.slane %v4203_v59, 1  ;;  %v4273_v39 = vadd.f32 %v4272_v25, %v4271_v41 }
 0x24f   : > { %v3711_v63 = vrot.slane %v3710_v29, 1  ;;  %v3780_v3 = vadd.f32 %v3779_v0, %v3778_v27 }
 0x250   : > { %v4205_v33 = vadd.f32 %v4204_v5, %v4203_v59  ;;  %v4274_v28 = vrot.slane %v4273_v39, 1 }
 0x251   : > { %v3712_v21 = vadd.f32 %v3711_v63, %v3710_v29  ;;  %v3781_v30 = vrot.slane %v3780_v3, 1 }
 0x252   : > { %4206 = vst [vmem:[%s347_s25] sm:$0x1] %v4205_v33  ;;  %v4275_v16 = vadd.f32 %v4274_v28, %v4273_v39 }
 0x253   : > { %3713 = vst [vmem:[%s336_s30] sm:$0x1] %v3712_v21  ;;  %v3782_v31 = vadd.f32 %v3781_v30, %v3780_v3 }
 0x254   : > { %4276 = vst [vmem:[%s350_s12] sm:$0x1] %v4275_v16 }
 0x255   : > { %3783 = vst [vmem:[%s339_s15] sm:$0x1] %v3782_v31 }
 0x256 PF: > { %s19_s27 = sadd.s32 1, %s6293_s27  }
 0x257   : > { %p16_p4 = scmp.ge.s32.totalorder %s19_s27, 4  }
 0x259   :  { %18 = sbr.rel (!%p16_p4) target bundleno = 1 (0x1), region = 126 }

// kernel: basic_block_forward.4
= control target key start
LH: loop header
LB: loop body
LE: loop exit
PB: predicated region body
PF: predicated region fallthrough
CT: control target
= control target key end

     0   :  { %s6280_s21 = smov 0   ;;  %s7709_s0 = inlined_call_operand.vmem [shape: bf16[2,256,128], index: 0, kind: input, shape index: {}]   ;;  %s7710_s1 = inlined_call_operand.vmem [shape: f32[1,128], index: 1, kind: input, shape index: {}]   ;;  %s7711_s2 = inlined_call_operand.vmem [shape: f32[1,128], index: 2, kind: input, shape index: {}]   ;;  %s7712_s3 = inlined_call_operand.vmem [shape: bf16[3,384,128], index: 3, kind: input, shape index: {}]   ;;  %s7713_s4 = inlined_call_operand.vmem [shape: bf16[2,256,128], index: 4, kind: output, shape index: {0}]   ;;  %s7714_s5 = inlined_call_operand.vmem [shape: f32[2,1,128], index: 5, kind: output, shape index: {1}]   ;;  %s7715_s6 = inlined_call_operand.vmem [shape: f32[2,1,128], index: 6, kind: output, shape index: {2}]  }
   0x1 LB: > { %s4621_s22 = sadd.s32 4294967295, %s6242_s21   ;;  %p4625_p0 = scmp.ge.s32.totalorder %s6242_s21, 1  ;;  %s6242_s21 = sphi %s6280_s21, %s17_s21  }
   0x2   : > { %p217_p1 = scmp.lt.s32.totalorder %s6242_s21, 3 }
   0x4   : > { %p218_p2 = pnand %p4625_p0, %p217_p1 }
   0x6   : > { %221 = sbr.rel (%p218_p2) target bundleno = 650 (0x28a), region = 36 }
   0xd   : > { %v6291_v0 = vld [vmem:[%s7712_s3 + $0x140] sm:$0xff]   ;;  %v6304_v3 = vld [vmem:[%s7712_s3 + $0x148] sm:$0xff]   ;;  %v6316_v6 = vld [vmem:[%s7712_s3 + $0x150] sm:$0xff]   ;;  %v6244_v8 = vmov 0   ;;  %p253_p3 = scmp.lt.s32.totalorder %s4621_s22, 1  ;;  %vm864_vm0 = vcmask 1043456  }
   0xe   : > { %v5988_v1 = vld [vmem:[%s7712_s3 + $0x100] sm:$0xff]   ;;  %5802 = vmatprep.subr.bf16.mxu1 %v6291_v0  ;;  %v5991_v4 = vld [vmem:[%s7712_s3 + $0x108] sm:$0xff]   ;;  %v5994_v7 = vld [vmem:[%s7712_s3 + $0x110] sm:$0xff]   ;;  %981 = vst [vmem:[#allocation2] sm:$0xf] %v6244_v8  ;;  %vm871_vm4 = vcmask 1040384  }
   0xf   : > { %v5989_v2 = vld [vmem:[%s7712_s3 + $0xc0] sm:$0xff]   ;;  %5810 = vmatpush3.bf16.msra.mxu1 %v6291_v0  ;;  %5250 = vmatprep.subr.bf16.mxu0 %v5988_v1  ;;  %v5992_v5 = vld [vmem:[%s7712_s3 + $0xc8] sm:$0xff]   ;;  %982 = vst [vmem:[#allocation2 + $0x4] sm:$0xf] %v6244_v8  ;;  %983 = vst [vmem:[#allocation2 + $0x8] sm:$0x1] %v6244_v8 }
  0x10   : > { %5251 = vmatpush3.bf16.msra.mxu0 %v5989_v2  ;;  %5803 = vmatprep.subr.bf16.mxu1 %v6304_v3  ;;  %985 = vst [vmem:[#allocation2 + $0xcc] sm:$0xf] %v6244_v8  ;;  %986 = vst [vmem:[#allocation2 + $0xd0] sm:$0xf] %v6244_v8  ;;  %v5995_v9 = vld [vmem:[%s7712_s3 + $0xd0] sm:$0xff]   ;;  %v6329_v10 = vld [vmem:[%s7712_s3 + $0x158] sm:$0xff]  }
  0x11   : > { %5252 = vmatprep.subr.bf16.mxu0 %v5991_v4  ;;  %987 = vst [vmem:[#allocation2 + $0xd4] sm:$0x1] %v6244_v8  ;;  %v5997_v11 = vld [vmem:[%s7712_s3 + $0x118] sm:$0xff]   ;;  %v6344_v13 = vld [vmem:[%s7712_s3 + $0x160] sm:$0xff]   ;;  %s7729_s22 = smov (!%p253_p3, %s4621_s22), 1  ;;  %v6361_v16 = vld [vmem:[%s7712_s3 + $0x168] sm:$0xff]  }
  0x12   : > { %v5998_v12 = vld [vmem:[%s7712_s3 + $0xd8] sm:$0xff]   ;;  %v6000_v14 = vld [vmem:[%s7712_s3 + $0x120] sm:$0xff]   ;;  %v6003_v17 = vld [vmem:[%s7712_s3 + $0x128] sm:$0xff]   ;;  %s5010_s11 = sshll.u32 %s7729_s22, 7  ;;  %vm540_vm1 = vsmask.f32 256  ;;  %s265_s23 = scalar_lea.vmem %s7714_s5, %s7729_s22 }
  0x13   : > { %5811 = vmatpush3.bf16.msra.mxu1 %v6304_v3  ;;  %v6001_v15 = vld [vmem:[%s7712_s3 + $0xe0] sm:$0xff]   ;;  %v6004_v18 = vld [vmem:[%s7712_s3 + $0xe8] sm:$0xff]   ;;  %v6005_v19 = vld [vmem:[%s7712_s3 + $0x170] sm:$0xff]   ;;  %s6380_s18 = scalar_lea.vmem %s7709_s0, %s5010_s11  ;;  %vm541_vm2 = vsmask.f32 4368  ;;  %vm1550_vm9 = vcmask 1046528   ;;  %s7648_s20 = scalar_lea.vmem %s7713_s4, %s5010_s11 }
  0x14   : > { %5253 = vmatpush3.bf16.msra.mxu0 %v5992_v5  ;;  %5804 = vmatprep.subr.bf16.mxu1 %v6316_v6  ;;  %v6006_v20 = vld [vmem:[%s7712_s3 + $0x130] sm:$0xff]   ;;  %v5227_v21 = vld [vmem:[%s6380_s18 + $0x40] sm:$0xff]   ;;  %v6008_v24 = vld [vmem:[%s7712_s3 + $0x178] sm:$0xff]   ;;  %vm865_vm3 = vsmask.f32 7938  ;;  %s268_s26 = scalar_lea.vmem %s7715_s6, %s7729_s22 }
  0x15   : > { %5254 = vmatprep.subr.bf16.mxu0 %v5994_v7  ;;  %v6390_v22 = vld [vmem:[%s7710_s1] ss:$0 sm:$0xff]  ;;  %v6007_v23 = vld [vmem:[%s7712_s3 + $0xf0] sm:$0xff]   ;;  %v5110_v25 = vunpack.c.l.bf16 %v5227_v21  ;;  %v5111_v26 = vunpack.c.h.bf16 %v5227_v21  ;;  %v6009_v27 = vld [vmem:[%s7712_s3 + $0x138] sm:$0xff]   ;;  %vm1293_vm10 = vsmask.f32 7424 }
  0x16   : > { %v6404_v28 = vld [vmem:[%s7711_s2] ss:$0 sm:$0xff]  ;;  %v5228_v31 = vld [vmem:[%s6380_s18 + $0x48] sm:$0xff]   ;;  %v6013_v34 = vld [vmem:[%s7712_s3 + $0xf8] sm:$0xff]  }
  0x17   : > { %5812 = vmatpush3.bf16.msra.mxu1 %v6316_v6  ;;  %v357_v29 = vmul.f32 %v5110_v25, %v6390_v22  ;;  %v358_v30 = vmul.f32 %v5111_v26, %v6390_v22  ;;  %v5114_v35 = vunpack.c.l.bf16 %v5228_v31  ;;  %v5115_v36 = vunpack.c.h.bf16 %v5228_v31  ;;  %v6017_v37 = vld [vmem:[%s7712_s3 + $0x40] sm:$0xff]   ;;  %v5229_v51 = vld [vmem:[%s6380_s18 + $0x50] sm:$0xff]   ;;  %vm6430_vm5 = vmor %vm540_vm1, %vm541_vm2 }
  0x18   : > { %5255 = vmatpush3.bf16.msra.mxu0 %v5995_v9  ;;  %5805 = vmatprep.subr.bf16.mxu1 %v6329_v10  ;;  %v5077_v42 = vld [vmem:[%s6380_s18] sm:$0xff]   ;;  %v925_v63 = vld [vmem:[#allocation2 + $0x6c] sm:$0xf]  ;;  %v929_v1 = vld [vmem:[#allocation2 + $0x74] sm:$0x1]  ;;  %v5118_v2 = vunpack.c.l.bf16 %v5229_v51  ;;  %v5119_v4 = vunpack.c.h.bf16 %v5229_v51 }
  0x19   : > { %5256 = vmatprep.subr.bf16.mxu0 %v5997_v11  ;;  %v396_v32 = vadd.f32 %v6404_v28, %v357_v29  ;;  %v397_v33 = vadd.f32 %v6404_v28, %v358_v30  ;;  %v359_v40 = vmul.f32 %v5114_v35, %v6390_v22  ;;  %v360_v41 = vmul.f32 %v5115_v36, %v6390_v22  ;;  %vm6436_vm6 = vmand %vm871_vm4, %vm540_vm1  ;;  %v936_v29 = vld [vmem:[#allocation2 + $0x80] sm:$0x1]  ;;  %v5230_v35 = vld [vmem:[%s6380_s18 + $0x58] sm:$0xff]  }
  0x1a   : > { %v5078_v43 = vunpack.c.l.bf16 %v5077_v42  ;;  %v5079_v44 = vunpack.c.h.bf16 %v5077_v42  ;;  %vm6442_vm7 = vmand %vm864_vm0, %vm865_vm3  ;;  %v6099_v60 = vld [vmem:[%s7712_s3 + $0xb0] sm:$0xff]  }
  0x1b   : > { %5813 = vmatpush3.bf16.msra.mxu1 %v6329_v10  ;;  %v428_v38 = vmax.f32 %v396_v32, 0.0  ;;  %v429_v39 = vmax.f32 %v397_v33, 0.0  ;;  %v398_v47 = vadd.f32 %v6404_v28, %v359_v40  ;;  %v399_v48 = vadd.f32 %v6404_v28, %v360_v41  ;;  %vm6466_vm8 = vmand %vm871_vm4, %vm865_vm3 }
  0x1c   : > { %5257 = vmatpush3.bf16.msra.mxu0 %v5998_v12  ;;  %5806 = vmatprep.subr.bf16.mxu1 %v6344_v13  ;;  %v341_v49 = vmul.f32 %v5078_v43, %v6390_v22  ;;  %v342_v50 = vmul.f32 %v5079_v44, %v6390_v22 }
  0x1d   : > { %5258 = vmatprep.subr.bf16.mxu0 %v6000_v14  ;;  %v5028_v45 = vpack.c.bf16 %v428_v38, %v428_v38  ;;  %v5029_v46 = vpack.c.bf16 %v429_v39, %v429_v39  ;;  %v430_v56 = vmax.f32 %v398_v47, 0.0  ;;  %v431_v57 = vmax.f32 %v399_v48, 0.0  ;;  %v5220_v48 = vld [vmem:[%s6380_s18 + $0x8] sm:$0xff]  }
  0x1e   : > { %v380_v58 = vadd.f32 %v6404_v28, %v341_v49  ;;  %v381_v59 = vadd.f32 %v6404_v28, %v342_v50  ;;  %v362_v38 = vmul.f32 %v5119_v4, %v6390_v22  ;;  %v5122_v39 = vunpack.c.l.bf16 %v5230_v35 }
  0x1f   : > { %5814 = vmatpush3.bf16.msra.mxu1 %v6344_v13  ;;  %v680_v52 = vshrl.u32 %v5028_v45, 16  ;;  %v683_v53 = vshll.u32 %v5028_v45, 16  ;;  %v688_v54 = vshrl.u32 %v5029_v46, 16  ;;  %v691_v55 = vshll.u32 %v5029_v46, 16 }
  0x20   : > { %5259 = vmatpush3.bf16.msra.mxu0 %v6001_v15  ;;  %5807 = vmatprep.subr.bf16.mxu1 %v6361_v16  ;;  %v5030_v7 = vpack.c.bf16 %v430_v56, %v430_v56  ;;  %v5031_v8 = vpack.c.bf16 %v431_v57, %v431_v57  ;;  %v412_v9 = vmax.f32 %v380_v58, 0.0  ;;  %v413_v11 = vmax.f32 %v381_v59, 0.0  ;;  %v873_v58 = vld [vmem:[#allocation2 + $0x14] sm:$0x1] }
  0x21   : > { %5260 = vmatprep.subr.bf16.mxu0 %v6003_v17  ;;  %v682_v61 = vrot.slane %v680_v52, 7  ;;  %v690_v62 = vrot.slane %v688_v54, 7  ;;  %v867_v52 = vld [vmem:[#allocation2 + $0xc] sm:$0xf] }
  0x22   : > { %v705_v21 = vshrl.u32 %v5031_v8, 16  ;;  %v5012_v30 = vpack.c.bf16 %v412_v9, %v412_v9  ;;  %v5013_v33 = vpack.c.bf16 %v413_v11, %v413_v11 }
  0x23   : > { %5815 = vmatpush3.bf16.msra.mxu1 %v6361_v16  ;;  %v685_v12 = vor.u32 %v683_v53, %v682_v61  ;;  %v686_v14 = vrot.slane %v682_v61, 4  ;;  %v693_v15 = vor.u32 %v691_v55, %v690_v62  ;;  %v695_v17 = vrot.slane %v690_v62, 4 }
  0x24   : > { %5261 = vmatpush3.bf16.msra.mxu0 %v6004_v18  ;;  %5808 = vmatprep.subr.bf16.mxu1 %v6005_v19  ;;  %v707_v32 = vrot.slane %v705_v21, 7  ;;  %v544_v36 = vshrl.u32 %v5012_v30, 16  ;;  %v552_v45 = vshrl.u32 %v5013_v33, 16  ;;  %v555_v46 = vshll.u32 %v5013_v33, 16 }
  0x25   : > { %5262 = vmatprep.subr.bf16.mxu0 %v6006_v20  ;;  %v700_v20 = vshll.u32 %v5030_v7, 16  ;;  %v926_v25 = vsel %vm6442_vm7, %v685_v12, %v925_v63  ;;  %v930_v26 = vsel %vm6436_vm6, %v695_v17, %v929_v1  ;;  %v401_v53 = vadd.f32 %v6404_v28, %v362_v38 }
  0x26   : > { %927 = vst [vmem:[#allocation2 + $0x6c] sm:$0xf] %v926_v25  ;;  %931 = vst [vmem:[#allocation2 + $0x74] sm:$0x1] %v930_v26  ;;  %v712_v43 = vrot.slane %v707_v32, 4  ;;  %v546_v44 = vrot.slane %v544_v36, 7  ;;  %v5123_v62 = vunpack.c.h.bf16 %v5230_v35  ;;  %v363_v63 = vmul.f32 %v5122_v39, %v6390_v22 }
  0x27   : > { %5816 = vmatpush3.bf16.msra.mxu1 %v6005_v19  ;;  %v697_v19 = vshrl.u32 %v5030_v7, 16  ;;  %v554_v57 = vrot.slane %v552_v45, 7  ;;  %v433_v61 = vmax.f32 %v401_v53, 0.0  ;;  %v5082_v1 = vunpack.c.l.bf16 %v5220_v48 }
  0x28   : > { %5263 = vmatpush3.bf16.msra.mxu0 %v6007_v23  ;;  %5809 = vmatprep.subr.bf16.mxu1 %v6008_v24  ;;  %v708_v23 = vshll.u32 %v5031_v8, 16  ;;  %v937_v51 = vsel %vm6436_vm6, %v712_v43, %v936_v29  ;;  %v550_v56 = vrot.slane %v546_v44, 4  ;;  %v5083_v12 = vunpack.c.h.bf16 %v5220_v48  ;;  %v939_v29 = vld [vmem:[#allocation2 + $0x84] sm:$0xf] }
  0x29   : > { %5264 = vmatprep.subr.bf16.mxu0 %v6009_v27  ;;  %v932_v27 = vld [vmem:[#allocation2 + $0x78] sm:$0xf]  ;;  %v699_v31 = vrot.slane %v697_v19, 7  ;;  %938 = vst [vmem:[#allocation2 + $0x80] sm:$0x1] %v937_v51  ;;  %v557_v8 = vor.u32 %v555_v46, %v554_v57  ;;  %v559_v19 = vrot.slane %v554_v57, 4  ;;  %v343_v35 = vmul.f32 %v5082_v1, %v6390_v22 }
  0x2a   : > { %v710_v42 = vor.u32 %v708_v23, %v707_v32 }
  0x2b   : > { %5817 = vmatpush3.bf16.msra.mxu1 %v6008_v24  ;;  %v694_v24 = vsel %vm6430_vm5, %v686_v14, %v693_v15  ;;  %v702_v40 = vor.u32 %v700_v20, %v699_v31  ;;  %v703_v41 = vrot.slane %v699_v31, 4  ;;  %v5033_v20 = vpack.c.bf16 %v433_v61, %v433_v61  ;;  %v5231_v31 = vld [vmem:[%s6380_s18 + $0x60] sm:$0xff]  }
  0x2c   : > { %5265 = vmatpush3.bf16.msra.mxu0 %v6013_v34  ;;  %5386 = vmatprep.subr.bf16.mxu1 %v6017_v37  ;;  %928 = vst [vmem:[#allocation2 + $0x70] sm:$0xf] %v694_v24  ;;  %v361_v34 = vmul.f32 %v5118_v2, %v6390_v22  ;;  %v547_v37 = vshll.u32 %v5012_v30, 16  ;;  %v558_v21 = vsel %vm6430_vm5, %v550_v56, %v557_v8  ;;  %v5127_v46 = vunpack.c.h.bf16 %v5231_v31 }
  0x2d   : > { %5658 = vmatprep.subr.bf16.mxu0 %v6291_v0  ;;  %v711_v49 = vsel %vm6430_vm5, %v703_v41, %v710_v42  ;;  %v933_v50 = vsel %vm6442_vm7, %v702_v40, %v932_v27  ;;  %v1012_v2 = vld [vmem:[#allocation2 + $0x6c] sm:$0x1]  ;;  %v1061_v4 = vld [vmem:[#allocation2 + $0x74] sm:$0x1]  ;;  %v1719_v17 = vld [vmem:[#allocation2 + $0x6c] sm:$0xe]  ;;  %v874_v26 = vsel %vm6436_vm6, %v559_v19, %v873_v58  ;;  %v364_v30 = vmul.f32 %v5123_v62, %v6390_v22 }
  0x2e   : > { %v400_v47 = vadd.f32 %v6404_v28, %v361_v34  ;;  %934 = vst [vmem:[#allocation2 + $0x78] sm:$0xf] %v933_v50  ;;  %935 = vst [vmem:[#allocation2 + $0x7c] sm:$0xf] %v711_v49  ;;  %v549_v55 = vor.u32 %v547_v37, %v546_v44  ;;  %v1013_v14 = vsel %vm6436_vm6, 0, %v1012_v2  ;;  %v1062_v15 = vsel %vm6466_vm8, 0, %v1061_v4 }
  0x2f   : > { %1014 = vst [vmem:[#allocation2 + $0x6c] sm:$0x1] %v1013_v14  ;;  %1063 = vst [vmem:[#allocation2 + $0x74] sm:$0x1] %v1062_v15  ;;  %v722_v27 = vshrl.u32 %v5033_v20, 16  ;;  %v725_v33 = vshll.u32 %v5033_v20, 16  ;;  %v402_v34 = vadd.f32 %v6404_v28, %v363_v63  ;;  %v403_v39 = vadd.f32 %v6404_v28, %v364_v30 }
  0x30   : > { %v432_v59 = vmax.f32 %v400_v47, 0.0  ;;  %v868_v9 = vsel %vm6442_vm7, %v549_v55, %v867_v52  ;;  %870 = vst [vmem:[#allocation2 + $0x10] sm:$0xf] %v558_v21  ;;  %875 = vst [vmem:[#allocation2 + $0x14] sm:$0x1] %v874_v26  ;;  %v344_v40 = vmul.f32 %v5083_v12, %v6390_v22  ;;  %v5126_v41 = vunpack.c.l.bf16 %v5231_v31 }
  0x31   : > { %869 = vst [vmem:[#allocation2 + $0xc] sm:$0xf] %v868_v9  ;;  %v1064_v37 = vld [vmem:[#allocation2 + $0x80] sm:$0x1]  ;;  %v724_v48 = vrot.slane %v722_v27, 7  ;;  %v434_v49 = vmax.f32 %v402_v34, 0.0  ;;  %v382_v56 = vadd.f32 %v6404_v28, %v343_v35 }
  0x32   : > { %v5032_v11 = vpack.c.bf16 %v432_v59, %v432_v59  ;;  %v1065_v43 = vsel %vm6466_vm8, 0, %v1064_v37  ;;  %v435_v50 = vmax.f32 %v403_v39, 0.0  ;;  %v943_v59 = vld [vmem:[#allocation2 + $0x8c] sm:$0x1]  ;;  %v383_v62 = vadd.f32 %v6404_v28, %v344_v40  ;;  %v946_v21 = vld [vmem:[#allocation2 + $0x90] sm:$0xf] }
  0x33   : > { %v1680_v7 = vld [vmem:[#allocation2 + $0x70] sm:$0xf]  ;;  %1066 = vst [vmem:[#allocation2 + $0x80] sm:$0x1] %v1065_v43  ;;  %v727_v58 = vor.u32 %v725_v33, %v724_v48  ;;  %v5034_v61 = vpack.c.bf16 %v434_v49, %v434_v49  ;;  %v729_v1 = vrot.slane %v724_v48, 4  ;;  %v365_v4 = vmul.f32 %v5126_v41, %v6390_v22 }
  0x34   : > { %v714_v23 = vshrl.u32 %v5032_v11, 16  ;;  %v717_v24 = vshll.u32 %v5032_v11, 16  ;;  %v4752_v25 = vcombine.low %v1719_v17, %v1680_v7  ;;  %v5035_v2 = vpack.c.bf16 %v435_v50, %v435_v50 }
  0x35   : > { %v1015_v36 = vld [vmem:[#allocation2 + $0x78] sm:$0x1]  ;;  %v1682_v38 = vld [vmem:[#allocation2 + $0x7c] sm:$0xf]  ;;  %v1720_v44 = vld [vmem:[#allocation2 + $0x78] sm:$0xe]  ;;  %v366_v7 = vmul.f32 %v5127_v46, %v6390_v22  ;;  %v944_v19 = vsel %vm6436_vm6, %v729_v1, %v943_v59  ;;  %v6510_v34 = vadd.f32 %v6404_v28, %v365_v4 }
  0x36   : > { %v716_v32 = vrot.slane %v714_v23, 7  ;;  %v1016_v42 = vsel %vm6436_vm6, 0, %v1015_v36  ;;  %v2151_v51 = vrot.slane %v4752_v25, 1  ;;  %v4753_v52 = vcombine.low %v1720_v44, %v1682_v38  ;;  %v6011_v63 = vld [vmem:[#allocation2 + $0x74] ss:$0 sps:$4 sm:$0x11]  }
  0x37   : > { %1017 = vst [vmem:[#allocation2 + $0x78] sm:$0x1] %v1016_v42  ;;  %v1037_v8 = vld [vmem:[#allocation2 + $0x14] sm:$0x1]  ;;  %v731_v11 = vshrl.u32 %v5034_v61, 16  ;;  %v734_v12 = vshll.u32 %v5034_v61, 16  ;;  %v405_v39 = vadd.f32 %v6404_v28, %v366_v7 }
  0x38   : > { %v719_v45 = vor.u32 %v717_v24, %v716_v32  ;;  %v720_v47 = vrot.slane %v716_v32, 4  ;;  %v988_v53 = vld [vmem:[#allocation2 + $0xc] sm:$0x1]  ;;  %v414_v14 = vmax.f32 %v382_v56, 0.0  ;;  %v2152_v15 = vrot.slane %v6011_v63, 1 }
  0x39   : > { %v989_v57 = vsel %vm6436_vm6, 0, %v988_v53  ;;  %v1038_v17 = vsel %vm6466_vm8, 0, %v1037_v8  ;;  %v739_v20 = vshrl.u32 %v5035_v2, 16  ;;  %945 = vst [vmem:[#allocation2 + $0x8c] sm:$0x1] %v944_v19  ;;  %v733_v23 = vrot.slane %v731_v11, 7 }
  0x3a   : > { %v940_v55 = vsel %vm6442_vm7, %v719_v45, %v939_v29  ;;  %990 = vst [vmem:[#allocation2 + $0xc] sm:$0x1] %v989_v57  ;;  %v728_v9 = vsel %vm6430_vm5, %v720_v47, %v727_v58  ;;  %1039 = vst [vmem:[#allocation2 + $0x14] sm:$0x1] %v1038_v17  ;;  %v742_v24 = vshll.u32 %v5035_v2, 16  ;;  %v415_v26 = vmax.f32 %v383_v62, 0.0 }
  0x3b   : > { %941 = vst [vmem:[#allocation2 + $0x84] sm:$0xf] %v940_v55  ;;  %942 = vst [vmem:[#allocation2 + $0x88] sm:$0xf] %v728_v9  ;;  %v950_v25 = vld [vmem:[#allocation2 + $0x98] sm:$0x1]  ;;  %v5014_v27 = vpack.c.bf16 %v414_v14, %v414_v14  ;;  %v2153_v30 = vsel %vm1550_vm9, %v2151_v51, %v2152_v15  ;;  %v736_v36 = vor.u32 %v734_v12, %v733_v23 }
  0x3c   : > { %v6506_v29 = vld [vmem:[%s6380_s18 + $0x68] sm:$0xff]   ;;  %v2154_v31 = vrot.slane %v4753_v52, 1  ;;  %v1664_v32 = vld [vmem:[#allocation2 + $0x10] sm:$0xf]  ;;  %v741_v33 = vrot.slane %v739_v20, 7  ;;  %5690 = vmatprep.mubr.bf16.mxu1 %v2153_v30  ;;  %v737_v37 = vrot.slane %v733_v23, 4  ;;  %v5015_v38 = vpack.c.bf16 %v415_v26, %v415_v26 }
  0x3d   : > { %v6015_v35 = vld [vmem:[#allocation2 + $0x80] ss:$0 sps:$4 sm:$0x11]   ;;  %v561_v44 = vshrl.u32 %v5014_v27, 16  ;;  %v5130_v45 = vunpack.c.l.bf16 %v6506_v29  ;;  %v947_v50 = vsel %vm6442_vm7, %v736_v36, %v946_v21  ;;  %v564_v51 = vshll.u32 %v5014_v27, 16  ;;  %v6021_v55 = vld [vmem:[%s7712_s3 + $0x48] sm:$0xff]  }
  0x3e   : > { %v744_v42 = vor.u32 %v742_v24, %v741_v33  ;;  %v746_v43 = vrot.slane %v741_v33, 4  ;;  %v2155_v46 = vrot.slane %v6015_v35, 1  ;;  %v6018_v47 = vld [vmem:[%s7712_s3] sm:$0xff]   ;;  %v876_v52 = vld [vmem:[#allocation2 + $0x18] sm:$0xf]  ;;  %v6022_v61 = vld [vmem:[%s7712_s3 + $0x8] sm:$0xff]   ;;  %v5131_v14 = vunpack.c.h.bf16 %v6506_v29 }
  0x3f   : > { %948 = vst [vmem:[#allocation2 + $0x90] sm:$0xf] %v947_v50  ;;  %v563_v58 = vrot.slane %v561_v44, 7  ;;  %v569_v63 = vshrl.u32 %v5015_v38, 16  ;;  %v572_v1 = vshll.u32 %v5015_v38, 16  ;;  %v436_v2 = vmax.f32 %v6510_v34, 0.0 }
  0x40   : > { %v745_v56 = vsel %vm6430_vm5, %v737_v37, %v744_v42  ;;  %v951_v57 = vsel %vm6436_vm6, %v746_v43, %v950_v25  ;;  %v2156_v59 = vsel %vm1550_vm9, %v2154_v31, %v2155_v46  ;;  %v6029_v9 = vld [vmem:[%s7712_s3 + $0x50] sm:$0xff]   ;;  %v880_v12 = vld [vmem:[#allocation2 + $0x20] sm:$0x1]  ;;  %v1067_v17 = vld [vmem:[#allocation2 + $0x8c] sm:$0x1]  ;;  %v437_v21 = vmax.f32 %v405_v39, 0.0 }
  0x41   : > { %v1663_v48 = vld [vmem:[#allocation2 + $0xc] sm:$0xf]  ;;  %949 = vst [vmem:[#allocation2 + $0x94] sm:$0xf] %v745_v56  ;;  %952 = vst [vmem:[#allocation2 + $0x98] sm:$0x1] %v951_v57  ;;  %5691 = vmatmul.mubr.bf16.vlgmr.msra.gmra.mrb[0].mxu1 %v2156_v59  ;;  %v566_v11 = vor.u32 %v564_v51, %v563_v58  ;;  %v5036_v33 = vpack.c.bf16 %v436_v2, %v436_v2  ;;  %v367_v37 = vmul.f32 %v5130_v45, %v6390_v22 }
  0x42   : > { %v1018_v40 = vld [vmem:[#allocation2 + $0x84] sm:$0x1]  ;;  %v1721_v41 = vld [vmem:[#allocation2 + $0x84] sm:$0xe]  ;;  %v6521_v53 = vcombine.low %v1663_v48, %v1664_v32  ;;  %v1684_v62 = vld [vmem:[#allocation2 + $0x88] sm:$0xf]  ;;  %5387 = vmatpush3.bf16.msra.mxu1 %v6018_v47  ;;  %v5037_v36 = vpack.c.bf16 %v437_v21, %v437_v21  ;;  %v368_v38 = vmul.f32 %v5131_v14, %v6390_v22 }
  0x43   : > { %v1019_v49 = vsel %vm6436_vm6, 0, %v1018_v40  ;;  %v6020_v4 = vld [vmem:[#allocation2 + $0x14] ss:$0 sps:$4 sm:$0x11]   ;;  %v4754_v8 = vcombine.low %v1721_v41, %v1684_v62  ;;  %v567_v19 = vrot.slane %v563_v58, 4  ;;  %v571_v20 = vrot.slane %v569_v63, 7  ;;  %5388 = vmatprep.subr.bf16.mxu1 %v6021_v55 }
  0x44   : > { %1020 = vst [vmem:[#allocation2 + $0x84] sm:$0x1] %v1019_v49  ;;  %v1872_v7 = vshrl.u32 %v6521_v53, 16  ;;  %v1874_v15 = vshll.u32 %v6521_v53, 16  ;;  %v1879_v23 = vshll.u32 %v6020_v4, 16  ;;  %v1068_v24 = vsel %vm6466_vm8, 0, %v1067_v17 }
  0x45   : > { %v6543_v25 = vrot.slane %v4754_v8, 1  ;;  %v877_v26 = vsel %vm6442_vm7, %v566_v11, %v876_v52  ;;  %v5221_v27 = vld [vmem:[%s6380_s18 + $0x10] sm:$0xff]   ;;  %1069 = vst [vmem:[#allocation2 + $0x8c] sm:$0x1] %v1068_v24  ;;  %v574_v31 = vor.u32 %v572_v1, %v571_v20  ;;  %v576_v32 = vrot.slane %v571_v20, 4  ;;  %v6033_v35 = vld [vmem:[%s7712_s3 + $0x58] sm:$0xff]  }
  0x46   : > { %v1876_v30 = vrot.slane %v1874_v15, 1  ;;  %v6030_v29 = vld [vmem:[%s7712_s3 + $0x10] sm:$0xff]   ;;  %878 = vst [vmem:[#allocation2 + $0x18] sm:$0xf] %v877_v26  ;;  %v1881_v34 = vrot.slane %v1879_v23, 1  ;;  %5389 = vmatpush3.bf16.msra.mxu1 %v6022_v61  ;;  %v5086_v44 = vunpack.c.l.bf16 %v5221_v27  ;;  %v748_v49 = vshrl.u32 %v5036_v33, 16 }
  0x47   : > { %v1021_v40 = vld [vmem:[#allocation2 + $0x90] sm:$0x1]  ;;  %v1722_v41 = vld [vmem:[#allocation2 + $0x90] sm:$0xe]  ;;  %v575_v42 = vsel %vm6430_vm5, %v567_v19, %v574_v31  ;;  %v881_v43 = vsel %vm6436_vm6, %v576_v32, %v880_v12  ;;  %5390 = vmatprep.subr.bf16.mxu1 %v6029_v9  ;;  %v406_v50 = vadd.f32 %v6404_v28, %v367_v37  ;;  %v751_v56 = vshll.u32 %v5036_v33, 16  ;;  %v6034_v1 = vld [vmem:[%s7712_s3 + $0x18] sm:$0xff]  }
  0x48   : > { %v1877_v39 = vor.u32 %v1876_v30, %v1872_v7  ;;  %v6561_v46 = vld [vmem:[%s6380_s18 + $0x70] sm:$0xff]   ;;  %v1022_v47 = vsel %vm6436_vm6, 0, %v1021_v40  ;;  %v1070_v48 = vld [vmem:[#allocation2 + $0x98] sm:$0x1]  ;;  %879 = vst [vmem:[#allocation2 + $0x1c] sm:$0xf] %v575_v42  ;;  %v407_v62 = vadd.f32 %v6404_v28, %v368_v38  ;;  %v5087_v7 = vunpack.c.h.bf16 %v5221_v27 }
  0x49   : > { %v1686_v45 = vld [vmem:[#allocation2 + $0x94] sm:$0xf]  ;;  %882 = vst [vmem:[#allocation2 + $0x20] sm:$0x1] %v881_v43  ;;  %1023 = vst [vmem:[#allocation2 + $0x90] sm:$0x1] %v1022_v47  ;;  %v345_v8 = vmul.f32 %v5086_v44, %v6390_v22  ;;  %v5134_v12 = vunpack.c.l.bf16 %v6561_v46  ;;  %v5135_v14 = vunpack.c.h.bf16 %v6561_v46 }
  0x4a   : > { %v1882_v51 = vsel %vm1293_vm10, %v1877_v39, %v1881_v34  ;;  %v1071_v52 = vsel %vm6466_vm8, 0, %v1070_v48  ;;  %v4755_v55 = vcombine.low %v1722_v41, %v1686_v45  ;;  %v750_v57 = vrot.slane %v748_v49, 7  ;;  %v953_v61 = vld [vmem:[#allocation2 + $0x9c] sm:$0xf]  ;;  %5391 = vmatpush3.bf16.msra.mxu1 %v6030_v29  ;;  %v6041_v4 = vld [vmem:[%s7712_s3 + $0x60] sm:$0xff]   ;;  %v6045_v40 = vld [vmem:[%s7712_s3 + $0x68] sm:$0xff]  }
  0x4b   : > { %2416 = vmatprep.mubr.bf16.mxu0 %v1882_v51  ;;  %1072 = vst [vmem:[#allocation2 + $0x98] sm:$0x1] %v1071_v52  ;;  %v756_v58 = vshrl.u32 %v5037_v36, 16  ;;  %v759_v59 = vshll.u32 %v5037_v36, 16  ;;  %v438_v2 = vmax.f32 %v406_v50, 0.0  ;;  %5392 = vmatprep.subr.bf16.mxu1 %v6033_v35  ;;  %v439_v19 = vmax.f32 %v407_v62, 0.0 }
  0x4c   : > { %2417 = vmatmul.mubr.bf16.vlgmr.msra.gmra.mrb[0].mxu0 %v6521_v53  ;;  %v6571_v63 = vrot.slane %v4755_v55, 1  ;;  %v6024_v9 = vld [vmem:[#allocation2 + $0x8c] ss:$0 sps:$4 sm:$0x11]   ;;  %v753_v53 = vor.u32 %v751_v56, %v750_v57  ;;  %v754_v11 = vrot.slane %v750_v57, 4  ;;  %v346_v21 = vmul.f32 %v5087_v7, %v6390_v22  ;;  %v6042_v34 = vld [vmem:[%s7712_s3 + $0x20] sm:$0xff]  }
  0x4d   : > { %5659 = vmatpush3.bf16.msra.mxu0 %v6291_v0  ;;  %v991_v15 = vld [vmem:[#allocation2 + $0x18] sm:$0x1]  ;;  %v758_v17 = vrot.slane %v756_v58, 7  ;;  %v5038_v20 = vpack.c.bf16 %v438_v2, %v438_v2  ;;  %v2158_v23 = vrot.slane %v6024_v9, 1  ;;  %v957_v26 = vld [vmem:[#allocation2 + $0xa4] sm:$0x1]  ;;  %v384_v27 = vadd.f32 %v6404_v28, %v345_v8 }
  0x4e   : > { %5660 = vmatprep.subr.bf16.mxu0 %v6304_v3  ;;  %v992_v0 = vsel %vm6436_vm6, 0, %v991_v15  ;;  %v954_v24 = vsel %vm6442_vm7, %v753_v53, %v953_v61  ;;  %5393 = vmatpush3.bf16.msra.mxu1 %v6034_v1  ;;  %v5039_v32 = vpack.c.bf16 %v439_v19, %v439_v19  ;;  %v960_v38 = vld [vmem:[#allocation2 + $0xa8] sm:$0xf]  ;;  %v385_v39 = vadd.f32 %v6404_v28, %v346_v21  ;;  %v5234_v51 = vld [vmem:[%s6380_s18 + $0x78] sm:$0xff]   ;;  %v6053_v52 = vld [vmem:[%s7712_s3 + $0x70] sm:$0xff]  }
  0x4f   : > { %993 = vst [vmem:[#allocation2 + $0x18] sm:$0x1] %v992_v0  ;;  %v761_v29 = vor.u32 %v759_v59, %v758_v17  ;;  %v763_v31 = vrot.slane %v758_v17, 4  ;;  %955 = vst [vmem:[#allocation2 + $0x9c] sm:$0xf] %v954_v24  ;;  %v765_v33 = vshrl.u32 %v5038_v20, 16  ;;  %v2159_v35 = vsel %vm1550_vm9, %v6543_v25, %v2158_v23  ;;  %5394 = vmatprep.subr.bf16.mxu1 %v6041_v4 }
  0x50   : > { %v1040_v30 = vld [vmem:[#allocation2 + $0x20] sm:$0x1]  ;;  %v768_v37 = vshll.u32 %v5038_v20, 16  ;;  %5694 = vmatprep.mubr.bf16.mxu1 %v2159_v35  ;;  %v6046_v44 = vld [vmem:[%s7712_s3 + $0x28] sm:$0xff]   ;;  %v776_v46 = vshll.u32 %v5039_v32, 16  ;;  %v416_v47 = vmax.f32 %v384_v27, 0.0  ;;  %v369_v50 = vmul.f32 %v5134_v12, %v6390_v22 }
  0x51   : > { %v1041_v36 = vsel %vm6466_vm8, 0, %v1040_v30  ;;  %5661 = vmatpush3.bf16.msra.mxu0 %v6304_v3  ;;  %v762_v25 = vsel %vm6430_vm5, %v754_v11, %v761_v29  ;;  %v958_v42 = vsel %vm6436_vm6, %v763_v31, %v957_v26  ;;  %v767_v43 = vrot.slane %v765_v33, 7  ;;  %v1666_v55 = vld [vmem:[#allocation2 + $0x1c] sm:$0xf]  ;;  %v964_v1 = vld [vmem:[#allocation2 + $0xb0] sm:$0x1] }
  0x52   : > { %v6027_v41 = vld [vmem:[#allocation2 + $0x98] ss:$0 sps:$4 sm:$0x11]   ;;  %1042 = vst [vmem:[#allocation2 + $0x20] sm:$0x1] %v1041_v36  ;;  %5662 = vmatprep.subr.bf16.mxu0 %v6316_v6  ;;  %v773_v3 = vshrl.u32 %v5039_v32, 16  ;;  %5395 = vmatpush3.bf16.msra.mxu1 %v6042_v34  ;;  %v5016_v58 = vpack.c.bf16 %v416_v47, %v416_v47  ;;  %v370_v59 = vmul.f32 %v5135_v14, %v6390_v22  ;;  %v5138_v2 = vunpack.c.l.bf16 %v5234_v51 }
  0x53   : > { %956 = vst [vmem:[#allocation2 + $0xa0] sm:$0xf] %v762_v25  ;;  %959 = vst [vmem:[#allocation2 + $0xa4] sm:$0x1] %v958_v42  ;;  %v417_v48 = vmax.f32 %v385_v39, 0.0  ;;  %v2161_v45 = vrot.slane %v6027_v41, 1  ;;  %v770_v49 = vor.u32 %v768_v37, %v767_v43  ;;  %5396 = vmatprep.subr.bf16.mxu1 %v6045_v40  ;;  %v5139_v11 = vunpack.c.h.bf16 %v5234_v51 }
  0x54   : > { %v771_v56 = vrot.slane %v767_v43, 4  ;;  %v775_v57 = vrot.slane %v773_v3, 7  ;;  %v6622_v4 = vld [vmem:[%s6380_s18 + $0x18] sm:$0xff]   ;;  %v578_v19 = vshrl.u32 %v5016_v58, 16  ;;  %v581_v0 = vshll.u32 %v5016_v58, 16  ;;  %v6202_v3 = vld [vmem:[%s7712_s3 + $0x160] sm:$0xff]  }
  0x55   : > { %5663 = vmatpush3.bf16.msra.mxu0 %v6316_v6  ;;  %v2162_v61 = vsel %vm1550_vm9, %v6571_v63, %v2161_v45  ;;  %v961_v62 = vsel %vm6442_vm7, %v770_v49, %v960_v38  ;;  %v6625_v53 = vpack.c.bf16 %v417_v48, %v417_v48  ;;  %v408_v6 = vadd.f32 %v6404_v28, %v369_v50  ;;  %v6054_v63 = vld [vmem:[%s7712_s3 + $0x30] sm:$0xff]   ;;  %v6057_v20 = vld [vmem:[%s7712_s3 + $0x78] sm:$0xff]   ;;  %v883_v36 = vld [vmem:[#allocation2 + $0x24] sm:$0xf] }
  0x56   : > { %5664 = vmatprep.subr.bf16.mxu0 %v6329_v10  ;;  %5695 = vmatmul.mubr.bf16.gmra.mrb[4].mxu1 %v2162_v61  ;;  %v1665_v7 = vld [vmem:[#allocation2 + $0x18] sm:$0xf]  ;;  %v1024_v8 = vld [vmem:[#allocation2 + $0x9c] sm:$0x1]  ;;  %v778_v9 = vor.u32 %v776_v46, %v775_v57  ;;  %962 = vst [vmem:[#allocation2 + $0xa8] sm:$0xf] %v961_v62  ;;  %v409_v24 = vadd.f32 %v6404_v28, %v370_v59  ;;  %v5090_v26 = vunpack.c.l.bf16 %v6622_v4 }
  0x57   : > { %v6631_v12 = vcombine.low %v1665_v7, %v1666_v55  ;;  %v1025_v14 = vsel %vm6436_vm6, 0, %v1024_v8  ;;  %v1723_v15 = vld [vmem:[#allocation2 + $0x9c] sm:$0xe]  ;;  %v780_v17 = vrot.slane %v775_v57, 4  ;;  %5397 = vmatpush3.bf16.msra.mxu1 %v6046_v44  ;;  %v371_v33 = vmul.f32 %v5138_v2, %v6390_v22 }
  0x58   : > { %1026 = vst [vmem:[#allocation2 + $0x9c] sm:$0x1] %v1025_v14  ;;  %v779_v23 = vsel %vm6430_vm5, %v771_v56, %v778_v9  ;;  %5398 = vmatprep.subr.bf16.mxu1 %v6053_v52  ;;  %v372_v37 = vmul.f32 %v5139_v11, %v6390_v22  ;;  %v586_v39 = vshrl.u32 %v6625_v53, 16  ;;  %v589_v40 = vshll.u32 %v6625_v53, 16  ;;  %v6660_v22 = vld [vmem:[%s7712_s3 + $0x80] sm:$0xff]  }
  0x59   : > { %v6032_v21 = vld [vmem:[#allocation2 + $0x20] ss:$0 sps:$4 sm:$0x11]   ;;  %5665 = vmatpush3.bf16.msra.mxu0 %v6329_v10  ;;  %v1884_v27 = vshrl.u32 %v6631_v12, 16  ;;  %v1886_v30 = vshll.u32 %v6631_v12, 16  ;;  %v965_v32 = vsel %vm6436_vm6, %v780_v17, %v964_v1  ;;  %v580_v10 = vrot.slane %v578_v19, 7 }
  0x5a   : > { %v1073_v29 = vld [vmem:[#allocation2 + $0xa4] sm:$0x1]  ;;  %v1688_v31 = vld [vmem:[#allocation2 + $0xa0] sm:$0xf]  ;;  %963 = vst [vmem:[#allocation2 + $0xac] sm:$0xf] %v779_v23  ;;  %5666 = vmatprep.subr.bf16.mxu0 %v6344_v13  ;;  %v410_v55 = vadd.f32 %v6404_v28, %v371_v33  ;;  %v5091_v56 = vunpack.c.h.bf16 %v6622_v4  ;;  %v411_v7 = vadd.f32 %v6404_v28, %v372_v37 }
  0x5b   : > { %v1891_v34 = vshll.u32 %v6032_v21, 16  ;;  %v1074_v35 = vsel %vm6466_vm8, 0, %v1073_v29  ;;  %966 = vst [vmem:[#allocation2 + $0xb0] sm:$0x1] %v965_v32  ;;  %v1888_v38 = vrot.slane %v1886_v30, 1  ;;  %v440_v41 = vmax.f32 %v408_v6, 0.0  ;;  %5399 = vmatpush3.bf16.msra.mxu1 %v6054_v63 }
  0x5c   : > { %1075 = vst [vmem:[#allocation2 + $0xa4] sm:$0x1] %v1074_v35  ;;  %v6058_v13 = vld [vmem:[%s7712_s3 + $0x38] sm:$0xff]   ;;  %v4756_v42 = vcombine.low %v1723_v15, %v1688_v31  ;;  %v583_v43 = vor.u32 %v581_v0, %v580_v10  ;;  %v584_v44 = vrot.slane %v580_v10, 4  ;;  %5400 = vmatprep.subr.bf16.mxu1 %v6057_v20  ;;  %v588_v48 = vrot.slane %v586_v39, 7  ;;  %v6204_v21 = vld [vmem:[%s7712_s3 + $0x168] sm:$0xff]  }
  0x5d   : > { %v1893_v25 = vrot.slane %v1891_v34, 1  ;;  %5667 = vmatpush3.bf16.msra.mxu0 %v6202_v3  ;;  %v1889_v46 = vor.u32 %v1888_v38, %v1884_v27  ;;  %v1027_v47 = vld [vmem:[#allocation2 + $0xa8] sm:$0x1]  ;;  %v441_v45 = vmax.f32 %v409_v24, 0.0  ;;  %v5040_v49 = vpack.c.bf16 %v440_v41, %v440_v41  ;;  %v887_v52 = vld [vmem:[#allocation2 + $0x2c] sm:$0x1] }
  0x5e   : > { %5668 = vmatprep.subr.bf16.mxu0 %v6361_v16  ;;  %v1028_v50 = vsel %vm6436_vm6, 0, %v1027_v47  ;;  %v884_v51 = vsel %vm6442_vm7, %v583_v43, %v883_v36  ;;  %v1724_v58 = vld [vmem:[#allocation2 + $0xa8] sm:$0xe]  ;;  %v591_v59 = vor.u32 %v589_v40, %v588_v48  ;;  %v593_v61 = vrot.slane %v588_v48, 4  ;;  %v967_v28 = vld [vmem:[#allocation2 + $0xb4] sm:$0xf] }
  0x5f   : > { %v1894_v57 = vsel %vm1293_vm10, %v1889_v46, %v1893_v25  ;;  %1029 = vst [vmem:[#allocation2 + $0xa8] sm:$0x1] %v1028_v50  ;;  %885 = vst [vmem:[#allocation2 + $0x24] sm:$0xf] %v884_v51  ;;  %v5041_v62 = vpack.c.bf16 %v441_v45, %v441_v45  ;;  %5401 = vmatpush3.bf16.msra.mxu1 %v6058_v13  ;;  %v2163_v16 = vrot.slane %v4756_v42, 1  ;;  %v782_v2 = vshrl.u32 %v5040_v49, 16 }
  0x60   : > { %2424 = vmatprep.mubr.bf16.mxu0 %v1894_v57  ;;  %v442_v8 = vmax.f32 %v410_v55, 0.0  ;;  %5706 = vmatprep.subr.bf16.mxu1 %v6660_v22  ;;  %v592_v53 = vsel %vm6430_vm5, %v584_v44, %v591_v59  ;;  %v888_v6 = vsel %vm6436_vm6, %v593_v61, %v887_v52  ;;  %v785_v11 = vshll.u32 %v5040_v49, 16  ;;  %v971_v27 = vld [vmem:[#allocation2 + $0xbc] sm:$0x1]  ;;  %v6205_v29 = vld [vmem:[%s7712_s3 + $0x170] sm:$0xff]   ;;  %v6698_v39 = vld [vmem:[%s6380_s18 + $0x20] sm:$0xff]  }
  0x61   : > { %v1690_v1 = vld [vmem:[#allocation2 + $0xac] sm:$0xf]  ;;  %2425 = vmatmul.mubr.bf16.gmra.mrb[4].mxu0 %v6631_v12  ;;  %v790_v63 = vshrl.u32 %v5041_v62, 16  ;;  %886 = vst [vmem:[#allocation2 + $0x28] sm:$0xf] %v592_v53  ;;  %v784_v23 = vrot.slane %v782_v2, 7  ;;  %v5095_v53 = vunpack.c.h.bf16 %v6698_v39 }
  0x62   : > { %v1076_v9 = vld [vmem:[#allocation2 + $0xb0] sm:$0x1]  ;;  %v4757_v17 = vcombine.low %v1724_v58, %v1690_v1  ;;  %889 = vst [vmem:[#allocation2 + $0x2c] sm:$0x1] %v888_v6  ;;  %v5042_v19 = vpack.c.bf16 %v442_v8, %v442_v8  ;;  %v6685_v12 = vld [vmem:[%s7710_s1] ss:$0 sm:$0xff]  ;;  %5669 = vmatpush3.bf16.msra.mxu0 %v6204_v21  ;;  %v5094_v1 = vunpack.c.l.bf16 %v6698_v39 }
  0x63   : > { %v6036_v14 = vld [vmem:[#allocation2 + $0xa4] ss:$0 sps:$4 sm:$0x11]   ;;  %v1077_v15 = vsel %vm6466_vm8, 0, %v1076_v9  ;;  %v347_v20 = vmul.f32 %v6685_v12, %v5090_v26  ;;  %v792_v0 = vrot.slane %v790_v63, 7  ;;  %v793_v24 = vshll.u32 %v5041_v62, 16  ;;  %5670 = vmatprep.subr.bf16.mxu0 %v6205_v29 }
  0x64   : > { %1078 = vst [vmem:[#allocation2 + $0xb0] sm:$0x1] %v1077_v15  ;;  %v348_v30 = vmul.f32 %v6685_v12, %v5091_v56  ;;  %v2164_v4 = vrot.slane %v6036_v14, 1  ;;  %v443_v26 = vmax.f32 %v411_v7, 0.0  ;;  %v799_v31 = vshrl.u32 %v5042_v19, 16  ;;  %v6207_v45 = vld [vmem:[%s7712_s3 + $0x178] sm:$0xff]  }
  0x65   : > { %v802_v32 = vshll.u32 %v5042_v19, 16  ;;  %v1085_v33 = vld [vmem:[#allocation2] sm:$0xf]  ;;  %v787_v34 = vor.u32 %v785_v11, %v784_v23  ;;  %v788_v35 = vrot.slane %v784_v23, 4  ;;  %v795_v10 = vor.u32 %v793_v24, %v792_v0  ;;  %v1086_v38 = vld [vmem:[#allocation2 + $0x4] sm:$0xf] }
  0x66   : > { %v797_v36 = vrot.slane %v792_v0, 4  ;;  %v974_v37 = vld [vmem:[#allocation2 + $0xc0] sm:$0xf]  ;;  %v2165_v40 = vsel %vm1550_vm9, %v2163_v16, %v2164_v4  ;;  %v994_v41 = vld [vmem:[#allocation2 + $0x24] sm:$0x1]  ;;  %v5043_v13 = vpack.c.bf16 %v443_v26, %v443_v26  ;;  %v801_v25 = vrot.slane %v799_v31, 7  ;;  %5671 = vmatpush3.bf16.msra.mxu0 %v6205_v29 }
  0x67   : > { %v6704_v42 = vld [vmem:[%s7711_s2] ss:$0 sm:$0xff]  ;;  %v6707_v44 = vld [vmem:[#allocation2 + $0x8] ss:$0 sps:$4 sm:$0x11]   ;;  %5698 = vmatprep.mubr.bf16.mxu1 %v2165_v40  ;;  %v2166_v3 = vrot.slane %v4757_v17, 1  ;;  %v796_v47 = vsel %vm6430_vm5, %v788_v35, %v795_v10  ;;  %v968_v48 = vsel %vm6442_vm7, %v787_v34, %v967_v28  ;;  %5672 = vmatprep.subr.bf16.mxu0 %v6207_v45  ;;  %v6721_v59 = vcombine.low %v1085_v33, %v1086_v38 }
  0x68   : > { %v386_v43 = vadd.f32 %v6704_v42, %v347_v20  ;;  %v995_v46 = vsel %vm6436_vm6, 0, %v994_v41  ;;  %969 = vst [vmem:[#allocation2 + $0xb4] sm:$0xf] %v968_v48  ;;  %970 = vst [vmem:[#allocation2 + $0xb8] sm:$0xf] %v796_v47  ;;  %v972_v49 = vsel %vm6436_vm6, %v797_v36, %v971_v27  ;;  %v804_v50 = vor.u32 %v802_v32, %v801_v25 }
  0x69   : > { %996 = vst [vmem:[#allocation2 + $0x24] sm:$0x1] %v995_v46  ;;  %v805_v51 = vrot.slane %v801_v25, 4  ;;  %v807_v52 = vshrl.u32 %v5043_v13, 16  ;;  %v1043_v55 = vld [vmem:[#allocation2 + $0x2c] sm:$0x1]  ;;  %v387_v57 = vadd.f32 %v6704_v42, %v348_v30  ;;  %v349_v14 = vmul.f32 %v6685_v12, %v5094_v1 }
  0x6a   : > { %973 = vst [vmem:[#allocation2 + $0xbc] sm:$0x1] %v972_v49  ;;  %v810_v56 = vshll.u32 %v5043_v13, 16  ;;  %v418_v58 = vmax.f32 %v386_v43, 0.0  ;;  %v1044_v62 = vsel %vm6466_vm8, 0, %v1043_v55  ;;  %v975_v16 = vsel %vm6442_vm7, %v804_v50, %v974_v37  ;;  %5673 = vmatpush3.bf16.msra.mxu0 %v6207_v45  ;;  %v5224_v1 = vld [vmem:[%s6380_s18 + $0x28] sm:$0xff]  }
  0x6b   : > { %v6039_v61 = vld [vmem:[#allocation2 + $0xb0] ss:$0 sps:$4 sm:$0x11]   ;;  %1045 = vst [vmem:[#allocation2 + $0x2c] sm:$0x1] %v1044_v62  ;;  %v809_v2 = vrot.slane %v807_v52, 7  ;;  %v350_v33 = vmul.f32 %v6685_v12, %v5095_v53  ;;  %v388_v13 = vadd.f32 %v6704_v42, %v349_v14 }
  0x6c   : > { %976 = vst [vmem:[#allocation2 + $0xc0] sm:$0xf] %v975_v16  ;;  %v978_v7 = vld [vmem:[#allocation2 + $0xc8] sm:$0x1]  ;;  %v419_v8 = vmax.f32 %v387_v57, 0.0  ;;  %v5018_v9 = vpack.c.bf16 %v418_v58, %v418_v58  ;;  %v2167_v6 = vrot.slane %v6039_v61, 1 }
  0x6d   : > { %v1297_v11 = vshll.u32 %v6721_v59, 16  ;;  %v1302_v63 = vshll.u32 %v6707_v44, 16  ;;  %v1668_v15 = vld [vmem:[#allocation2 + $0x28] sm:$0xf]  ;;  %v812_v17 = vor.u32 %v810_v56, %v809_v2  ;;  %v814_v28 = vrot.slane %v809_v2, 4 }
  0x6e   : > { %v5019_v19 = vpack.c.bf16 %v419_v8, %v419_v8  ;;  %v595_v20 = vshrl.u32 %v5018_v9, 16  ;;  %v2168_v21 = vsel %vm1550_vm9, %v2166_v3, %v2167_v6  ;;  %v598_v23 = vshll.u32 %v5018_v9, 16  ;;  %v1087_v27 = vld [vmem:[#allocation2 + $0xc] sm:$0xf]  ;;  %v1088_v30 = vld [vmem:[#allocation2 + $0x10] sm:$0xf] }
  0x6f   : > { %v1295_v0 = vshrl.u32 %v6721_v59, 16  ;;  %v1299_v24 = vrot.slane %v1297_v11, 1  ;;  %5699 = vmatmul.mubr.bf16.gmra.mrb[8].mxu1 %v2168_v21  ;;  %v1030_v4 = vld [vmem:[#allocation2 + $0xb4] sm:$0x1]  ;;  %v6734_v26 = vld [vmem:[#allocation2 + $0xb8] sm:$0xf]  ;;  %v813_v31 = vsel %vm6430_vm5, %v805_v51, %v812_v17  ;;  %v979_v32 = vsel %vm6436_vm6, %v814_v28, %v978_v7 }
  0x70   : > { %v1667_v29 = vld [vmem:[#allocation2 + $0x24] sm:$0xf]  ;;  %v1031_v35 = vsel %vm6436_vm6, 0, %v1030_v4  ;;  %v1725_v36 = vld [vmem:[#allocation2 + $0xb4] sm:$0xe]  ;;  %v597_v37 = vrot.slane %v595_v20, 7  ;;  %v389_v46 = vadd.f32 %v6704_v42, %v350_v33  ;;  %v6752_v50 = vcombine.low %v1087_v27, %v1088_v30 }
  0x71   : > { %v6741_v34 = vcombine.low %v1667_v29, %v1668_v15  ;;  %v1079_v10 = vld [vmem:[#allocation2 + $0xbc] sm:$0x1]  ;;  %977 = vst [vmem:[#allocation2 + $0xc4] sm:$0xf] %v813_v31  ;;  %980 = vst [vmem:[#allocation2 + $0xc8] sm:$0x1] %v979_v32  ;;  %v4758_v43 = vcombine.low %v1725_v36, %v6734_v26  ;;  %v1300_v49 = vor.u32 %v1299_v24, %v1295_v0  ;;  %v5099_v29 = vunpack.c.h.bf16 %v5224_v1 }
  0x72   : > { %1032 = vst [vmem:[#allocation2 + $0xb4] sm:$0x1] %v1031_v35  ;;  %v1080_v38 = vsel %vm6466_vm8, 0, %v1079_v10  ;;  %v603_v39 = vshrl.u32 %v5019_v19, 16  ;;  %v890_v40 = vld [vmem:[#allocation2 + $0x30] sm:$0xf]  ;;  %v600_v44 = vor.u32 %v598_v23, %v597_v37  ;;  %v5098_v23 = vunpack.c.l.bf16 %v5224_v1 }
  0x73   : > { %v1304_v41 = vrot.slane %v1302_v63, 1  ;;  %v6044_v25 = vld [vmem:[#allocation2 + $0x2c] ss:$0 sps:$4 sm:$0x11]   ;;  %1081 = vst [vmem:[#allocation2 + $0xbc] sm:$0x1] %v1080_v38 }
  0x74   : > { %v606_v3 = vshll.u32 %v5019_v19, 16  ;;  %v1896_v47 = vshrl.u32 %v6741_v34, 16  ;;  %v1898_v48 = vshll.u32 %v6741_v34, 16  ;;  %v1033_v45 = vld [vmem:[#allocation2 + $0xc0] sm:$0x1]  ;;  %v1903_v51 = vshll.u32 %v6044_v25, 16 }
  0x75   : > { %v1034_v52 = vsel %vm6436_vm6, 0, %v1033_v45  ;;  %v601_v55 = vrot.slane %v597_v37, 4  ;;  %v605_v56 = vrot.slane %v603_v39, 7  ;;  %v891_v58 = vsel %vm6442_vm7, %v600_v44, %v890_v40  ;;  %v894_v61 = vld [vmem:[#allocation2 + $0x38] sm:$0x1] }
  0x76   : > { %v1900_v57 = vrot.slane %v1898_v48, 1  ;;  %1035 = vst [vmem:[#allocation2 + $0xc0] sm:$0x1] %v1034_v52  ;;  %v420_v62 = vmax.f32 %v388_v13, 0.0  ;;  %v421_v16 = vmax.f32 %v389_v46, 0.0  ;;  %v1905_v2 = vrot.slane %v1903_v51, 1 }
  0x77   : > { %v2169_v7 = vrot.slane %v4758_v43, 1  ;;  %v1726_v8 = vld [vmem:[#allocation2 + $0xc0] sm:$0xe]  ;;  %v608_v9 = vor.u32 %v606_v3, %v605_v56  ;;  %v610_v53 = vrot.slane %v605_v56, 4  ;;  %892 = vst [vmem:[#allocation2 + $0x30] sm:$0xf] %v891_v58  ;;  %v6773_v31 = vsel %vm1293_vm10, %v1300_v49, %v1304_v41 }
  0x78   : > { %v1901_v6 = vor.u32 %v1900_v57, %v1896_v47  ;;  %v1082_v11 = vld [vmem:[#allocation2 + $0xc8] sm:$0x1]  ;;  %v6759_v63 = vld [vmem:[#allocation2 + $0xc4] sm:$0xf]  ;;  %v5020_v14 = vpack.c.bf16 %v420_v62, %v420_v62  ;;  %v5021_v15 = vpack.c.bf16 %v421_v16, %v421_v16  ;;  %v1309_v17 = vshll.u32 %v6752_v50, 16  ;;  %v5225_v46 = vld [vmem:[%s6380_s18 + $0x30] sm:$0xff]  }
  0x79   : > { %v1083_v28 = vsel %vm6466_vm8, 0, %v1082_v11  ;;  %v609_v19 = vsel %vm6430_vm5, %v601_v55, %v608_v9  ;;  %v895_v20 = vsel %vm6436_vm6, %v610_v53, %v894_v61  ;;  %v6065_v21 = vld [vmem:[#allocation2 + $0x14] ss:$0 sps:$4 sm:$0x11]   ;;  %v4759_v27 = vcombine.low %v1726_v8, %v6759_v63  ;;  %v1089_v4 = vld [vmem:[#allocation2 + $0x18] sm:$0xf] }
  0x7a   : > { %v1906_v0 = vsel %vm1293_vm10, %v1901_v6, %v1905_v2  ;;  %v6769_v24 = vld [vmem:[#allocation2 + $0xbc] ss:$0 sps:$4 sm:$0x11]   ;;  %1084 = vst [vmem:[#allocation2 + $0xc8] sm:$0x1] %v1083_v28  ;;  %v612_v30 = vshrl.u32 %v5020_v14, 16  ;;  %v351_v41 = vmul.f32 %v6685_v12, %v5098_v23  ;;  %v352_v44 = vmul.f32 %v6685_v12, %v5099_v29 }
  0x7b   : > { %893 = vst [vmem:[#allocation2 + $0x34] sm:$0xf] %v609_v19  ;;  %896 = vst [vmem:[#allocation2 + $0x38] sm:$0x1] %v895_v20  ;;  %2432 = vmatprep.mubr.bf16.mxu0 %v1906_v0  ;;  %v615_v32 = vshll.u32 %v5020_v14, 16  ;;  %v620_v33 = vshrl.u32 %v5021_v15, 16  ;;  %v5102_v9 = vunpack.c.l.bf16 %v5225_v46 }
  0x7c   : > { %v623_v35 = vshll.u32 %v5021_v15, 16  ;;  %v897_v10 = vld [vmem:[#allocation2 + $0x3c] sm:$0xf]  ;;  %2433 = vmatmul.mubr.bf16.gmra.mrb[8].mxu0 %v6741_v34  ;;  %v2170_v37 = vrot.slane %v6769_v24, 1  ;;  %v614_v38 = vrot.slane %v612_v30, 7  ;;  %v1307_v40 = vshrl.u32 %v6752_v50, 16 }
  0x7d   : > { %v1090_v36 = vld [vmem:[#allocation2 + $0x1c] sm:$0xf]  ;;  %v901_v39 = vld [vmem:[#allocation2 + $0x44] sm:$0x1]  ;;  %v1311_v13 = vrot.slane %v1309_v17, 1  ;;  %v622_v25 = vrot.slane %v620_v33, 7  ;;  %v390_v61 = vadd.f32 %v6704_v42, %v351_v41  ;;  %v391_v62 = vadd.f32 %v6704_v42, %v352_v44 }
  0x7e   : > { %v1314_v43 = vshll.u32 %v6065_v21, 16  ;;  %v6069_v3 = vld [vmem:[#allocation2 + $0x20] ss:$0 sps:$4 sm:$0x11]   ;;  %v2171_v47 = vsel %vm1550_vm9, %v2169_v7, %v2170_v37  ;;  %v2172_v48 = vrot.slane %v4759_v27, 1  ;;  %v617_v34 = vor.u32 %v615_v32, %v614_v38 }
  0x7f   : > { %v997_v45 = vld [vmem:[#allocation2 + $0x30] sm:$0x1]  ;;  %v618_v49 = vrot.slane %v614_v38, 4  ;;  %5702 = vmatprep.mubr.bf16.mxu1 %v2171_v47  ;;  %v625_v52 = vor.u32 %v623_v35, %v622_v25  ;;  %v627_v55 = vrot.slane %v622_v25, 4  ;;  %v6784_v56 = vcombine.low %v1089_v4, %v1090_v36  ;;  %v6100_v16 = vld [vmem:[%s7712_s3 + $0x1c0] sm:$0xff]  }
  0x80   : > { %v998_v51 = vsel %vm6436_vm6, 0, %v997_v45  ;;  %v898_v57 = vsel %vm6442_vm7, %v617_v34, %v897_v10  ;;  %v1312_v58 = vor.u32 %v1311_v13, %v1307_v40  ;;  %v1316_v8 = vrot.slane %v1314_v43, 1  ;;  %5522 = vmatprep.subr.bf16.mxu0 %v6100_v16  ;;  %v1091_v30 = vld [vmem:[#allocation2 + $0x24] sm:$0xf]  ;;  %v1092_v29 = vld [vmem:[#allocation2 + $0x28] sm:$0xf] }
  0x81   : > { %999 = vst [vmem:[#allocation2 + $0x30] sm:$0x1] %v998_v51  ;;  %v6793_v1 = vld [vmem:[#allocation2 + $0xc8] ss:$0 sps:$4 sm:$0x11]   ;;  %v626_v2 = vsel %vm6430_vm5, %v618_v49, %v625_v52  ;;  %v902_v7 = vsel %vm6436_vm6, %v627_v55, %v901_v39  ;;  %v422_v6 = vmax.f32 %v390_v61, 0.0  ;;  %v5103_v15 = vunpack.c.h.bf16 %v5225_v46 }
  0x82   : > { %899 = vst [vmem:[#allocation2 + $0x3c] sm:$0xf] %v898_v57  ;;  %v1046_v53 = vld [vmem:[#allocation2 + $0x38] sm:$0x1]  ;;  %900 = vst [vmem:[#allocation2 + $0x40] sm:$0xf] %v626_v2  ;;  %v353_v0 = vmul.f32 %v6685_v12, %v5102_v9  ;;  %v1317_v33 = vsel %vm1293_vm10, %v1312_v58, %v1316_v8  ;;  %v6815_v41 = vcombine.low %v1091_v30, %v1092_v29 }
  0x83   : > { %903 = vst [vmem:[#allocation2 + $0x44] sm:$0x1] %v902_v7  ;;  %v423_v11 = vmax.f32 %v391_v62, 0.0  ;;  %v1319_v14 = vshrl.u32 %v6784_v56, 16  ;;  %v2173_v17 = vrot.slane %v6793_v1, 1  ;;  %v1047_v28 = vsel %vm6466_vm8, 0, %v1046_v53 }
  0x84   : > { %v1321_v19 = vshll.u32 %v6784_v56, 16  ;;  %v1326_v20 = vshll.u32 %v6069_v3, 16  ;;  %1048 = vst [vmem:[#allocation2 + $0x38] sm:$0x1] %v1047_v28  ;;  %v5022_v21 = vpack.c.bf16 %v422_v6, %v422_v6  ;;  %v354_v27 = vmul.f32 %v6685_v12, %v5103_v15  ;;  %v6807_v32 = vld [vmem:[#allocation2 + $0x34] sm:$0xf] }
  0x85   : > { %v5023_v23 = vpack.c.bf16 %v423_v11, %v423_v11  ;;  %v2174_v4 = vsel %vm1550_vm9, %v2172_v48, %v2173_v17  ;;  %v5226_v39 = vld [vmem:[%s6380_s18 + $0x38] sm:$0xff]   ;;  %v392_v43 = vadd.f32 %v6704_v42, %v353_v0  ;;  %v904_v48 = vld [vmem:[#allocation2 + $0x48] sm:$0xf]  ;;  %v1331_v51 = vshrl.u32 %v6815_v41, 16  ;;  %v908_v62 = vld [vmem:[#allocation2 + $0x50] sm:$0x1] }
  0x86   : > { %v1323_v35 = vrot.slane %v1321_v19, 1  ;;  %5703 = vmatmul.mubr.bf16.gmra.mrb[12].mxu1 %v2174_v4  ;;  %v629_v10 = vshrl.u32 %v5022_v21, 16  ;;  %v632_v36 = vshll.u32 %v5022_v21, 16  ;;  %v6810_v38 = vrot.slane %v1326_v20, 1  ;;  %v6072_v15 = vld [vmem:[%s7712_s3 + $0x88] sm:$0xff]  }
  0x87   : > { %v637_v37 = vshrl.u32 %v5023_v23, 16  ;;  %2882 = vmatprep.mubr.bf16.mxu1 %v6773_v31  ;;  %v640_v13 = vshll.u32 %v5023_v23, 16  ;;  %v393_v45 = vadd.f32 %v6704_v42, %v354_v27  ;;  %v424_v31 = vmax.f32 %v392_v43, 0.0  ;;  %v6838_v21 = vld [vmem:[#allocation2 + $0x2c] ss:$0 sps:$4 sm:$0x11]  }
  0x88   : > { %v1669_v40 = vld [vmem:[#allocation2 + $0x30] sm:$0xf]  ;;  %v1324_v25 = vor.u32 %v1323_v35, %v1319_v14  ;;  %v631_v46 = vrot.slane %v629_v10, 7  ;;  %v5106_v52 = vunpack.c.l.bf16 %v5226_v39  ;;  %v5107_v9 = vunpack.c.h.bf16 %v5226_v39  ;;  %v911_v30 = vld [vmem:[#allocation2 + $0x54] sm:$0xf] }
  0x89   : > { %v6818_v44 = vcombine.low %v1669_v40, %v6807_v32  ;;  %v1000_v3 = vld [vmem:[#allocation2 + $0x3c] sm:$0x1]  ;;  %v639_v47 = vrot.slane %v637_v37, 7  ;;  %v5024_v8 = vpack.c.bf16 %v424_v31, %v424_v31  ;;  %v425_v14 = vmax.f32 %v393_v45, 0.0  ;;  %v1093_v4 = vld [vmem:[#allocation2 + $0x30] sm:$0xf] }
  0x8a   : > { %v1001_v34 = vsel %vm6436_vm6, 0, %v1000_v3  ;;  %v1049_v49 = vld [vmem:[#allocation2 + $0x44] sm:$0x1]  ;;  %v634_v61 = vor.u32 %v632_v36, %v631_v46  ;;  %v635_v2 = vrot.slane %v631_v46, 4  ;;  %v1333_v29 = vshll.u32 %v6815_v41, 16  ;;  %v6079_v10 = vld [vmem:[%s7712_s3 + $0x90] sm:$0xff]  }
  0x8b   : > { %v1908_v55 = vshrl.u32 %v6818_v44, 16  ;;  %v1910_v57 = vshll.u32 %v6818_v44, 16  ;;  %1002 = vst [vmem:[#allocation2 + $0x3c] sm:$0x1] %v1001_v34  ;;  %v1050_v58 = vsel %vm6466_vm8, 0, %v1049_v49  ;;  %v642_v7 = vor.u32 %v640_v13, %v639_v47 }
  0x8c   : > { %v6828_v16 = vld [vmem:[#allocation2 + $0x38] ss:$0 sps:$4 sm:$0x11]   ;;  %1051 = vst [vmem:[#allocation2 + $0x44] sm:$0x1] %v1050_v58  ;;  %v644_v6 = vrot.slane %v639_v47, 4  ;;  %v905_v11 = vsel %vm6442_vm7, %v634_v61, %v904_v48  ;;  %v5025_v27 = vpack.c.bf16 %v425_v14, %v425_v14  ;;  %v355_v39 = vmul.f32 %v6685_v12, %v5106_v52 }
  0x8d   : > { %v1912_v53 = vrot.slane %v1910_v57, 1  ;;  %v1915_v17 = vshll.u32 %v6828_v16, 16  ;;  %v643_v28 = vsel %vm6430_vm5, %v635_v2, %v642_v7  ;;  %906 = vst [vmem:[#allocation2 + $0x48] sm:$0xf] %v905_v11  ;;  %v646_v19 = vshrl.u32 %v5024_v8, 16 }
  0x8e   : > { %v649_v20 = vshll.u32 %v5024_v8, 16  ;;  %2883 = vmatmul.mubr.bf16.vlgmr.msra.gmra.mrb[16].mxu1 %v6721_v59  ;;  %907 = vst [vmem:[#allocation2 + $0x4c] sm:$0xf] %v643_v28  ;;  %v909_v0 = vsel %vm6436_vm6, %v644_v6, %v908_v62  ;;  %v1094_v35 = vld [vmem:[#allocation2 + $0x34] sm:$0xf]  ;;  %v654_v40 = vshrl.u32 %v5025_v27, 16  ;;  %v356_v43 = vmul.f32 %v6685_v12, %v5107_v9 }
  0x8f   : > { %v1913_v23 = vor.u32 %v1912_v53, %v1908_v55  ;;  %v1917_v36 = vrot.slane %v1915_v17, 1  ;;  %v6847_v37 = vld [vmem:[#allocation2 + $0x40] sm:$0xf]  ;;  %5707 = vmatpush3.bf16.msra.mxu1 %v6660_v22  ;;  %2890 = vmatprep.mubr.bf16.mxu1 %v1317_v33  ;;  %910 = vst [vmem:[#allocation2 + $0x50] sm:$0x1] %v909_v0  ;;  %v648_v59 = vrot.slane %v646_v19, 7  ;;  %v1329_v47 = vsel %vm1293_vm10, %v1324_v25, %v6810_v38 }
  0x90   : > { %v657_v13 = vshll.u32 %v5025_v27, 16  ;;  %5708 = vmatprep.subr.bf16.mxu1 %v6072_v15  ;;  %v656_v34 = vrot.slane %v654_v40, 7  ;;  %v394_v49 = vadd.f32 %v6704_v42, %v355_v39  ;;  %v395_v31 = vadd.f32 %v6704_v42, %v356_v43  ;;  %v915_v52 = vld [vmem:[#allocation2 + $0x5c] sm:$0x1] }
  0x91   : > { %v1918_v3 = vsel %vm1293_vm10, %v1913_v23, %v1917_v36  ;;  %v651_v48 = vor.u32 %v649_v20, %v648_v59  ;;  %v652_v45 = vrot.slane %v648_v59, 4  ;;  %v1335_v38 = vrot.slane %v1333_v29, 1  ;;  %v6867_v42 = vld [vmem:[#allocation2 + $0x38] ss:$0 sps:$4 sm:$0x11]  }
  0x92   : > { %v1671_v46 = vld [vmem:[#allocation2 + $0x3c] sm:$0xf]  ;;  %2440 = vmatprep.mubr.bf16.mxu0 %v1918_v3  ;;  %v1338_v25 = vshll.u32 %v6838_v21, 16  ;;  %v6864_v55 = vcombine.low %v1093_v4, %v1094_v35  ;;  %v659_v2 = vor.u32 %v657_v13, %v656_v34  ;;  %v661_v8 = vrot.slane %v656_v34, 4  ;;  %v6881_v21 = vld [vmem:[#allocation2 + $0x40] sm:$0xf] }
  0x93   : > { %v4716_v22 = vcombine.low %v1671_v46, %v6847_v37  ;;  %v6856_v33 = vld [vmem:[#allocation2 + $0x44] ss:$0 sps:$4 sm:$0x11]   ;;  %2441 = vmatmul.mubr.bf16.gmra.mrb[12].mxu0 %v6818_v44  ;;  %v912_v12 = vsel %vm6442_vm7, %v651_v48, %v911_v30  ;;  %5709 = vmatpush3.bf16.msra.mxu1 %v6072_v15  ;;  %v6084_v44 = vld [vmem:[%s7712_s3 + $0x98] sm:$0xff]   ;;  %v426_v9 = vmax.f32 %v394_v49, 0.0  ;;  %v427_v53 = vmax.f32 %v395_v31, 0.0 }
  0x94   : > { %v1927_v61 = vshll.u32 %v6856_v33, 16  ;;  %v1003_v62 = vld [vmem:[#allocation2 + $0x48] sm:$0x1]  ;;  %913 = vst [vmem:[#allocation2 + $0x54] sm:$0xf] %v912_v12  ;;  %5710 = vmatprep.subr.bf16.mxu1 %v6079_v10  ;;  %v660_v15 = vsel %vm6430_vm5, %v652_v45, %v659_v2  ;;  %v916_v28 = vsel %vm6436_vm6, %v661_v8, %v915_v52  ;;  %v1336_v0 = vor.u32 %v1335_v38, %v1331_v51 }
  0x95   : > { %v1920_v57 = vshrl.u32 %v4716_v22, 16  ;;  %v1922_v58 = vshll.u32 %v4716_v22, 16  ;;  %v1004_v7 = vsel %vm6436_vm6, 0, %v1003_v62  ;;  %914 = vst [vmem:[#allocation2 + $0x58] sm:$0xf] %v660_v15  ;;  %v5026_v19 = vpack.c.bf16 %v426_v9, %v426_v9  ;;  %v6094_v31 = vld [vmem:[%s7712_s3 + $0xa8] sm:$0xff]  }
  0x96   : > { %v1929_v11 = vrot.slane %v1927_v61, 1  ;;  %2891 = vmatmul.mubr.bf16.gmra.mrb[20].mxu1 %v6752_v50  ;;  %1005 = vst [vmem:[#allocation2 + $0x48] sm:$0x1] %v1004_v7  ;;  %v1052_v14 = vld [vmem:[#allocation2 + $0x50] sm:$0x1]  ;;  %v5027_v20 = vpack.c.bf16 %v427_v53, %v427_v53  ;;  %v6089_v50 = vld [vmem:[%s7712_s3 + $0xa0] sm:$0xff]  }
  0x97   : > { %v1924_v6 = vrot.slane %v1922_v58, 1  ;;  %v1053_v17 = vsel %vm6466_vm8, 0, %v1052_v14  ;;  %2898 = vmatprep.mubr.bf16.mxu1 %v1329_v47  ;;  %5711 = vmatpush3.bf16.msra.mxu1 %v6079_v10  ;;  %917 = vst [vmem:[#allocation2 + $0x5c] sm:$0x1] %v916_v28  ;;  %v1340_v27 = vrot.slane %v1338_v25, 1  ;;  %v1345_v30 = vshll.u32 %v6864_v55, 16 }
  0x98   : > { %1054 = vst [vmem:[#allocation2 + $0x50] sm:$0x1] %v1053_v17  ;;  %v1095_v29 = vld [vmem:[#allocation2 + $0x3c] sm:$0xf]  ;;  %5712 = vmatprep.subr.bf16.mxu1 %v6084_v44  ;;  %v663_v4 = vshrl.u32 %v5026_v19, 16  ;;  %v666_v35 = vshll.u32 %v5026_v19, 16 }
  0x99   : > { %v1925_v23 = vor.u32 %v1924_v6, %v1920_v57  ;;  %v671_v10 = vshrl.u32 %v5027_v20, 16  ;;  %v674_v36 = vshll.u32 %v5027_v20, 16  ;;  %v1343_v39 = vshrl.u32 %v6864_v55, 16  ;;  %v6892_v43 = vld [vmem:[#allocation2 + $0x4c] sm:$0xf] }
  0x9a   : > { %v1347_v40 = vrot.slane %v1345_v30, 1  ;;  %v1350_v13 = vshll.u32 %v6867_v42, 16  ;;  %v665_v3 = vrot.slane %v663_v4, 7  ;;  %v1341_v48 = vsel %vm1293_vm10, %v1336_v0, %v1340_v27  ;;  %v918_v45 = vld [vmem:[#allocation2 + $0x60] sm:$0xf] }
  0x9b   : > { %v1930_v59 = vsel %vm1293_vm10, %v1925_v23, %v1929_v11  ;;  %v1006_v51 = vld [vmem:[#allocation2 + $0x54] sm:$0x1]  ;;  %v673_v46 = vrot.slane %v671_v10, 7  ;;  %5713 = vmatpush3.bf16.msra.mxu1 %v6084_v44  ;;  %v922_v34 = vld [vmem:[#allocation2 + $0x68] sm:$0x1]  ;;  %v6898_v49 = vcombine.low %v1095_v29, %v6881_v21  ;;  %v6116_v10 = vld [vmem:[%s7712_s3 + $0xb8] sm:$0xff]  }
  0x9c   : > { %2448 = vmatprep.mubr.bf16.mxu0 %v1930_v59  ;;  %v1007_v47 = vsel %vm6436_vm6, 0, %v1006_v51  ;;  %5714 = vmatprep.subr.bf16.mxu1 %v6089_v50  ;;  %v668_v52 = vor.u32 %v666_v35, %v665_v3  ;;  %v669_v38 = vrot.slane %v665_v3, 4  ;;  %v1348_v58 = vor.u32 %v1347_v40, %v1343_v39  ;;  %v6905_v61 = vld [vmem:[#allocation2 + $0x44] ss:$0 sps:$4 sm:$0x11]  }
  0x9d   : > { %2449 = vmatmul.mubr.bf16.gmra.mrb[16].mxu0 %v4716_v22  ;;  %v1673_v12 = vld [vmem:[#allocation2 + $0x48] sm:$0xf]  ;;  %1008 = vst [vmem:[#allocation2 + $0x54] sm:$0x1] %v1007_v47  ;;  %v676_v22 = vor.u32 %v674_v36, %v673_v46  ;;  %v678_v25 = vrot.slane %v673_v46, 4  ;;  %v1352_v7 = vrot.slane %v1350_v13, 1 }
  0x9e   : > { %v4717_v57 = vcombine.low %v1673_v12, %v6892_v43  ;;  %2899 = vmatmul.mubr.bf16.gmra.mrb[24].mxu1 %v6784_v56  ;;  %v919_v42 = vsel %vm6442_vm7, %v668_v52, %v918_v45  ;;  %v6915_v8 = vld [vmem:[#allocation2 + $0x4c] sm:$0xf]  ;;  %v1055_v53 = vld [vmem:[#allocation2 + $0x5c] sm:$0x1]  ;;  %v1357_v6 = vshll.u32 %v6898_v49, 16  ;;  %v1362_v28 = vshll.u32 %v6905_v61, 16 }
  0x9f   : > { %v6907_v62 = vld [vmem:[#allocation2 + $0x50] ss:$0 sps:$4 sm:$0x11]   ;;  %2906 = vmatprep.mubr.bf16.mxu1 %v1341_v48  ;;  %v677_v2 = vsel %vm6430_vm5, %v669_v38, %v676_v22  ;;  %v923_v44 = vsel %vm6436_vm6, %v678_v25, %v922_v34  ;;  %5715 = vmatpush3.bf16.msra.mxu1 %v6089_v50  ;;  %920 = vst [vmem:[#allocation2 + $0x60] sm:$0xf] %v919_v42  ;;  %v1056_v11 = vsel %vm6466_vm8, 0, %v1055_v53 }
  0xa0   : > { %v1932_v56 = vshrl.u32 %v4717_v57, 16  ;;  %v1934_v9 = vshll.u32 %v4717_v57, 16  ;;  %921 = vst [vmem:[#allocation2 + $0x64] sm:$0xf] %v677_v2  ;;  %924 = vst [vmem:[#allocation2 + $0x68] sm:$0x1] %v923_v44  ;;  %5716 = vmatprep.subr.bf16.mxu1 %v6094_v31  ;;  %v1353_v20 = vsel %vm1293_vm10, %v1348_v58, %v1352_v7 }
  0xa1   : > { %v1939_v18 = vshll.u32 %v6907_v62, 16  ;;  %v1097_v14 = vld [vmem:[#allocation2 + $0x48] sm:$0xf]  ;;  %1057 = vst [vmem:[#allocation2 + $0x5c] sm:$0x1] %v1056_v11  ;;  %v1355_v27 = vshrl.u32 %v6898_v49, 16 }
  0xa2   : > { %v1936_v15 = vrot.slane %v1934_v9, 1  ;;  %v6924_v17 = vld [vmem:[#allocation2 + $0x58] sm:$0xf]  ;;  %v1679_v50 = vld [vmem:[#allocation2 + $0x6c] sm:$0xf]  ;;  %v1359_v30 = vrot.slane %v1357_v6, 1  ;;  %v6930_v29 = vcombine.low %v1097_v14, %v6915_v8 }
  0xa3   : > { %v1941_v19 = vrot.slane %v1939_v18, 1  ;;  %5717 = vmatpush3.bf16.msra.mxu1 %v6094_v31  ;;  %v6933_v35 = vld [vmem:[#allocation2 + $0x58] sm:$0xf]  ;;  %v1364_v59 = vrot.slane %v1362_v28, 1  ;;  %v6950_v34 = vld [vmem:[%s7712_s3 + $0x200] sm:$0xff]  }
  0xa4   : > { %v1937_v23 = vor.u32 %v1936_v15, %v1932_v56  ;;  %v1675_v0 = vld [vmem:[#allocation2 + $0x54] sm:$0xf]  ;;  %5718 = vmatprep.subr.bf16.mxu1 %v6099_v60  ;;  %v6940_v39 = vld [vmem:[#allocation2 + $0x50] ss:$0 sps:$4 sm:$0x11]   ;;  %v1360_v45 = vor.u32 %v1359_v30, %v1355_v27  ;;  %v1367_v42 = vshrl.u32 %v6930_v29, 16 }
  0xa5   : > { %v4718_v4 = vcombine.low %v1675_v0, %v6924_v17  ;;  %v1099_v40 = vld [vmem:[#allocation2 + $0x54] sm:$0xf]  ;;  %v6208_v31 = vld [vmem:[#allocation2 + $0x70] sm:$0xf]  ;;  %v1374_v25 = vshll.u32 %v6940_v39, 16 }
  0xa6   : > { %v1942_v36 = vsel %vm1293_vm10, %v1937_v23, %v1941_v19  ;;  %2907 = vmatmul.mubr.bf16.gmra.mrb[28].mxu1 %v6815_v41  ;;  %v1009_v3 = vld [vmem:[#allocation2 + $0x60] sm:$0x1]  ;;  %v1369_v41 = vshll.u32 %v6930_v29, 16  ;;  %v6952_v12 = vcombine.low %v1679_v50, %v6208_v31  ;;  %v6957_v5 = vcombine.low %v1099_v40, %v6933_v35  ;;  %v6209_v18 = vld [vmem:[#allocation2 + $0x74] ss:$0 sps:$4 sm:$0x11]  }
  0xa7   : > { %2456 = vmatprep.mubr.bf16.mxu0 %v1942_v36  ;;  %v1944_v13 = vshrl.u32 %v4718_v4, 16  ;;  %v1946_v51 = vshll.u32 %v4718_v4, 16  ;;  %v1058_v46 = vld [vmem:[#allocation2 + $0x68] sm:$0x1]  ;;  %2914 = vmatprep.mubr.bf16.mxu1 %v1353_v20  ;;  %v1010_v47 = vsel %vm6436_vm6, 0, %v1009_v3  ;;  %v1365_v2 = vsel %vm1293_vm10, %v1360_v45, %v1364_v59 }
  0xa8   : > { %2457 = vmatmul.mubr.bf16.gmra.mrb[20].mxu0 %v4717_v57  ;;  %v1059_v48 = vsel %vm6466_vm8, 0, %v1058_v46  ;;  %5719 = vmatpush3.bf16.msra.mxu1 %v6099_v60  ;;  %v6954_v52 = vld [vmem:[#allocation2 + $0x5c] ss:$0 sps:$4 sm:$0x11]   ;;  %1011 = vst [vmem:[#allocation2 + $0x60] sm:$0x1] %v1010_v47 }
  0xa9   : > { %v1948_v38 = vrot.slane %v1946_v51, 1  ;;  %1060 = vst [vmem:[#allocation2 + $0x68] sm:$0x1] %v1059_v48  ;;  %5720 = vmatprep.subr.bf16.mxu1 %v6116_v10  ;;  %v1951_v22 = vshll.u32 %v6954_v52, 16  ;;  %v1681_v57 = vld [vmem:[#allocation2 + $0x78] sm:$0xf] }
  0xaa   : > { %v1968_v58 = vshrl.u32 %v6952_v12, 16  ;;  %v1371_v44 = vrot.slane %v1369_v41, 1  ;;  %v6964_v56 = vld [vmem:[#allocation2 + $0x64] sm:$0xf]  ;;  %v1970_v9 = vshll.u32 %v6952_v12, 16  ;;  %v1381_v6 = vshll.u32 %v6957_v5, 16 }
  0xab   : > { %v1949_v54 = vor.u32 %v1948_v38, %v1944_v13  ;;  %v1953_v7 = vrot.slane %v1951_v22, 1  ;;  %v6969_v53 = vld [vmem:[#allocation2 + $0x5c] ss:$0 sps:$4 sm:$0x11]   ;;  %v1975_v11 = vshll.u32 %v6209_v18, 16  ;;  %v1376_v14 = vrot.slane %v1374_v25, 1 }
  0xac   : > { %5721 = vmatpush3.bf16.msra.mxu1 %v6116_v10  ;;  %v6973_v15 = vld [vmem:[#allocation2 + $0x64] sm:$0xf]  ;;  %v1372_v19 = vor.u32 %v1371_v44, %v1367_v42  ;;  %v6210_v50 = vld [vmem:[#allocation2 + $0x7c] sm:$0xf]  ;;  %v1972_v27 = vrot.slane %v1970_v9, 1  ;;  %v1379_v36 = vshrl.u32 %v6957_v5, 16 }
  0xad   : > { %5754 = vmatprep.subr.bf16.mxu1 %v6950_v34  ;;  %v1954_v60 = vsel %vm1293_vm10, %v1949_v54, %v1953_v7  ;;  %v6975_v23 = vcombine.low %v1681_v57, %v6210_v50  ;;  %v1683_v30 = vld [vmem:[#allocation2 + $0x84] sm:$0xf]  ;;  %v1691_v10 = vld [vmem:[#allocation2 + $0xb4] sm:$0xf]  ;;  %v1383_v59 = vrot.slane %v1381_v6, 1  ;;  %v1386_v3 = vshll.u32 %v6969_v53, 16 }
  0xae   : > { %2915 = vmatmul.mubr.bf16.gmra.mrb[32].mxu1 %v6864_v55  ;;  %2464 = vmatprep.mubr.bf16.mxu0 %v1954_v60  ;;  %v1693_v46 = vld [vmem:[#allocation2 + $0xc0] sm:$0xf]  ;;  %v1977_v47 = vrot.slane %v1975_v11, 1  ;;  %v1973_v31 = vor.u32 %v1972_v27, %v1968_v58  ;;  %v6211_v54 = vld [vmem:[#allocation2 + $0x88] sm:$0xf]  ;;  %v6991_v25 = vcombine.low %v1691_v10, %v6734_v26  ;;  %v2047_v10 = vshll.u32 %v6769_v24, 16 }
  0xaf   : > { %2922 = vmatprep.mubr.bf16.mxu1 %v1365_v2  ;;  %v1677_v28 = vld [vmem:[#allocation2 + $0x60] sm:$0xf]  ;;  %v1982_v38 = vshll.u32 %v6975_v23, 16  ;;  %v6988_v22 = vcombine.low %v1683_v30, %v6211_v54  ;;  %v1103_v57 = vld [vmem:[#allocation2 + $0x6c] sm:$0xf]  ;;  %v1384_v9 = vor.u32 %v1383_v59, %v1379_v36  ;;  %v1388_v6 = vrot.slane %v1386_v3, 1 }
  0xb0   : > { %v1101_v20 = vld [vmem:[#allocation2 + $0x60] sm:$0xf]  ;;  %2465 = vmatmul.mubr.bf16.gmra.mrb[24].mxu0 %v4718_v4  ;;  %v4719_v55 = vcombine.low %v1677_v28, %v6964_v56  ;;  %v6978_v0 = vld [vmem:[#allocation2 + $0x68] ss:$0 sps:$4 sm:$0x11]   ;;  %v1377_v4 = vsel %vm1293_vm10, %v1372_v19, %v1376_v14  ;;  %v6999_v60 = vcombine.low %v1693_v46, %v6759_v63  ;;  %v1980_v11 = vshrl.u32 %v6975_v23, 16 }
  0xb1   : > { %v1963_v51 = vshll.u32 %v6978_v0, 16  ;;  %v6985_v48 = vcombine.low %v1101_v20, %v6973_v15  ;;  %v6994_v2 = vld [vmem:[#allocation2 + $0x70] sm:$0xf]  ;;  %v6212_v44 = vld [vmem:[#allocation2 + $0x80] ss:$0 sps:$4 sm:$0x11]   ;;  %v1389_v27 = vsel %vm1293_vm10, %v1384_v9, %v1388_v6 }
  0xb2   : > { %v1956_v40 = vshrl.u32 %v4719_v55, 16  ;;  %v1958_v13 = vshll.u32 %v4719_v55, 16  ;;  %v1987_v7 = vshll.u32 %v6212_v44, 16  ;;  %v6996_v58 = vld [vmem:[#allocation2 + $0x68] ss:$0 sps:$4 sm:$0x11]   ;;  %v7010_v30 = vcombine.low %v1103_v57, %v6994_v2 }
  0xb3   : > { %v1965_v41 = vrot.slane %v1963_v51, 1  ;;  %v1393_v18 = vshll.u32 %v6985_v48, 16  ;;  %v1984_v14 = vrot.slane %v1982_v38, 1  ;;  %v1994_v28 = vshll.u32 %v6988_v22, 16  ;;  %v1685_v50 = vld [vmem:[#allocation2 + $0x90] sm:$0xf] }
  0xb4   : > { %v1960_v45 = vrot.slane %v1958_v13, 1  ;;  %v2040_v19 = vshrl.u32 %v6991_v25, 16  ;;  %v2042_v20 = vshll.u32 %v6991_v25, 16  ;;  %v1989_v63 = vrot.slane %v1987_v7, 1 }
  0xb5   : > { %v1391_v36 = vshrl.u32 %v6985_v48, 16  ;;  %v1395_v59 = vrot.slane %v1393_v18, 1  ;;  %v1985_v51 = vor.u32 %v1984_v14, %v1980_v11  ;;  %v7015_v3 = vld [vmem:[#allocation2 + $0x74] ss:$0 sps:$4 sm:$0x11]   ;;  %v2049_v46 = vrot.slane %v2047_v10, 1 }
  0xb6   : > { %2923 = vmatmul.mubr.bf16.gmra.mrb[36].mxu1 %v6898_v49  ;;  %v1961_v42 = vor.u32 %v1960_v45, %v1956_v40  ;;  %v1978_v49 = vsel %vm1293_vm10, %v1973_v31, %v1977_v47  ;;  %v1398_v40 = vshll.u32 %v6996_v58, 16  ;;  %v2044_v13 = vrot.slane %v2042_v20, 1  ;;  %v6214_v24 = vld [vmem:[#allocation2 + $0x8c] ss:$0 sps:$4 sm:$0x11]  }
  0xb7   : > { %2930 = vmatprep.mubr.bf16.mxu1 %v1377_v4  ;;  %v2054_v47 = vshll.u32 %v6999_v60, 16  ;;  %v6213_v4 = vld [vmem:[#allocation2 + $0x94] sm:$0xf]  ;;  %v2059_v38 = vshll.u32 %v6793_v1, 16  ;;  %v1992_v54 = vshrl.u32 %v6988_v22, 16  ;;  %v1996_v57 = vrot.slane %v1994_v28, 1 }
  0xb8   : > { %v1966_v26 = vsel %vm1293_vm10, %v1961_v42, %v1965_v41  ;;  %v7019_v45 = vcombine.low %v1685_v50, %v6213_v4  ;;  %v1999_v41 = vshll.u32 %v6214_v24, 16  ;;  %v2045_v31 = vor.u32 %v2044_v13, %v2040_v19  ;;  %v1714_v28 = vld [vmem:[#allocation2 + $0x30] sm:$0xe]  ;;  %v1687_v19 = vld [vmem:[#allocation2 + $0x9c] sm:$0xf] }
  0xb9   : > { %2472 = vmatprep.mubr.bf16.mxu0 %v1966_v26  ;;  %v1405_v42 = vshll.u32 %v7010_v30, 16  ;;  %v2056_v44 = vrot.slane %v2054_v47, 1  ;;  %v1396_v7 = vor.u32 %v1395_v59, %v1391_v36  ;;  %v1400_v9 = vrot.slane %v1398_v40, 1  ;;  %v1105_v26 = vld [vmem:[#allocation2 + $0x78] sm:$0xf] }
  0xba   : > { %2473 = vmatmul.mubr.bf16.gmra.mrb[28].mxu0 %v4719_v55  ;;  %v2052_v55 = vshrl.u32 %v6999_v60, 16  ;;  %v7026_v6 = vsel %vm1293_vm10, %v2045_v31, %v2049_v46  ;;  %v2061_v18 = vrot.slane %v2059_v38, 1  ;;  %v2001_v1 = vrot.slane %v1999_v41, 1  ;;  %v1715_v40 = vld [vmem:[#allocation2 + $0x3c] sm:$0xe] }
  0xbb   : > { %2480 = vmatprep.mubr.bf16.mxu0 %v1978_v49  ;;  %v7029_v49 = vld [vmem:[#allocation2 + $0x7c] sm:$0xf]  ;;  %v2006_v14 = vshll.u32 %v7019_v45, 16  ;;  %v1403_v20 = vshrl.u32 %v7010_v30, 16  ;;  %v1407_v50 = vrot.slane %v1405_v42, 1  ;;  %v1401_v36 = vsel %vm1293_vm10, %v1396_v7, %v1400_v9 }
  0xbc   : > { %v2057_v11 = vor.u32 %v2056_v44, %v2052_v55  ;;  %v7040_v59 = vcombine.low %v1105_v26, %v7029_v49  ;;  %v6215_v13 = vld [vmem:[#allocation2 + $0x98] ss:$0 sps:$4 sm:$0x11]   ;;  %v1107_v46 = vld [vmem:[#allocation2 + $0x84] sm:$0xf]  ;;  %v4747_v55 = vcombine.low %v1714_v28, %v6807_v32  ;;  %v2004_v24 = vshrl.u32 %v7019_v45, 16 }
  0xbd   : > { %v6216_v47 = vld [vmem:[#allocation2 + $0xa0] sm:$0xf]  ;;  %v2137_v31 = vrot.slane %v6828_v16, 1  ;;  %v1716_v38 = vld [vmem:[#allocation2 + $0x48] sm:$0xe]  ;;  %v4748_v42 = vcombine.low %v1715_v40, %v6847_v37  ;;  %v2140_v44 = vrot.slane %v6856_v33, 1  ;;  %v1408_v7 = vor.u32 %v1407_v50, %v1403_v20 }
  0xbe   : > { %2931 = vmatmul.mubr.bf16.gmra.mrb[40].mxu1 %v6930_v29  ;;  %v1990_v29 = vsel %vm1293_vm10, %v1985_v51, %v1989_v63  ;;  %v7036_v10 = vsel %vm1293_vm10, %v2057_v11, %v2061_v18  ;;  %v1997_v63 = vor.u32 %v1996_v57, %v1992_v54  ;;  %v2011_v51 = vshll.u32 %v6215_v13, 16  ;;  %v7049_v41 = vld [vmem:[#allocation2 + $0x80] ss:$0 sps:$4 sm:$0x11]   ;;  %v1717_v18 = vld [vmem:[#allocation2 + $0x54] sm:$0xe] }
  0xbf   : > { %2938 = vmatprep.mubr.bf16.mxu1 %v1389_v27  ;;  %v1410_v27 = vshll.u32 %v7015_v3, 16  ;;  %v7045_v4 = vcombine.low %v1687_v19, %v6216_v47  ;;  %v2008_v54 = vrot.slane %v2006_v14, 1  ;;  %v2136_v57 = vrot.slane %v4747_v55, 1  ;;  %v1689_v28 = vld [vmem:[#allocation2 + $0xa8] sm:$0xf] }
  0xc0   : > { %v2002_v32 = vsel %vm1293_vm10, %v1997_v63, %v2001_v1  ;;  %v2139_v16 = vrot.slane %v4748_v42, 1  ;;  %v4749_v11 = vcombine.low %v1716_v38, %v6892_v43  ;;  %v2143_v33 = vrot.slane %v6907_v62, 1  ;;  %v1718_v1 = vld [vmem:[#allocation2 + $0x60] sm:$0xe]  ;;  %v6217_v55 = vld [vmem:[#allocation2 + $0xac] sm:$0xf] }
  0xc1   : > { %v1412_v9 = vrot.slane %v1410_v27, 1  ;;  %v7057_v26 = vsel %vm1550_vm9, %v2136_v57, %v2137_v31  ;;  %v2018_v14 = vshll.u32 %v7045_v4, 16  ;;  %v1415_v19 = vshrl.u32 %v7040_v59, 16  ;;  %v7074_v13 = vld [vmem:[#allocation2 + $0x8c] ss:$0 sps:$4 sm:$0x11]  }
  0xc2   : > { %2481 = vmatmul.mubr.bf16.gmra.mrb[32].mxu0 %v6952_v12  ;;  %v7042_v12 = vld [vmem:[#allocation2 + $0x88] sm:$0xf]  ;;  %v7068_v20 = vsel %vm1550_vm9, %v2139_v16, %v2140_v44  ;;  %v2142_v50 = vrot.slane %v4749_v11, 1  ;;  %v4750_v27 = vcombine.low %v1717_v18, %v6924_v17  ;;  %v2146_v62 = vrot.slane %v6954_v52, 1  ;;  %v1109_v52 = vld [vmem:[#allocation2 + $0x90] sm:$0xf] }
  0xc3   : > { %2488 = vmatprep.mubr.bf16.mxu0 %v1990_v29  ;;  %v2013_v29 = vrot.slane %v2011_v51, 1  ;;  %v7062_v37 = vcombine.low %v1107_v46, %v7042_v12  ;;  %v1413_v43 = vsel %vm1293_vm10, %v1408_v7, %v1412_v9  ;;  %v2009_v40 = vor.u32 %v2008_v54, %v2004_v24 }
  0xc4   : > { %v2145_v51 = vrot.slane %v4750_v27, 1  ;;  %v4751_v46 = vcombine.low %v1718_v1, %v6964_v56  ;;  %v7080_v47 = vcombine.low %v1689_v28, %v6217_v55  ;;  %v2149_v17 = vrot.slane %v6978_v0, 1 }
  0xc5   : > { %v1429_v31 = vshll.u32 %v7062_v37, 16  ;;  %v2016_v54 = vshrl.u32 %v7045_v4, 16  ;;  %v2014_v56 = vsel %vm1293_vm10, %v2009_v40, %v2013_v29  ;;  %v2020_v44 = vrot.slane %v2018_v14, 1 }
  0xc6   : > { %2939 = vmatmul.mubr.bf16.gmra.mrb[44].mxu1 %v6957_v5  ;;  %v1417_v5 = vshll.u32 %v7040_v59, 16  ;;  %v7086_v24 = vsel %vm1550_vm9, %v2145_v51, %v2146_v62  ;;  %v2148_v38 = vrot.slane %v4751_v46, 1  ;;  %v2030_v9 = vshll.u32 %v7080_v47, 16  ;;  %v1111_v62 = vld [vmem:[#allocation2 + $0x9c] sm:$0xf] }
  0xc7   : > { %2946 = vmatprep.mubr.bf16.mxu1 %v1401_v36  ;;  %v1422_v36 = vshll.u32 %v7049_v41, 16  ;;  %v1431_v18 = vrot.slane %v1429_v31, 1  ;;  %v1434_v16 = vshll.u32 %v7074_v13, 16  ;;  %v2021_v14 = vor.u32 %v2020_v44, %v2016_v54  ;;  %v7109_v51 = vld [vmem:[#allocation2 + $0xa0] sm:$0xf] }
  0xc8   : > { %v1419_v63 = vrot.slane %v1417_v5, 1  ;;  %v7093_v0 = vsel %vm1550_vm9, %v2148_v38, %v2149_v17  ;;  %v1427_v5 = vshrl.u32 %v7062_v37, 16  ;;  %v2028_v1 = vshrl.u32 %v7080_v47, 16  ;;  %v1140_v44 = vld [vmem:[#allocation2 + $0x54] sm:$0xe] }
  0xc9   : > { %v1424_v42 = vrot.slane %v1422_v36, 1  ;;  %v2032_v28 = vrot.slane %v2030_v9, 1  ;;  %v1436_v27 = vrot.slane %v1434_v16, 1  ;;  %v1567_v46 = vrot.slane %v6905_v61, 1 }
  0xca   : > { %2489 = vmatmul.mubr.bf16.gmra.mrb[36].mxu0 %v6975_v23  ;;  %v7077_v23 = vsel %vm1550_vm9, %v2142_v50, %v2143_v33  ;;  %v1420_v57 = vor.u32 %v1419_v63, %v1415_v19  ;;  %v6219_v19 = vld [vmem:[#allocation2 + $0xb0] ss:$0 sps:$4 sm:$0x11]   ;;  %v1432_v50 = vor.u32 %v1431_v18, %v1427_v5  ;;  %v1138_v63 = vld [vmem:[#allocation2 + $0x3c] sm:$0xe]  ;;  %v1570_v61 = vrot.slane %v6940_v39, 1 }
  0xcb   : > { %2496 = vmatprep.mubr.bf16.mxu0 %v2002_v32  ;;  %v6218_v32 = vld [vmem:[#allocation2 + $0xa4] ss:$0 sps:$4 sm:$0x11]   ;;  %v2033_v55 = vor.u32 %v2032_v28, %v2028_v1 }
  0xcc   : > { %v2023_v7 = vshll.u32 %v6218_v32, 16  ;;  %v1425_v29 = vsel %vm1293_vm10, %v1420_v57, %v1424_v42  ;;  %v1437_v31 = vsel %vm1293_vm10, %v1432_v50, %v1436_v27  ;;  %v1139_v57 = vld [vmem:[#allocation2 + $0x48] sm:$0xe]  ;;  %v4703_v32 = vcombine.low %v1140_v44, %v6933_v35  ;;  %v7128_v9 = vld [vmem:[#allocation2 + $0xa4] ss:$0 sps:$4 sm:$0x11]  }
  0xcd   : > { %v1142_v35 = vld [vmem:[#allocation2 + $0x6c] sm:$0xe]  ;;  %v1458_v50 = vshll.u32 %v7128_v9, 16  ;;  %v1579_v27 = vrot.slane %v7015_v3, 1  ;;  %v1116_v44 = vld [vmem:[#allocation2 + $0xb8] sm:$0xf] }
  0xce   : > { %2947 = vmatmul.mubr.bf16.gmra.mrb[48].mxu1 %v6985_v48  ;;  %v7090_v48 = vld [vmem:[#allocation2 + $0x94] sm:$0xf]  ;;  %v2025_v33 = vrot.slane %v2023_v7, 1  ;;  %v1573_v7 = vrot.slane %v6969_v53, 1  ;;  %v1572_v16 = vrot.slane %v4703_v32, 1 }
  0xcf   : > { %2954 = vmatprep.mubr.bf16.mxu1 %v1413_v43  ;;  %v7101_v11 = vcombine.low %v1109_v52, %v7090_v48  ;;  %v7105_v43 = vld [vmem:[#allocation2 + $0x98] ss:$0 sps:$4 sm:$0x11]   ;;  %v7135_v53 = vld [vmem:[#allocation2 + $0xac] sm:$0xf] }
  0xd0   : > { %v2026_v40 = vsel %vm1293_vm10, %v2021_v14, %v2025_v33  ;;  %v1446_v38 = vshll.u32 %v7105_v43, 16  ;;  %v1113_v33 = vld [vmem:[#allocation2 + $0xa8] sm:$0xf] }
  0xd1   : > { %v1441_v36 = vshll.u32 %v7101_v11, 16  ;;  %v1439_v52 = vshrl.u32 %v7101_v11, 16 }
  0xd2   : > { %2497 = vmatmul.mubr.bf16.gmra.mrb[40].mxu0 %v6988_v22  ;;  %v2035_v22 = vshll.u32 %v6219_v19, 16  ;;  %v1448_v39 = vrot.slane %v1446_v38, 1  ;;  %v1576_v19 = vrot.slane %v6996_v58, 1  ;;  %v1143_v58 = vld [vmem:[#allocation2 + $0x78] sm:$0xe] }
  0xd3   : > { %2504 = vmatprep.mubr.bf16.mxu0 %v2014_v56  ;;  %v1443_v42 = vrot.slane %v1441_v36, 1  ;;  %v7118_v56 = vcombine.low %v1111_v62, %v7109_v51  ;;  %v4706_v3 = vcombine.low %v1143_v58, %v7029_v49 }
  0xd4   : > { %v2037_v17 = vrot.slane %v2035_v22, 1  ;;  %v4705_v22 = vcombine.low %v1142_v35, %v6994_v2 }
  0xd5   : > { %v1453_v14 = vshll.u32 %v7118_v56, 16  ;;  %v1581_v38 = vrot.slane %v4706_v3, 1 }
  0xd6   : > { %2955 = vmatmul.mubr.bf16.gmra.mrb[52].mxu1 %v7010_v30  ;;  %v4701_v30 = vcombine.low %v1138_v63, %v6881_v21  ;;  %v4702_v21 = vcombine.low %v1139_v57, %v6915_v8  ;;  %v2038_v18 = vsel %vm1293_vm10, %v2033_v55, %v2037_v17  ;;  %v1141_v8 = vld [vmem:[#allocation2 + $0x60] sm:$0xe]  ;;  %v1578_v36 = vrot.slane %v4705_v22, 1  ;;  %v1144_v55 = vld [vmem:[#allocation2 + $0x84] sm:$0xe] }
  0xd7   : > { %2962 = vmatprep.mubr.bf16.mxu1 %v1425_v29  ;;  %v1444_v29 = vor.u32 %v1443_v42, %v1439_v52  ;;  %v4704_v28 = vcombine.low %v1141_v8, %v6973_v15  ;;  %v7149_v15 = vcombine.low %v1113_v33, %v7135_v53  ;;  %v6112_v17 = vld [vmem:[#allocation2 + $0xb0] ss:$0 sps:$4 sm:$0x11]   ;;  %v1460_v52 = vrot.slane %v1458_v50, 1 }
  0xd8   : > { %v1566_v54 = vrot.slane %v4701_v30, 1  ;;  %v1569_v5 = vrot.slane %v4702_v21, 1  ;;  %v1455_v30 = vrot.slane %v1453_v14, 1  ;;  %v1470_v32 = vshll.u32 %v6112_v17, 16 }
  0xd9   : > { %v1575_v63 = vrot.slane %v4704_v28, 1  ;;  %v1449_v62 = vsel %vm1293_vm10, %v1444_v29, %v1448_v39  ;;  %v1465_v42 = vshll.u32 %v7149_v15, 16  ;;  %v1148_v28 = vld [vmem:[#allocation2 + $0xb4] sm:$0xe] }
  0xda   : > { %2505 = vmatmul.mubr.bf16.gmra.mrb[44].mxu0 %v7019_v45  ;;  %v7123_v45 = vsel %vm1550_vm9, %v1566_v54, %v1567_v46  ;;  %v7133_v1 = vsel %vm1550_vm9, %v1569_v5, %v1570_v61  ;;  %v7155_v46 = vsel %vm1550_vm9, %v1578_v36, %v1579_v27  ;;  %v1585_v54 = vrot.slane %v7074_v13, 1  ;;  %v1115_v61 = vld [vmem:[#allocation2 + $0xb4] sm:$0xf]  ;;  %v1146_v5 = vld [vmem:[#allocation2 + $0x9c] sm:$0xe] }
  0xdb   : > { %2512 = vmatprep.mubr.bf16.mxu0 %v2026_v40  ;;  %v1451_v40 = vshrl.u32 %v7118_v56, 16  ;;  %v7152_v2 = vsel %vm1550_vm9, %v1575_v63, %v1576_v19  ;;  %v1463_v13 = vshrl.u32 %v7149_v15, 16  ;;  %v1467_v29 = vrot.slane %v1465_v42, 1 }
  0xdc   : > { %v7177_v39 = vcombine.low %v1115_v61, %v1116_v44  ;;  %v4711_v22 = vcombine.low %v1148_v28, %v1116_v44  ;;  %v6223_v61 = vld [vmem:[#allocation2 + $0x28] sm:$0xf] }
  0xdd   : > { %v1456_v57 = vor.u32 %v1455_v30, %v1451_v40  ;;  %v1468_v50 = vor.u32 %v1467_v29, %v1463_v13  ;;  %v6102_v29 = vld [vmem:[%s7712_s3 + $0x180] sm:$0xff]  }
  0xde   : > { %2963 = vmatmul.mubr.bf16.gmra.mrb[56].mxu1 %v7040_v59  ;;  %v7138_v59 = vsel %vm1550_vm9, %v1572_v16, %v1573_v7  ;;  %v1588_v7 = vrot.slane %v7105_v43, 1  ;;  %v1591_v16 = vrot.slane %v7128_v9, 1  ;;  %v1147_v43 = vld [vmem:[#allocation2 + $0xa8] sm:$0xe]  ;;  %v1594_v9 = vrot.slane %v6112_v17, 1 }
  0xdf   : > { %2970 = vmatprep.mubr.bf16.mxu1 %v1437_v31  ;;  %v4707_v31 = vcombine.low %v1144_v55, %v7042_v12  ;;  %v1461_v8 = vsel %vm1293_vm10, %v1456_v57, %v1460_v52  ;;  %v1477_v27 = vshll.u32 %v7177_v39, 16  ;;  %v1596_v40 = vrot.slane %v4711_v22, 1 }
  0xe0   : > { %v1475_v3 = vshrl.u32 %v7177_v39, 16 }
  0xe1   : > { %v1584_v21 = vrot.slane %v4707_v31, 1  ;;  %v6221_v31 = vld [vmem:[#allocation2 + $0x14] ss:$0 sps:$4 sm:$0x11]  }
  0xe2   : > { %2513 = vmatmul.mubr.bf16.gmra.mrb[48].mxu0 %v7045_v4  ;;  %v1582_v4 = vrot.slane %v7049_v41, 1  ;;  %v1145_v41 = vld [vmem:[#allocation2 + $0x90] sm:$0xe]  ;;  %v2128_v52 = vrot.slane %v6221_v31, 1  ;;  %v1136_v31 = vld [vmem:[#allocation2 + $0x24] sm:$0xe] }
  0xe3   : > { %2520 = vmatprep.mubr.bf16.mxu0 %v2038_v18  ;;  %v4708_v12 = vcombine.low %v1145_v41, %v7090_v48  ;;  %v4709_v18 = vcombine.low %v1146_v5, %v7109_v51  ;;  %v1711_v48 = vld [vmem:[#allocation2 + $0xc] sm:$0xe]  ;;  %v4710_v51 = vcombine.low %v1147_v43, %v7135_v53  ;;  %v1133_v41 = vld [vmem:[#allocation2] sm:$0xe] }
  0xe4   : > { %v7164_v49 = vsel %vm1550_vm9, %v1581_v38, %v1582_v4  ;;  %v1479_v4 = vrot.slane %v1477_v27, 1  ;;  %v1712_v38 = vld [vmem:[#allocation2 + $0x18] sm:$0xe]  ;;  %v1134_v43 = vld [vmem:[#allocation2 + $0xc] sm:$0xe] }
  0xe5   : > { %v1587_v14 = vrot.slane %v4708_v12, 1  ;;  %v1590_v33 = vrot.slane %v4709_v18, 1  ;;  %v1593_v63 = vrot.slane %v4710_v51, 1  ;;  %v6224_v12 = vld [vmem:[#allocation2 + $0x20] ss:$0 sps:$4 sm:$0x11]  }
  0xe6   : > { %2971 = vmatmul.mubr.bf16.gmra.mrb[60].mxu1 %v7062_v37  ;;  %v7167_v37 = vsel %vm1550_vm9, %v1584_v21, %v1585_v54  ;;  %v1713_v54 = vld [vmem:[#allocation2 + $0x24] sm:$0xe]  ;;  %v1480_v42 = vor.u32 %v1479_v4, %v1475_v3 }
  0xe7   : > { %2978 = vmatprep.mubr.bf16.mxu1 %v1449_v62  ;;  %v7181_v35 = vsel %vm1550_vm9, %v1587_v14, %v1588_v7  ;;  %v7185_v19 = vsel %vm1550_vm9, %v1590_v33, %v1591_v16  ;;  %v7189_v30 = vsel %vm1550_vm9, %v1593_v63, %v1594_v9  ;;  %v4746_v44 = vcombine.low %v1713_v54, %v6223_v61  ;;  %v6226_v16 = vld [vmem:[#allocation2 + $0x2c] ss:$0 sps:$4 sm:$0x11]   ;;  %v1135_v9 = vld [vmem:[#allocation2 + $0x18] sm:$0xe]  ;;  %v6108_v63 = vld [vmem:[%s7712_s3 + $0x1d0] sm:$0xff]  }
  0xe8   : > { %v2131_v7 = vrot.slane %v6224_v12, 1  ;;  %v6114_v54 = vld [vmem:[%s7712_s3 + $0x198] sm:$0xff]   ;;  %v6233_v61 = vld [vmem:[#allocation2 + $0x34] sm:$0xf]  ;;  %v3175_v12 = vld [vmem:[#allocation2 + $0x24] sm:$0xf] }
  0xe9   : > { %v2133_v18 = vrot.slane %v4746_v44, 1 }
  0xea   : > { %2521 = vmatmul.mubr.bf16.gmra.mrb[52].mxu0 %v7080_v47  ;;  %v6121_v47 = vld [vmem:[#allocation2 + $0xbc] ss:$0 sps:$4 sm:$0x11]  }
  0xeb   : > { %2528 = vmatprep.mubr.bf16.mxu0 %v7026_v6  ;;  %v1472_v6 = vrot.slane %v1470_v32, 1  ;;  %v1597_v36 = vrot.slane %v6121_v47, 1  ;;  %v1482_v55 = vshll.u32 %v6121_v47, 16  ;;  %v6105_v47 = vld [vmem:[%s7712_s3 + $0x1c8] sm:$0xff]  }
  0xed   : > { %v7193_v53 = vsel %vm1550_vm9, %v1596_v40, %v1597_v36  ;;  %v1473_v58 = vsel %vm1293_vm10, %v1468_v50, %v1472_v6  ;;  %v1484_v21 = vrot.slane %v1482_v55, 1  ;;  %v6106_v6 = vld [vmem:[%s7712_s3 + $0x188] sm:$0xff]   ;;  %v6229_v50 = vld [vmem:[#allocation2 + $0x1c] sm:$0xf]  ;;  %v3173_v36 = vld [vmem:[#allocation2 + $0x18] sm:$0xf] }
  0xee   : > { %2979 = vmatmul.mubr.bf16.gmra.mrb[64].mxu1 %v7101_v11  ;;  %v6220_v11 = vld [vmem:[#allocation2 + $0x10] sm:$0xf]  ;;  %v4698_v27 = vcombine.low %v1135_v9, %v6229_v50  ;;  %v6231_v55 = vld [vmem:[#allocation2 + $0x20] ss:$0 sps:$4 sm:$0x11]   ;;  %v6149_v9 = vld [vmem:[%s7712_s3 + $0x218] sm:$0xff]  }
  0xef   : > { %2986 = vmatprep.mubr.bf16.mxu1 %v1461_v8  ;;  %v4744_v62 = vcombine.low %v1711_v48, %v6220_v11  ;;  %v1485_v5 = vsel %vm1293_vm10, %v1480_v42, %v1484_v21  ;;  %v2134_v8 = vrot.slane %v6226_v16, 1  ;;  %v6227_v48 = vld [vmem:[#allocation2 + $0x8] ss:$0 sps:$4 sm:$0x11]   ;;  %v7219_v11 = vld [vmem:[#allocation2 + $0x1c] sm:$0xf] }
  0xf0   : > { %v1552_v33 = vrot.slane %v6227_v48, 1  ;;  %v1557_v4 = vrot.slane %v4698_v27, 1  ;;  %v6235_v16 = vld [vmem:[#allocation2 + $0x38] ss:$0 sps:$4 sm:$0x11]   ;;  %v6127_v27 = vld [vmem:[%s7712_s3 + $0x1b0] sm:$0xff]  }
  0xf1   : > { %v2127_v17 = vrot.slane %v4744_v62, 1  ;;  %v2135_v51 = vsel %vm1550_vm9, %v2133_v18, %v2134_v8  ;;  %v6110_v62 = vld [vmem:[%s7712_s3 + $0x190] sm:$0xff]   ;;  %v1564_v8 = vrot.slane %v6235_v16, 1 }
  0xf2   : > { %2529 = vmatmul.mubr.bf16.gmra.mrb[56].mxu0 %v6991_v25  ;;  %v6222_v25 = vld [vmem:[#allocation2 + $0x1c] sm:$0xf]  ;;  %v7279_v50 = vld [vmem:[#allocation2 + $0x34] sm:$0xf] }
  0xf3   : > { %2536 = vmatprep.mubr.bf16.mxu0 %v7036_v10  ;;  %v4745_v57 = vcombine.low %v1712_v38, %v6222_v25  ;;  %v2129_v10 = vsel %vm1550_vm9, %v2127_v17, %v2128_v52  ;;  %v1558_v17 = vrot.slane %v6231_v55, 1  ;;  %v7228_v52 = vcombine.low %v3173_v36, %v7219_v11  ;;  %v1137_v38 = vld [vmem:[#allocation2 + $0x30] sm:$0xe]  ;;  %v6129_v36 = vld [vmem:[%s7712_s3 + $0x1f8] sm:$0xff]  }
  0xf4   : > { %v4700_v44 = vcombine.low %v1137_v38, %v6233_v61  ;;  %v6131_v55 = vld [vmem:[%s7712_s3 + $0x1b8] sm:$0xff]  }
  0xf5   : > { %v2130_v32 = vrot.slane %v4745_v57, 1  ;;  %v6232_v57 = vld [vmem:[#allocation2 + $0x28] sm:$0xf]  ;;  %v1559_v21 = vsel %vm1550_vm9, %v1557_v4, %v1558_v17  ;;  %v6154_v4 = vld [vmem:[%s7712_s3 + $0x220] sm:$0xff]  }
  0xf6   : > { %2987 = vmatmul.mubr.bf16.gmra.mrb[68].mxu1 %v7118_v56  ;;  %v6225_v56 = vld [vmem:[#allocation2 + $0x4] sm:$0xf]  ;;  %v4699_v42 = vcombine.low %v1136_v31, %v6232_v57  ;;  %v1563_v18 = vrot.slane %v4700_v44, 1  ;;  %v7300_v17 = vld [vmem:[#allocation2 + $0x38] ss:$0 sps:$4 sm:$0x11]  }
  0xf7   : > { %2994 = vmatprep.mubr.bf16.mxu1 %v1473_v58  ;;  %v4696_v13 = vcombine.low %v1133_v41, %v6225_v56  ;;  %v6230_v58 = vld [vmem:[#allocation2 + $0x14] ss:$0 sps:$4 sm:$0x11]   ;;  %v7243_v41 = vld [vmem:[#allocation2 + $0x20] ss:$0 sps:$4 sm:$0x11]  }
  0xf8   : > { %v1555_v3 = vrot.slane %v6230_v58, 1  ;;  %v6159_v31 = vld [vmem:[%s7712_s3 + $0x228] sm:$0xff]  }
  0xf9   : > { %v1551_v14 = vrot.slane %v4696_v13, 1  ;;  %v6119_v13 = vld [vmem:[%s7712_s3 + $0x1a0] sm:$0xff]  }
  0xfa   : > { %2537 = vmatmul.mubr.bf16.gmra.mrb[60].mxu0 %v6999_v60  ;;  %v2132_v60 = vsel %vm1550_vm9, %v2130_v32, %v2131_v7  ;;  %v3384_v32 = vshll.u32 %v7228_v52, 16  ;;  %v1560_v7 = vrot.slane %v4699_v42, 1 }
  0xfb   : > { %5674 = vmatprep.mubr.bf16.mxu0 %v2129_v10  ;;  %v1553_v22 = vsel %vm1550_vm9, %v1551_v14, %v1552_v33  ;;  %v6139_v10 = vld [vmem:[%s7712_s3 + $0x208] sm:$0xff]   ;;  %v3389_v14 = vshll.u32 %v7243_v41, 16  ;;  %v6144_v33 = vld [vmem:[%s7712_s3 + $0x210] sm:$0xff]  }
  0xfe   : > { %2995 = vmatmul.mubr.bf16.gmra.mrb[72].mxu1 %v7149_v15  ;;  %v6228_v15 = vld [vmem:[#allocation2 + $0x10] sm:$0xf] }
  0xff   : > { %3002 = vmatprep.mubr.bf16.mxu1 %v1485_v5  ;;  %v4697_v28 = vcombine.low %v1134_v43, %v6228_v15  ;;  %v6234_v5 = vld [vmem:[#allocation2 + $0x2c] ss:$0 sps:$4 sm:$0x11]  }
 0x100   : > { %v1561_v56 = vrot.slane %v6234_v5, 1  ;;  %v6169_v5 = vld [vmem:[%s7712_s3 + $0x238] sm:$0xff]  }
 0x101   : > { %v1554_v40 = vrot.slane %v4697_v28, 1  ;;  %v3391_v28 = vrot.slane %v3389_v14, 1 }
 0x102   : > { %5675 = vmatmul.mubr.bf16.vlgmr.msra.gmra.mrb[64].mxu0 %v2132_v60  ;;  %v3386_v60 = vrot.slane %v3384_v32, 1  ;;  %v1562_v43 = vsel %vm1550_vm9, %v1560_v7, %v1561_v56 }
 0x103   : > { %5523 = vmatpush3.bf16.msra.mxu0 %v6102_v29  ;;  %5678 = vmatprep.mubr.bf16.mxu0 %v2135_v51  ;;  %v1556_v25 = vsel %vm1550_vm9, %v1554_v40, %v1555_v3  ;;  %v6122_v29 = vld [vmem:[%s7712_s3 + $0x1e8] sm:$0xff]   ;;  %v1565_v51 = vsel %vm1550_vm9, %v1563_v18, %v1564_v8  ;;  %v7327_v18 = vld [vmem:[#allocation2 + $0x44] ss:$0 sps:$4 sm:$0x11]  }
 0x104   : > { %5524 = vmatprep.subr.bf16.mxu0 %v6105_v47  ;;  %v6123_v47 = vld [vmem:[%s7712_s3 + $0x1a8] sm:$0xff]   ;;  %v3425_v14 = vshll.u32 %v7327_v18, 16 }
 0x105   : > { %v3181_v8 = vld [vmem:[#allocation2 + $0x48] sm:$0xf] }
 0x106   : > { %3003 = vmatmul.mubr.bf16.gmra.mrb[76].mxu1 %v7177_v39  ;;  %v6113_v39 = vld [vmem:[%s7712_s3 + $0x1d8] sm:$0xff]  }
 0x107   : > { %5722 = vmatprep.mubr.bf16.mxu1 %v1553_v22  ;;  %5525 = vmatpush3.bf16.msra.mxu0 %v6106_v6  ;;  %v7276_v6 = vld [vmem:[#allocation2 + $0x2c] ss:$0 sps:$4 sm:$0x11]  }
 0x108   : > { %5526 = vmatprep.subr.bf16.mxu0 %v6108_v63  ;;  %v3401_v58 = vshll.u32 %v7276_v6, 16 }
 0x10a   : > { %5679 = vmatmul.mubr.bf16.gmra.mrb[68].mxu0 %v7057_v26  ;;  %v6117_v26 = vld [vmem:[%s7712_s3 + $0x1e0] sm:$0xff]   ;;  %v3403_v38 = vrot.slane %v3401_v58, 1 }
 0x10b   : > { %5527 = vmatpush3.bf16.msra.mxu0 %v6110_v62  ;;  %5682 = vmatprep.mubr.bf16.mxu0 %v7068_v20  ;;  %v7246_v20 = vld [vmem:[#allocation2 + $0x28] sm:$0xf] }
 0x10c   : > { %5528 = vmatprep.subr.bf16.mxu0 %v6113_v39  ;;  %v7258_v48 = vcombine.low %v3175_v12, %v7246_v20 }
 0x10e   : > { %5723 = vmatmul.mubr.bf16.vlgmr.msra.gmra.mrb[80].mxu1 %v1556_v25  ;;  %v3396_v22 = vshll.u32 %v7258_v48, 16  ;;  %v3394_v63 = vshrl.u32 %v7258_v48, 16  ;;  %v7307_v25 = vld [vmem:[#allocation2 + $0x40] sm:$0xf] }
 0x10f   : > { %5755 = vmatpush3.bf16.msra.mxu1 %v6950_v34  ;;  %5726 = vmatprep.mubr.bf16.mxu1 %v1559_v21  ;;  %v3382_v34 = vshrl.u32 %v7228_v52, 16  ;;  %v3413_v21 = vshll.u32 %v7300_v17, 16 }
 0x110   : > { %5529 = vmatpush3.bf16.msra.mxu0 %v6114_v54  ;;  %5756 = vmatprep.subr.bf16.mxu1 %v6139_v10  ;;  %v3398_v40 = vrot.slane %v3396_v22, 1 }
 0x111   : > { %5530 = vmatprep.subr.bf16.mxu0 %v6117_v26  ;;  %v3387_v15 = vor.u32 %v3386_v60, %v3382_v34 }
 0x112   : > { %5683 = vmatmul.mubr.bf16.gmra.mrb[72].mxu0 %v7077_v23  ;;  %v6125_v23 = vld [vmem:[%s7712_s3 + $0x1f0] sm:$0xff]   ;;  %v3399_v39 = vor.u32 %v3398_v40, %v3394_v63 }
 0x113   : > { %5757 = vmatpush3.bf16.msra.mxu1 %v6139_v10  ;;  %5686 = vmatprep.mubr.bf16.mxu0 %v7086_v24  ;;  %v3177_v24 = vld [vmem:[#allocation2 + $0x30] sm:$0xf]  ;;  %v3392_v62 = vsel %vm1293_vm10, %v3387_v15, %v3391_v28 }
 0x114   : > { %5531 = vmatpush3.bf16.msra.mxu0 %v6119_v13  ;;  %5758 = vmatprep.subr.bf16.mxu1 %v6144_v33  ;;  %v7291_v3 = vcombine.low %v3177_v24, %v7279_v50  ;;  %v6164_v10 = vld [vmem:[%s7712_s3 + $0x230] sm:$0xff]   ;;  %v3415_v13 = vrot.slane %v3413_v21, 1  ;;  %v7351_v24 = vld [vmem:[#allocation2 + $0x5c] ss:$0 sps:$4 sm:$0x11]  }
 0x115   : > { %5532 = vmatprep.subr.bf16.mxu0 %v6122_v29  ;;  %v7331_v29 = vld [vmem:[#allocation2 + $0x4c] sm:$0xf]  ;;  %v7370_v21 = vld [vmem:[#allocation2 + $0x68] ss:$0 sps:$4 sm:$0x11]  }
 0x116   : > { %5727 = vmatmul.mubr.bf16.gmra.mrb[84].mxu1 %v1562_v43  ;;  %v3408_v54 = vshll.u32 %v7291_v3, 16  ;;  %v3406_v42 = vshrl.u32 %v7291_v3, 16  ;;  %v3427_v43 = vrot.slane %v3425_v14, 1  ;;  %v3189_v14 = vld [vmem:[#allocation2 + $0x78] sm:$0xf] }
 0x117   : > { %5730 = vmatprep.mubr.bf16.mxu1 %v1565_v51  ;;  %5759 = vmatpush3.bf16.msra.mxu1 %v6144_v33  ;;  %v4860_v33 = vcombine.low %v3181_v8, %v7331_v29  ;;  %v3183_v51 = vld [vmem:[#allocation2 + $0x54] sm:$0xf] }
 0x118   : > { %5533 = vmatpush3.bf16.msra.mxu0 %v6123_v47  ;;  %5760 = vmatprep.subr.bf16.mxu1 %v6149_v9  ;;  %v3410_v44 = vrot.slane %v3408_v54, 1  ;;  %v7339_v47 = vld [vmem:[#allocation2 + $0x50] ss:$0 sps:$4 sm:$0x11]  }
 0x119   : > { %5534 = vmatprep.subr.bf16.mxu0 %v6125_v23  ;;  %v3430_v23 = vshrl.u32 %v4860_v33, 16 }
 0x11a   : > { %5687 = vmatmul.mubr.bf16.gmra.mrb[76].mxu0 %v7093_v0  ;;  %v3179_v0 = vld [vmem:[#allocation2 + $0x3c] sm:$0xf]  ;;  %v3411_v56 = vor.u32 %v3410_v44, %v3406_v42 }
 0x11b   : > { %5761 = vmatpush3.bf16.msra.mxu1 %v6149_v9  ;;  %3926 = vmatprep.mubr.bf16.mxu0 %v3392_v62  ;;  %v7317_v26 = vcombine.low %v3179_v0, %v7307_v25  ;;  %v7342_v9 = vld [vmem:[#allocation2 + $0x58] sm:$0xf]  ;;  %v7355_v62 = vld [vmem:[#allocation2 + $0x64] sm:$0xf] }
 0x11c   : > { %5535 = vmatpush3.bf16.msra.mxu0 %v6127_v27  ;;  %5762 = vmatprep.subr.bf16.mxu1 %v6154_v4  ;;  %v3416_v34 = vsel %vm1293_vm10, %v3411_v56, %v3415_v13  ;;  %v7348_v22 = vcombine.low %v3183_v51, %v7342_v9  ;;  %v3461_v56 = vshll.u32 %v7370_v21, 16  ;;  %v3224_v51 = vld [vmem:[#allocation2 + $0x3c] sm:$0xe] }
 0x11d   : > { %5536 = vmatprep.subr.bf16.mxu0 %v6129_v36  ;;  %v3420_v16 = vshll.u32 %v7317_v26, 16 }
 0x11e   : > { %5731 = vmatmul.mubr.bf16.gmra.mrb[88].mxu1 %v7123_v45  ;;  %v3404_v45 = vsel %vm1293_vm10, %v3399_v39, %v3403_v38  ;;  %v3444_v63 = vshll.u32 %v7348_v22, 16 }
 0x11f   : > { %5734 = vmatprep.mubr.bf16.mxu1 %v7133_v1  ;;  %5763 = vmatpush3.bf16.msra.mxu1 %v6154_v4  ;;  %v5266_v57 = vpop.f32.mrb[0].mxu0  ;;  %v3422_v60 = vrot.slane %v3420_v16, 1 }
 0x120   : > { %5537 = vmatpush3.bf16.msra.mxu0 %v6131_v55  ;;  %5764 = vmatprep.subr.bf16.mxu1 %v6159_v31  ;;  %v5267_v61 = vpop.f32.mrb[1].mxu0  ;;  %v3449_v55 = vshll.u32 %v7351_v24, 16  ;;  %v3446_v38 = vrot.slane %v3444_v63, 1 }
 0x121   : > { %v7319_v1 = vadd.f32 %v5267_v61, %v5266_v57  ;;  %v5269_v32 = vpop.f32.mrb[2].mxu0  ;;  %v3187_v61 = vld [vmem:[#allocation2 + $0x6c] sm:$0xf] }
 0x122   : > { %v5270_v12 = vpop.f32.mrb[3].mxu0  ;;  %v3451_v42 = vrot.slane %v3449_v55, 1 }
 0x123   : > { %3927 = vmatmul.mubr.bf16.vlgmr.msra.gmra.mrb[80].mxu0 %v7228_v52  ;;  %5765 = vmatpush3.bf16.msra.mxu1 %v6159_v31  ;;  %v7322_v7 = vadd.f32 %v5270_v12, %v5269_v32  ;;  %v3418_v52 = vshrl.u32 %v7317_v26, 16  ;;  %v3222_v12 = vld [vmem:[#allocation2 + $0x24] sm:$0xe] }
 0x124   : > { %3934 = vmatprep.mubr.bf16.mxu0 %v3404_v45  ;;  %5766 = vmatprep.subr.bf16.mxu1 %v6164_v10  ;;  %v7374_v45 = vld [vmem:[#allocation2 + $0x70] sm:$0xf]  ;;  %v4889_v16 = vcombine.low %v3222_v12, %v7246_v20  ;;  %v3641_v20 = vrot.slane %v7276_v6, 1  ;;  %v4891_v6 = vcombine.low %v3224_v51, %v7307_v25 }
 0x125   : > { %v7382_v13 = vcombine.low %v3187_v61, %v7374_v45 }
 0x126   : > { %5735 = vmatmul.mubr.bf16.gmra.mrb[92].mxu1 %v7138_v59  ;;  %v3423_v59 = vor.u32 %v3422_v60, %v3418_v52  ;;  %v3646_v25 = vrot.slane %v4891_v6, 1  ;;  %v3195_v6 = vld [vmem:[#allocation2 + $0x9c] sm:$0xf] }
 0x127   : > { %5738 = vmatprep.mubr.bf16.mxu1 %v7152_v2  ;;  %5767 = vmatpush3.bf16.msra.mxu1 %v6164_v10  ;;  %v3432_v2 = vshll.u32 %v4860_v33, 16  ;;  %v3468_v60 = vshll.u32 %v7382_v13, 16 }
 0x128   : > { %5768 = vmatprep.subr.bf16.mxu1 %v6169_v5  ;;  %v3428_v15 = vsel %vm1293_vm10, %v3423_v59, %v3427_v43  ;;  %v7391_v59 = vld [vmem:[#allocation2 + $0x7c] sm:$0xf]  ;;  %v3466_v43 = vshrl.u32 %v7382_v13, 16 }
 0x129   : > { %v3434_v28 = vrot.slane %v3432_v2, 1 }
 0x12b   : > { %3935 = vmatmul.mubr.bf16.gmra.mrb[84].mxu0 %v7258_v48  ;;  %5769 = vmatpush3.bf16.msra.mxu1 %v6169_v5  ;;  %v3437_v48 = vshll.u32 %v7339_v47, 16 }
 0x12c   : > { %3942 = vmatprep.mubr.bf16.mxu0 %v3416_v34  ;;  %v7387_v34 = vld [vmem:[#allocation2 + $0x74] ss:$0 sps:$4 sm:$0x11]  }
 0x12d   : > { %v3439_v27 = vrot.slane %v3437_v48, 1  ;;  %v3225_v48 = vld [vmem:[#allocation2 + $0x48] sm:$0xe] }
 0x12e   : > { %5739 = vmatmul.mubr.bf16.gmra.mrb[0].mxu1 %v7155_v46  ;;  %v3435_v46 = vor.u32 %v3434_v28, %v3430_v23  ;;  %v3473_v28 = vshll.u32 %v7387_v34, 16  ;;  %v4892_v63 = vcombine.low %v3225_v48, %v7331_v29  ;;  %v3650_v29 = vrot.slane %v7339_v47, 1  ;;  %v7446_v48 = vld [vmem:[#allocation2 + $0x98] ss:$0 sps:$4 sm:$0x11]  }
 0x12f   : > { %5742 = vmatprep.mubr.bf16.mxu1 %v7164_v49  ;;  %v3185_v49 = vld [vmem:[#allocation2 + $0x60] sm:$0xf] }
 0x130   : > { %v3440_v39 = vsel %vm1293_vm10, %v3435_v46, %v3439_v27  ;;  %v7364_v54 = vcombine.low %v3185_v49, %v7355_v62  ;;  %v7404_v27 = vld [vmem:[#allocation2 + $0x80] ss:$0 sps:$4 sm:$0x11]   ;;  %v3475_v49 = vrot.slane %v3473_v28, 1 }
 0x132   : > { %v3456_v10 = vshll.u32 %v7364_v54, 16  ;;  %v3454_v44 = vshrl.u32 %v7364_v54, 16 }
 0x133   : > { %3943 = vmatmul.mubr.bf16.gmra.mrb[88].mxu0 %v7291_v3  ;;  %v3442_v3 = vshrl.u32 %v7348_v22, 16 }
 0x134   : > { %3950 = vmatprep.mubr.bf16.mxu0 %v3428_v15  ;;  %v5272_v36 = vpop.f32.mrb[4].mxu0  ;;  %v3458_v5 = vrot.slane %v3456_v10, 1  ;;  %v3470_v15 = vrot.slane %v3468_v60, 1 }
 0x135   : > { %v5273_v40 = vpop.f32.mrb[5].mxu0  ;;  %v3447_v57 = vor.u32 %v3446_v38, %v3442_v3  ;;  %v7409_v3 = vld [vmem:[#allocation2 + $0x88] sm:$0xf] }
 0x136   : > { %5743 = vmatmul.mubr.bf16.gmra.mrb[4].mxu1 %v7167_v37  ;;  %v7358_v58 = vadd.f32 %v5273_v40, %v5272_v36  ;;  %v5275_v4 = vpop.f32.mrb[6].mxu0  ;;  %v3221_v37 = vld [vmem:[#allocation2 + $0x18] sm:$0xe]  ;;  %v3459_v52 = vor.u32 %v3458_v5, %v3454_v44  ;;  %v3471_v36 = vor.u32 %v3470_v15, %v3466_v43 }
 0x137   : > { %5746 = vmatprep.mubr.bf16.mxu1 %v7181_v35  ;;  %v5276_v31 = vpop.f32.mrb[7].mxu0  ;;  %v4888_v35 = vcombine.low %v3221_v37, %v7219_v11  ;;  %v3452_v11 = vsel %vm1293_vm10, %v3447_v57, %v3451_v42  ;;  %v3649_v37 = vrot.slane %v4892_v63, 1  ;;  %v3659_v63 = vrot.slane %v7387_v34, 1 }
 0x138   : > { %v7366_v0 = vadd.f32 %v5276_v31, %v5275_v4  ;;  %v3191_v4 = vld [vmem:[#allocation2 + $0x84] sm:$0xf]  ;;  %v3647_v31 = vrot.slane %v7327_v18, 1  ;;  %v3476_v57 = vsel %vm1293_vm10, %v3471_v36, %v3475_v49  ;;  %v3662_v49 = vrot.slane %v7404_v27, 1 }
 0x139   : > { %v3637_v32 = vrot.slane %v4888_v35, 1  ;;  %v3226_v35 = vld [vmem:[#allocation2 + $0x54] sm:$0xe]  ;;  %v7419_v44 = vcombine.low %v3191_v4, %v7409_v3  ;;  %v3651_v5 = vsel %vm1550_vm9, %v3649_v37, %v3650_v29 }
 0x13a   : > { %v3648_v18 = vsel %vm1550_vm9, %v3646_v25, %v3647_v31  ;;  %v4893_v47 = vcombine.low %v3226_v35, %v7342_v9  ;;  %v3231_v31 = vld [vmem:[#allocation2 + $0x90] sm:$0xe] }
 0x13b   : > { %3951 = vmatmul.mubr.bf16.gmra.mrb[92].mxu0 %v7317_v26  ;;  %v3638_v26 = vrot.slane %v7243_v41, 1  ;;  %v3463_v41 = vrot.slane %v3461_v56, 1 }
 0x13c   : > { %3958 = vmatprep.mubr.bf16.mxu0 %v3440_v39  ;;  %v3485_v39 = vshll.u32 %v7404_v27, 16 }
 0x13d   : > { %v3464_v23 = vsel %vm1293_vm10, %v3459_v52, %v3463_v41  ;;  %v3652_v52 = vrot.slane %v4893_v47, 1  ;;  %v3653_v41 = vrot.slane %v7351_v24, 1  ;;  %v3197_v47 = vld [vmem:[#allocation2 + $0xa8] sm:$0xf] }
 0x13e   : > { %5747 = vmatmul.mubr.bf16.gmra.mrb[8].mxu1 %v7185_v19  ;;  %v3223_v19 = vld [vmem:[#allocation2 + $0x30] sm:$0xe] }
 0x13f   : > { %5750 = vmatprep.mubr.bf16.mxu1 %v7189_v30  ;;  %v3639_v30 = vsel %vm1550_vm9, %v3637_v32, %v3638_v26  ;;  %v4890_v8 = vcombine.low %v3223_v19, %v7279_v50  ;;  %v3644_v50 = vrot.slane %v7300_v17, 1  ;;  %v3227_v32 = vld [vmem:[#allocation2 + $0x60] sm:$0xe]  ;;  %v3654_v51 = vsel %vm1550_vm9, %v3652_v52, %v3653_v41  ;;  %v3232_v41 = vld [vmem:[#allocation2 + $0x9c] sm:$0xe] }
 0x140   : > { %v4894_v56 = vcombine.low %v3227_v32, %v7355_v62  ;;  %v3668_v52 = vrot.slane %v7446_v48, 1 }
 0x141   : > { %v3643_v2 = vrot.slane %v4890_v8, 1  ;;  %v3193_v8 = vld [vmem:[#allocation2 + $0x90] sm:$0xf] }
 0x142   : > { %v3655_v60 = vrot.slane %v4894_v56, 1 }
 0x143   : > { %3959 = vmatmul.mubr.bf16.gmra.mrb[96].mxu0 %v4860_v33  ;;  %v3640_v33 = vrot.slane %v4889_v16, 1  ;;  %v3645_v17 = vsel %vm1550_vm9, %v3643_v2, %v3644_v50  ;;  %v3487_v16 = vrot.slane %v3485_v39, 1  ;;  %v3229_v50 = vld [vmem:[#allocation2 + $0x78] sm:$0xe] }
 0x144   : > { %3966 = vmatprep.mubr.bf16.mxu0 %v3452_v11  ;;  %v7426_v11 = vld [vmem:[#allocation2 + $0x8c] ss:$0 sps:$4 sm:$0x11]  }
 0x145   : > { %v3642_v46 = vsel %vm1550_vm9, %v3640_v33, %v3641_v20  ;;  %v3497_v9 = vshll.u32 %v7426_v11, 16  ;;  %v3228_v33 = vld [vmem:[#allocation2 + $0x6c] sm:$0xe]  ;;  %v3490_v20 = vshrl.u32 %v7419_v44, 16 }
 0x146   : > { %5751 = vmatmul.mubr.bf16.gmra.mrb[12].mxu1 %v7193_v53  ;;  %v7399_v53 = vcombine.low %v3189_v14, %v7391_v59  ;;  %v3656_v14 = vrot.slane %v7370_v21, 1  ;;  %v4895_v24 = vcombine.low %v3228_v33, %v7374_v45  ;;  %v4896_v21 = vcombine.low %v3229_v50, %v7391_v59  ;;  %v3230_v59 = vld [vmem:[#allocation2 + $0x84] sm:$0xe] }
 0x147   : > { %5770 = vmatprep.mubr.bf16.mxu1 %v3639_v30  ;;  %v3492_v30 = vshll.u32 %v7419_v44, 16  ;;  %v3499_v28 = vrot.slane %v3497_v9, 1  ;;  %v4897_v27 = vcombine.low %v3230_v59, %v7409_v3 }
 0x148   : > { %v3480_v40 = vshll.u32 %v7399_v53, 16  ;;  %v3661_v36 = vrot.slane %v4896_v21, 1 }
 0x149   : > { %v3494_v43 = vrot.slane %v3492_v30, 1  ;;  %v3664_v3 = vrot.slane %v4897_v27, 1 }
 0x14a   : > { %v3482_v42 = vrot.slane %v3480_v40, 1  ;;  %v3663_v35 = vsel %vm1550_vm9, %v3661_v36, %v3662_v49  ;;  %v3200_v36 = vld [vmem:[#allocation2 + $0xb8] sm:$0xf] }
 0x14b   : > { %3967 = vmatmul.mubr.bf16.gmra.mrb[100].mxu0 %v7348_v22  ;;  %v3478_v22 = vshrl.u32 %v7399_v53, 16  ;;  %v3495_v15 = vor.u32 %v3494_v43, %v3490_v20  ;;  %v3233_v43 = vld [vmem:[#allocation2 + $0xa8] sm:$0xe] }
 0x14c   : > { %3974 = vmatprep.mubr.bf16.mxu0 %v3464_v23  ;;  %v3657_v23 = vsel %vm1550_vm9, %v3655_v60, %v3656_v14 }
 0x14d   : > { %v3483_v19 = vor.u32 %v3482_v42, %v3478_v22  ;;  %v3500_v40 = vsel %vm1293_vm10, %v3495_v15, %v3499_v28  ;;  %v3509_v22 = vshll.u32 %v7446_v48, 16  ;;  %v6189_v28 = vld [vmem:[#allocation2 + $0xb0] ss:$0 sps:$4 sm:$0x11]  }
 0x14e   : > { %5771 = vmatmul.mubr.bf16.vlgmr.msra.gmra.mrb[80].mxu1 %v3642_v46 }
 0x14f   : > { %v5278_v55 = vpop.f32.mrb[8].mxu0  ;;  %5774 = vmatprep.mubr.bf16.mxu1 %v3645_v17  ;;  %v3488_v62 = vsel %vm1293_vm10, %v3483_v19, %v3487_v16  ;;  %v7449_v17 = vld [vmem:[#allocation2 + $0xa0] sm:$0xf]  ;;  %v3665_v19 = vrot.slane %v7426_v11, 1 }
 0x150   : > { %v5279_v38 = vpop.f32.mrb[9].mxu0  ;;  %v7457_v25 = vcombine.low %v3195_v6, %v7449_v17  ;;  %v4899_v21 = vcombine.low %v3232_v41, %v7449_v17 }
 0x151   : > { %v7416_v10 = vadd.f32 %v5279_v38, %v5278_v55  ;;  %v5281_v61 = vpop.f32.mrb[10].mxu0 }
 0x152   : > { %v5282_v26 = vpop.f32.mrb[11].mxu0  ;;  %v3670_v17 = vrot.slane %v4899_v21, 1  ;;  %v3236_v21 = vld [vmem:[#allocation2 + $0xcc] sm:$0xe] }
 0x153   : > { %3975 = vmatmul.mubr.bf16.gmra.mrb[104].mxu0 %v7364_v54  ;;  %v7423_v12 = vadd.f32 %v5282_v26, %v5281_v61  ;;  %v7431_v54 = vld [vmem:[#allocation2 + $0x94] sm:$0xf]  ;;  %v3511_v61 = vrot.slane %v3509_v22, 1  ;;  %v7468_v26 = vld [vmem:[#allocation2 + $0xa4] ss:$0 sps:$4 sm:$0x11]  }
 0x154   : > { %3982 = vmatprep.mubr.bf16.mxu0 %v3476_v57  ;;  %v7439_v2 = vcombine.low %v3193_v8, %v7431_v54  ;;  %v4898_v57 = vcombine.low %v3231_v31, %v7431_v54  ;;  %v3514_v8 = vshrl.u32 %v7457_v25, 16  ;;  %v3521_v33 = vshll.u32 %v7468_v26, 16 }
 0x155   : > { %v3533_v22 = vshll.u32 %v6189_v28, 16  ;;  %v3674_v31 = vrot.slane %v6189_v28, 1 }
 0x156   : > { %5775 = vmatmul.mubr.bf16.gmra.mrb[84].mxu1 %v3648_v18  ;;  %v3504_v46 = vshll.u32 %v7439_v2, 16  ;;  %v3502_v45 = vshrl.u32 %v7439_v2, 16  ;;  %v3667_v54 = vrot.slane %v4898_v57, 1 }
 0x157   : > { %5778 = vmatprep.mubr.bf16.mxu1 %v3651_v5  ;;  %v3198_v5 = vld [vmem:[#allocation2 + $0xac] sm:$0xf]  ;;  %v3535_v41 = vrot.slane %v3533_v22, 1 }
 0x158   : > { %v3506_v4 = vrot.slane %v3504_v46, 1  ;;  %v7478_v20 = vcombine.low %v3197_v47, %v3198_v5  ;;  %v3669_v48 = vsel %vm1550_vm9, %v3667_v54, %v3668_v52  ;;  %v4900_v46 = vcombine.low %v3233_v43, %v3198_v5 }
 0x15a   : > { %v3507_v42 = vor.u32 %v3506_v4, %v3502_v45  ;;  %v3528_v45 = vshll.u32 %v7478_v20, 16  ;;  %v3526_v59 = vshrl.u32 %v7478_v20, 16 }
 0x15b   : > { %3983 = vmatmul.mubr.bf16.gmra.mrb[108].mxu0 %v7382_v13  ;;  %v3658_v13 = vrot.slane %v4895_v24, 1 }
 0x15c   : > { %3990 = vmatprep.mubr.bf16.mxu0 %v3488_v62  ;;  %v3512_v60 = vsel %vm1293_vm10, %v3507_v42, %v3511_v61  ;;  %v3235_v42 = vld [vmem:[#allocation2 + $0xc0] sm:$0xe] }
 0x15d   : > { %v3660_v37 = vsel %vm1550_vm9, %v3658_v13, %v3659_v63  ;;  %v3523_v13 = vrot.slane %v3521_v33, 1 }
 0x15e   : > { %5779 = vmatmul.mubr.bf16.gmra.mrb[88].mxu1 %v3654_v51 }
 0x15f   : > { %5782 = vmatprep.mubr.bf16.mxu1 %v3657_v23  ;;  %v3666_v23 = vsel %vm1550_vm9, %v3664_v3, %v3665_v19  ;;  %v3202_v19 = vld [vmem:[#allocation2 + $0xc4] sm:$0xf] }
 0x160   : > { %v4902_v54 = vcombine.low %v3235_v42, %v3202_v19 }
 0x161   : > { %v5402_v55 = vpop.f32.mrb[16].mxu1 }
 0x162   : > { %v5403_v39 = vpop.f32.mrb[17].mxu1 }
 0x163   : > { %3991 = vmatmul.mubr.bf16.gmra.mrb[112].mxu0 %v7399_v53  ;;  %v7460_v34 = vadd.f32 %v5403_v39, %v5402_v55  ;;  %v5405_v38 = vpop.f32.mrb[18].mxu1  ;;  %v3516_v53 = vshll.u32 %v7457_v25, 16  ;;  %v3673_v55 = vrot.slane %v4900_v46, 1  ;;  %v3234_v39 = vld [vmem:[#allocation2 + $0xb4] sm:$0xe] }
 0x164   : > { %3998 = vmatprep.mubr.bf16.mxu0 %v3500_v40  ;;  %v5406_v29 = vpop.f32.mrb[19].mxu1  ;;  %v3671_v40 = vrot.slane %v7468_v26, 1  ;;  %v4901_v3 = vcombine.low %v3234_v39, %v3200_v36 }
 0x165   : > { %v7466_v32 = vadd.f32 %v5406_v29, %v5405_v38  ;;  %v3518_v14 = vrot.slane %v3516_v53, 1  ;;  %v3530_v29 = vrot.slane %v3528_v45, 1 }
 0x166   : > { %v5284_v18 = vpop.f32.mrb[12].mxu0  ;;  %5783 = vmatmul.mubr.bf16.gmra.mrb[92].mxu1 %v3660_v37  ;;  %v3672_v5 = vsel %vm1550_vm9, %v3670_v17, %v3671_v40 }
 0x167   : > { %v5285_v56 = vpop.f32.mrb[13].mxu0  ;;  %5786 = vmatprep.mubr.bf16.mxu1 %v3663_v35  ;;  %v3519_v6 = vor.u32 %v3518_v14, %v3514_v8  ;;  %v3675_v8 = vsel %vm1550_vm9, %v3673_v55, %v3674_v31  ;;  %v3531_v52 = vor.u32 %v3530_v29, %v3526_v59  ;;  %v6197_v14 = vld [vmem:[#allocation2 + $0xc8] ss:$0 sps:$4 sm:$0x11]  }
 0x168   : > { %v7472_v16 = vadd.f32 %v5285_v56, %v5284_v18  ;;  %v5287_v30 = vpop.f32.mrb[14].mxu0  ;;  %v6193_v56 = vld [vmem:[#allocation2 + $0xbc] ss:$0 sps:$4 sm:$0x11]  }
 0x169   : > { %v5288_v9 = vpop.f32.mrb[15].mxu0  ;;  %v5408_v62 = vpop.f32.mrb[20].mxu1  ;;  %v3524_v27 = vsel %vm1293_vm10, %v3519_v6, %v3523_v13  ;;  %v3545_v33 = vshll.u32 %v6193_v56, 16  ;;  %v3677_v43 = vrot.slane %v6193_v56, 1 }
 0x16a   : > { %v7480_v11 = vadd.f32 %v5288_v9, %v5287_v30  ;;  %v5409_v50 = vpop.f32.mrb[21].mxu1  ;;  %v6200_v59 = vld [vmem:[#allocation2 + $0xd4] ss:$0 sps:$4 sm:$0x11]  }
 0x16b   : > { %3999 = vmatmul.mubr.bf16.gmra.mrb[116].mxu0 %v7419_v44  ;;  %v7483_v51 = vadd.f32 %v5409_v50, %v5408_v62  ;;  %v5411_v24 = vpop.f32.mrb[22].mxu1  ;;  %v3199_v44 = vld [vmem:[#allocation2 + $0xb4] sm:$0xf]  ;;  %v3676_v62 = vrot.slane %v4901_v3, 1  ;;  %v3679_v50 = vrot.slane %v4902_v54, 1  ;;  %v3557_v3 = vshll.u32 %v6197_v14, 16 }
 0x16c   : > { %4006 = vmatprep.mubr.bf16.mxu0 %v3512_v60  ;;  %v5412_v15 = vpop.f32.mrb[23].mxu1  ;;  %v7496_v57 = vcombine.low %v3199_v44, %v3200_v36  ;;  %v3201_v60 = vld [vmem:[#allocation2 + $0xc0] sm:$0xf] }
 0x16d   : > { %v7488_v63 = vadd.f32 %v5412_v15, %v5411_v24  ;;  %v3680_v24 = vrot.slane %v6197_v14, 1  ;;  %v3536_v15 = vsel %vm1293_vm10, %v3531_v52, %v3535_v41  ;;  %v7510_v6 = vcombine.low %v3201_v60, %v3202_v19 }
 0x16e   : > { %5787 = vmatmul.mubr.bf16.gmra.mrb[0].mxu1 %v3666_v23  ;;  %v3204_v23 = vld [vmem:[#allocation2 + $0xd0] sm:$0xf]  ;;  %v3538_v28 = vshrl.u32 %v7496_v57, 16 }
 0x16f   : > { %5790 = vmatprep.mubr.bf16.mxu1 %v3669_v48  ;;  %v4903_v17 = vcombine.low %v3236_v21, %v3204_v23  ;;  %v3681_v55 = vsel %vm1550_vm9, %v3679_v50, %v3680_v24 }
 0x170   : > { %v5290_v49 = vpop.f32.mrb[16].mxu0 }
 0x171   : > { %v5291_v4 = vpop.f32.mrb[17].mxu0  ;;  %v5414_v35 = vpop.f32.mrb[24].mxu1 }
 0x172   : > { %v7493_v38 = vadd.f32 %v5291_v4, %v5290_v49  ;;  %v5293_v37 = vpop.f32.mrb[18].mxu0  ;;  %v5415_v53 = vpop.f32.mrb[25].mxu1  ;;  %v3678_v49 = vsel %vm1550_vm9, %v3676_v62, %v3677_v43  ;;  %v3547_v4 = vrot.slane %v3545_v33, 1  ;;  %v3559_v43 = vrot.slane %v3557_v3, 1 }
 0x173   : > { %v5294_v61 = vpop.f32.mrb[19].mxu0  ;;  %4007 = vmatmul.mubr.bf16.gmra.mrb[120].mxu0 %v7439_v2  ;;  %v7501_v18 = vadd.f32 %v5415_v53, %v5414_v35  ;;  %v5417_v47 = vpop.f32.mrb[26].mxu1  ;;  %v3540_v2 = vshll.u32 %v7496_v57, 16  ;;  %v3203_v35 = vld [vmem:[#allocation2 + $0xcc] sm:$0xf]  ;;  %v3683_v53 = vrot.slane %v6200_v59, 1 }
 0x174   : > { %v7499_v26 = vadd.f32 %v5294_v61, %v5293_v37  ;;  %4014 = vmatprep.mubr.bf16.mxu0 %v3524_v27  ;;  %v5418_v30 = vpop.f32.mrb[27].mxu1  ;;  %v3682_v61 = vrot.slane %v4903_v17, 1 }
 0x175   : > { %v7505_v9 = vadd.f32 %v5418_v30, %v5417_v47  ;;  %v3542_v48 = vrot.slane %v3540_v2, 1  ;;  %v3550_v47 = vshrl.u32 %v7510_v6, 16  ;;  %v4871_v30 = vcombine.low %v3203_v35, %v3204_v23 }
 0x176   : > { %5791 = vmatmul.mubr.bf16.gmra.mrb[4].mxu1 %v3672_v5  ;;  %v3684_v41 = vsel %vm1550_vm9, %v3682_v61, %v3683_v53 }
 0x177   : > { %5794 = vmatprep.mubr.bf16.mxu1 %v3675_v8  ;;  %v3543_v37 = vor.u32 %v3542_v48, %v3538_v28  ;;  %v3564_v24 = vshll.u32 %v4871_v30, 16  ;;  %v3562_v28 = vshrl.u32 %v4871_v30, 16 }
 0x179   : > { %v5420_v46 = vpop.f32.mrb[28].mxu1  ;;  %v3548_v5 = vsel %vm1293_vm10, %v3543_v37, %v3547_v4  ;;  %v3566_v48 = vrot.slane %v3564_v24, 1 }
 0x17a   : > { %v5421_v13 = vpop.f32.mrb[29].mxu1 }
 0x17b   : > { %4015 = vmatmul.mubr.bf16.gmra.mrb[124].mxu0 %v7457_v25  ;;  %v5296_v45 = vpop.f32.mrb[20].mxu0  ;;  %v7513_v44 = vadd.f32 %v5421_v13, %v5420_v46  ;;  %v5423_v36 = vpop.f32.mrb[30].mxu1  ;;  %v3552_v25 = vshll.u32 %v7510_v6, 16  ;;  %v3569_v46 = vshll.u32 %v6200_v59, 16 }
 0x17c   : > { %v5297_v40 = vpop.f32.mrb[21].mxu0  ;;  %4022 = vmatprep.mubr.bf16.mxu0 %v3536_v15  ;;  %v5424_v22 = vpop.f32.mrb[31].mxu1 }
 0x17d   : > { %v7517_v31 = vadd.f32 %v5297_v40, %v5296_v45  ;;  %v5299_v39 = vpop.f32.mrb[22].mxu0  ;;  %v7519_v27 = vadd.f32 %v5424_v22, %v5423_v36  ;;  %v3554_v56 = vrot.slane %v3552_v25, 1  ;;  %v3567_v40 = vor.u32 %v3566_v48, %v3562_v28 }
 0x17e   : > { %v5300_v29 = vpop.f32.mrb[23].mxu0  ;;  %5795 = vmatmul.mubr.bf16.gmra.mrb[8].mxu1 %v3678_v49  ;;  %v3571_v4 = vrot.slane %v3569_v46, 1 }
 0x17f   : > { %v7522_v42 = vadd.f32 %v5300_v29, %v5299_v39  ;;  %5798 = vmatprep.mubr.bf16.mxu1 %v3681_v55  ;;  %v3555_v62 = vor.u32 %v3554_v56, %v3550_v47 }
 0x180   : > { %v3572_v59 = vsel %vm1293_vm10, %v3567_v40, %v3571_v4 }
 0x181   : > { %v5426_v19 = vpop.f32.mrb[32].mxu1  ;;  %v3560_v15 = vsel %vm1293_vm10, %v3555_v62, %v3559_v43 }
 0x182   : > { %v5427_v8 = vpop.f32.mrb[33].mxu1 }
 0x183   : > { %4023 = vmatmul.mubr.bf16.gmra.mrb[128].mxu0 %v7478_v20  ;;  %v7527_v54 = vadd.f32 %v5427_v8, %v5426_v19  ;;  %v5429_v52 = vpop.f32.mrb[34].mxu1  ;;  %v5302_v2 = vpop.f32.mrb[24].mxu0 }
 0x184   : > { %4030 = vmatprep.mubr.bf16.mxu0 %v3548_v5  ;;  %v5430_v60 = vpop.f32.mrb[35].mxu1  ;;  %v5303_v33 = vpop.f32.mrb[25].mxu0 }
 0x185   : > { %v7530_v50 = vadd.f32 %v5430_v60, %v5429_v52  ;;  %v7532_v14 = vadd.f32 %v5303_v33, %v5302_v2  ;;  %v5305_v23 = vpop.f32.mrb[26].mxu0 }
 0x186   : > { %5799 = vmatmul.mubr.bf16.gmra.mrb[12].mxu1 %v3684_v41  ;;  %v5306_v21 = vpop.f32.mrb[27].mxu0 }
 0x187   : > { %v7534_v20 = vadd.f32 %v5306_v21, %v5305_v23 }
 0x189   : > { %v5432_v13 = vpop.f32.mrb[36].mxu1 }
 0x18a   : > { %v5433_v45 = vpop.f32.mrb[37].mxu1 }
 0x18b   : > { %4031 = vmatmul.mubr.bf16.gmra.mrb[132].mxu0 %v7496_v57  ;;  %v7538_v36 = vadd.f32 %v5433_v45, %v5432_v13  ;;  %v5435_v49 = vpop.f32.mrb[38].mxu1 }
 0x18c   : > { %4038 = vmatprep.mubr.bf16.mxu0 %v3560_v15  ;;  %v5436_v17 = vpop.f32.mrb[39].mxu1 }
 0x18d   : > { %v7540_v22 = vadd.f32 %v5436_v17, %v5435_v49  ;;  %v5308_v55 = vpop.f32.mrb[28].mxu0 }
 0x18e   : > { %v5309_v39 = vpop.f32.mrb[29].mxu0 }
 0x18f   : > { %v7542_v37 = vadd.f32 %v5309_v39, %v5308_v55  ;;  %v5311_v25 = vpop.f32.mrb[30].mxu0 }
 0x190   : > { %v5312_v29 = vpop.f32.mrb[31].mxu0 }
 0x191   : > { %v5438_v35 = vpop.f32.mrb[40].mxu1  ;;  %v7545_v61 = vadd.f32 %v5312_v29, %v5311_v25 }
 0x192   : > { %v5439_v57 = vpop.f32.mrb[41].mxu1 }
 0x193   : > { %4039 = vmatmul.mubr.bf16.gmra.mrb[136].mxu0 %v7510_v6  ;;  %v7548_v53 = vadd.f32 %v5439_v57, %v5438_v35  ;;  %v5441_v47 = vpop.f32.mrb[42].mxu1 }
 0x194   : > { %4046 = vmatprep.mubr.bf16.mxu0 %v3572_v59  ;;  %v5442_v5 = vpop.f32.mrb[43].mxu1 }
 0x195   : > { %v7550_v56 = vadd.f32 %v5442_v5, %v5441_v47  ;;  %v5314_v3 = vpop.f32.mrb[32].mxu0 }
 0x196   : > { %v5315_v19 = vpop.f32.mrb[33].mxu0 }
 0x197   : > { %v5316_v8 = vadd.f32 %v5315_v19, %v5314_v3  ;;  %v5317_v52 = vpop.f32.mrb[34].mxu0 }
 0x198   : > { %v5318_v41 = vpop.f32.mrb[35].mxu0 }
 0x199   : > { %v5444_v2 = vpop.f32.mrb[44].mxu1  ;;  %v5319_v60 = vadd.f32 %v5318_v41, %v5317_v52 }
 0x19a   : > { %v5445_v33 = vpop.f32.mrb[45].mxu1 }
 0x19b   : > { %4047 = vmatmul.mubr.bf16.gmra.mrb[140].mxu0 %v4871_v30  ;;  %v7552_v62 = vadd.f32 %v5445_v33, %v5444_v2  ;;  %v5447_v43 = vpop.f32.mrb[46].mxu1 }
 0x19c   : > { %v5448_v6 = vpop.f32.mrb[47].mxu1 }
 0x19d   : > { %v7554_v24 = vadd.f32 %v5448_v6, %v5447_v43  ;;  %v5320_v23 = vpop.f32.mrb[36].mxu0 }
 0x19e   : > { %v5321_v21 = vpop.f32.mrb[37].mxu0 }
 0x19f   : > { %v5322_v15 = vadd.f32 %v5321_v21, %v5320_v23  ;;  %v5323_v28 = vpop.f32.mrb[38].mxu0 }
 0x1a0   : > { %v5324_v48 = vpop.f32.mrb[39].mxu0 }
 0x1a1   : > { %v5450_v46 = vpop.f32.mrb[48].mxu1  ;;  %v5325_v13 = vadd.f32 %v5324_v48, %v5323_v28 }
 0x1a2   : > { %v5451_v45 = vpop.f32.mrb[49].mxu1 }
 0x1a3   : > { %v5452_v49 = vadd.f32 %v5451_v45, %v5450_v46  ;;  %v5453_v17 = vpop.f32.mrb[50].mxu1 }
 0x1a4   : > { %v5454_v40 = vpop.f32.mrb[51].mxu1 }
 0x1a5   : > { %v7556_v4 = vadd.f32 %v5452_v49, %v5316_v8  ;;  %v5455_v30 = vadd.f32 %v5454_v40, %v5453_v17  ;;  %v5326_v55 = vpop.f32.mrb[40].mxu0 }
 0x1a6   : > { %v5327_v39 = vpop.f32.mrb[41].mxu0 }
 0x1a7   : > { %v7558_v25 = vadd.f32 %v5455_v30, %v5319_v60  ;;  %v5328_v29 = vadd.f32 %v5327_v39, %v5326_v55  ;;  %v5329_v59 = vpop.f32.mrb[42].mxu0 }
 0x1a8   : > { %v5330_v35 = vpop.f32.mrb[43].mxu0 }
 0x1a9   : > { %v5456_v57 = vpop.f32.mrb[52].mxu1  ;;  %v5331_v47 = vadd.f32 %v5330_v35, %v5329_v59 }
 0x1aa   : > { %v5457_v5 = vpop.f32.mrb[53].mxu1 }
 0x1ab   : > { %v5458_v3 = vadd.f32 %v5457_v5, %v5456_v57  ;;  %v5459_v19 = vpop.f32.mrb[54].mxu1 }
 0x1ac   : > { %v5460_v52 = vpop.f32.mrb[55].mxu1 }
 0x1ad   : > { %v7560_v41 = vadd.f32 %v5458_v3, %v5322_v15  ;;  %v5461_v2 = vadd.f32 %v5460_v52, %v5459_v19  ;;  %v5332_v33 = vpop.f32.mrb[44].mxu0 }
 0x1ae   : > { %v5333_v8 = vpop.f32.mrb[45].mxu0 }
 0x1af   : > { %v7562_v43 = vadd.f32 %v5461_v2, %v5325_v13  ;;  %v5334_v6 = vadd.f32 %v5333_v8, %v5332_v33  ;;  %v5335_v23 = vpop.f32.mrb[46].mxu0 }
 0x1b0   : > { %v5336_v60 = vpop.f32.mrb[47].mxu0 }
 0x1b1   : > { %v5462_v21 = vpop.f32.mrb[56].mxu1  ;;  %v5337_v28 = vadd.f32 %v5336_v60, %v5335_v23 }
 0x1b2   : > { %v5463_v48 = vpop.f32.mrb[57].mxu1 }
 0x1b3   : > { %v5464_v46 = vadd.f32 %v5463_v48, %v5462_v21  ;;  %v5465_v45 = vpop.f32.mrb[58].mxu1 }
 0x1b4   : > { %v5466_v49 = vpop.f32.mrb[59].mxu1 }
 0x1b5   : > { %v7564_v17 = vadd.f32 %v5464_v46, %v5328_v29  ;;  %v5467_v40 = vadd.f32 %v5466_v49, %v5465_v45  ;;  %v5338_v30 = vpop.f32.mrb[48].mxu0 }
 0x1b6   : > { %v5339_v15 = vpop.f32.mrb[49].mxu0 }
 0x1b7   : > { %v7566_v55 = vadd.f32 %v5467_v40, %v5331_v47  ;;  %v5340_v39 = vadd.f32 %v5339_v15, %v5338_v30  ;;  %v5341_v59 = vpop.f32.mrb[50].mxu0 }
 0x1b8   : > { %v5342_v13 = vpop.f32.mrb[51].mxu0 }
 0x1b9   : > { %v5468_v35 = vpop.f32.mrb[60].mxu1  ;;  %v5343_v57 = vadd.f32 %v5342_v13, %v5341_v59 }
 0x1ba   : > { %v5469_v5 = vpop.f32.mrb[61].mxu1 }
 0x1bb   : > { %v5470_v3 = vadd.f32 %v5469_v5, %v5468_v35  ;;  %v5471_v19 = vpop.f32.mrb[62].mxu1 }
 0x1bc   : > { %v5472_v52 = vpop.f32.mrb[63].mxu1 }
 0x1bd   : > { %v7568_v2 = vadd.f32 %v5470_v3, %v5334_v6  ;;  %v5473_v33 = vadd.f32 %v5472_v52, %v5471_v19  ;;  %v5344_v8 = vpop.f32.mrb[52].mxu0 }
 0x1be   : > { %v5345_v29 = vpop.f32.mrb[53].mxu0 }
 0x1bf   : > { %v7570_v23 = vadd.f32 %v5473_v33, %v5337_v28  ;;  %v5346_v60 = vadd.f32 %v5345_v29, %v5344_v8  ;;  %v5347_v21 = vpop.f32.mrb[54].mxu0 }
 0x1c0   : > { %v5348_v47 = vpop.f32.mrb[55].mxu0 }
 0x1c1   : > { %v5474_v48 = vpop.f32.mrb[64].mxu1  ;;  %v5349_v46 = vadd.f32 %v5348_v47, %v5347_v21 }
 0x1c2   : > { %v5475_v45 = vpop.f32.mrb[65].mxu1 }
 0x1c3   : > { %v5476_v49 = vadd.f32 %v5475_v45, %v5474_v48  ;;  %v5477_v40 = vpop.f32.mrb[66].mxu1 }
 0x1c4   : > { %v5478_v30 = vpop.f32.mrb[67].mxu1 }
 0x1c5   : > { %v7572_v15 = vadd.f32 %v5476_v49, %v5340_v39  ;;  %v5479_v59 = vadd.f32 %v5478_v30, %v5477_v40  ;;  %v5350_v13 = vpop.f32.mrb[56].mxu0 }
 0x1c6   : > { %v5351_v6 = vpop.f32.mrb[57].mxu0 }
 0x1c7   : > { %7724 = vst [vmem:[#allocation3_spill] sm:$0xff] %v7572_v15  ;;  %v7574_v35 = vadd.f32 %v5479_v59, %v5343_v57  ;;  %v5352_v5 = vadd.f32 %v5351_v6, %v5350_v13  ;;  %v5353_v3 = vpop.f32.mrb[58].mxu0 }
 0x1c8   : > { %v5354_v28 = vpop.f32.mrb[59].mxu0 }
 0x1c9   : > { %7725 = vst [vmem:[#allocation4_spill] sm:$0xff] %v7574_v35  ;;  %v5480_v19 = vpop.f32.mrb[68].mxu1  ;;  %v5355_v52 = vadd.f32 %v5354_v28, %v5353_v3 }
 0x1ca   : > { %v5481_v33 = vpop.f32.mrb[69].mxu1 }
 0x1cb   : > { %v5482_v8 = vadd.f32 %v5481_v33, %v5480_v19  ;;  %v5483_v29 = vpop.f32.mrb[70].mxu1 }
 0x1cc   : > { %v5484_v21 = vpop.f32.mrb[71].mxu1 }
 0x1cd   : > { %v7576_v47 = vadd.f32 %v5482_v8, %v5346_v60  ;;  %v5485_v48 = vadd.f32 %v5484_v21, %v5483_v29  ;;  %v5356_v45 = vpop.f32.mrb[60].mxu0 }
 0x1ce   : > { %v5357_v39 = vpop.f32.mrb[61].mxu0 }
 0x1cf   : > { %v7578_v49 = vadd.f32 %v5485_v48, %v5349_v46  ;;  %v5358_v40 = vadd.f32 %v5357_v39, %v5356_v45  ;;  %v5359_v30 = vpop.f32.mrb[62].mxu0 }
 0x1d0   : > { %v5360_v57 = vpop.f32.mrb[63].mxu0 }
 0x1d1   : > { %v5486_v59 = vpop.f32.mrb[72].mxu1  ;;  %v5361_v13 = vadd.f32 %v5360_v57, %v5359_v30 }
 0x1d2   : > { %v5487_v6 = vpop.f32.mrb[73].mxu1 }
 0x1d3   : > { %v5488_v35 = vadd.f32 %v5487_v6, %v5486_v59  ;;  %v5489_v15 = vpop.f32.mrb[74].mxu1 }
 0x1d4   : > { %v5490_v3 = vpop.f32.mrb[75].mxu1 }
 0x1d5   : > { %v7580_v28 = vadd.f32 %v5488_v35, %v5352_v5  ;;  %v5491_v19 = vadd.f32 %v5490_v3, %v5489_v15  ;;  %v5676_v33 = vpop.f32.mrb[64].mxu0 }
 0x1d6   : > { %v2588_v60 = vadd.f32 %v5676_v33, %v7358_v58  ;;  %v2579_v8 = vpop.f32.mrb[65].mxu0 }
 0x1d7   : > { %v7583_v29 = vadd.f32 %v5491_v19, %v5355_v52  ;;  %v2580_v46 = vadd.f32 %v7319_v1, %v2579_v8  ;;  %v5677_v21 = vpop.f32.mrb[66].mxu0 }
 0x1d8   : > { %v7587_v48 = vadd.f32 %v7483_v51, %v2588_v60  ;;  %v2591_v45 = vadd.f32 %v5677_v21, %v7366_v0  ;;  %v2582_v39 = vpop.f32.mrb[67].mxu0 }
 0x1d9   : > { %v5492_v30 = vpop.f32.mrb[76].mxu1  ;;  %v2885_v35 = vadd.f32 %v7460_v34, %v2580_v46  ;;  %v2583_v15 = vadd.f32 %v7322_v7, %v2582_v39 }
 0x1da   : > { %v5493_v5 = vpop.f32.mrb[77].mxu1  ;;  %v2896_v58 = vadd.f32 %v7488_v63, %v2591_v45 }
 0x1db   : > { %v5494_v57 = vadd.f32 %v5493_v5, %v5492_v30  ;;  %v5495_v52 = vpop.f32.mrb[78].mxu1  ;;  %v2888_v59 = vadd.f32 %v7466_v32, %v2583_v15 }
 0x1dc   : > { %v5496_v1 = vpop.f32.mrb[79].mxu1 }
 0x1dd   : > { %v7594_v6 = vadd.f32 %v5494_v57, %v5358_v40  ;;  %v5497_v51 = vadd.f32 %v5496_v1, %v5495_v52  ;;  %v5680_v3 = vpop.f32.mrb[68].mxu0 }
 0x1de   : > { %v2604_v0 = vadd.f32 %v5680_v3, %v7472_v16  ;;  %v2595_v19 = vpop.f32.mrb[69].mxu0 }
 0x1df   : > { %v7597_v33 = vadd.f32 %v5497_v51, %v5361_v13  ;;  %v2596_v34 = vadd.f32 %v7416_v10, %v2595_v19  ;;  %v5681_v7 = vpop.f32.mrb[70].mxu0 }
 0x1e0   : > { %v2909_v60 = vadd.f32 %v7513_v44, %v2604_v0  ;;  %v2607_v63 = vadd.f32 %v5681_v7, %v7480_v11  ;;  %v2598_v8 = vpop.f32.mrb[71].mxu0 }
 0x1e1   : > { %v2901_v32 = vadd.f32 %v7501_v18, %v2596_v34  ;;  %v2599_v40 = vadd.f32 %v7423_v12, %v2598_v8 }
 0x1e2   : > { %v2912_v46 = vadd.f32 %v7519_v27, %v2607_v63 }
 0x1e3   : > { %v2904_v21 = vadd.f32 %v7505_v9, %v2599_v40 }
 0x1e5   : > { %v5684_v16 = vpop.f32.mrb[72].mxu0 }
 0x1e6   : > { %v2620_v13 = vadd.f32 %v5684_v16, %v7517_v31  ;;  %v2611_v45 = vpop.f32.mrb[73].mxu0 }
 0x1e7   : > { %v2612_v10 = vadd.f32 %v7493_v38, %v2611_v45  ;;  %v5685_v39 = vpop.f32.mrb[74].mxu0 }
 0x1e8   : > { %v7609_v44 = vadd.f32 %v7538_v36, %v2620_v13  ;;  %v2623_v11 = vadd.f32 %v5685_v39, %v7522_v42  ;;  %v2614_v30 = vpop.f32.mrb[75].mxu0 }
 0x1e9   : > { %v2917_v18 = vadd.f32 %v7527_v54, %v2612_v10  ;;  %v2615_v12 = vadd.f32 %v7499_v26, %v2614_v30 }
 0x1ea   : > { %v7615_v27 = vadd.f32 %v7540_v22, %v2623_v11 }
 0x1eb   : > { %v2920_v9 = vadd.f32 %v7530_v50, %v2615_v12 }
 0x1ed   : > { %v5688_v31 = vpop.f32.mrb[76].mxu0 }
 0x1ee   : > { %v2636_v15 = vadd.f32 %v5688_v31, %v7542_v37  ;;  %v2627_v38 = vpop.f32.mrb[77].mxu0 }
 0x1ef   : > { %v2628_v5 = vadd.f32 %v7532_v14, %v2627_v38  ;;  %v5689_v36 = vpop.f32.mrb[78].mxu0 }
 0x1f0   : > { %v7621_v57 = vadd.f32 %v7552_v62, %v2636_v15  ;;  %v2639_v42 = vadd.f32 %v5689_v36, %v7545_v61  ;;  %v2630_v54 = vpop.f32.mrb[79].mxu0 }
 0x1f1   : > { %v7625_v26 = vadd.f32 %v7548_v53, %v2628_v5  ;;  %v2631_v22 = vadd.f32 %v7534_v20, %v2630_v54 }
 0x1f2   : > { %v7629_v50 = vadd.f32 %v7554_v24, %v2639_v42 }
 0x1f3   : > { %v7632_v37 = vadd.f32 %v7550_v56, %v2631_v22 }
 0x1f6   : > { %v5538_v52 = vpop.f32.mrb[80].mxu0 }
 0x1f7   : > { %v5539_v14 = vpop.f32.mrb[81].mxu0 }
 0x1f8   : > { %v5540_v1 = vadd.f32 %v5539_v14, %v5538_v52  ;;  %v5541_v51 = vpop.f32.mrb[82].mxu0 }
 0x1f9   : > { %v5542_v62 = vpop.f32.mrb[83].mxu0 }
 0x1fa   : > { %v5543_v3 = vadd.f32 %v5542_v62, %v5541_v51  ;;  %v5824_v0 = vadd.f32 %v5540_v1, %v2885_v35 }
 0x1fc   : > { %v5832_v61 = vadd.f32 %v5543_v3, %v2888_v59 }
 0x1fe   : > { %v5544_v19 = vpop.f32.mrb[84].mxu0 }
 0x1ff   : > { %v5545_v34 = vpop.f32.mrb[85].mxu0 }
 0x200   : > { %v5546_v53 = vadd.f32 %v5545_v34, %v5544_v19  ;;  %v5547_v7 = vpop.f32.mrb[86].mxu0 }
 0x201   : > { %v5548_v63 = vpop.f32.mrb[87].mxu0 }
 0x202   : > { %v5549_v20 = vadd.f32 %v5548_v63, %v5547_v7  ;;  %v5820_v24 = vadd.f32 %v5546_v53, %v7587_v48 }
 0x204   : > { %v5828_v8 = vadd.f32 %v5549_v20, %v2896_v58 }
 0x206   : > { %v5550_v40 = vpop.f32.mrb[88].mxu0 }
 0x207   : > { %v5551_v56 = vpop.f32.mrb[89].mxu0 }
 0x208   : > { %v5552_v16 = vadd.f32 %v5551_v56, %v5550_v40  ;;  %v5553_v13 = vpop.f32.mrb[90].mxu0 }
 0x209   : > { %v5554_v45 = vpop.f32.mrb[91].mxu0 }
 0x20a   : > { %v5555_v10 = vadd.f32 %v5554_v45, %v5553_v13  ;;  %v5840_v39 = vadd.f32 %v5552_v16, %v2901_v32 }
 0x20c   : > { %v7635_v11 = vadd.f32 %v5555_v10, %v2904_v21 }
 0x20e   : > { %v5556_v35 = vpop.f32.mrb[92].mxu0 }
 0x20f   : > { %v5557_v59 = vpop.f32.mrb[93].mxu0 }
 0x210   : > { %v5558_v30 = vadd.f32 %v5557_v59, %v5556_v35  ;;  %v5559_v12 = vpop.f32.mrb[94].mxu0 }
 0x211   : > { %v5560_v31 = vpop.f32.mrb[95].mxu0 }
 0x212   : > { %v5561_v15 = vadd.f32 %v5560_v31, %v5559_v12  ;;  %v5836_v38 = vadd.f32 %v5558_v30, %v2909_v60 }
 0x214   : > { %v5844_v5 = vadd.f32 %v5561_v15, %v2912_v46 }
 0x216   : > { %v5562_v36 = vpop.f32.mrb[96].mxu0 }
 0x217   : > { %v5563_v48 = vpop.f32.mrb[97].mxu0 }
 0x218   : > { %v5564_v58 = vadd.f32 %v5563_v48, %v5562_v36  ;;  %v5565_v42 = vpop.f32.mrb[98].mxu0 }
 0x219   : > { %v5566_v54 = vpop.f32.mrb[99].mxu0 }
 0x21a   : > { %v5567_v22 = vadd.f32 %v5566_v54, %v5565_v42  ;;  %v7637_v52 = vadd.f32 %v5564_v58, %v2917_v18 }
 0x21c   : > { %v7639_v14 = vadd.f32 %v5567_v22, %v2920_v9 }
 0x21e   : > { %v5568_v32 = vpop.f32.mrb[100].mxu0 }
 0x21f   : > { %v5569_v21 = vpop.f32.mrb[101].mxu0 }
 0x220   : > { %v5570_v1 = vadd.f32 %v5569_v21, %v5568_v32  ;;  %v5571_v51 = vpop.f32.mrb[102].mxu0 }
 0x221   : > { %v5572_v62 = vpop.f32.mrb[103].mxu0  ;;  %v5772_v3 = vpop.f32.mrb[80].mxu1 }
 0x222   : > { %v5573_v19 = vadd.f32 %v5572_v62, %v5571_v51  ;;  %v5821_v60 = vadd.f32 %v5820_v24, %v5772_v3  ;;  %v4089_v46 = vpop.f32.mrb[81].mxu1  ;;  %v5852_v34 = vadd.f32 %v5570_v1, %v7609_v44 }
 0x223   : > { %v5825_v53 = vadd.f32 %v5824_v0, %v4089_v46  ;;  %v5773_v7 = vpop.f32.mrb[82].mxu1 }
 0x224   : > { %v5829_v63 = vadd.f32 %v5828_v8, %v5773_v7  ;;  %v4092_v20 = vpop.f32.mrb[83].mxu1  ;;  %v5860_v18 = vadd.f32 %v5573_v19, %v7615_v27  ;;  %v4448_v10 = vmul.f32 %v5821_v60, %v5821_v60 }
 0x225   : > { %v5833_v9 = vadd.f32 %v5832_v61, %v4092_v20  ;;  %v4446_v16 = vmul.f32 %v5825_v53, %v5825_v53 }
 0x226   : > { %v5574_v40 = vpop.f32.mrb[104].mxu0  ;;  %v5148_v24 = vpack.c.bf16 %v5829_v63, %v5821_v60  ;;  %v4449_v36 = vmul.f32 %v5829_v63, %v5829_v63 }
 0x227   : > { %v5575_v56 = vpop.f32.mrb[105].mxu0  ;;  %v5143_v44 = vpack.c.bf16 %v5833_v9, %v5825_v53  ;;  %v4408_v0 = vadd.f32 %v5833_v9, %v5825_v53  ;;  %v4447_v13 = vmul.f32 %v5833_v9, %v5833_v9 }
 0x228   : > { %v5576_v8 = vadd.f32 %v5575_v56, %v5574_v40  ;;  %v5577_v45 = vpop.f32.mrb[106].mxu0  ;;  %5235 = vst [vmem:[%s7648_s20 + $0x8] sm:$0xff] %v5148_v24  }
 0x229   : > { %v5578_v27 = vpop.f32.mrb[107].mxu0  ;;  %5144 = vst [vmem:[%s7648_s20] sm:$0xff] %v5143_v44   ;;  %v4409_v35 = vadd.f32 %v5821_v60, %v4408_v0  ;;  %v4478_v59 = vadd.f32 %v4447_v13, %v4446_v16  ;;  %v5776_v30 = vpop.f32.mrb[84].mxu1 }
 0x22a   : > { %v5579_v12 = vadd.f32 %v5578_v27, %v5577_v45  ;;  %v5837_v31 = vadd.f32 %v5836_v38, %v5776_v30  ;;  %v4105_v15 = vpop.f32.mrb[85].mxu1  ;;  %v7653_v61 = vadd.f32 %v5576_v8, %v7625_v26 }
 0x22b   : > { %v4479_v48 = vadd.f32 %v4478_v59, %v4448_v10  ;;  %v5841_v58 = vadd.f32 %v5840_v39, %v4105_v15  ;;  %v4410_v42 = vadd.f32 %v5829_v63, %v4409_v35  ;;  %v5777_v54 = vpop.f32.mrb[86].mxu1 }
 0x22c   : > { %v5845_v22 = vadd.f32 %v5844_v5, %v5777_v54  ;;  %v4108_v32 = vpop.f32.mrb[87].mxu1  ;;  %v7656_v21 = vadd.f32 %v5579_v12, %v7632_v37  ;;  %v4452_v20 = vmul.f32 %v5837_v31, %v5837_v31 }
 0x22d   : > { %v4411_v1 = vadd.f32 %v5841_v58, %v4410_v42  ;;  %v4450_v51 = vmul.f32 %v5841_v58, %v5841_v58  ;;  %v4480_v62 = vadd.f32 %v4479_v48, %v4449_v36  ;;  %v5849_v38 = vadd.f32 %v7635_v11, %v4108_v32 }
 0x22e   : > { %v5580_v3 = vpop.f32.mrb[108].mxu0  ;;  %v5158_v26 = vpack.c.bf16 %v5845_v22, %v5837_v31  ;;  %v4453_v44 = vmul.f32 %v5845_v22, %v5845_v22 }
 0x22f   : > { %v5581_v19 = vpop.f32.mrb[109].mxu0  ;;  %v4481_v60 = vadd.f32 %v4480_v62, %v4450_v51  ;;  %v5153_v46 = vpack.c.bf16 %v5849_v38, %v5841_v58  ;;  %v4412_v39 = vadd.f32 %v5849_v38, %v4411_v1  ;;  %v4451_v53 = vmul.f32 %v5849_v38, %v5849_v38 }
 0x230   : > { %v5582_v7 = vadd.f32 %v5581_v19, %v5580_v3  ;;  %v5583_v5 = vpop.f32.mrb[110].mxu0  ;;  %5237 = vst [vmem:[%s7648_s20 + $0x18] sm:$0xff] %v5158_v26  }
 0x231   : > { %v5584_v63 = vpop.f32.mrb[111].mxu0  ;;  %5236 = vst [vmem:[%s7648_s20 + $0x10] sm:$0xff] %v5153_v46   ;;  %v4413_v37 = vadd.f32 %v5837_v31, %v4412_v39  ;;  %v4482_v9 = vadd.f32 %v4481_v60, %v4451_v53  ;;  %v5780_v40 = vpop.f32.mrb[88].mxu1 }
 0x232   : > { %v5585_v24 = vadd.f32 %v5584_v63, %v5583_v5  ;;  %v5853_v56 = vadd.f32 %v5852_v34, %v5780_v40  ;;  %v4121_v16 = vpop.f32.mrb[89].mxu1  ;;  %v5868_v11 = vadd.f32 %v5582_v7, %v7621_v57 }
 0x233   : > { %v4483_v0 = vadd.f32 %v4482_v9, %v4452_v20  ;;  %v5857_v13 = vadd.f32 %v7637_v52, %v4121_v16  ;;  %v4414_v8 = vadd.f32 %v5845_v22, %v4413_v37  ;;  %v5781_v45 = vpop.f32.mrb[90].mxu1 }
 0x234   : > { %v5861_v27 = vadd.f32 %v5860_v18, %v5781_v45  ;;  %v4124_v10 = vpop.f32.mrb[91].mxu1  ;;  %v5876_v35 = vadd.f32 %v5585_v24, %v7629_v50  ;;  %v4456_v22 = vmul.f32 %v5853_v56, %v5853_v56 }
 0x235   : > { %v4415_v59 = vadd.f32 %v5857_v13, %v4414_v8  ;;  %v4454_v30 = vmul.f32 %v5857_v13, %v5857_v13  ;;  %v4484_v12 = vadd.f32 %v4483_v0, %v4453_v44  ;;  %v5865_v34 = vadd.f32 %v7639_v14, %v4124_v10 }
 0x236   : > { %v5586_v31 = vpop.f32.mrb[112].mxu0  ;;  %v5168_v15 = vpack.c.bf16 %v5861_v27, %v5853_v56  ;;  %v4457_v3 = vmul.f32 %v5861_v27, %v5861_v27 }
 0x237   : > { %v5587_v57 = vpop.f32.mrb[113].mxu0  ;;  %v4485_v36 = vadd.f32 %v4484_v12, %v4454_v30  ;;  %v5163_v48 = vpack.c.bf16 %v5865_v34, %v5857_v13  ;;  %v4416_v58 = vadd.f32 %v5865_v34, %v4415_v59  ;;  %v4455_v52 = vmul.f32 %v5865_v34, %v5865_v34 }
 0x238   : > { %v5588_v42 = vadd.f32 %v5587_v57, %v5586_v31  ;;  %v5589_v54 = vpop.f32.mrb[114].mxu0  ;;  %5239 = vst [vmem:[%s7648_s20 + $0x28] sm:$0xff] %v5168_v15  }
 0x239   : > { %v5590_v18 = vpop.f32.mrb[115].mxu0  ;;  %5238 = vst [vmem:[%s7648_s20 + $0x20] sm:$0xff] %v5163_v48   ;;  %v4417_v50 = vadd.f32 %v5853_v56, %v4416_v58  ;;  %v4486_v32 = vadd.f32 %v4485_v36, %v4455_v52  ;;  %v5784_v1 = vpop.f32.mrb[92].mxu1 }
 0x23a   : > { %v5591_v51 = vadd.f32 %v5590_v18, %v5589_v54  ;;  %v5869_v62 = vadd.f32 %v5868_v11, %v5784_v1  ;;  %v4137_v38 = vpop.f32.mrb[93].mxu1  ;;  %v5886_v14 = vadd.f32 %v7556_v4, %v5588_v42 }
 0x23b   : > { %v4487_v26 = vadd.f32 %v4486_v32, %v4456_v22  ;;  %v5873_v19 = vadd.f32 %v7653_v61, %v4137_v38  ;;  %v4418_v60 = vadd.f32 %v5861_v27, %v4417_v50  ;;  %v5785_v46 = vpop.f32.mrb[94].mxu1 }
 0x23c   : > { %v5877_v39 = vadd.f32 %v5876_v35, %v5785_v46  ;;  %v4140_v53 = vpop.f32.mrb[95].mxu1  ;;  %v5892_v7 = vadd.f32 %v7558_v25, %v5591_v51  ;;  %v4460_v13 = vmul.f32 %v5869_v62, %v5869_v62 }
 0x23d   : > { %v4419_v5 = vadd.f32 %v5873_v19, %v4418_v60  ;;  %v4458_v63 = vmul.f32 %v5873_v19, %v5873_v19  ;;  %v4488_v20 = vadd.f32 %v4487_v26, %v4457_v3  ;;  %v5881_v37 = vadd.f32 %v7656_v21, %v4140_v53 }
 0x23e   : > { %v5592_v9 = vpop.f32.mrb[116].mxu0  ;;  %v5178_v40 = vpack.c.bf16 %v5877_v39, %v5869_v62  ;;  %v4461_v35 = vmul.f32 %v5877_v39, %v5877_v39 }
 0x23f   : > { %v5593_v4 = vpop.f32.mrb[117].mxu0  ;;  %v4489_v24 = vadd.f32 %v4488_v20, %v4458_v63  ;;  %v5173_v56 = vpack.c.bf16 %v5881_v37, %v5873_v19  ;;  %v4420_v16 = vadd.f32 %v5881_v37, %v4419_v5  ;;  %v4459_v61 = vmul.f32 %v5881_v37, %v5881_v37 }
 0x240   : > { %v5594_v11 = vadd.f32 %v5593_v4, %v5592_v9  ;;  %v5595_v44 = vpop.f32.mrb[118].mxu0  ;;  %5241 = vst [vmem:[%s7648_s20 + $0x38] sm:$0xff] %v5178_v40  }
 0x241   : > { %v5596_v0 = vpop.f32.mrb[119].mxu0  ;;  %5240 = vst [vmem:[%s7648_s20 + $0x30] sm:$0xff] %v5173_v56   ;;  %v4421_v25 = vadd.f32 %v5869_v62, %v4420_v16  ;;  %v4490_v8 = vadd.f32 %v4489_v24, %v4459_v61  ;;  %v5788_v45 = vpop.f32.mrb[0].mxu1 }
 0x242   : > { %v5597_v27 = vadd.f32 %v5596_v0, %v5595_v44  ;;  %v5883_v10 = vadd.f32 %v7560_v41, %v5594_v11  ;;  %v4153_v21 = vpop.f32.mrb[1].mxu1 }
 0x243   : > { %v4491_v59 = vadd.f32 %v4490_v8, %v4460_v13  ;;  %v5887_v30 = vadd.f32 %v5886_v14, %v4153_v21  ;;  %v4422_v12 = vadd.f32 %v5877_v39, %v4421_v25  ;;  %v5789_v34 = vpop.f32.mrb[2].mxu1 }
 0x244   : > { %v5884_v31 = vadd.f32 %v5883_v10, %v5788_v45  ;;  %v5889_v15 = vadd.f32 %v7562_v43, %v5597_v27  ;;  %v4156_v57 = vpop.f32.mrb[3].mxu1 }
 0x245   : > { %v4423_v36 = vadd.f32 %v5887_v30, %v4422_v12  ;;  %v4462_v48 = vmul.f32 %v5887_v30, %v5887_v30  ;;  %v4492_v58 = vadd.f32 %v4491_v59, %v4461_v35  ;;  %v5893_v52 = vadd.f32 %v5892_v7, %v4156_v57 }
 0x246   : > { %v5598_v42 = vpop.f32.mrb[120].mxu0  ;;  %v5890_v54 = vadd.f32 %v5889_v15, %v5789_v34  ;;  %v4464_v14 = vmul.f32 %v5884_v31, %v5884_v31 }
 0x247   : > { %v5599_v18 = vpop.f32.mrb[121].mxu0  ;;  %v4493_v41 = vadd.f32 %v4492_v58, %v4462_v48  ;;  %v5183_v22 = vpack.c.bf16 %v5893_v52, %v5887_v30  ;;  %v4424_v50 = vadd.f32 %v5893_v52, %v4423_v36  ;;  %v4463_v32 = vmul.f32 %v5893_v52, %v5893_v52 }
 0x248   : > { %v5600_v1 = vadd.f32 %v5599_v18, %v5598_v42  ;;  %v5601_v51 = vpop.f32.mrb[122].mxu0  ;;  %v5188_v62 = vpack.c.bf16 %v5890_v54, %v5884_v31  ;;  %v4465_v39 = vmul.f32 %v5890_v54, %v5890_v54 }
 0x249   : > { %v5602_v38 = vpop.f32.mrb[123].mxu0  ;;  %5242 = vst [vmem:[%s7648_s20 + $0x40] sm:$0xff] %v5183_v22   ;;  %v4425_v43 = vadd.f32 %v5884_v31, %v4424_v50  ;;  %v4494_v3 = vadd.f32 %v4493_v41, %v4463_v32  ;;  %v5792_v26 = vpop.f32.mrb[4].mxu1  ;;  %v7726_v22 = vld [vmem:[#allocation3_spill] sm:$0xff] }
 0x24a   : > { %v5603_v19 = vadd.f32 %v5602_v38, %v5601_v51  ;;  %5243 = vst [vmem:[%s7648_s20 + $0x48] sm:$0xff] %v5188_v62   ;;  %v4169_v60 = vpop.f32.mrb[5].mxu1  ;;  %v5898_v46 = vadd.f32 %v7564_v17, %v5600_v1  ;;  %v7727_v62 = vld [vmem:[#allocation4_spill] sm:$0xff] }
 0x24b   : > { %v4495_v53 = vadd.f32 %v4494_v3, %v4464_v14  ;;  %v4426_v7 = vadd.f32 %v5890_v54, %v4425_v43  ;;  %v5793_v5 = vpop.f32.mrb[6].mxu1 }
 0x24c   : > { %v5899_v63 = vadd.f32 %v5898_v46, %v4169_v60  ;;  %v4172_v20 = vpop.f32.mrb[7].mxu1  ;;  %v5904_v37 = vadd.f32 %v7566_v55, %v5603_v19 }
 0x24d   : > { %v4496_v9 = vadd.f32 %v4495_v53, %v4465_v39 }
 0x24e   : > { %v5604_v40 = vpop.f32.mrb[124].mxu0  ;;  %v4427_v4 = vadd.f32 %v5899_v63, %v4426_v7  ;;  %v4466_v24 = vmul.f32 %v5899_v63, %v5899_v63  ;;  %v5905_v56 = vadd.f32 %v5904_v37, %v4172_v20 }
 0x24f   : > { %v5605_v16 = vpop.f32.mrb[125].mxu0 }
 0x250   : > { %v5606_v61 = vadd.f32 %v5605_v16, %v5604_v40  ;;  %v5607_v11 = vpop.f32.mrb[126].mxu0  ;;  %v4497_v44 = vadd.f32 %v4496_v9, %v4466_v24  ;;  %v5193_v0 = vpack.c.bf16 %v5905_v56, %v5899_v63  ;;  %v4428_v17 = vadd.f32 %v5905_v56, %v4427_v4 }
 0x251   : > { %v5608_v13 = vpop.f32.mrb[127].mxu0  ;;  %v4467_v25 = vmul.f32 %v5905_v56, %v5905_v56  ;;  %v5796_v8 = vpop.f32.mrb[8].mxu1 }
 0x252   : > { %v5609_v45 = vadd.f32 %v5608_v13, %v5607_v11  ;;  %v5895_v27 = vadd.f32 %v7568_v2, %v5606_v61  ;;  %5244 = vst [vmem:[%s7648_s20 + $0x50] sm:$0xff] %v5193_v0   ;;  %v4185_v55 = vpop.f32.mrb[9].mxu1 }
 0x253   : > { %v4498_v10 = vadd.f32 %v4497_v44, %v4467_v25  ;;  %v5797_v21 = vpop.f32.mrb[10].mxu1 }
 0x254   : > { %v5896_v35 = vadd.f32 %v5895_v27, %v5792_v26  ;;  %v5901_v59 = vadd.f32 %v7570_v23, %v5609_v45  ;;  %v4188_v30 = vpop.f32.mrb[11].mxu1 }
 0x256   : > { %v5610_v12 = vpop.f32.mrb[128].mxu0  ;;  %v4468_v34 = vmul.f32 %v5896_v35, %v5896_v35  ;;  %v5902_v31 = vadd.f32 %v5901_v59, %v5793_v5  ;;  %v4429_v15 = vadd.f32 %v5896_v35, %v4428_v17 }
 0x257   : > { %v5611_v57 = vpop.f32.mrb[129].mxu0 }
 0x258   : > { %v5612_v36 = vadd.f32 %v5611_v57, %v5610_v12  ;;  %v5613_v48 = vpop.f32.mrb[130].mxu0  ;;  %v5198_v58 = vpack.c.bf16 %v5902_v31, %v5896_v35  ;;  %v4469_v52 = vmul.f32 %v5902_v31, %v5902_v31  ;;  %v4499_v42 = vadd.f32 %v4498_v10, %v4468_v34 }
 0x259   : > { %v5614_v2 = vpop.f32.mrb[131].mxu0  ;;  %v4430_v54 = vadd.f32 %v5902_v31, %v4429_v15  ;;  %v7682_v18 = vpop.f32.mrb[12].mxu1 }
 0x25a   : > { %v5615_v41 = vadd.f32 %v5614_v2, %v5613_v48  ;;  %5245 = vst [vmem:[%s7648_s20 + $0x58] sm:$0xff] %v5198_v58   ;;  %v5910_v23 = vadd.f32 %v7726_v22, %v5612_v36  ;;  %v4500_v50 = vadd.f32 %v4499_v42, %v4469_v52  ;;  %v4201_v32 = vpop.f32.mrb[13].mxu1 }
 0x25b   : > { %v5801_v1 = vpop.f32.mrb[14].mxu1 }
 0x25c   : > { %v5911_v51 = vadd.f32 %v5910_v23, %v4185_v55  ;;  %v5916_v38 = vadd.f32 %v7727_v62, %v5615_v41  ;;  %v4204_v14 = vpop.f32.mrb[15].mxu1 }
 0x25e   : > { %v5616_v43 = vpop.f32.mrb[132].mxu0  ;;  %v4431_v3 = vadd.f32 %v5911_v51, %v4430_v54  ;;  %v4470_v26 = vmul.f32 %v5911_v51, %v5911_v51  ;;  %v5917_v19 = vadd.f32 %v5916_v38, %v4188_v30 }
 0x25f   : > { %v5617_v60 = vpop.f32.mrb[133].mxu0 }
 0x260   : > { %v5618_v46 = vadd.f32 %v5617_v60, %v5616_v43  ;;  %v5619_v39 = vpop.f32.mrb[134].mxu0  ;;  %v4501_v53 = vadd.f32 %v4500_v50, %v4470_v26  ;;  %v5203_v7 = vpack.c.bf16 %v5917_v19, %v5911_v51  ;;  %v4432_v5 = vadd.f32 %v5917_v19, %v4431_v3 }
 0x261   : > { %v5620_v63 = vpop.f32.mrb[135].mxu0  ;;  %v4471_v20 = vmul.f32 %v5917_v19, %v5917_v19 }
 0x262   : > { %v5621_v37 = vadd.f32 %v5620_v63, %v5619_v39  ;;  %v5907_v9 = vadd.f32 %v7576_v47, %v5618_v46  ;;  %5246 = vst [vmem:[%s7648_s20 + $0x60] sm:$0xff] %v5203_v7  }
 0x263   : > { %v4502_v40 = vadd.f32 %v4501_v53, %v4471_v20 }
 0x264   : > { %v5908_v4 = vadd.f32 %v5907_v9, %v5796_v8  ;;  %v5913_v24 = vadd.f32 %v7578_v49, %v5621_v37 }
 0x266   : > { %v4472_v56 = vmul.f32 %v5908_v4, %v5908_v4  ;;  %v5914_v16 = vadd.f32 %v5913_v24, %v5797_v21  ;;  %v4433_v61 = vadd.f32 %v5908_v4, %v4432_v5  ;;  %v5622_v11 = vpop.f32.mrb[136].mxu0 }
 0x267   : > { %v5623_v44 = vpop.f32.mrb[137].mxu0 }
 0x268   : > { %v5208_v0 = vpack.c.bf16 %v5914_v16, %v5908_v4  ;;  %v4473_v17 = vmul.f32 %v5914_v16, %v5914_v16  ;;  %v4503_v13 = vadd.f32 %v4502_v40, %v4472_v56  ;;  %v5624_v25 = vadd.f32 %v5623_v44, %v5622_v11  ;;  %v5625_v45 = vpop.f32.mrb[138].mxu0 }
 0x269   : > { %v5626_v27 = vpop.f32.mrb[139].mxu0  ;;  %v4434_v55 = vadd.f32 %v5914_v16, %v4433_v61 }
 0x26a   : > { %5247 = vst [vmem:[%s7648_s20 + $0x68] sm:$0xff] %v5208_v0   ;;  %v5627_v47 = vadd.f32 %v5626_v27, %v5625_v45  ;;  %v5922_v10 = vadd.f32 %v7580_v28, %v5624_v25  ;;  %v4504_v8 = vadd.f32 %v4503_v13, %v4473_v17 }
 0x26c   : > { %v5923_v35 = vadd.f32 %v5922_v10, %v4201_v32  ;;  %v5928_v49 = vadd.f32 %v7583_v29, %v5627_v47 }
 0x26e   : > { %v4435_v21 = vadd.f32 %v5923_v35, %v4434_v55  ;;  %v4474_v59 = vmul.f32 %v5923_v35, %v5923_v35  ;;  %v5929_v30 = vadd.f32 %v5928_v49, %v4204_v14  ;;  %v5628_v12 = vpop.f32.mrb[140].mxu0 }
 0x26f   : > { %v5629_v34 = vpop.f32.mrb[141].mxu0 }
 0x270   : > { %v4505_v31 = vadd.f32 %v4504_v8, %v4474_v59  ;;  %v5213_v15 = vpack.c.bf16 %v5929_v30, %v5923_v35  ;;  %v4436_v57 = vadd.f32 %v5929_v30, %v4435_v21  ;;  %v4475_v36 = vmul.f32 %v5929_v30, %v5929_v30  ;;  %v5631_v48 = vpop.f32.mrb[142].mxu0 }
 0x271   : > { %v5630_v58 = vadd.f32 %v5629_v34, %v5628_v12  ;;  %v5632_v52 = vpop.f32.mrb[143].mxu0 }
 0x272   : > { %5248 = vst [vmem:[%s7648_s20 + $0x70] sm:$0xff] %v5213_v15   ;;  %v4506_v28 = vadd.f32 %v4505_v31, %v4475_v36  ;;  %v5633_v42 = vadd.f32 %v5632_v52, %v5631_v48 }
 0x273   : > { %v5919_v2 = vadd.f32 %v7594_v6, %v5630_v58 }
 0x274   : > { %v5925_v29 = vadd.f32 %v7597_v33, %v5633_v42 }
 0x275   : > { %v5920_v54 = vadd.f32 %v5919_v2, %v7682_v18 }
 0x276   : > { %v5926_v41 = vadd.f32 %v5925_v29, %v5801_v1 }
 0x277   : > { %v4437_v22 = vadd.f32 %v5920_v54, %v4436_v57  ;;  %v4476_v23 = vmul.f32 %v5920_v54, %v5920_v54 }
 0x278   : > { %v5218_v50 = vpack.c.bf16 %v5926_v41, %v5920_v54  ;;  %v4477_v32 = vmul.f32 %v5926_v41, %v5926_v41 }
 0x279   : > { %v4507_v51 = vadd.f32 %v4506_v28, %v4476_v23  ;;  %v4438_v62 = vadd.f32 %v5926_v41, %v4437_v22 }
 0x27a   : > { %5249 = vst [vmem:[%s7648_s20 + $0x78] sm:$0xff] %v5218_v50  }
 0x27b   : > { %v4439_v38 = vrot.slane %v4438_v62, 4  ;;  %v4508_v14 = vadd.f32 %v4507_v51, %v4477_v32 }
 0x27d   : > { %v4440_v43 = vadd.f32 %v4439_v38, %v4438_v62  ;;  %v4509_v3 = vrot.slane %v4508_v14, 4 }
 0x27f   : > { %v4441_v26 = vrot.slane %v4440_v43, 2  ;;  %v4510_v6 = vadd.f32 %v4509_v3, %v4508_v14 }
 0x281   : > { %v4442_v19 = vadd.f32 %v4441_v26, %v4440_v43  ;;  %v4511_v33 = vrot.slane %v4510_v6, 2 }
 0x283   : > { %v4443_v60 = vrot.slane %v4442_v19, 1  ;;  %v4512_v18 = vadd.f32 %v4511_v33, %v4510_v6 }
 0x285   : > { %v4444_v1 = vadd.f32 %v4443_v60, %v4442_v19  ;;  %v4513_v46 = vrot.slane %v4512_v18, 1 }
 0x287   : > { %4445 = vst [vmem:[%s265_s23] sm:$0x1] %v4444_v1  ;;  %v4514_v39 = vadd.f32 %v4513_v46, %v4512_v18 }
 0x289   : > { %4515 = vst [vmem:[%s268_s26] sm:$0x1] %v4514_v39 }
 0x28a PF: > { %s17_s21 = sadd.s32 1, %s6242_s21  }
 0x28b   : > { %p14_p4 = scmp.ge.s32.totalorder %s17_s21, 4  }
 0x28d   :  { %16 = sbr.rel (!%p14_p4) target bundleno = 1 (0x1), region = 95 }

</bundles_post_ra>
